<compile_context>
chip_gen: v7x
topology: tpu7x:2x2x1
jax: 0.10.0
libtpu: 0.0.40
codegen_flags: <defaults>
</compile_context>

<pallas_src>
import numpy as np
import jax
import jax.numpy as jnp
from jax.experimental import pallas as pl
from jax.experimental.pallas import tpu as pltpu


CFG = dict(
    MODEL_ASPP_OUTDIM=32,
    MODEL_SHORTCUT_DIM=16,
    MODEL_NUM_CLASSES=8,
    BACKBONE_OUTPUT_DIM=64,
    BACKBONE_MIDDLE_DIM=24,
)
_BN_EPS = 1e-5
_LANE = 128


def _round_up(c, m=_LANE):
    return ((c + m - 1) // m) * m


# ----------------------------------------------------------------------------
# Fused conv chain kernel:
#   y = x;  for each layer:  y = [ReLU]( conv_KxK(y) * scale + bias )
# All convs stride 1, padding K//2.  One pallas_call per chain; one batch
# element per grid step; each KxK conv is a single MXU matmul on im2col
# patches built in VMEM; intermediates never leave VMEM.
# ----------------------------------------------------------------------------
def conv_chain(x, layers, out_dtype=jnp.bfloat16):
    """x: (N, H, W, Cin_p) bf16; layers: list of {K, w, s, b, relu} with
    w: (K*K*Cin_p, Cout_p) bf16 and s/b: (1, Cout_p) f32."""
    N, H, W, Cin0 = x.shape
    L = len(layers)
    Ks = [int(l["K"]) for l in layers]
    couts = [int(l["w"].shape[1]) for l in layers]
    cins = [int(l["w"].shape[0]) // (k * k) for l, k in zip(layers, Ks)]
    relus = [bool(l["relu"]) for l in layers]
    assert cins[0] == Cin0, (cins[0], Cin0)
    Cout_last = couts[-1]

    # One zero-padded VMEM halo buffer per 3x3 layer (kept f32 so the shifted
    # slices / reshapes stay on the robust 32-bit layout path; operands are
    # cast to bf16 right before the MXU matmul).
    scratch_shapes = [pltpu.VMEM((H + 2, W + 2, cins[i]), jnp.float32)
                      for i in range(L) if Ks[i] == 3]

    def kernel(*refs):
        x_ref = refs[0]
        w_refs = refs[1:1 + L]
        s_refs = refs[1 + L:1 + 2 * L]
        b_refs = refs[1 + 2 * L:1 + 3 * L]
        o_ref = refs[1 + 3 * L]
        pads = refs[2 + 3 * L:]

        cur = x_ref[0].astype(jnp.float32)                 # (H, W, Cin0)
        pad_i = 0
        y = None
        for i in range(L):
            K, cin, cout = Ks[i], cins[i], couts[i]
            if K == 3:
                xpad = pads[pad_i]
                pad_i += 1
                xpad[...] = jnp.zeros_like(xpad)           # zero halo
                xpad[1:1 + H, 1:1 + W, :] = cur            # interior
                taps = [xpad[ky:ky + H, kx:kx + W, :].reshape(H * W, cin)
                        for ky in range(3) for kx in range(3)]
                patches = jnp.concatenate(taps, axis=-1)   # (H*W, 9*cin) im2col
            else:  # 1x1 conv
                patches = cur.reshape(H * W, cin)
            # single MXU matmul per layer: bf16 operands, f32 accumulation
            acc = jnp.dot(patches.astype(jnp.bfloat16), w_refs[i][...],
                          preferred_element_type=jnp.float32)
            y = acc * s_refs[i][0] + b_refs[i][0]          # folded BN / bias (f32)
            if relus[i]:
                y = jnp.maximum(y, 0.0)
            if i + 1 < L:
                cur = y.reshape(H, W, cout)                # stays in VMEM
        o_ref[0] = y.reshape(H, W, Cout_last).astype(o_ref.dtype)

    in_specs = [pl.BlockSpec((1, H, W, Cin0), lambda n: (n, 0, 0, 0))]
    operands = [x]
    for l in layers:
        in_specs.append(pl.BlockSpec(l["w"].shape, lambda n: (0, 0)))
        operands.append(l["w"])
    for l in layers:
        in_specs.append(pl.BlockSpec(l["s"].shape, lambda n: (0, 0)))
        operands.append(l["s"])
    for l in layers:
        in_specs.append(pl.BlockSpec(l["b"].shape, lambda n: (0, 0)))
        operands.append(l["b"])

    return pl.pallas_call(
        kernel,
        out_shape=jax.ShapeDtypeStruct((N, H, W, Cout_last), out_dtype),
        grid=(N,),
        in_specs=in_specs,
        out_specs=pl.BlockSpec((1, H, W, Cout_last), lambda n: (n, 0, 0, 0)),
        scratch_shapes=scratch_shapes,
        compiler_params=pltpu.CompilerParams(
            dimension_semantics=("parallel",)),
    )(*operands)


# ----------------------------------------------------------------------------
# Fused ASPP stand-in: 1x1 branch + global-pool branch + 1x1 fuse in ONE call.
# TODO(synk): dilated-rate (6/12/18) branches of the real ASPP are not in the
#             provided source.
# ----------------------------------------------------------------------------
def aspp_forward(params, l4):
    p0, pg, po = params["aspp_b0"], params["aspp_gp"], params["aspp_out"]
    N, Hs, Ws, Cp = l4.shape
    HW = Hs * Ws
    C0 = int(p0["w"].shape[1])        # padded ASPP_OUTDIM (= 128)
    Co = int(po["w"].shape[1])

    def kernel(x_ref, w0, s0, b0, wg, sg, bg, wo, so, bo, o_ref):
        x2 = x_ref[0].astype(jnp.float32).reshape(HW, Cp)
        xb = x2.astype(jnp.bfloat16)
        # 1x1 branch
        a0 = jnp.dot(xb, w0[...], preferred_element_type=jnp.float32)
        a0 = jnp.maximum(a0 * s0[0] + b0[0], 0.0)
        # global-average-pool branch (padded channels are exact zeros)
        m = jnp.mean(x2, axis=0, keepdims=True)            # (1, Cp) f32
        g = jnp.dot(m.astype(jnp.bfloat16), wg[...],
                    preferred_element_type=jnp.float32)
        g = jnp.maximum(g * sg[0] + bg[0], 0.0)            # (1, C0)
        # fused concat + 1x1:  [a0 | broadcast(g)] @ wo = a0@wo_top + g@wo_bot
        wov = wo[...]
        acc = jnp.dot(a0.astype(jnp.bfloat16), wov[:C0, :],
                      preferred_element_type=jnp.float32)
        acc = acc + jnp.dot(g.astype(jnp.bfloat16), wov[C0:, :],
                            preferred_element_type=jnp.float32)
        y = jnp.maximum(acc * so[0] + bo[0], 0.0)
        o_ref[0] = y.reshape(Hs, Ws, Co).astype(o_ref.dtype)

    consts = (p0["w"], p0["s"], p0["b"], pg["w"], pg["s"], pg["b"],
              po["w"], po["s"], po["b"])
    in_specs = [pl.BlockSpec((1, Hs, Ws, Cp), lambda n: (n, 0, 0, 0))]
    in_specs += [pl.BlockSpec(c.shape, lambda n: (0, 0)) for c in consts]
    return pl.pallas_call(
        kernel,
        out_shape=jax.ShapeDtypeStruct((N, Hs, Ws, Co), jnp.bfloat16),
        grid=(N,),
        in_specs=in_specs,
        out_specs=pl.BlockSpec((1, Hs, Ws, Co), lambda n: (n, 0, 0, 0)),
        compiler_params=pltpu.CompilerParams(
            dimension_semantics=("parallel",)),
    )(l4, *consts)


# ----------------------------------------------------------------------------
# Bilinear resize, align_corners=True (glue: two interpolation-matrix matmuls)
# ----------------------------------------------------------------------------
def _interp_matrix(out_size, in_size):
    M = np.zeros((out_size, in_size), dtype=np.float32)
    if out_size == 1 or in_size == 1:
        M[:, 0] = 1.0
        return jnp.asarray(M)
    src = np.arange(out_size, dtype=np.float64) * (in_size - 1) / (out_size - 1)
    lo = np.clip(np.floor(src).astype(np.int64), 0, in_size - 1)
    hi = np.minimum(lo + 1, in_size - 1)
    frac = (src - lo).astype(np.float32)
    for o in range(out_size):
        M[o, lo[o]] += 1.0 - frac[o]
        M[o, hi[o]] += frac[o]
    return jnp.asarray(M)


def bilinear_resize(x, out_h, out_w):
    """x: (N, H, W, C) -> (N, out_h, out_w, C), align_corners=True."""
    _, H, W, _ = x.shape
    Ah = _interp_matrix(out_h, H)
    Aw = _interp_matrix(out_w, W)
    y = jnp.einsum('oh,nhwc->nowc', Ah, x)
    y = jnp.einsum('pw,nowc->nopc', Aw, y)
    return y


# ----------------------------------------------------------------------------
# Parameter construction (deterministic, synthetic — no checkpoint load).
# Weights are packed lane-padded: (K*K*Cin_p, Cout_p) bf16, zero in all padded
# rows/cols so padded activation channels stay exactly zero through the net.
# ----------------------------------------------------------------------------
def _make_conv(key, K, in_segments, cout, kind):
    """in_segments: [(real_c, padded_c), ...] — padded channel layout of the
    (possibly concatenated) input activation."""
    cin_p = sum(p for _, p in in_segments)
    cin_r = sum(r for r, _ in in_segments)
    cout_p = _round_up(cout)
    kw, kb = jax.random.split(key)
    w = jax.random.normal(kw, (K, K, cin_r, cout), jnp.float32) * 0.05
    wp = jnp.zeros((K, K, cin_p, cout_p), jnp.float32)
    off_r = off_p = 0
    for r, p in in_segments:
        wp = wp.at[:, :, off_p:off_p + r, :cout].set(w[:, :, off_r:off_r + r, :])
        off_r += r
        off_p += p
    wp = wp.reshape(K * K * cin_p, cout_p).astype(jnp.bfloat16)
    scale = jnp.zeros((cout_p,), jnp.float32)
    bias = jnp.zeros((cout_p,), jnp.float32)
    if kind == "bn":   # eval / freeze_bn fold: mean=0, var=1, gamma=1, beta=0
        scale = scale.at[:cout].set(1.0 / np.sqrt(1.0 + _BN_EPS))
    else:              # conv with bias (cls heads)
        scale = scale.at[:cout].set(1.0)
        bias = bias.at[:cout].set(
            jax.random.normal(kb, (cout,), jnp.float32) * 0.05)
    return dict(K=K, w=wp, s=scale.reshape(1, cout_p), b=bias.reshape(1, cout_p))


def init_params(key):
    od = CFG["BACKBONE_OUTPUT_DIM"]
    md = CFG["BACKBONE_MIDDLE_DIM"]
    ad = CFG["MODEL_ASPP_OUTDIM"]
    sd = CFG["MODEL_SHORTCUT_DIM"]
    nc = CFG["MODEL_NUM_CLASSES"]
    one = lambda c: [(c, _round_up(c))]

    specs = {
        # synthetic backbone   # TODO(synk): real backbone not in the module
        "stem":      (3, one(3),             16, "bn"),
        "layer1":    (3, one(16),            md, "bn"),
        "layer2":    (3, one(md),       od // 4, "bn"),
        "layer3":    (3, one(od // 4),  od // 2, "bn"),
        "layer4":    (3, one(od // 2),       od, "bn"),
        # ASPP stand-in
        "aspp_b0":   (1, one(od),            ad, "bn"),
        "aspp_gp":   (1, one(od),            ad, "bn"),
        "aspp_out":  (1, one(ad) + one(ad),  ad, "bn"),
        # deeplabv3plus head
        "shortcut":  (3, one(md),            sd, "bn"),
        "cat1":      (3, one(ad) + one(sd),  ad, "bn"),
        "cat2":      (3, one(ad),            ad, "bn"),
        "cls":       (1, one(ad),            nc, "bias"),
        # aux segheads
        "seg2_conv": (3, one(od // 4),       ad, "bn"),
        "seg2_cls":  (1, one(ad),            nc, "bias"),
        "seg3_conv": (3, one(od // 2),       ad, "bn"),
        "seg3_cls":  (1, one(ad),            nc, "bias"),
        "seg4_conv": (3, one(od),            ad, "bn"),
        "seg4_cls":  (1, one(ad),            nc, "bias"),
    }
    keys = jax.random.split(key, len(specs))
    return {name: _make_conv(k, K, segs, cout, kind)
            for (name, (K, segs, cout, kind)), k in zip(specs.items(), keys)}


# ----------------------------------------------------------------------------
# Forward pass of deeplabv3plusAux
# ----------------------------------------------------------------------------
def forward(params, x_nchw):
    nc = CFG["MODEL_NUM_CLASSES"]
    x = jnp.transpose(x_nchw, (0, 2, 3, 1)).astype(jnp.float32)      # NHWC
    N, H, W, C = x.shape
    x = jnp.pad(x, ((0, 0), (0, 0), (0, 0), (0, _round_up(C) - C)))  # lane pad
    x = x.astype(jnp.bfloat16)

    def L(name, relu=True):
        p = params[name]
        return dict(K=p["K"], w=p["w"], s=p["s"], b=p["b"], relu=relu)

    # TODO(synk): stride-2 is a wrapper-side slice for the synthetic backbone;
    # fold into the kernel input DMA for a real strided backbone.
    def down2(t):
        return t[:, ::2, ::2, :]

    # ---- synthetic backbone: l1..l4 feature pyramid ----
    x0 = conv_chain(down2(x), [L("stem")])          # stride 2
    l1 = conv_chain(down2(x0), [L("layer1")])       # stride 4,  MIDDLE_DIM
    l2 = conv_chain(down2(l1), [L("layer2")])       # stride 8,  OUTPUT_DIM // 4
    l3 = conv_chain(down2(l2), [L("layer3")])       # stride 16, OUTPUT_DIM // 2
    l4 = conv_chain(l3, [L("layer4")])              # stride 16, OUTPUT_DIM

    # ---- ASPP (one fused kernel) ----
    feature_aspp = aspp_forward(params, l4)

    # ---- decoder: shortcut, then cat_conv(3x3)+cat_conv(3x3)+cls(1x1) fused ----
    feature_shallow = conv_chain(l1, [L("shortcut")])
    hs, ws = feature_shallow.shape[1], feature_shallow.shape[2]
    fa = bilinear_resize(feature_aspp, hs, ws).astype(jnp.bfloat16)
    feature_cat = jnp.concatenate([fa, feature_shallow], axis=-1)    # padded concat
    result = conv_chain(feature_cat,
                        [L("cat1"), L("cat2"), L("cls", relu=False)],
                        out_dtype=jnp.float32)
    result = bilinear_resize(result[..., :nc], H, W)

    # ---- auxiliary seg heads: (3x3+BN+ReLU) fused with (1x1 cls) ----
    def seghead(conv_name, cls_name, t):
        y = conv_chain(t, [L(conv_name), L(cls_name, relu=False)],
                       out_dtype=jnp.float32)
        return bilinear_resize(y[..., :nc], H, W)

    seg2 = seghead("seg2_conv", "seg2_cls", l2)
    seg3 = seghead("seg3_conv", "seg3_cls", l3)
    seg4 = seghead("seg4_conv", "seg4_cls", l4)

    to_nchw = lambda t: jnp.transpose(t, (0, 3, 1, 2)).astype(jnp.float32)
    return [to_nchw(result), to_nchw(seg2), to_nchw(seg3), to_nchw(seg4)]


if __name__ == "__main__":
    key = jax.random.PRNGKey(0)
    k_x, k_p = jax.random.split(key)
    x = jax.random.normal(k_x, (2, 3, 32, 32), jnp.float32)   # NCHW, like PyTorch
    params = init_params(k_p)

    fwd = jax.jit(lambda inp: forward(params, inp))
    outs = fwd(x)
    for o in outs:
        jax.block_until_ready(o)

    nc = CFG["MODEL_NUM_CLASSES"]
    expected = (2, nc, 32, 32)
    assert all(tuple(o.shape) == expected for o in outs), [o.shape for o in outs]
    assert all(bool(jnp.all(jnp.isfinite(o))) for o in outs)
    print("KERNEL_OK")
</pallas_src>

<mosaic_0001>
module attributes {stable_mosaic.version = 11 : i64} {
  func.func @kernel(%arg0: i32, %arg1: memref<1x16x16x128xbf16, #tpu.memory_space<vmem>>, %arg2: memref<1152x128xbf16, #tpu.memory_space<vmem>>, %arg3: memref<1x128xf32, #tpu.memory_space<vmem>>, %arg4: memref<1x128xf32, #tpu.memory_space<vmem>>, %arg5: memref<1x16x16x128xbf16, #tpu.memory_space<vmem>>, %arg6: memref<18x18x128xf32, #tpu.memory_space<vmem>>) attributes {dimension_semantics = [#tpu.dimension_semantics<parallel>], iteration_bounds = array<i64: 2>, scalar_prefetch = 0 : i64, scratch_operands = 1 : i64, tpu.core_type = #tpu.core_type<tc>, window_params = [{transform_indices = @transform_0, window_bounds = array<i64: 1, 16, 16, 128>}, {pipeline_mode = #tpu.pipeline_mode<synchronous>, transform_indices = @transform_1, window_bounds = array<i64: 1152, 128>}, {pipeline_mode = #tpu.pipeline_mode<synchronous>, transform_indices = @transform_2, window_bounds = array<i64: 1, 128>}, {pipeline_mode = #tpu.pipeline_mode<synchronous>, transform_indices = @transform_3, window_bounds = array<i64: 1, 128>}, {transform_indices = @transform_4, window_bounds = array<i64: 1, 16, 16, 128>}]} {
    %c0 = arith.constant 0 : index
    %c0_0 = arith.constant 0 : index
    %c0_1 = arith.constant 0 : index
    %c0_2 = arith.constant 0 : index
    %0 = vector.load %arg1[%c0, %c0_0, %c0_1, %c0_2] : memref<1x16x16x128xbf16, #tpu.memory_space<vmem>>, vector<1x16x16x128xbf16>
    %1 = vector.shape_cast %0 : vector<1x16x16x128xbf16> to vector<16x16x128xbf16>
    %2 = arith.extf %1 : vector<16x16x128xbf16> to vector<16x16x128xf32>
    %cst = arith.constant 0.000000e+00 : f32
    %3 = vector.broadcast %cst : f32 to vector<18x18x128xf32>
    %c0_3 = arith.constant 0 : index
    %c0_4 = arith.constant 0 : index
    %c0_5 = arith.constant 0 : index
    %4 = vector.load %arg6[%c0_3, %c0_4, %c0_5] : memref<18x18x128xf32, #tpu.memory_space<vmem>>, vector<18x18x128xf32>
    tpu.vector_store %arg6[%c0_3, %c0_4, %c0_5], %3 {strides = array<i32>} : memref<18x18x128xf32, #tpu.memory_space<vmem>>, vector<18x18x128xf32>,
    %c1 = arith.constant 1 : index
    %c1_6 = arith.constant 1 : index
    %c0_7 = arith.constant 0 : index
    %5 = vector.load %arg6[%c1, %c1_6, %c0_7] : memref<18x18x128xf32, #tpu.memory_space<vmem>>, vector<16x16x128xf32>
    tpu.vector_store %arg6[%c1, %c1_6, %c0_7], %2 {strides = array<i32>} : memref<18x18x128xf32, #tpu.memory_space<vmem>>, vector<16x16x128xf32>,
    %c0_8 = arith.constant 0 : index
    %c0_9 = arith.constant 0 : index
    %c0_10 = arith.constant 0 : index
    %6 = vector.load %arg6[%c0_8, %c0_9, %c0_10] : memref<18x18x128xf32, #tpu.memory_space<vmem>>, vector<16x16x128xf32>
    %7 = vector.shape_cast %6 : vector<16x16x128xf32> to vector<256x128xf32>
    %c0_11 = arith.constant 0 : index
    %c1_12 = arith.constant 1 : index
    %c0_13 = arith.constant 0 : index
    %8 = vector.load %arg6[%c0_11, %c1_12, %c0_13] : memref<18x18x128xf32, #tpu.memory_space<vmem>>, vector<16x16x128xf32>
    %9 = vector.shape_cast %8 : vector<16x16x128xf32> to vector<256x128xf32>
    %c0_14 = arith.constant 0 : index
    %c2 = arith.constant 2 : index
    %c0_15 = arith.constant 0 : index
    %10 = vector.load %arg6[%c0_14, %c2, %c0_15] : memref<18x18x128xf32, #tpu.memory_space<vmem>>, vector<16x16x128xf32>
    %11 = vector.shape_cast %10 : vector<16x16x128xf32> to vector<256x128xf32>
    %c1_16 = arith.constant 1 : index
    %c0_17 = arith.constant 0 : index
    %c0_18 = arith.constant 0 : index
    %12 = vector.load %arg6[%c1_16, %c0_17, %c0_18] : memref<18x18x128xf32, #tpu.memory_space<vmem>>, vector<16x16x128xf32>
    %13 = vector.shape_cast %12 : vector<16x16x128xf32> to vector<256x128xf32>
    %c1_19 = arith.constant 1 : index
    %c1_20 = arith.constant 1 : index
    %c0_21 = arith.constant 0 : index
    %14 = vector.load %arg6[%c1_19, %c1_20, %c0_21] : memref<18x18x128xf32, #tpu.memory_space<vmem>>, vector<16x16x128xf32>
    %15 = vector.shape_cast %14 : vector<16x16x128xf32> to vector<256x128xf32>
    %c1_22 = arith.constant 1 : index
    %c2_23 = arith.constant 2 : index
    %c0_24 = arith.constant 0 : index
    %16 = vector.load %arg6[%c1_22, %c2_23, %c0_24] : memref<18x18x128xf32, #tpu.memory_space<vmem>>, vector<16x16x128xf32>
    %17 = vector.shape_cast %16 : vector<16x16x128xf32> to vector<256x128xf32>
    %c2_25 = arith.constant 2 : index
    %c0_26 = arith.constant 0 : index
    %c0_27 = arith.constant 0 : index
    %18 = vector.load %arg6[%c2_25, %c0_26, %c0_27] : memref<18x18x128xf32, #tpu.memory_space<vmem>>, vector<16x16x128xf32>
    %19 = vector.shape_cast %18 : vector<16x16x128xf32> to vector<256x128xf32>
    %c2_28 = arith.constant 2 : index
    %c1_29 = arith.constant 1 : index
    %c0_30 = arith.constant 0 : index
    %20 = vector.load %arg6[%c2_28, %c1_29, %c0_30] : memref<18x18x128xf32, #tpu.memory_space<vmem>>, vector<16x16x128xf32>
    %21 = vector.shape_cast %20 : vector<16x16x128xf32> to vector<256x128xf32>
    %c2_31 = arith.constant 2 : index
    %c2_32 = arith.constant 2 : index
    %c0_33 = arith.constant 0 : index
    %22 = vector.load %arg6[%c2_31, %c2_32, %c0_33] : memref<18x18x128xf32, #tpu.memory_space<vmem>>, vector<16x16x128xf32>
    %23 = vector.shape_cast %22 : vector<16x16x128xf32> to vector<256x128xf32>
    %24 = tpu.concatenate %7, %9, %11, %13, %15, %17, %19, %21, %23 in 1 : vector<256x128xf32>, vector<256x128xf32>, vector<256x128xf32>, vector<256x128xf32>, vector<256x128xf32>, vector<256x128xf32>, vector<256x128xf32>, vector<256x128xf32>, vector<256x128xf32> -> vector<256x1152xf32>
    %25 = arith.truncf %24 : vector<256x1152xf32> to vector<256x1152xbf16>
    %c0_34 = arith.constant 0 : index
    %c0_35 = arith.constant 0 : index
    %26 = vector.load %arg2[%c0_34, %c0_35] : memref<1152x128xbf16, #tpu.memory_space<vmem>>, vector<1152x128xbf16>
    %cst_36 = arith.constant dense<0.000000e+00> : vector<256x128xf32>
    %27 = tpu.matmul %25, %26, %cst_36 {dimension_numbers = #tpu.dot_dimension_numbers<[1], [0], [0], [1], [0, 0, 1, 1], [], []>} : vector<256x1152xbf16>, vector<1152x128xbf16>, vector<256x128xf32> -> vector<256x128xf32>
    %c0_37 = arith.constant 0 : index
    %c0_38 = arith.constant 0 : index
    %28 = vector.load %arg3[%c0_37, %c0_38] : memref<1x128xf32, #tpu.memory_space<vmem>>, vector<1x128xf32>
    %29 = vector.shape_cast %28 : vector<1x128xf32> to vector<128xf32>
    %30 = vector.shape_cast %29 : vector<128xf32> to vector<1x128xf32>
    %31 = vector.broadcast %30 : vector<1x128xf32> to vector<256x128xf32>
    %32 = arith.mulf %27, %31 : vector<256x128xf32>
    %c0_39 = arith.constant 0 : index
    %c0_40 = arith.constant 0 : index
    %33 = vector.load %arg4[%c0_39, %c0_40] : memref<1x128xf32, #tpu.memory_space<vmem>>, vector<1x128xf32>
    %34 = vector.shape_cast %33 : vector<1x128xf32> to vector<128xf32>
    %35 = vector.shape_cast %34 : vector<128xf32> to vector<1x128xf32>
    %36 = vector.broadcast %35 : vector<1x128xf32> to vector<256x128xf32>
    %37 = arith.addf %32, %36 : vector<256x128xf32>
    %cst_41 = arith.constant 0.000000e+00 : f32
    %38 = vector.broadcast %cst_41 : f32 to vector<256x128xf32>
    %39 = arith.maximumf %37, %38 : vector<256x128xf32>
    %40 = vector.shape_cast %39 : vector<256x128xf32> to vector<16x16x128xf32>
    %41 = arith.truncf %40 : vector<16x16x128xf32> to vector<16x16x128xbf16>
    %c0_42 = arith.constant 0 : index
    %c0_43 = arith.constant 0 : index
    %c0_44 = arith.constant 0 : index
    %c0_45 = arith.constant 0 : index
    %42 = vector.load %arg5[%c0_42, %c0_43, %c0_44, %c0_45] : memref<1x16x16x128xbf16, #tpu.memory_space<vmem>>, vector<1x16x16x128xbf16>
    %43 = vector.shape_cast %42 : vector<1x16x16x128xbf16> to vector<16x16x128xbf16>
    %44 = vector.shape_cast %41 : vector<16x16x128xbf16> to vector<1x16x16x128xbf16>
    tpu.vector_store %arg5[%c0_42, %c0_43, %c0_44, %c0_45], %44 {strides = array<i32>} : memref<1x16x16x128xbf16, #tpu.memory_space<vmem>>, vector<1x16x16x128xbf16>,
    return
  }
  func.func @transform_0(%arg0: i32) -> (i32, i32, i32, i32) {
    %c0_i32 = arith.constant 0 : i32
    %c0_i32_0 = arith.constant 0 : i32
    %c0_i32_1 = arith.constant 0 : i32
    %c0_i32_2 = arith.constant 0 : i32
    return %arg0, %c0_i32, %c0_i32_0, %c0_i32_1 : i32, i32, i32, i32
  }
  func.func @transform_1(%arg0: i32) -> (i32, i32) {
    %c0_i32 = arith.constant 0 : i32
    %c0_i32_0 = arith.constant 0 : i32
    %c0_i32_1 = arith.constant 0 : i32
    return %c0_i32, %c0_i32_0 : i32, i32
  }
  func.func @transform_2(%arg0: i32) -> (i32, i32) {
    %c0_i32 = arith.constant 0 : i32
    %c0_i32_0 = arith.constant 0 : i32
    %c0_i32_1 = arith.constant 0 : i32
    return %c0_i32, %c0_i32_0 : i32, i32
  }
  func.func @transform_3(%arg0: i32) -> (i32, i32) {
    %c0_i32 = arith.constant 0 : i32
    %c0_i32_0 = arith.constant 0 : i32
    %c0_i32_1 = arith.constant 0 : i32
    return %c0_i32, %c0_i32_0 : i32, i32
  }
  func.func @transform_4(%arg0: i32) -> (i32, i32, i32, i32) {
    %c0_i32 = arith.constant 0 : i32
    %c0_i32_0 = arith.constant 0 : i32
    %c0_i32_1 = arith.constant 0 : i32
    %c0_i32_2 = arith.constant 0 : i32
    return %arg0, %c0_i32, %c0_i32_0, %c0_i32_1 : i32, i32, i32, i32
  }
}

module attributes {stable_mosaic.version = 11 : i64} {
  func.func @kernel(%arg0: i32, %arg1: memref<1x8x8x128xbf16, #tpu.memory_space<vmem>>, %arg2: memref<1152x128xbf16, #tpu.memory_space<vmem>>, %arg3: memref<1x128xf32, #tpu.memory_space<vmem>>, %arg4: memref<1x128xf32, #tpu.memory_space<vmem>>, %arg5: memref<1x8x8x128xbf16, #tpu.memory_space<vmem>>, %arg6: memref<10x10x128xf32, #tpu.memory_space<vmem>>) attributes {dimension_semantics = [#tpu.dimension_semantics<parallel>], iteration_bounds = array<i64: 2>, scalar_prefetch = 0 : i64, scratch_operands = 1 : i64, tpu.core_type = #tpu.core_type<tc>, window_params = [{transform_indices = @transform_0, window_bounds = array<i64: 1, 8, 8, 128>}, {pipeline_mode = #tpu.pipeline_mode<synchronous>, transform_indices = @transform_1, window_bounds = array<i64: 1152, 128>}, {pipeline_mode = #tpu.pipeline_mode<synchronous>, transform_indices = @transform_2, window_bounds = array<i64: 1, 128>}, {pipeline_mode = #tpu.pipeline_mode<synchronous>, transform_indices = @transform_3, window_bounds = array<i64: 1, 128>}, {transform_indices = @transform_4, window_bounds = array<i64: 1, 8, 8, 128>}]} {
    %c0 = arith.constant 0 : index
    %c0_0 = arith.constant 0 : index
    %c0_1 = arith.constant 0 : index
    %c0_2 = arith.constant 0 : index
    %0 = vector.load %arg1[%c0, %c0_0, %c0_1, %c0_2] : memref<1x8x8x128xbf16, #tpu.memory_space<vmem>>, vector<1x8x8x128xbf16>
    %1 = vector.shape_cast %0 : vector<1x8x8x128xbf16> to vector<8x8x128xbf16>
    %2 = arith.extf %1 : vector<8x8x128xbf16> to vector<8x8x128xf32>
    %cst = arith.constant 0.000000e+00 : f32
    %3 = vector.broadcast %cst : f32 to vector<10x10x128xf32>
    %c0_3 = arith.constant 0 : index
    %c0_4 = arith.constant 0 : index
    %c0_5 = arith.constant 0 : index
    %4 = vector.load %arg6[%c0_3, %c0_4, %c0_5] : memref<10x10x128xf32, #tpu.memory_space<vmem>>, vector<10x10x128xf32>
    tpu.vector_store %arg6[%c0_3, %c0_4, %c0_5], %3 {strides = array<i32>} : memref<10x10x128xf32, #tpu.memory_space<vmem>>, vector<10x10x128xf32>,
    %c1 = arith.constant 1 : index
    %c1_6 = arith.constant 1 : index
    %c0_7 = arith.constant 0 : index
    %5 = vector.load %arg6[%c1, %c1_6, %c0_7] : memref<10x10x128xf32, #tpu.memory_space<vmem>>, vector<8x8x128xf32>
    tpu.vector_store %arg6[%c1, %c1_6, %c0_7], %2 {strides = array<i32>} : memref<10x10x128xf32, #tpu.memory_space<vmem>>, vector<8x8x128xf32>,
    %c0_8 = arith.constant 0 : index
    %c0_9 = arith.constant 0 : index
    %c0_10 = arith.constant 0 : index
    %6 = vector.load %arg6[%c0_8, %c0_9, %c0_10] : memref<10x10x128xf32, #tpu.memory_space<vmem>>, vector<8x8x128xf32>
    %7 = vector.shape_cast %6 : vector<8x8x128xf32> to vector<64x128xf32>
    %c0_11 = arith.constant 0 : index
    %c1_12 = arith.constant 1 : index
    %c0_13 = arith.constant 0 : index
    %8 = vector.load %arg6[%c0_11, %c1_12, %c0_13] : memref<10x10x128xf32, #tpu.memory_space<vmem>>, vector<8x8x128xf32>
    %9 = vector.shape_cast %8 : vector<8x8x128xf32> to vector<64x128xf32>
    %c0_14 = arith.constant 0 : index
    %c2 = arith.constant 2 : index
    %c0_15 = arith.constant 0 : index
    %10 = vector.load %arg6[%c0_14, %c2, %c0_15] : memref<10x10x128xf32, #tpu.memory_space<vmem>>, vector<8x8x128xf32>
    %11 = vector.shape_cast %10 : vector<8x8x128xf32> to vector<64x128xf32>
    %c1_16 = arith.constant 1 : index
    %c0_17 = arith.constant 0 : index
    %c0_18 = arith.constant 0 : index
    %12 = vector.load %arg6[%c1_16, %c0_17, %c0_18] : memref<10x10x128xf32, #tpu.memory_space<vmem>>, vector<8x8x128xf32>
    %13 = vector.shape_cast %12 : vector<8x8x128xf32> to vector<64x128xf32>
    %c1_19 = arith.constant 1 : index
    %c1_20 = arith.constant 1 : index
    %c0_21 = arith.constant 0 : index
    %14 = vector.load %arg6[%c1_19, %c1_20, %c0_21] : memref<10x10x128xf32, #tpu.memory_space<vmem>>, vector<8x8x128xf32>
    %15 = vector.shape_cast %14 : vector<8x8x128xf32> to vector<64x128xf32>
    %c1_22 = arith.constant 1 : index
    %c2_23 = arith.constant 2 : index
    %c0_24 = arith.constant 0 : index
    %16 = vector.load %arg6[%c1_22, %c2_23, %c0_24] : memref<10x10x128xf32, #tpu.memory_space<vmem>>, vector<8x8x128xf32>
    %17 = vector.shape_cast %16 : vector<8x8x128xf32> to vector<64x128xf32>
    %c2_25 = arith.constant 2 : index
    %c0_26 = arith.constant 0 : index
    %c0_27 = arith.constant 0 : index
    %18 = vector.load %arg6[%c2_25, %c0_26, %c0_27] : memref<10x10x128xf32, #tpu.memory_space<vmem>>, vector<8x8x128xf32>
    %19 = vector.shape_cast %18 : vector<8x8x128xf32> to vector<64x128xf32>
    %c2_28 = arith.constant 2 : index
    %c1_29 = arith.constant 1 : index
    %c0_30 = arith.constant 0 : index
    %20 = vector.load %arg6[%c2_28, %c1_29, %c0_30] : memref<10x10x128xf32, #tpu.memory_space<vmem>>, vector<8x8x128xf32>
    %21 = vector.shape_cast %20 : vector<8x8x128xf32> to vector<64x128xf32>
    %c2_31 = arith.constant 2 : index
    %c2_32 = arith.constant 2 : index
    %c0_33 = arith.constant 0 : index
    %22 = vector.load %arg6[%c2_31, %c2_32, %c0_33] : memref<10x10x128xf32, #tpu.memory_space<vmem>>, vector<8x8x128xf32>
    %23 = vector.shape_cast %22 : vector<8x8x128xf32> to vector<64x128xf32>
    %24 = tpu.concatenate %7, %9, %11, %13, %15, %17, %19, %21, %23 in 1 : vector<64x128xf32>, vector<64x128xf32>, vector<64x128xf32>, vector<64x128xf32>, vector<64x128xf32>, vector<64x128xf32>, vector<64x128xf32>, vector<64x128xf32>, vector<64x128xf32> -> vector<64x1152xf32>
    %25 = arith.truncf %24 : vector<64x1152xf32> to vector<64x1152xbf16>
    %c0_34 = arith.constant 0 : index
    %c0_35 = arith.constant 0 : index
    %26 = vector.load %arg2[%c0_34, %c0_35] : memref<1152x128xbf16, #tpu.memory_space<vmem>>, vector<1152x128xbf16>
    %cst_36 = arith.constant dense<0.000000e+00> : vector<64x128xf32>
    %27 = tpu.matmul %25, %26, %cst_36 {dimension_numbers = #tpu.dot_dimension_numbers<[1], [0], [0], [1], [0, 0, 1, 1], [], []>} : vector<64x1152xbf16>, vector<1152x128xbf16>, vector<64x128xf32> -> vector<64x128xf32>
    %c0_37 = arith.constant 0 : index
    %c0_38 = arith.constant 0 : index
    %28 = vector.load %arg3[%c0_37, %c0_38] : memref<1x128xf32, #tpu.memory_space<vmem>>, vector<1x128xf32>
    %29 = vector.shape_cast %28 : vector<1x128xf32> to vector<128xf32>
    %30 = vector.shape_cast %29 : vector<128xf32> to vector<1x128xf32>
    %31 = vector.broadcast %30 : vector<1x128xf32> to vector<64x128xf32>
    %32 = arith.mulf %27, %31 : vector<64x128xf32>
    %c0_39 = arith.constant 0 : index
    %c0_40 = arith.constant 0 : index
    %33 = vector.load %arg4[%c0_39, %c0_40] : memref<1x128xf32, #tpu.memory_space<vmem>>, vector<1x128xf32>
    %34 = vector.shape_cast %33 : vector<1x128xf32> to vector<128xf32>
    %35 = vector.shape_cast %34 : vector<128xf32> to vector<1x128xf32>
    %36 = vector.broadcast %35 : vector<1x128xf32> to vector<64x128xf32>
    %37 = arith.addf %32, %36 : vector<64x128xf32>
    %cst_41 = arith.constant 0.000000e+00 : f32
    %38 = vector.broadcast %cst_41 : f32 to vector<64x128xf32>
    %39 = arith.maximumf %37, %38 : vector<64x128xf32>
    %40 = vector.shape_cast %39 : vector<64x128xf32> to vector<8x8x128xf32>
    %41 = arith.truncf %40 : vector<8x8x128xf32> to vector<8x8x128xbf16>
    %c0_42 = arith.constant 0 : index
    %c0_43 = arith.constant 0 : index
    %c0_44 = arith.constant 0 : index
    %c0_45 = arith.constant 0 : index
    %42 = vector.load %arg5[%c0_42, %c0_43, %c0_44, %c0_45] : memref<1x8x8x128xbf16, #tpu.memory_space<vmem>>, vector<1x8x8x128xbf16>
    %43 = vector.shape_cast %42 : vector<1x8x8x128xbf16> to vector<8x8x128xbf16>
    %44 = vector.shape_cast %41 : vector<8x8x128xbf16> to vector<1x8x8x128xbf16>
    tpu.vector_store %arg5[%c0_42, %c0_43, %c0_44, %c0_45], %44 {strides = array<i32>} : memref<1x8x8x128xbf16, #tpu.memory_space<vmem>>, vector<1x8x8x128xbf16>,
    return
  }
  func.func @transform_0(%arg0: i32) -> (i32, i32, i32, i32) {
    %c0_i32 = arith.constant 0 : i32
    %c0_i32_0 = arith.constant 0 : i32
    %c0_i32_1 = arith.constant 0 : i32
    %c0_i32_2 = arith.constant 0 : i32
    return %arg0, %c0_i32, %c0_i32_0, %c0_i32_1 : i32, i32, i32, i32
  }
  func.func @transform_1(%arg0: i32) -> (i32, i32) {
    %c0_i32 = arith.constant 0 : i32
    %c0_i32_0 = arith.constant 0 : i32
    %c0_i32_1 = arith.constant 0 : i32
    return %c0_i32, %c0_i32_0 : i32, i32
  }
  func.func @transform_2(%arg0: i32) -> (i32, i32) {
    %c0_i32 = arith.constant 0 : i32
    %c0_i32_0 = arith.constant 0 : i32
    %c0_i32_1 = arith.constant 0 : i32
    return %c0_i32, %c0_i32_0 : i32, i32
  }
  func.func @transform_3(%arg0: i32) -> (i32, i32) {
    %c0_i32 = arith.constant 0 : i32
    %c0_i32_0 = arith.constant 0 : i32
    %c0_i32_1 = arith.constant 0 : i32
    return %c0_i32, %c0_i32_0 : i32, i32
  }
  func.func @transform_4(%arg0: i32) -> (i32, i32, i32, i32) {
    %c0_i32 = arith.constant 0 : i32
    %c0_i32_0 = arith.constant 0 : i32
    %c0_i32_1 = arith.constant 0 : i32
    %c0_i32_2 = arith.constant 0 : i32
    return %arg0, %c0_i32, %c0_i32_0, %c0_i32_1 : i32, i32, i32, i32
  }
}

module attributes {stable_mosaic.version = 11 : i64} {
  func.func @kernel(%arg0: i32, %arg1: memref<1x4x4x128xbf16, #tpu.memory_space<vmem>>, %arg2: memref<1152x128xbf16, #tpu.memory_space<vmem>>, %arg3: memref<1x128xf32, #tpu.memory_space<vmem>>, %arg4: memref<1x128xf32, #tpu.memory_space<vmem>>, %arg5: memref<1x4x4x128xbf16, #tpu.memory_space<vmem>>, %arg6: memref<6x6x128xf32, #tpu.memory_space<vmem>>) attributes {dimension_semantics = [#tpu.dimension_semantics<parallel>], iteration_bounds = array<i64: 2>, scalar_prefetch = 0 : i64, scratch_operands = 1 : i64, tpu.core_type = #tpu.core_type<tc>, window_params = [{transform_indices = @transform_0, window_bounds = array<i64: 1, 4, 4, 128>}, {pipeline_mode = #tpu.pipeline_mode<synchronous>, transform_indices = @transform_1, window_bounds = array<i64: 1152, 128>}, {pipeline_mode = #tpu.pipeline_mode<synchronous>, transform_indices = @transform_2, window_bounds = array<i64: 1, 128>}, {pipeline_mode = #tpu.pipeline_mode<synchronous>, transform_indices = @transform_3, window_bounds = array<i64: 1, 128>}, {transform_indices = @transform_4, window_bounds = array<i64: 1, 4, 4, 128>}]} {
    %c0 = arith.constant 0 : index
    %c0_0 = arith.constant 0 : index
    %c0_1 = arith.constant 0 : index
    %c0_2 = arith.constant 0 : index
    %0 = vector.load %arg1[%c0, %c0_0, %c0_1, %c0_2] : memref<1x4x4x128xbf16, #tpu.memory_space<vmem>>, vector<1x4x4x128xbf16>
    %1 = vector.shape_cast %0 : vector<1x4x4x128xbf16> to vector<4x4x128xbf16>
    %2 = arith.extf %1 : vector<4x4x128xbf16> to vector<4x4x128xf32>
    %cst = arith.constant 0.000000e+00 : f32
    %3 = vector.broadcast %cst : f32 to vector<6x6x128xf32>
    %c0_3 = arith.constant 0 : index
    %c0_4 = arith.constant 0 : index
    %c0_5 = arith.constant 0 : index
    %4 = vector.load %arg6[%c0_3, %c0_4, %c0_5] : memref<6x6x128xf32, #tpu.memory_space<vmem>>, vector<6x6x128xf32>
    tpu.vector_store %arg6[%c0_3, %c0_4, %c0_5], %3 {strides = array<i32>} : memref<6x6x128xf32, #tpu.memory_space<vmem>>, vector<6x6x128xf32>,
    %c1 = arith.constant 1 : index
    %c1_6 = arith.constant 1 : index
    %c0_7 = arith.constant 0 : index
    %5 = vector.load %arg6[%c1, %c1_6, %c0_7] : memref<6x6x128xf32, #tpu.memory_space<vmem>>, vector<4x4x128xf32>
    tpu.vector_store %arg6[%c1, %c1_6, %c0_7], %2 {strides = array<i32>} : memref<6x6x128xf32, #tpu.memory_space<vmem>>, vector<4x4x128xf32>,
    %c0_8 = arith.constant 0 : index
    %c0_9 = arith.constant 0 : index
    %c0_10 = arith.constant 0 : index
    %6 = vector.load %arg6[%c0_8, %c0_9, %c0_10] : memref<6x6x128xf32, #tpu.memory_space<vmem>>, vector<4x4x128xf32>
    %7 = vector.shape_cast %6 : vector<4x4x128xf32> to vector<16x128xf32>
    %c0_11 = arith.constant 0 : index
    %c1_12 = arith.constant 1 : index
    %c0_13 = arith.constant 0 : index
    %8 = vector.load %arg6[%c0_11, %c1_12, %c0_13] : memref<6x6x128xf32, #tpu.memory_space<vmem>>, vector<4x4x128xf32>
    %9 = vector.shape_cast %8 : vector<4x4x128xf32> to vector<16x128xf32>
    %c0_14 = arith.constant 0 : index
    %c2 = arith.constant 2 : index
    %c0_15 = arith.constant 0 : index
    %10 = vector.load %arg6[%c0_14, %c2, %c0_15] : memref<6x6x128xf32, #tpu.memory_space<vmem>>, vector<4x4x128xf32>
    %11 = vector.shape_cast %10 : vector<4x4x128xf32> to vector<16x128xf32>
    %c1_16 = arith.constant 1 : index
    %c0_17 = arith.constant 0 : index
    %c0_18 = arith.constant 0 : index
    %12 = vector.load %arg6[%c1_16, %c0_17, %c0_18] : memref<6x6x128xf32, #tpu.memory_space<vmem>>, vector<4x4x128xf32>
    %13 = vector.shape_cast %12 : vector<4x4x128xf32> to vector<16x128xf32>
    %c1_19 = arith.constant 1 : index
    %c1_20 = arith.constant 1 : index
    %c0_21 = arith.constant 0 : index
    %14 = vector.load %arg6[%c1_19, %c1_20, %c0_21] : memref<6x6x128xf32, #tpu.memory_space<vmem>>, vector<4x4x128xf32>
    %15 = vector.shape_cast %14 : vector<4x4x128xf32> to vector<16x128xf32>
    %c1_22 = arith.constant 1 : index
    %c2_23 = arith.constant 2 : index
    %c0_24 = arith.constant 0 : index
    %16 = vector.load %arg6[%c1_22, %c2_23, %c0_24] : memref<6x6x128xf32, #tpu.memory_space<vmem>>, vector<4x4x128xf32>
    %17 = vector.shape_cast %16 : vector<4x4x128xf32> to vector<16x128xf32>
    %c2_25 = arith.constant 2 : index
    %c0_26 = arith.constant 0 : index
    %c0_27 = arith.constant 0 : index
    %18 = vector.load %arg6[%c2_25, %c0_26, %c0_27] : memref<6x6x128xf32, #tpu.memory_space<vmem>>, vector<4x4x128xf32>
    %19 = vector.shape_cast %18 : vector<4x4x128xf32> to vector<16x128xf32>
    %c2_28 = arith.constant 2 : index
    %c1_29 = arith.constant 1 : index
    %c0_30 = arith.constant 0 : index
    %20 = vector.load %arg6[%c2_28, %c1_29, %c0_30] : memref<6x6x128xf32, #tpu.memory_space<vmem>>, vector<4x4x128xf32>
    %21 = vector.shape_cast %20 : vector<4x4x128xf32> to vector<16x128xf32>
    %c2_31 = arith.constant 2 : index
    %c2_32 = arith.constant 2 : index
    %c0_33 = arith.constant 0 : index
    %22 = vector.load %arg6[%c2_31, %c2_32, %c0_33] : memref<6x6x128xf32, #tpu.memory_space<vmem>>, vector<4x4x128xf32>
    %23 = vector.shape_cast %22 : vector<4x4x128xf32> to vector<16x128xf32>
    %24 = tpu.concatenate %7, %9, %11, %13, %15, %17, %19, %21, %23 in 1 : vector<16x128xf32>, vector<16x128xf32>, vector<16x128xf32>, vector<16x128xf32>, vector<16x128xf32>, vector<16x128xf32>, vector<16x128xf32>, vector<16x128xf32>, vector<16x128xf32> -> vector<16x1152xf32>
    %25 = arith.truncf %24 : vector<16x1152xf32> to vector<16x1152xbf16>
    %c0_34 = arith.constant 0 : index
    %c0_35 = arith.constant 0 : index
    %26 = vector.load %arg2[%c0_34, %c0_35] : memref<1152x128xbf16, #tpu.memory_space<vmem>>, vector<1152x128xbf16>
    %cst_36 = arith.constant dense<0.000000e+00> : vector<16x128xf32>
    %27 = tpu.matmul %25, %26, %cst_36 {dimension_numbers = #tpu.dot_dimension_numbers<[1], [0], [0], [1], [0, 0, 1, 1], [], []>} : vector<16x1152xbf16>, vector<1152x128xbf16>, vector<16x128xf32> -> vector<16x128xf32>
    %c0_37 = arith.constant 0 : index
    %c0_38 = arith.constant 0 : index
    %28 = vector.load %arg3[%c0_37, %c0_38] : memref<1x128xf32, #tpu.memory_space<vmem>>, vector<1x128xf32>
    %29 = vector.shape_cast %28 : vector<1x128xf32> to vector<128xf32>
    %30 = vector.shape_cast %29 : vector<128xf32> to vector<1x128xf32>
    %31 = vector.broadcast %30 : vector<1x128xf32> to vector<16x128xf32>
    %32 = arith.mulf %27, %31 : vector<16x128xf32>
    %c0_39 = arith.constant 0 : index
    %c0_40 = arith.constant 0 : index
    %33 = vector.load %arg4[%c0_39, %c0_40] : memref<1x128xf32, #tpu.memory_space<vmem>>, vector<1x128xf32>
    %34 = vector.shape_cast %33 : vector<1x128xf32> to vector<128xf32>
    %35 = vector.shape_cast %34 : vector<128xf32> to vector<1x128xf32>
    %36 = vector.broadcast %35 : vector<1x128xf32> to vector<16x128xf32>
    %37 = arith.addf %32, %36 : vector<16x128xf32>
    %cst_41 = arith.constant 0.000000e+00 : f32
    %38 = vector.broadcast %cst_41 : f32 to vector<16x128xf32>
    %39 = arith.maximumf %37, %38 : vector<16x128xf32>
    %40 = vector.shape_cast %39 : vector<16x128xf32> to vector<4x4x128xf32>
    %41 = arith.truncf %40 : vector<4x4x128xf32> to vector<4x4x128xbf16>
    %c0_42 = arith.constant 0 : index
    %c0_43 = arith.constant 0 : index
    %c0_44 = arith.constant 0 : index
    %c0_45 = arith.constant 0 : index
    %42 = vector.load %arg5[%c0_42, %c0_43, %c0_44, %c0_45] : memref<1x4x4x128xbf16, #tpu.memory_space<vmem>>, vector<1x4x4x128xbf16>
    %43 = vector.shape_cast %42 : vector<1x4x4x128xbf16> to vector<4x4x128xbf16>
    %44 = vector.shape_cast %41 : vector<4x4x128xbf16> to vector<1x4x4x128xbf16>
    tpu.vector_store %arg5[%c0_42, %c0_43, %c0_44, %c0_45], %44 {strides = array<i32>} : memref<1x4x4x128xbf16, #tpu.memory_space<vmem>>, vector<1x4x4x128xbf16>,
    return
  }
  func.func @transform_0(%arg0: i32) -> (i32, i32, i32, i32) {
    %c0_i32 = arith.constant 0 : i32
    %c0_i32_0 = arith.constant 0 : i32
    %c0_i32_1 = arith.constant 0 : i32
    %c0_i32_2 = arith.constant 0 : i32
    return %arg0, %c0_i32, %c0_i32_0, %c0_i32_1 : i32, i32, i32, i32
  }
  func.func @transform_1(%arg0: i32) -> (i32, i32) {
    %c0_i32 = arith.constant 0 : i32
    %c0_i32_0 = arith.constant 0 : i32
    %c0_i32_1 = arith.constant 0 : i32
    return %c0_i32, %c0_i32_0 : i32, i32
  }
  func.func @transform_2(%arg0: i32) -> (i32, i32) {
    %c0_i32 = arith.constant 0 : i32
    %c0_i32_0 = arith.constant 0 : i32
    %c0_i32_1 = arith.constant 0 : i32
    return %c0_i32, %c0_i32_0 : i32, i32
  }
  func.func @transform_3(%arg0: i32) -> (i32, i32) {
    %c0_i32 = arith.constant 0 : i32
    %c0_i32_0 = arith.constant 0 : i32
    %c0_i32_1 = arith.constant 0 : i32
    return %c0_i32, %c0_i32_0 : i32, i32
  }
  func.func @transform_4(%arg0: i32) -> (i32, i32, i32, i32) {
    %c0_i32 = arith.constant 0 : i32
    %c0_i32_0 = arith.constant 0 : i32
    %c0_i32_1 = arith.constant 0 : i32
    %c0_i32_2 = arith.constant 0 : i32
    return %arg0, %c0_i32, %c0_i32_0, %c0_i32_1 : i32, i32, i32, i32
  }
}

module attributes {stable_mosaic.version = 11 : i64} {
  func.func @kernel(%arg0: i32, %arg1: memref<1x2x2x128xbf16, #tpu.memory_space<vmem>>, %arg2: memref<1152x128xbf16, #tpu.memory_space<vmem>>, %arg3: memref<1x128xf32, #tpu.memory_space<vmem>>, %arg4: memref<1x128xf32, #tpu.memory_space<vmem>>, %arg5: memref<1x2x2x128xbf16, #tpu.memory_space<vmem>>, %arg6: memref<4x4x128xf32, #tpu.memory_space<vmem>>) attributes {dimension_semantics = [#tpu.dimension_semantics<parallel>], iteration_bounds = array<i64: 2>, scalar_prefetch = 0 : i64, scratch_operands = 1 : i64, tpu.core_type = #tpu.core_type<tc>, window_params = [{transform_indices = @transform_0, window_bounds = array<i64: 1, 2, 2, 128>}, {pipeline_mode = #tpu.pipeline_mode<synchronous>, transform_indices = @transform_1, window_bounds = array<i64: 1152, 128>}, {pipeline_mode = #tpu.pipeline_mode<synchronous>, transform_indices = @transform_2, window_bounds = array<i64: 1, 128>}, {pipeline_mode = #tpu.pipeline_mode<synchronous>, transform_indices = @transform_3, window_bounds = array<i64: 1, 128>}, {transform_indices = @transform_4, window_bounds = array<i64: 1, 2, 2, 128>}]} {
    %c0 = arith.constant 0 : index
    %c0_0 = arith.constant 0 : index
    %c0_1 = arith.constant 0 : index
    %c0_2 = arith.constant 0 : index
    %0 = vector.load %arg1[%c0, %c0_0, %c0_1, %c0_2] : memref<1x2x2x128xbf16, #tpu.memory_space<vmem>>, vector<1x2x2x128xbf16>
    %1 = vector.shape_cast %0 : vector<1x2x2x128xbf16> to vector<2x2x128xbf16>
    %2 = arith.extf %1 : vector<2x2x128xbf16> to vector<2x2x128xf32>
    %cst = arith.constant 0.000000e+00 : f32
    %3 = vector.broadcast %cst : f32 to vector<4x4x128xf32>
    %c0_3 = arith.constant 0 : index
    %c0_4 = arith.constant 0 : index
    %c0_5 = arith.constant 0 : index
    %4 = vector.load %arg6[%c0_3, %c0_4, %c0_5] : memref<4x4x128xf32, #tpu.memory_space<vmem>>, vector<4x4x128xf32>
    tpu.vector_store %arg6[%c0_3, %c0_4, %c0_5], %3 {strides = array<i32>} : memref<4x4x128xf32, #tpu.memory_space<vmem>>, vector<4x4x128xf32>,
    %c1 = arith.constant 1 : index
    %c1_6 = arith.constant 1 : index
    %c0_7 = arith.constant 0 : index
    %5 = vector.load %arg6[%c1, %c1_6, %c0_7] : memref<4x4x128xf32, #tpu.memory_space<vmem>>, vector<2x2x128xf32>
    tpu.vector_store %arg6[%c1, %c1_6, %c0_7], %2 {strides = array<i32>} : memref<4x4x128xf32, #tpu.memory_space<vmem>>, vector<2x2x128xf32>,
    %c0_8 = arith.constant 0 : index
    %c0_9 = arith.constant 0 : index
    %c0_10 = arith.constant 0 : index
    %6 = vector.load %arg6[%c0_8, %c0_9, %c0_10] : memref<4x4x128xf32, #tpu.memory_space<vmem>>, vector<2x2x128xf32>
    %7 = vector.shape_cast %6 : vector<2x2x128xf32> to vector<4x128xf32>
    %c0_11 = arith.constant 0 : index
    %c1_12 = arith.constant 1 : index
    %c0_13 = arith.constant 0 : index
    %8 = vector.load %arg6[%c0_11, %c1_12, %c0_13] : memref<4x4x128xf32, #tpu.memory_space<vmem>>, vector<2x2x128xf32>
    %9 = vector.shape_cast %8 : vector<2x2x128xf32> to vector<4x128xf32>
    %c0_14 = arith.constant 0 : index
    %c2 = arith.constant 2 : index
    %c0_15 = arith.constant 0 : index
    %10 = vector.load %arg6[%c0_14, %c2, %c0_15] : memref<4x4x128xf32, #tpu.memory_space<vmem>>, vector<2x2x128xf32>
    %11 = vector.shape_cast %10 : vector<2x2x128xf32> to vector<4x128xf32>
    %c1_16 = arith.constant 1 : index
    %c0_17 = arith.constant 0 : index
    %c0_18 = arith.constant 0 : index
    %12 = vector.load %arg6[%c1_16, %c0_17, %c0_18] : memref<4x4x128xf32, #tpu.memory_space<vmem>>, vector<2x2x128xf32>
    %13 = vector.shape_cast %12 : vector<2x2x128xf32> to vector<4x128xf32>
    %c1_19 = arith.constant 1 : index
    %c1_20 = arith.constant 1 : index
    %c0_21 = arith.constant 0 : index
    %14 = vector.load %arg6[%c1_19, %c1_20, %c0_21] : memref<4x4x128xf32, #tpu.memory_space<vmem>>, vector<2x2x128xf32>
    %15 = vector.shape_cast %14 : vector<2x2x128xf32> to vector<4x128xf32>
    %c1_22 = arith.constant 1 : index
    %c2_23 = arith.constant 2 : index
    %c0_24 = arith.constant 0 : index
    %16 = vector.load %arg6[%c1_22, %c2_23, %c0_24] : memref<4x4x128xf32, #tpu.memory_space<vmem>>, vector<2x2x128xf32>
    %17 = vector.shape_cast %16 : vector<2x2x128xf32> to vector<4x128xf32>
    %c2_25 = arith.constant 2 : index
    %c0_26 = arith.constant 0 : index
    %c0_27 = arith.constant 0 : index
    %18 = vector.load %arg6[%c2_25, %c0_26, %c0_27] : memref<4x4x128xf32, #tpu.memory_space<vmem>>, vector<2x2x128xf32>
    %19 = vector.shape_cast %18 : vector<2x2x128xf32> to vector<4x128xf32>
    %c2_28 = arith.constant 2 : index
    %c1_29 = arith.constant 1 : index
    %c0_30 = arith.constant 0 : index
    %20 = vector.load %arg6[%c2_28, %c1_29, %c0_30] : memref<4x4x128xf32, #tpu.memory_space<vmem>>, vector<2x2x128xf32>
    %21 = vector.shape_cast %20 : vector<2x2x128xf32> to vector<4x128xf32>
    %c2_31 = arith.constant 2 : index
    %c2_32 = arith.constant 2 : index
    %c0_33 = arith.constant 0 : index
    %22 = vector.load %arg6[%c2_31, %c2_32, %c0_33] : memref<4x4x128xf32, #tpu.memory_space<vmem>>, vector<2x2x128xf32>
    %23 = vector.shape_cast %22 : vector<2x2x128xf32> to vector<4x128xf32>
    %24 = tpu.concatenate %7, %9, %11, %13, %15, %17, %19, %21, %23 in 1 : vector<4x128xf32>, vector<4x128xf32>, vector<4x128xf32>, vector<4x128xf32>, vector<4x128xf32>, vector<4x128xf32>, vector<4x128xf32>, vector<4x128xf32>, vector<4x128xf32> -> vector<4x1152xf32>
    %25 = arith.truncf %24 : vector<4x1152xf32> to vector<4x1152xbf16>
    %c0_34 = arith.constant 0 : index
    %c0_35 = arith.constant 0 : index
    %26 = vector.load %arg2[%c0_34, %c0_35] : memref<1152x128xbf16, #tpu.memory_space<vmem>>, vector<1152x128xbf16>
    %cst_36 = arith.constant dense<0.000000e+00> : vector<4x128xf32>
    %27 = tpu.matmul %25, %26, %cst_36 {dimension_numbers = #tpu.dot_dimension_numbers<[1], [0], [0], [1], [0, 0, 1, 1], [], []>} : vector<4x1152xbf16>, vector<1152x128xbf16>, vector<4x128xf32> -> vector<4x128xf32>
    %c0_37 = arith.constant 0 : index
    %c0_38 = arith.constant 0 : index
    %28 = vector.load %arg3[%c0_37, %c0_38] : memref<1x128xf32, #tpu.memory_space<vmem>>, vector<1x128xf32>
    %29 = vector.shape_cast %28 : vector<1x128xf32> to vector<128xf32>
    %30 = vector.shape_cast %29 : vector<128xf32> to vector<1x128xf32>
    %31 = vector.broadcast %30 : vector<1x128xf32> to vector<4x128xf32>
    %32 = arith.mulf %27, %31 : vector<4x128xf32>
    %c0_39 = arith.constant 0 : index
    %c0_40 = arith.constant 0 : index
    %33 = vector.load %arg4[%c0_39, %c0_40] : memref<1x128xf32, #tpu.memory_space<vmem>>, vector<1x128xf32>
    %34 = vector.shape_cast %33 : vector<1x128xf32> to vector<128xf32>
    %35 = vector.shape_cast %34 : vector<128xf32> to vector<1x128xf32>
    %36 = vector.broadcast %35 : vector<1x128xf32> to vector<4x128xf32>
    %37 = arith.addf %32, %36 : vector<4x128xf32>
    %cst_41 = arith.constant 0.000000e+00 : f32
    %38 = vector.broadcast %cst_41 : f32 to vector<4x128xf32>
    %39 = arith.maximumf %37, %38 : vector<4x128xf32>
    %40 = vector.shape_cast %39 : vector<4x128xf32> to vector<2x2x128xf32>
    %41 = arith.truncf %40 : vector<2x2x128xf32> to vector<2x2x128xbf16>
    %c0_42 = arith.constant 0 : index
    %c0_43 = arith.constant 0 : index
    %c0_44 = arith.constant 0 : index
    %c0_45 = arith.constant 0 : index
    %42 = vector.load %arg5[%c0_42, %c0_43, %c0_44, %c0_45] : memref<1x2x2x128xbf16, #tpu.memory_space<vmem>>, vector<1x2x2x128xbf16>
    %43 = vector.shape_cast %42 : vector<1x2x2x128xbf16> to vector<2x2x128xbf16>
    %44 = vector.shape_cast %41 : vector<2x2x128xbf16> to vector<1x2x2x128xbf16>
    tpu.vector_store %arg5[%c0_42, %c0_43, %c0_44, %c0_45], %44 {strides = array<i32>} : memref<1x2x2x128xbf16, #tpu.memory_space<vmem>>, vector<1x2x2x128xbf16>,
    return
  }
  func.func @transform_0(%arg0: i32) -> (i32, i32, i32, i32) {
    %c0_i32 = arith.constant 0 : i32
    %c0_i32_0 = arith.constant 0 : i32
    %c0_i32_1 = arith.constant 0 : i32
    %c0_i32_2 = arith.constant 0 : i32
    return %arg0, %c0_i32, %c0_i32_0, %c0_i32_1 : i32, i32, i32, i32
  }
  func.func @transform_1(%arg0: i32) -> (i32, i32) {
    %c0_i32 = arith.constant 0 : i32
    %c0_i32_0 = arith.constant 0 : i32
    %c0_i32_1 = arith.constant 0 : i32
    return %c0_i32, %c0_i32_0 : i32, i32
  }
  func.func @transform_2(%arg0: i32) -> (i32, i32) {
    %c0_i32 = arith.constant 0 : i32
    %c0_i32_0 = arith.constant 0 : i32
    %c0_i32_1 = arith.constant 0 : i32
    return %c0_i32, %c0_i32_0 : i32, i32
  }
  func.func @transform_3(%arg0: i32) -> (i32, i32) {
    %c0_i32 = arith.constant 0 : i32
    %c0_i32_0 = arith.constant 0 : i32
    %c0_i32_1 = arith.constant 0 : i32
    return %c0_i32, %c0_i32_0 : i32, i32
  }
  func.func @transform_4(%arg0: i32) -> (i32, i32, i32, i32) {
    %c0_i32 = arith.constant 0 : i32
    %c0_i32_0 = arith.constant 0 : i32
    %c0_i32_1 = arith.constant 0 : i32
    %c0_i32_2 = arith.constant 0 : i32
    return %arg0, %c0_i32, %c0_i32_0, %c0_i32_1 : i32, i32, i32, i32
  }
}

module attributes {stable_mosaic.version = 11 : i64} {
  func.func @kernel(%arg0: i32, %arg1: memref<1x2x2x128xbf16, #tpu.memory_space<vmem>>, %arg2: memref<1152x128xbf16, #tpu.memory_space<vmem>>, %arg3: memref<128x128xbf16, #tpu.memory_space<vmem>>, %arg4: memref<1x128xf32, #tpu.memory_space<vmem>>, %arg5: memref<1x128xf32, #tpu.memory_space<vmem>>, %arg6: memref<1x128xf32, #tpu.memory_space<vmem>>, %arg7: memref<1x128xf32, #tpu.memory_space<vmem>>, %arg8: memref<1x2x2x128xf32, #tpu.memory_space<vmem>>, %arg9: memref<4x4x128xf32, #tpu.memory_space<vmem>>) attributes {dimension_semantics = [#tpu.dimension_semantics<parallel>], iteration_bounds = array<i64: 2>, scalar_prefetch = 0 : i64, scratch_operands = 1 : i64, tpu.core_type = #tpu.core_type<tc>, window_params = [{transform_indices = @transform_0, window_bounds = array<i64: 1, 2, 2, 128>}, {pipeline_mode = #tpu.pipeline_mode<synchronous>, transform_indices = @transform_1, window_bounds = array<i64: 1152, 128>}, {pipeline_mode = #tpu.pipeline_mode<synchronous>, transform_indices = @transform_2, window_bounds = array<i64: 128, 128>}, {pipeline_mode = #tpu.pipeline_mode<synchronous>, transform_indices = @transform_3, window_bounds = array<i64: 1, 128>}, {pipeline_mode = #tpu.pipeline_mode<synchronous>, transform_indices = @transform_4, window_bounds = array<i64: 1, 128>}, {pipeline_mode = #tpu.pipeline_mode<synchronous>, transform_indices = @transform_5, window_bounds = array<i64: 1, 128>}, {pipeline_mode = #tpu.pipeline_mode<synchronous>, transform_indices = @transform_6, window_bounds = array<i64: 1, 128>}, {transform_indices = @transform_7, window_bounds = array<i64: 1, 2, 2, 128>}]} {
    %c0 = arith.constant 0 : index
    %c0_0 = arith.constant 0 : index
    %c0_1 = arith.constant 0 : index
    %c0_2 = arith.constant 0 : index
    %0 = vector.load %arg1[%c0, %c0_0, %c0_1, %c0_2] : memref<1x2x2x128xbf16, #tpu.memory_space<vmem>>, vector<1x2x2x128xbf16>
    %1 = vector.shape_cast %0 : vector<1x2x2x128xbf16> to vector<2x2x128xbf16>
    %2 = arith.extf %1 : vector<2x2x128xbf16> to vector<2x2x128xf32>
    %cst = arith.constant 0.000000e+00 : f32
    %3 = vector.broadcast %cst : f32 to vector<4x4x128xf32>
    %c0_3 = arith.constant 0 : index
    %c0_4 = arith.constant 0 : index
    %c0_5 = arith.constant 0 : index
    %4 = vector.load %arg9[%c0_3, %c0_4, %c0_5] : memref<4x4x128xf32, #tpu.memory_space<vmem>>, vector<4x4x128xf32>
    tpu.vector_store %arg9[%c0_3, %c0_4, %c0_5], %3 {strides = array<i32>} : memref<4x4x128xf32, #tpu.memory_space<vmem>>, vector<4x4x128xf32>,
    %c1 = arith.constant 1 : index
    %c1_6 = arith.constant 1 : index
    %c0_7 = arith.constant 0 : index
    %5 = vector.load %arg9[%c1, %c1_6, %c0_7] : memref<4x4x128xf32, #tpu.memory_space<vmem>>, vector<2x2x128xf32>
    tpu.vector_store %arg9[%c1, %c1_6, %c0_7], %2 {strides = array<i32>} : memref<4x4x128xf32, #tpu.memory_space<vmem>>, vector<2x2x128xf32>,
    %c0_8 = arith.constant 0 : index
    %c0_9 = arith.constant 0 : index
    %c0_10 = arith.constant 0 : index
    %6 = vector.load %arg9[%c0_8, %c0_9, %c0_10] : memref<4x4x128xf32, #tpu.memory_space<vmem>>, vector<2x2x128xf32>
    %7 = vector.shape_cast %6 : vector<2x2x128xf32> to vector<4x128xf32>
    %c0_11 = arith.constant 0 : index
    %c1_12 = arith.constant 1 : index
    %c0_13 = arith.constant 0 : index
    %8 = vector.load %arg9[%c0_11, %c1_12, %c0_13] : memref<4x4x128xf32, #tpu.memory_space<vmem>>, vector<2x2x128xf32>
    %9 = vector.shape_cast %8 : vector<2x2x128xf32> to vector<4x128xf32>
    %c0_14 = arith.constant 0 : index
    %c2 = arith.constant 2 : index
    %c0_15 = arith.constant 0 : index
    %10 = vector.load %arg9[%c0_14, %c2, %c0_15] : memref<4x4x128xf32, #tpu.memory_space<vmem>>, vector<2x2x128xf32>
    %11 = vector.shape_cast %10 : vector<2x2x128xf32> to vector<4x128xf32>
    %c1_16 = arith.constant 1 : index
    %c0_17 = arith.constant 0 : index
    %c0_18 = arith.constant 0 : index
    %12 = vector.load %arg9[%c1_16, %c0_17, %c0_18] : memref<4x4x128xf32, #tpu.memory_space<vmem>>, vector<2x2x128xf32>
    %13 = vector.shape_cast %12 : vector<2x2x128xf32> to vector<4x128xf32>
    %c1_19 = arith.constant 1 : index
    %c1_20 = arith.constant 1 : index
    %c0_21 = arith.constant 0 : index
    %14 = vector.load %arg9[%c1_19, %c1_20, %c0_21] : memref<4x4x128xf32, #tpu.memory_space<vmem>>, vector<2x2x128xf32>
    %15 = vector.shape_cast %14 : vector<2x2x128xf32> to vector<4x128xf32>
    %c1_22 = arith.constant 1 : index
    %c2_23 = arith.constant 2 : index
    %c0_24 = arith.constant 0 : index
    %16 = vector.load %arg9[%c1_22, %c2_23, %c0_24] : memref<4x4x128xf32, #tpu.memory_space<vmem>>, vector<2x2x128xf32>
    %17 = vector.shape_cast %16 : vector<2x2x128xf32> to vector<4x128xf32>
    %c2_25 = arith.constant 2 : index
    %c0_26 = arith.constant 0 : index
    %c0_27 = arith.constant 0 : index
    %18 = vector.load %arg9[%c2_25, %c0_26, %c0_27] : memref<4x4x128xf32, #tpu.memory_space<vmem>>, vector<2x2x128xf32>
    %19 = vector.shape_cast %18 : vector<2x2x128xf32> to vector<4x128xf32>
    %c2_28 = arith.constant 2 : index
    %c1_29 = arith.constant 1 : index
    %c0_30 = arith.constant 0 : index
    %20 = vector.load %arg9[%c2_28, %c1_29, %c0_30] : memref<4x4x128xf32, #tpu.memory_space<vmem>>, vector<2x2x128xf32>
    %21 = vector.shape_cast %20 : vector<2x2x128xf32> to vector<4x128xf32>
    %c2_31 = arith.constant 2 : index
    %c2_32 = arith.constant 2 : index
    %c0_33 = arith.constant 0 : index
    %22 = vector.load %arg9[%c2_31, %c2_32, %c0_33] : memref<4x4x128xf32, #tpu.memory_space<vmem>>, vector<2x2x128xf32>
    %23 = vector.shape_cast %22 : vector<2x2x128xf32> to vector<4x128xf32>
    %24 = tpu.concatenate %7, %9, %11, %13, %15, %17, %19, %21, %23 in 1 : vector<4x128xf32>, vector<4x128xf32>, vector<4x128xf32>, vector<4x128xf32>, vector<4x128xf32>, vector<4x128xf32>, vector<4x128xf32>, vector<4x128xf32>, vector<4x128xf32> -> vector<4x1152xf32>
    %25 = arith.truncf %24 : vector<4x1152xf32> to vector<4x1152xbf16>
    %c0_34 = arith.constant 0 : index
    %c0_35 = arith.constant 0 : index
    %26 = vector.load %arg2[%c0_34, %c0_35] : memref<1152x128xbf16, #tpu.memory_space<vmem>>, vector<1152x128xbf16>
    %cst_36 = arith.constant dense<0.000000e+00> : vector<4x128xf32>
    %27 = tpu.matmul %25, %26, %cst_36 {dimension_numbers = #tpu.dot_dimension_numbers<[1], [0], [0], [1], [0, 0, 1, 1], [], []>} : vector<4x1152xbf16>, vector<1152x128xbf16>, vector<4x128xf32> -> vector<4x128xf32>
    %c0_37 = arith.constant 0 : index
    %c0_38 = arith.constant 0 : index
    %28 = vector.load %arg4[%c0_37, %c0_38] : memref<1x128xf32, #tpu.memory_space<vmem>>, vector<1x128xf32>
    %29 = vector.shape_cast %28 : vector<1x128xf32> to vector<128xf32>
    %30 = vector.shape_cast %29 : vector<128xf32> to vector<1x128xf32>
    %31 = vector.broadcast %30 : vector<1x128xf32> to vector<4x128xf32>
    %32 = arith.mulf %27, %31 : vector<4x128xf32>
    %c0_39 = arith.constant 0 : index
    %c0_40 = arith.constant 0 : index
    %33 = vector.load %arg6[%c0_39, %c0_40] : memref<1x128xf32, #tpu.memory_space<vmem>>, vector<1x128xf32>
    %34 = vector.shape_cast %33 : vector<1x128xf32> to vector<128xf32>
    %35 = vector.shape_cast %34 : vector<128xf32> to vector<1x128xf32>
    %36 = vector.broadcast %35 : vector<1x128xf32> to vector<4x128xf32>
    %37 = arith.addf %32, %36 : vector<4x128xf32>
    %cst_41 = arith.constant 0.000000e+00 : f32
    %38 = vector.broadcast %cst_41 : f32 to vector<4x128xf32>
    %39 = arith.maximumf %37, %38 : vector<4x128xf32>
    %40 = vector.shape_cast %39 : vector<4x128xf32> to vector<2x2x128xf32>
    %41 = vector.shape_cast %40 : vector<2x2x128xf32> to vector<4x128xf32>
    %42 = arith.truncf %41 : vector<4x128xf32> to vector<4x128xbf16>
    %c0_42 = arith.constant 0 : index
    %c0_43 = arith.constant 0 : index
    %43 = vector.load %arg3[%c0_42, %c0_43] : memref<128x128xbf16, #tpu.memory_space<vmem>>, vector<128x128xbf16>
    %cst_44 = arith.constant dense<0.000000e+00> : vector<4x128xf32>
    %44 = tpu.matmul %42, %43, %cst_44 {dimension_numbers = #tpu.dot_dimension_numbers<[1], [0], [0], [1], [0, 0, 1, 1], [], []>} : vector<4x128xbf16>, vector<128x128xbf16>, vector<4x128xf32> -> vector<4x128xf32>
    %c0_45 = arith.constant 0 : index
    %c0_46 = arith.constant 0 : index
    %45 = vector.load %arg5[%c0_45, %c0_46] : memref<1x128xf32, #tpu.memory_space<vmem>>, vector<1x128xf32>
    %46 = vector.shape_cast %45 : vector<1x128xf32> to vector<128xf32>
    %47 = vector.shape_cast %46 : vector<128xf32> to vector<1x128xf32>
    %48 = vector.broadcast %47 : vector<1x128xf32> to vector<4x128xf32>
    %49 = arith.mulf %44, %48 : vector<4x128xf32>
    %c0_47 = arith.constant 0 : index
    %c0_48 = arith.constant 0 : index
    %50 = vector.load %arg7[%c0_47, %c0_48] : memref<1x128xf32, #tpu.memory_space<vmem>>, vector<1x128xf32>
    %51 = vector.shape_cast %50 : vector<1x128xf32> to vector<128xf32>
    %52 = vector.shape_cast %51 : vector<128xf32> to vector<1x128xf32>
    %53 = vector.broadcast %52 : vector<1x128xf32> to vector<4x128xf32>
    %54 = arith.addf %49, %53 : vector<4x128xf32>
    %55 = vector.shape_cast %54 : vector<4x128xf32> to vector<2x2x128xf32>
    %c0_49 = arith.constant 0 : index
    %c0_50 = arith.constant 0 : index
    %c0_51 = arith.constant 0 : index
    %c0_52 = arith.constant 0 : index
    %56 = vector.load %arg8[%c0_49, %c0_50, %c0_51, %c0_52] : memref<1x2x2x128xf32, #tpu.memory_space<vmem>>, vector<1x2x2x128xf32>
    %57 = vector.shape_cast %56 : vector<1x2x2x128xf32> to vector<2x2x128xf32>
    %58 = vector.shape_cast %55 : vector<2x2x128xf32> to vector<1x2x2x128xf32>
    tpu.vector_store %arg8[%c0_49, %c0_50, %c0_51, %c0_52], %58 {strides = array<i32>} : memref<1x2x2x128xf32, #tpu.memory_space<vmem>>, vector<1x2x2x128xf32>,
    return
  }
  func.func @transform_0(%arg0: i32) -> (i32, i32, i32, i32) {
    %c0_i32 = arith.constant 0 : i32
    %c0_i32_0 = arith.constant 0 : i32
    %c0_i32_1 = arith.constant 0 : i32
    %c0_i32_2 = arith.constant 0 : i32
    return %arg0, %c0_i32, %c0_i32_0, %c0_i32_1 : i32, i32, i32, i32
  }
  func.func @transform_1(%arg0: i32) -> (i32, i32) {
    %c0_i32 = arith.constant 0 : i32
    %c0_i32_0 = arith.constant 0 : i32
    %c0_i32_1 = arith.constant 0 : i32
    return %c0_i32, %c0_i32_0 : i32, i32
  }
  func.func @transform_2(%arg0: i32) -> (i32, i32) {
    %c0_i32 = arith.constant 0 : i32
    %c0_i32_0 = arith.constant 0 : i32
    %c0_i32_1 = arith.constant 0 : i32
    return %c0_i32, %c0_i32_0 : i32, i32
  }
  func.func @transform_3(%arg0: i32) -> (i32, i32) {
    %c0_i32 = arith.constant 0 : i32
    %c0_i32_0 = arith.constant 0 : i32
    %c0_i32_1 = arith.constant 0 : i32
    return %c0_i32, %c0_i32_0 : i32, i32
  }
  func.func @transform_4(%arg0: i32) -> (i32, i32) {
    %c0_i32 = arith.constant 0 : i32
    %c0_i32_0 = arith.constant 0 : i32
    %c0_i32_1 = arith.constant 0 : i32
    return %c0_i32, %c0_i32_0 : i32, i32
  }
  func.func @transform_5(%arg0: i32) -> (i32, i32) {
    %c0_i32 = arith.constant 0 : i32
    %c0_i32_0 = arith.constant 0 : i32
    %c0_i32_1 = arith.constant 0 : i32
    return %c0_i32, %c0_i32_0 : i32, i32
  }
  func.func @transform_6(%arg0: i32) -> (i32, i32) {
    %c0_i32 = arith.constant 0 : i32
    %c0_i32_0 = arith.constant 0 : i32
    %c0_i32_1 = arith.constant 0 : i32
    return %c0_i32, %c0_i32_0 : i32, i32
  }
  func.func @transform_7(%arg0: i32) -> (i32, i32, i32, i32) {
    %c0_i32 = arith.constant 0 : i32
    %c0_i32_0 = arith.constant 0 : i32
    %c0_i32_1 = arith.constant 0 : i32
    %c0_i32_2 = arith.constant 0 : i32
    return %arg0, %c0_i32, %c0_i32_0, %c0_i32_1 : i32, i32, i32, i32
  }
}

module attributes {stable_mosaic.version = 11 : i64} {
  func.func @kernel(%arg0: i32, %arg1: memref<1x2x2x128xbf16, #tpu.memory_space<vmem>>, %arg2: memref<128x128xbf16, #tpu.memory_space<vmem>>, %arg3: memref<1x128xf32, #tpu.memory_space<vmem>>, %arg4: memref<1x128xf32, #tpu.memory_space<vmem>>, %arg5: memref<128x128xbf16, #tpu.memory_space<vmem>>, %arg6: memref<1x128xf32, #tpu.memory_space<vmem>>, %arg7: memref<1x128xf32, #tpu.memory_space<vmem>>, %arg8: memref<256x128xbf16, #tpu.memory_space<vmem>>, %arg9: memref<1x128xf32, #tpu.memory_space<vmem>>, %arg10: memref<1x128xf32, #tpu.memory_space<vmem>>, %arg11: memref<1x2x2x128xbf16, #tpu.memory_space<vmem>>) attributes {dimension_semantics = [#tpu.dimension_semantics<parallel>], iteration_bounds = array<i64: 2>, scalar_prefetch = 0 : i64, scratch_operands = 0 : i64, tpu.core_type = #tpu.core_type<tc>, window_params = [{transform_indices = @transform_0, window_bounds = array<i64: 1, 2, 2, 128>}, {pipeline_mode = #tpu.pipeline_mode<synchronous>, transform_indices = @transform_1, window_bounds = array<i64: 128, 128>}, {pipeline_mode = #tpu.pipeline_mode<synchronous>, transform_indices = @transform_2, window_bounds = array<i64: 1, 128>}, {pipeline_mode = #tpu.pipeline_mode<synchronous>, transform_indices = @transform_3, window_bounds = array<i64: 1, 128>}, {pipeline_mode = #tpu.pipeline_mode<synchronous>, transform_indices = @transform_4, window_bounds = array<i64: 128, 128>}, {pipeline_mode = #tpu.pipeline_mode<synchronous>, transform_indices = @transform_5, window_bounds = array<i64: 1, 128>}, {pipeline_mode = #tpu.pipeline_mode<synchronous>, transform_indices = @transform_6, window_bounds = array<i64: 1, 128>}, {pipeline_mode = #tpu.pipeline_mode<synchronous>, transform_indices = @transform_7, window_bounds = array<i64: 256, 128>}, {pipeline_mode = #tpu.pipeline_mode<synchronous>, transform_indices = @transform_8, window_bounds = array<i64: 1, 128>}, {pipeline_mode = #tpu.pipeline_mode<synchronous>, transform_indices = @transform_9, window_bounds = array<i64: 1, 128>}, {transform_indices = @transform_10, window_bounds = array<i64: 1, 2, 2, 128>}]} {
    %c0 = arith.constant 0 : index
    %c0_0 = arith.constant 0 : index
    %c0_1 = arith.constant 0 : index
    %c0_2 = arith.constant 0 : index
    %0 = vector.load %arg1[%c0, %c0_0, %c0_1, %c0_2] : memref<1x2x2x128xbf16, #tpu.memory_space<vmem>>, vector<1x2x2x128xbf16>
    %1 = vector.shape_cast %0 : vector<1x2x2x128xbf16> to vector<2x2x128xbf16>
    %2 = arith.extf %1 : vector<2x2x128xbf16> to vector<2x2x128xf32>
    %3 = vector.shape_cast %2 : vector<2x2x128xf32> to vector<4x128xf32>
    %4 = arith.truncf %3 : vector<4x128xf32> to vector<4x128xbf16>
    %c0_3 = arith.constant 0 : index
    %c0_4 = arith.constant 0 : index
    %5 = vector.load %arg2[%c0_3, %c0_4] : memref<128x128xbf16, #tpu.memory_space<vmem>>, vector<128x128xbf16>
    %cst = arith.constant dense<0.000000e+00> : vector<4x128xf32>
    %6 = tpu.matmul %4, %5, %cst {dimension_numbers = #tpu.dot_dimension_numbers<[1], [0], [0], [1], [0, 0, 1, 1], [], []>} : vector<4x128xbf16>, vector<128x128xbf16>, vector<4x128xf32> -> vector<4x128xf32>
    %c0_5 = arith.constant 0 : index
    %c0_6 = arith.constant 0 : index
    %7 = vector.load %arg3[%c0_5, %c0_6] : memref<1x128xf32, #tpu.memory_space<vmem>>, vector<1x128xf32>
    %8 = vector.shape_cast %7 : vector<1x128xf32> to vector<128xf32>
    %9 = vector.shape_cast %8 : vector<128xf32> to vector<1x128xf32>
    %10 = vector.broadcast %9 : vector<1x128xf32> to vector<4x128xf32>
    %11 = arith.mulf %6, %10 : vector<4x128xf32>
    %c0_7 = arith.constant 0 : index
    %c0_8 = arith.constant 0 : index
    %12 = vector.load %arg4[%c0_7, %c0_8] : memref<1x128xf32, #tpu.memory_space<vmem>>, vector<1x128xf32>
    %13 = vector.shape_cast %12 : vector<1x128xf32> to vector<128xf32>
    %14 = vector.shape_cast %13 : vector<128xf32> to vector<1x128xf32>
    %15 = vector.broadcast %14 : vector<1x128xf32> to vector<4x128xf32>
    %16 = arith.addf %11, %15 : vector<4x128xf32>
    %cst_9 = arith.constant 0.000000e+00 : f32
    %17 = vector.broadcast %cst_9 : f32 to vector<4x128xf32>
    %18 = arith.maximumf %16, %17 : vector<4x128xf32>
    %cst_10 = arith.constant dense<0.000000e+00> : vector<128xf32>
    %19 = vector.multi_reduction <add>, %3, %cst_10 [0] : vector<4x128xf32> to vector<128xf32>
    %20 = vector.shape_cast %19 : vector<128xf32> to vector<1x128xf32>
    %cst_11 = arith.constant 4.000000e+00 : f32
    %21 = vector.broadcast %cst_11 : f32 to vector<1x128xf32>
    %22 = arith.divf %20, %21 : vector<1x128xf32>
    %23 = arith.truncf %22 : vector<1x128xf32> to vector<1x128xbf16>
    %c0_12 = arith.constant 0 : index
    %c0_13 = arith.constant 0 : index
    %24 = vector.load %arg5[%c0_12, %c0_13] : memref<128x128xbf16, #tpu.memory_space<vmem>>, vector<128x128xbf16>
    %cst_14 = arith.constant dense<0.000000e+00> : vector<1x128xf32>
    %25 = tpu.matmul %23, %24, %cst_14 {dimension_numbers = #tpu.dot_dimension_numbers<[1], [0], [0], [1], [0, 0, 1, 1], [], []>} : vector<1x128xbf16>, vector<128x128xbf16>, vector<1x128xf32> -> vector<1x128xf32>
    %c0_15 = arith.constant 0 : index
    %c0_16 = arith.constant 0 : index
    %26 = vector.load %arg6[%c0_15, %c0_16] : memref<1x128xf32, #tpu.memory_space<vmem>>, vector<1x128xf32>
    %27 = vector.shape_cast %26 : vector<1x128xf32> to vector<128xf32>
    %28 = vector.shape_cast %27 : vector<128xf32> to vector<1x128xf32>
    %29 = arith.mulf %25, %28 : vector<1x128xf32>
    %c0_17 = arith.constant 0 : index
    %c0_18 = arith.constant 0 : index
    %30 = vector.load %arg7[%c0_17, %c0_18] : memref<1x128xf32, #tpu.memory_space<vmem>>, vector<1x128xf32>
    %31 = vector.shape_cast %30 : vector<1x128xf32> to vector<128xf32>
    %32 = vector.shape_cast %31 : vector<128xf32> to vector<1x128xf32>
    %33 = arith.addf %29, %32 : vector<1x128xf32>
    %cst_19 = arith.constant 0.000000e+00 : f32
    %34 = vector.broadcast %cst_19 : f32 to vector<1x128xf32>
    %35 = arith.maximumf %33, %34 : vector<1x128xf32>
    %c0_20 = arith.constant 0 : index
    %c0_21 = arith.constant 0 : index
    %36 = vector.load %arg8[%c0_20, %c0_21] : memref<256x128xbf16, #tpu.memory_space<vmem>>, vector<256x128xbf16>
    %37 = arith.truncf %18 : vector<4x128xf32> to vector<4x128xbf16>
    %38 = vector.extract_strided_slice %36 {offsets = [0, 0], sizes = [128, 128], strides = [1, 1]} : vector<256x128xbf16> to vector<128x128xbf16>
    %cst_22 = arith.constant dense<0.000000e+00> : vector<4x128xf32>
    %39 = tpu.matmul %37, %38, %cst_22 {dimension_numbers = #tpu.dot_dimension_numbers<[1], [0], [0], [1], [0, 0, 1, 1], [], []>} : vector<4x128xbf16>, vector<128x128xbf16>, vector<4x128xf32> -> vector<4x128xf32>
    %40 = arith.truncf %35 : vector<1x128xf32> to vector<1x128xbf16>
    %41 = vector.extract_strided_slice %36 {offsets = [128, 0], sizes = [128, 128], strides = [1, 1]} : vector<256x128xbf16> to vector<128x128xbf16>
    %cst_23 = arith.constant dense<0.000000e+00> : vector<1x128xf32>
    %42 = tpu.matmul %40, %41, %cst_23 {dimension_numbers = #tpu.dot_dimension_numbers<[1], [0], [0], [1], [0, 0, 1, 1], [], []>} : vector<1x128xbf16>, vector<128x128xbf16>, vector<1x128xf32> -> vector<1x128xf32>
    %43 = vector.broadcast %42 : vector<1x128xf32> to vector<4x128xf32>
    %44 = arith.addf %39, %43 : vector<4x128xf32>
    %c0_24 = arith.constant 0 : index
    %c0_25 = arith.constant 0 : index
    %45 = vector.load %arg9[%c0_24, %c0_25] : memref<1x128xf32, #tpu.memory_space<vmem>>, vector<1x128xf32>
    %46 = vector.shape_cast %45 : vector<1x128xf32> to vector<128xf32>
    %47 = vector.shape_cast %46 : vector<128xf32> to vector<1x128xf32>
    %48 = vector.broadcast %47 : vector<1x128xf32> to vector<4x128xf32>
    %49 = arith.mulf %44, %48 : vector<4x128xf32>
    %c0_26 = arith.constant 0 : index
    %c0_27 = arith.constant 0 : index
    %50 = vector.load %arg10[%c0_26, %c0_27] : memref<1x128xf32, #tpu.memory_space<vmem>>, vector<1x128xf32>
    %51 = vector.shape_cast %50 : vector<1x128xf32> to vector<128xf32>
    %52 = vector.shape_cast %51 : vector<128xf32> to vector<1x128xf32>
    %53 = vector.broadcast %52 : vector<1x128xf32> to vector<4x128xf32>
    %54 = arith.addf %49, %53 : vector<4x128xf32>
    %cst_28 = arith.constant 0.000000e+00 : f32
    %55 = vector.broadcast %cst_28 : f32 to vector<4x128xf32>
    %56 = arith.maximumf %54, %55 : vector<4x128xf32>
    %57 = vector.shape_cast %56 : vector<4x128xf32> to vector<2x2x128xf32>
    %58 = arith.truncf %57 : vector<2x2x128xf32> to vector<2x2x128xbf16>
    %c0_29 = arith.constant 0 : index
    %c0_30 = arith.constant 0 : index
    %c0_31 = arith.constant 0 : index
    %c0_32 = arith.constant 0 : index
    %59 = vector.load %arg11[%c0_29, %c0_30, %c0_31, %c0_32] : memref<1x2x2x128xbf16, #tpu.memory_space<vmem>>, vector<1x2x2x128xbf16>
    %60 = vector.shape_cast %59 : vector<1x2x2x128xbf16> to vector<2x2x128xbf16>
    %61 = vector.shape_cast %58 : vector<2x2x128xbf16> to vector<1x2x2x128xbf16>
    tpu.vector_store %arg11[%c0_29, %c0_30, %c0_31, %c0_32], %61 {strides = array<i32>} : memref<1x2x2x128xbf16, #tpu.memory_space<vmem>>, vector<1x2x2x128xbf16>,
    return
  }
  func.func @transform_0(%arg0: i32) -> (i32, i32, i32, i32) {
    %c0_i32 = arith.constant 0 : i32
    %c0_i32_0 = arith.constant 0 : i32
    %c0_i32_1 = arith.constant 0 : i32
    %c0_i32_2 = arith.constant 0 : i32
    return %arg0, %c0_i32, %c0_i32_0, %c0_i32_1 : i32, i32, i32, i32
  }
  func.func @transform_1(%arg0: i32) -> (i32, i32) {
    %c0_i32 = arith.constant 0 : i32
    %c0_i32_0 = arith.constant 0 : i32
    %c0_i32_1 = arith.constant 0 : i32
    return %c0_i32, %c0_i32_0 : i32, i32
  }
  func.func @transform_2(%arg0: i32) -> (i32, i32) {
    %c0_i32 = arith.constant 0 : i32
    %c0_i32_0 = arith.constant 0 : i32
    %c0_i32_1 = arith.constant 0 : i32
    return %c0_i32, %c0_i32_0 : i32, i32
  }
  func.func @transform_3(%arg0: i32) -> (i32, i32) {
    %c0_i32 = arith.constant 0 : i32
    %c0_i32_0 = arith.constant 0 : i32
    %c0_i32_1 = arith.constant 0 : i32
    return %c0_i32, %c0_i32_0 : i32, i32
  }
  func.func @transform_4(%arg0: i32) -> (i32, i32) {
    %c0_i32 = arith.constant 0 : i32
    %c0_i32_0 = arith.constant 0 : i32
    %c0_i32_1 = arith.constant 0 : i32
    return %c0_i32, %c0_i32_0 : i32, i32
  }
  func.func @transform_5(%arg0: i32) -> (i32, i32) {
    %c0_i32 = arith.constant 0 : i32
    %c0_i32_0 = arith.constant 0 : i32
    %c0_i32_1 = arith.constant 0 : i32
    return %c0_i32, %c0_i32_0 : i32, i32
  }
  func.func @transform_6(%arg0: i32) -> (i32, i32) {
    %c0_i32 = arith.constant 0 : i32
    %c0_i32_0 = arith.constant 0 : i32
    %c0_i32_1 = arith.constant 0 : i32
    return %c0_i32, %c0_i32_0 : i32, i32
  }
  func.func @transform_7(%arg0: i32) -> (i32, i32) {
    %c0_i32 = arith.constant 0 : i32
    %c0_i32_0 = arith.constant 0 : i32
    %c0_i32_1 = arith.constant 0 : i32
    return %c0_i32, %c0_i32_0 : i32, i32
  }
  func.func @transform_8(%arg0: i32) -> (i32, i32) {
    %c0_i32 = arith.constant 0 : i32
    %c0_i32_0 = arith.constant 0 : i32
    %c0_i32_1 = arith.constant 0 : i32
    return %c0_i32, %c0_i32_0 : i32, i32
  }
  func.func @transform_9(%arg0: i32) -> (i32, i32) {
    %c0_i32 = arith.constant 0 : i32
    %c0_i32_0 = arith.constant 0 : i32
    %c0_i32_1 = arith.constant 0 : i32
    return %c0_i32, %c0_i32_0 : i32, i32
  }
  func.func @transform_10(%arg0: i32) -> (i32, i32, i32, i32) {
    %c0_i32 = arith.constant 0 : i32
    %c0_i32_0 = arith.constant 0 : i32
    %c0_i32_1 = arith.constant 0 : i32
    %c0_i32_2 = arith.constant 0 : i32
    return %arg0, %c0_i32, %c0_i32_0, %c0_i32_1 : i32, i32, i32, i32
  }
}

module attributes {stable_mosaic.version = 11 : i64} {
  func.func @kernel(%arg0: i32, %arg1: memref<1x4x4x128xbf16, #tpu.memory_space<vmem>>, %arg2: memref<1152x128xbf16, #tpu.memory_space<vmem>>, %arg3: memref<128x128xbf16, #tpu.memory_space<vmem>>, %arg4: memref<1x128xf32, #tpu.memory_space<vmem>>, %arg5: memref<1x128xf32, #tpu.memory_space<vmem>>, %arg6: memref<1x128xf32, #tpu.memory_space<vmem>>, %arg7: memref<1x128xf32, #tpu.memory_space<vmem>>, %arg8: memref<1x4x4x128xf32, #tpu.memory_space<vmem>>, %arg9: memref<6x6x128xf32, #tpu.memory_space<vmem>>) attributes {dimension_semantics = [#tpu.dimension_semantics<parallel>], iteration_bounds = array<i64: 2>, scalar_prefetch = 0 : i64, scratch_operands = 1 : i64, tpu.core_type = #tpu.core_type<tc>, window_params = [{transform_indices = @transform_0, window_bounds = array<i64: 1, 4, 4, 128>}, {pipeline_mode = #tpu.pipeline_mode<synchronous>, transform_indices = @transform_1, window_bounds = array<i64: 1152, 128>}, {pipeline_mode = #tpu.pipeline_mode<synchronous>, transform_indices = @transform_2, window_bounds = array<i64: 128, 128>}, {pipeline_mode = #tpu.pipeline_mode<synchronous>, transform_indices = @transform_3, window_bounds = array<i64: 1, 128>}, {pipeline_mode = #tpu.pipeline_mode<synchronous>, transform_indices = @transform_4, window_bounds = array<i64: 1, 128>}, {pipeline_mode = #tpu.pipeline_mode<synchronous>, transform_indices = @transform_5, window_bounds = array<i64: 1, 128>}, {pipeline_mode = #tpu.pipeline_mode<synchronous>, transform_indices = @transform_6, window_bounds = array<i64: 1, 128>}, {transform_indices = @transform_7, window_bounds = array<i64: 1, 4, 4, 128>}]} {
    %c0 = arith.constant 0 : index
    %c0_0 = arith.constant 0 : index
    %c0_1 = arith.constant 0 : index
    %c0_2 = arith.constant 0 : index
    %0 = vector.load %arg1[%c0, %c0_0, %c0_1, %c0_2] : memref<1x4x4x128xbf16, #tpu.memory_space<vmem>>, vector<1x4x4x128xbf16>
    %1 = vector.shape_cast %0 : vector<1x4x4x128xbf16> to vector<4x4x128xbf16>
    %2 = arith.extf %1 : vector<4x4x128xbf16> to vector<4x4x128xf32>
    %cst = arith.constant 0.000000e+00 : f32
    %3 = vector.broadcast %cst : f32 to vector<6x6x128xf32>
    %c0_3 = arith.constant 0 : index
    %c0_4 = arith.constant 0 : index
    %c0_5 = arith.constant 0 : index
    %4 = vector.load %arg9[%c0_3, %c0_4, %c0_5] : memref<6x6x128xf32, #tpu.memory_space<vmem>>, vector<6x6x128xf32>
    tpu.vector_store %arg9[%c0_3, %c0_4, %c0_5], %3 {strides = array<i32>} : memref<6x6x128xf32, #tpu.memory_space<vmem>>, vector<6x6x128xf32>,
    %c1 = arith.constant 1 : index
    %c1_6 = arith.constant 1 : index
    %c0_7 = arith.constant 0 : index
    %5 = vector.load %arg9[%c1, %c1_6, %c0_7] : memref<6x6x128xf32, #tpu.memory_space<vmem>>, vector<4x4x128xf32>
    tpu.vector_store %arg9[%c1, %c1_6, %c0_7], %2 {strides = array<i32>} : memref<6x6x128xf32, #tpu.memory_space<vmem>>, vector<4x4x128xf32>,
    %c0_8 = arith.constant 0 : index
    %c0_9 = arith.constant 0 : index
    %c0_10 = arith.constant 0 : index
    %6 = vector.load %arg9[%c0_8, %c0_9, %c0_10] : memref<6x6x128xf32, #tpu.memory_space<vmem>>, vector<4x4x128xf32>
    %7 = vector.shape_cast %6 : vector<4x4x128xf32> to vector<16x128xf32>
    %c0_11 = arith.constant 0 : index
    %c1_12 = arith.constant 1 : index
    %c0_13 = arith.constant 0 : index
    %8 = vector.load %arg9[%c0_11, %c1_12, %c0_13] : memref<6x6x128xf32, #tpu.memory_space<vmem>>, vector<4x4x128xf32>
    %9 = vector.shape_cast %8 : vector<4x4x128xf32> to vector<16x128xf32>
    %c0_14 = arith.constant 0 : index
    %c2 = arith.constant 2 : index
    %c0_15 = arith.constant 0 : index
    %10 = vector.load %arg9[%c0_14, %c2, %c0_15] : memref<6x6x128xf32, #tpu.memory_space<vmem>>, vector<4x4x128xf32>
    %11 = vector.shape_cast %10 : vector<4x4x128xf32> to vector<16x128xf32>
    %c1_16 = arith.constant 1 : index
    %c0_17 = arith.constant 0 : index
    %c0_18 = arith.constant 0 : index
    %12 = vector.load %arg9[%c1_16, %c0_17, %c0_18] : memref<6x6x128xf32, #tpu.memory_space<vmem>>, vector<4x4x128xf32>
    %13 = vector.shape_cast %12 : vector<4x4x128xf32> to vector<16x128xf32>
    %c1_19 = arith.constant 1 : index
    %c1_20 = arith.constant 1 : index
    %c0_21 = arith.constant 0 : index
    %14 = vector.load %arg9[%c1_19, %c1_20, %c0_21] : memref<6x6x128xf32, #tpu.memory_space<vmem>>, vector<4x4x128xf32>
    %15 = vector.shape_cast %14 : vector<4x4x128xf32> to vector<16x128xf32>
    %c1_22 = arith.constant 1 : index
    %c2_23 = arith.constant 2 : index
    %c0_24 = arith.constant 0 : index
    %16 = vector.load %arg9[%c1_22, %c2_23, %c0_24] : memref<6x6x128xf32, #tpu.memory_space<vmem>>, vector<4x4x128xf32>
    %17 = vector.shape_cast %16 : vector<4x4x128xf32> to vector<16x128xf32>
    %c2_25 = arith.constant 2 : index
    %c0_26 = arith.constant 0 : index
    %c0_27 = arith.constant 0 : index
    %18 = vector.load %arg9[%c2_25, %c0_26, %c0_27] : memref<6x6x128xf32, #tpu.memory_space<vmem>>, vector<4x4x128xf32>
    %19 = vector.shape_cast %18 : vector<4x4x128xf32> to vector<16x128xf32>
    %c2_28 = arith.constant 2 : index
    %c1_29 = arith.constant 1 : index
    %c0_30 = arith.constant 0 : index
    %20 = vector.load %arg9[%c2_28, %c1_29, %c0_30] : memref<6x6x128xf32, #tpu.memory_space<vmem>>, vector<4x4x128xf32>
    %21 = vector.shape_cast %20 : vector<4x4x128xf32> to vector<16x128xf32>
    %c2_31 = arith.constant 2 : index
    %c2_32 = arith.constant 2 : index
    %c0_33 = arith.constant 0 : index
    %22 = vector.load %arg9[%c2_31, %c2_32, %c0_33] : memref<6x6x128xf32, #tpu.memory_space<vmem>>, vector<4x4x128xf32>
    %23 = vector.shape_cast %22 : vector<4x4x128xf32> to vector<16x128xf32>
    %24 = tpu.concatenate %7, %9, %11, %13, %15, %17, %19, %21, %23 in 1 : vector<16x128xf32>, vector<16x128xf32>, vector<16x128xf32>, vector<16x128xf32>, vector<16x128xf32>, vector<16x128xf32>, vector<16x128xf32>, vector<16x128xf32>, vector<16x128xf32> -> vector<16x1152xf32>
    %25 = arith.truncf %24 : vector<16x1152xf32> to vector<16x1152xbf16>
    %c0_34 = arith.constant 0 : index
    %c0_35 = arith.constant 0 : index
    %26 = vector.load %arg2[%c0_34, %c0_35] : memref<1152x128xbf16, #tpu.memory_space<vmem>>, vector<1152x128xbf16>
    %cst_36 = arith.constant dense<0.000000e+00> : vector<16x128xf32>
    %27 = tpu.matmul %25, %26, %cst_36 {dimension_numbers = #tpu.dot_dimension_numbers<[1], [0], [0], [1], [0, 0, 1, 1], [], []>} : vector<16x1152xbf16>, vector<1152x128xbf16>, vector<16x128xf32> -> vector<16x128xf32>
    %c0_37 = arith.constant 0 : index
    %c0_38 = arith.constant 0 : index
    %28 = vector.load %arg4[%c0_37, %c0_38] : memref<1x128xf32, #tpu.memory_space<vmem>>, vector<1x128xf32>
    %29 = vector.shape_cast %28 : vector<1x128xf32> to vector<128xf32>
    %30 = vector.shape_cast %29 : vector<128xf32> to vector<1x128xf32>
    %31 = vector.broadcast %30 : vector<1x128xf32> to vector<16x128xf32>
    %32 = arith.mulf %27, %31 : vector<16x128xf32>
    %c0_39 = arith.constant 0 : index
    %c0_40 = arith.constant 0 : index
    %33 = vector.load %arg6[%c0_39, %c0_40] : memref<1x128xf32, #tpu.memory_space<vmem>>, vector<1x128xf32>
    %34 = vector.shape_cast %33 : vector<1x128xf32> to vector<128xf32>
    %35 = vector.shape_cast %34 : vector<128xf32> to vector<1x128xf32>
    %36 = vector.broadcast %35 : vector<1x128xf32> to vector<16x128xf32>
    %37 = arith.addf %32, %36 : vector<16x128xf32>
    %cst_41 = arith.constant 0.000000e+00 : f32
    %38 = vector.broadcast %cst_41 : f32 to vector<16x128xf32>
    %39 = arith.maximumf %37, %38 : vector<16x128xf32>
    %40 = vector.shape_cast %39 : vector<16x128xf32> to vector<4x4x128xf32>
    %41 = vector.shape_cast %40 : vector<4x4x128xf32> to vector<16x128xf32>
    %42 = arith.truncf %41 : vector<16x128xf32> to vector<16x128xbf16>
    %c0_42 = arith.constant 0 : index
    %c0_43 = arith.constant 0 : index
    %43 = vector.load %arg3[%c0_42, %c0_43] : memref<128x128xbf16, #tpu.memory_space<vmem>>, vector<128x128xbf16>
    %cst_44 = arith.constant dense<0.000000e+00> : vector<16x128xf32>
    %44 = tpu.matmul %42, %43, %cst_44 {dimension_numbers = #tpu.dot_dimension_numbers<[1], [0], [0], [1], [0, 0, 1, 1], [], []>} : vector<16x128xbf16>, vector<128x128xbf16>, vector<16x128xf32> -> vector<16x128xf32>
    %c0_45 = arith.constant 0 : index
    %c0_46 = arith.constant 0 : index
    %45 = vector.load %arg5[%c0_45, %c0_46] : memref<1x128xf32, #tpu.memory_space<vmem>>, vector<1x128xf32>
    %46 = vector.shape_cast %45 : vector<1x128xf32> to vector<128xf32>
    %47 = vector.shape_cast %46 : vector<128xf32> to vector<1x128xf32>
    %48 = vector.broadcast %47 : vector<1x128xf32> to vector<16x128xf32>
    %49 = arith.mulf %44, %48 : vector<16x128xf32>
    %c0_47 = arith.constant 0 : index
    %c0_48 = arith.constant 0 : index
    %50 = vector.load %arg7[%c0_47, %c0_48] : memref<1x128xf32, #tpu.memory_space<vmem>>, vector<1x128xf32>
    %51 = vector.shape_cast %50 : vector<1x128xf32> to vector<128xf32>
    %52 = vector.shape_cast %51 : vector<128xf32> to vector<1x128xf32>
    %53 = vector.broadcast %52 : vector<1x128xf32> to vector<16x128xf32>
    %54 = arith.addf %49, %53 : vector<16x128xf32>
    %55 = vector.shape_cast %54 : vector<16x128xf32> to vector<4x4x128xf32>
    %c0_49 = arith.constant 0 : index
    %c0_50 = arith.constant 0 : index
    %c0_51 = arith.constant 0 : index
    %c0_52 = arith.constant 0 : index
    %56 = vector.load %arg8[%c0_49, %c0_50, %c0_51, %c0_52] : memref<1x4x4x128xf32, #tpu.memory_space<vmem>>, vector<1x4x4x128xf32>
    %57 = vector.shape_cast %56 : vector<1x4x4x128xf32> to vector<4x4x128xf32>
    %58 = vector.shape_cast %55 : vector<4x4x128xf32> to vector<1x4x4x128xf32>
    tpu.vector_store %arg8[%c0_49, %c0_50, %c0_51, %c0_52], %58 {strides = array<i32>} : memref<1x4x4x128xf32, #tpu.memory_space<vmem>>, vector<1x4x4x128xf32>,
    return
  }
  func.func @transform_0(%arg0: i32) -> (i32, i32, i32, i32) {
    %c0_i32 = arith.constant 0 : i32
    %c0_i32_0 = arith.constant 0 : i32
    %c0_i32_1 = arith.constant 0 : i32
    %c0_i32_2 = arith.constant 0 : i32
    return %arg0, %c0_i32, %c0_i32_0, %c0_i32_1 : i32, i32, i32, i32
  }
  func.func @transform_1(%arg0: i32) -> (i32, i32) {
    %c0_i32 = arith.constant 0 : i32
    %c0_i32_0 = arith.constant 0 : i32
    %c0_i32_1 = arith.constant 0 : i32
    return %c0_i32, %c0_i32_0 : i32, i32
  }
  func.func @transform_2(%arg0: i32) -> (i32, i32) {
    %c0_i32 = arith.constant 0 : i32
    %c0_i32_0 = arith.constant 0 : i32
    %c0_i32_1 = arith.constant 0 : i32
    return %c0_i32, %c0_i32_0 : i32, i32
  }
  func.func @transform_3(%arg0: i32) -> (i32, i32) {
    %c0_i32 = arith.constant 0 : i32
    %c0_i32_0 = arith.constant 0 : i32
    %c0_i32_1 = arith.constant 0 : i32
    return %c0_i32, %c0_i32_0 : i32, i32
  }
  func.func @transform_4(%arg0: i32) -> (i32, i32) {
    %c0_i32 = arith.constant 0 : i32
    %c0_i32_0 = arith.constant 0 : i32
    %c0_i32_1 = arith.constant 0 : i32
    return %c0_i32, %c0_i32_0 : i32, i32
  }
  func.func @transform_5(%arg0: i32) -> (i32, i32) {
    %c0_i32 = arith.constant 0 : i32
    %c0_i32_0 = arith.constant 0 : i32
    %c0_i32_1 = arith.constant 0 : i32
    return %c0_i32, %c0_i32_0 : i32, i32
  }
  func.func @transform_6(%arg0: i32) -> (i32, i32) {
    %c0_i32 = arith.constant 0 : i32
    %c0_i32_0 = arith.constant 0 : i32
    %c0_i32_1 = arith.constant 0 : i32
    return %c0_i32, %c0_i32_0 : i32, i32
  }
  func.func @transform_7(%arg0: i32) -> (i32, i32, i32, i32) {
    %c0_i32 = arith.constant 0 : i32
    %c0_i32_0 = arith.constant 0 : i32
    %c0_i32_1 = arith.constant 0 : i32
    %c0_i32_2 = arith.constant 0 : i32
    return %arg0, %c0_i32, %c0_i32_0, %c0_i32_1 : i32, i32, i32, i32
  }
}

module attributes {stable_mosaic.version = 11 : i64} {
  func.func @kernel(%arg0: i32, %arg1: memref<1x8x8x256xbf16, #tpu.memory_space<vmem>>, %arg2: memref<2304x128xbf16, #tpu.memory_space<vmem>>, %arg3: memref<1152x128xbf16, #tpu.memory_space<vmem>>, %arg4: memref<128x128xbf16, #tpu.memory_space<vmem>>, %arg5: memref<1x128xf32, #tpu.memory_space<vmem>>, %arg6: memref<1x128xf32, #tpu.memory_space<vmem>>, %arg7: memref<1x128xf32, #tpu.memory_space<vmem>>, %arg8: memref<1x128xf32, #tpu.memory_space<vmem>>, %arg9: memref<1x128xf32, #tpu.memory_space<vmem>>, %arg10: memref<1x128xf32, #tpu.memory_space<vmem>>, %arg11: memref<1x8x8x128xf32, #tpu.memory_space<vmem>>, %arg12: memref<10x10x256xf32, #tpu.memory_space<vmem>>, %arg13: memref<10x10x128xf32, #tpu.memory_space<vmem>>) attributes {dimension_semantics = [#tpu.dimension_semantics<parallel>], iteration_bounds = array<i64: 2>, scalar_prefetch = 0 : i64, scratch_operands = 2 : i64, tpu.core_type = #tpu.core_type<tc>, window_params = [{transform_indices = @transform_0, window_bounds = array<i64: 1, 8, 8, 256>}, {pipeline_mode = #tpu.pipeline_mode<synchronous>, transform_indices = @transform_1, window_bounds = array<i64: 2304, 128>}, {pipeline_mode = #tpu.pipeline_mode<synchronous>, transform_indices = @transform_2, window_bounds = array<i64: 1152, 128>}, {pipeline_mode = #tpu.pipeline_mode<synchronous>, transform_indices = @transform_3, window_bounds = array<i64: 128, 128>}, {pipeline_mode = #tpu.pipeline_mode<synchronous>, transform_indices = @transform_4, window_bounds = array<i64: 1, 128>}, {pipeline_mode = #tpu.pipeline_mode<synchronous>, transform_indices = @transform_5, window_bounds = array<i64: 1, 128>}, {pipeline_mode = #tpu.pipeline_mode<synchronous>, transform_indices = @transform_6, window_bounds = array<i64: 1, 128>}, {pipeline_mode = #tpu.pipeline_mode<synchronous>, transform_indices = @transform_7, window_bounds = array<i64: 1, 128>}, {pipeline_mode = #tpu.pipeline_mode<synchronous>, transform_indices = @transform_8, window_bounds = array<i64: 1, 128>}, {pipeline_mode = #tpu.pipeline_mode<synchronous>, transform_indices = @transform_9, window_bounds = array<i64: 1, 128>}, {transform_indices = @transform_10, window_bounds = array<i64: 1, 8, 8, 128>}]} {
    %c0 = arith.constant 0 : index
    %c0_0 = arith.constant 0 : index
    %c0_1 = arith.constant 0 : index
    %c0_2 = arith.constant 0 : index
    %0 = vector.load %arg1[%c0, %c0_0, %c0_1, %c0_2] : memref<1x8x8x256xbf16, #tpu.memory_space<vmem>>, vector<1x8x8x256xbf16>
    %1 = vector.shape_cast %0 : vector<1x8x8x256xbf16> to vector<8x8x256xbf16>
    %2 = arith.extf %1 : vector<8x8x256xbf16> to vector<8x8x256xf32>
    %cst = arith.constant 0.000000e+00 : f32
    %3 = vector.broadcast %cst : f32 to vector<10x10x256xf32>
    %c0_3 = arith.constant 0 : index
    %c0_4 = arith.constant 0 : index
    %c0_5 = arith.constant 0 : index
    %4 = vector.load %arg12[%c0_3, %c0_4, %c0_5] : memref<10x10x256xf32, #tpu.memory_space<vmem>>, vector<10x10x256xf32>
    tpu.vector_store %arg12[%c0_3, %c0_4, %c0_5], %3 {strides = array<i32>} : memref<10x10x256xf32, #tpu.memory_space<vmem>>, vector<10x10x256xf32>,
    %c1 = arith.constant 1 : index
    %c1_6 = arith.constant 1 : index
    %c0_7 = arith.constant 0 : index
    %5 = vector.load %arg12[%c1, %c1_6, %c0_7] : memref<10x10x256xf32, #tpu.memory_space<vmem>>, vector<8x8x256xf32>
    tpu.vector_store %arg12[%c1, %c1_6, %c0_7], %2 {strides = array<i32>} : memref<10x10x256xf32, #tpu.memory_space<vmem>>, vector<8x8x256xf32>,
    %c0_8 = arith.constant 0 : index
    %c0_9 = arith.constant 0 : index
    %c0_10 = arith.constant 0 : index
    %6 = vector.load %arg12[%c0_8, %c0_9, %c0_10] : memref<10x10x256xf32, #tpu.memory_space<vmem>>, vector<8x8x256xf32>
    %7 = vector.shape_cast %6 : vector<8x8x256xf32> to vector<64x256xf32>
    %c0_11 = arith.constant 0 : index
    %c1_12 = arith.constant 1 : index
    %c0_13 = arith.constant 0 : index
    %8 = vector.load %arg12[%c0_11, %c1_12, %c0_13] : memref<10x10x256xf32, #tpu.memory_space<vmem>>, vector<8x8x256xf32>
    %9 = vector.shape_cast %8 : vector<8x8x256xf32> to vector<64x256xf32>
    %c0_14 = arith.constant 0 : index
    %c2 = arith.constant 2 : index
    %c0_15 = arith.constant 0 : index
    %10 = vector.load %arg12[%c0_14, %c2, %c0_15] : memref<10x10x256xf32, #tpu.memory_space<vmem>>, vector<8x8x256xf32>
    %11 = vector.shape_cast %10 : vector<8x8x256xf32> to vector<64x256xf32>
    %c1_16 = arith.constant 1 : index
    %c0_17 = arith.constant 0 : index
    %c0_18 = arith.constant 0 : index
    %12 = vector.load %arg12[%c1_16, %c0_17, %c0_18] : memref<10x10x256xf32, #tpu.memory_space<vmem>>, vector<8x8x256xf32>
    %13 = vector.shape_cast %12 : vector<8x8x256xf32> to vector<64x256xf32>
    %c1_19 = arith.constant 1 : index
    %c1_20 = arith.constant 1 : index
    %c0_21 = arith.constant 0 : index
    %14 = vector.load %arg12[%c1_19, %c1_20, %c0_21] : memref<10x10x256xf32, #tpu.memory_space<vmem>>, vector<8x8x256xf32>
    %15 = vector.shape_cast %14 : vector<8x8x256xf32> to vector<64x256xf32>
    %c1_22 = arith.constant 1 : index
    %c2_23 = arith.constant 2 : index
    %c0_24 = arith.constant 0 : index
    %16 = vector.load %arg12[%c1_22, %c2_23, %c0_24] : memref<10x10x256xf32, #tpu.memory_space<vmem>>, vector<8x8x256xf32>
    %17 = vector.shape_cast %16 : vector<8x8x256xf32> to vector<64x256xf32>
    %c2_25 = arith.constant 2 : index
    %c0_26 = arith.constant 0 : index
    %c0_27 = arith.constant 0 : index
    %18 = vector.load %arg12[%c2_25, %c0_26, %c0_27] : memref<10x10x256xf32, #tpu.memory_space<vmem>>, vector<8x8x256xf32>
    %19 = vector.shape_cast %18 : vector<8x8x256xf32> to vector<64x256xf32>
    %c2_28 = arith.constant 2 : index
    %c1_29 = arith.constant 1 : index
    %c0_30 = arith.constant 0 : index
    %20 = vector.load %arg12[%c2_28, %c1_29, %c0_30] : memref<10x10x256xf32, #tpu.memory_space<vmem>>, vector<8x8x256xf32>
    %21 = vector.shape_cast %20 : vector<8x8x256xf32> to vector<64x256xf32>
    %c2_31 = arith.constant 2 : index
    %c2_32 = arith.constant 2 : index
    %c0_33 = arith.constant 0 : index
    %22 = vector.load %arg12[%c2_31, %c2_32, %c0_33] : memref<10x10x256xf32, #tpu.memory_space<vmem>>, vector<8x8x256xf32>
    %23 = vector.shape_cast %22 : vector<8x8x256xf32> to vector<64x256xf32>
    %24 = tpu.concatenate %7, %9, %11, %13, %15, %17, %19, %21, %23 in 1 : vector<64x256xf32>, vector<64x256xf32>, vector<64x256xf32>, vector<64x256xf32>, vector<64x256xf32>, vector<64x256xf32>, vector<64x256xf32>, vector<64x256xf32>, vector<64x256xf32> -> vector<64x2304xf32>
    %25 = arith.truncf %24 : vector<64x2304xf32> to vector<64x2304xbf16>
    %c0_34 = arith.constant 0 : index
    %c0_35 = arith.constant 0 : index
    %26 = vector.load %arg2[%c0_34, %c0_35] : memref<2304x128xbf16, #tpu.memory_space<vmem>>, vector<2304x128xbf16>
    %cst_36 = arith.constant dense<0.000000e+00> : vector<64x128xf32>
    %27 = tpu.matmul %25, %26, %cst_36 {dimension_numbers = #tpu.dot_dimension_numbers<[1], [0], [0], [1], [0, 0, 1, 1], [], []>} : vector<64x2304xbf16>, vector<2304x128xbf16>, vector<64x128xf32> -> vector<64x128xf32>
    %c0_37 = arith.constant 0 : index
    %c0_38 = arith.constant 0 : index
    %28 = vector.load %arg5[%c0_37, %c0_38] : memref<1x128xf32, #tpu.memory_space<vmem>>, vector<1x128xf32>
    %29 = vector.shape_cast %28 : vector<1x128xf32> to vector<128xf32>
    %30 = vector.shape_cast %29 : vector<128xf32> to vector<1x128xf32>
    %31 = vector.broadcast %30 : vector<1x128xf32> to vector<64x128xf32>
    %32 = arith.mulf %27, %31 : vector<64x128xf32>
    %c0_39 = arith.constant 0 : index
    %c0_40 = arith.constant 0 : index
    %33 = vector.load %arg8[%c0_39, %c0_40] : memref<1x128xf32, #tpu.memory_space<vmem>>, vector<1x128xf32>
    %34 = vector.shape_cast %33 : vector<1x128xf32> to vector<128xf32>
    %35 = vector.shape_cast %34 : vector<128xf32> to vector<1x128xf32>
    %36 = vector.broadcast %35 : vector<1x128xf32> to vector<64x128xf32>
    %37 = arith.addf %32, %36 : vector<64x128xf32>
    %cst_41 = arith.constant 0.000000e+00 : f32
    %38 = vector.broadcast %cst_41 : f32 to vector<64x128xf32>
    %39 = arith.maximumf %37, %38 : vector<64x128xf32>
    %40 = vector.shape_cast %39 : vector<64x128xf32> to vector<8x8x128xf32>
    %cst_42 = arith.constant 0.000000e+00 : f32
    %41 = vector.broadcast %cst_42 : f32 to vector<10x10x128xf32>
    %c0_43 = arith.constant 0 : index
    %c0_44 = arith.constant 0 : index
    %c0_45 = arith.constant 0 : index
    %42 = vector.load %arg13[%c0_43, %c0_44, %c0_45] : memref<10x10x128xf32, #tpu.memory_space<vmem>>, vector<10x10x128xf32>
    tpu.vector_store %arg13[%c0_43, %c0_44, %c0_45], %41 {strides = array<i32>} : memref<10x10x128xf32, #tpu.memory_space<vmem>>, vector<10x10x128xf32>,
    %c1_46 = arith.constant 1 : index
    %c1_47 = arith.constant 1 : index
    %c0_48 = arith.constant 0 : index
    %43 = vector.load %arg13[%c1_46, %c1_47, %c0_48] : memref<10x10x128xf32, #tpu.memory_space<vmem>>, vector<8x8x128xf32>
    tpu.vector_store %arg13[%c1_46, %c1_47, %c0_48], %40 {strides = array<i32>} : memref<10x10x128xf32, #tpu.memory_space<vmem>>, vector<8x8x128xf32>,
    %c0_49 = arith.constant 0 : index
    %c0_50 = arith.constant 0 : index
    %c0_51 = arith.constant 0 : index
    %44 = vector.load %arg13[%c0_49, %c0_50, %c0_51] : memref<10x10x128xf32, #tpu.memory_space<vmem>>, vector<8x8x128xf32>
    %45 = vector.shape_cast %44 : vector<8x8x128xf32> to vector<64x128xf32>
    %c0_52 = arith.constant 0 : index
    %c1_53 = arith.constant 1 : index
    %c0_54 = arith.constant 0 : index
    %46 = vector.load %arg13[%c0_52, %c1_53, %c0_54] : memref<10x10x128xf32, #tpu.memory_space<vmem>>, vector<8x8x128xf32>
    %47 = vector.shape_cast %46 : vector<8x8x128xf32> to vector<64x128xf32>
    %c0_55 = arith.constant 0 : index
    %c2_56 = arith.constant 2 : index
    %c0_57 = arith.constant 0 : index
    %48 = vector.load %arg13[%c0_55, %c2_56, %c0_57] : memref<10x10x128xf32, #tpu.memory_space<vmem>>, vector<8x8x128xf32>
    %49 = vector.shape_cast %48 : vector<8x8x128xf32> to vector<64x128xf32>
    %c1_58 = arith.constant 1 : index
    %c0_59 = arith.constant 0 : index
    %c0_60 = arith.constant 0 : index
    %50 = vector.load %arg13[%c1_58, %c0_59, %c0_60] : memref<10x10x128xf32, #tpu.memory_space<vmem>>, vector<8x8x128xf32>
    %51 = vector.shape_cast %50 : vector<8x8x128xf32> to vector<64x128xf32>
    %c1_61 = arith.constant 1 : index
    %c1_62 = arith.constant 1 : index
    %c0_63 = arith.constant 0 : index
    %52 = vector.load %arg13[%c1_61, %c1_62, %c0_63] : memref<10x10x128xf32, #tpu.memory_space<vmem>>, vector<8x8x128xf32>
    %53 = vector.shape_cast %52 : vector<8x8x128xf32> to vector<64x128xf32>
    %c1_64 = arith.constant 1 : index
    %c2_65 = arith.constant 2 : index
    %c0_66 = arith.constant 0 : index
    %54 = vector.load %arg13[%c1_64, %c2_65, %c0_66] : memref<10x10x128xf32, #tpu.memory_space<vmem>>, vector<8x8x128xf32>
    %55 = vector.shape_cast %54 : vector<8x8x128xf32> to vector<64x128xf32>
    %c2_67 = arith.constant 2 : index
    %c0_68 = arith.constant 0 : index
    %c0_69 = arith.constant 0 : index
    %56 = vector.load %arg13[%c2_67, %c0_68, %c0_69] : memref<10x10x128xf32, #tpu.memory_space<vmem>>, vector<8x8x128xf32>
    %57 = vector.shape_cast %56 : vector<8x8x128xf32> to vector<64x128xf32>
    %c2_70 = arith.constant 2 : index
    %c1_71 = arith.constant 1 : index
    %c0_72 = arith.constant 0 : index
    %58 = vector.load %arg13[%c2_70, %c1_71, %c0_72] : memref<10x10x128xf32, #tpu.memory_space<vmem>>, vector<8x8x128xf32>
    %59 = vector.shape_cast %58 : vector<8x8x128xf32> to vector<64x128xf32>
    %c2_73 = arith.constant 2 : index
    %c2_74 = arith.constant 2 : index
    %c0_75 = arith.constant 0 : index
    %60 = vector.load %arg13[%c2_73, %c2_74, %c0_75] : memref<10x10x128xf32, #tpu.memory_space<vmem>>, vector<8x8x128xf32>
    %61 = vector.shape_cast %60 : vector<8x8x128xf32> to vector<64x128xf32>
    %62 = tpu.concatenate %45, %47, %49, %51, %53, %55, %57, %59, %61 in 1 : vector<64x128xf32>, vector<64x128xf32>, vector<64x128xf32>, vector<64x128xf32>, vector<64x128xf32>, vector<64x128xf32>, vector<64x128xf32>, vector<64x128xf32>, vector<64x128xf32> -> vector<64x1152xf32>
    %63 = arith.truncf %62 : vector<64x1152xf32> to vector<64x1152xbf16>
    %c0_76 = arith.constant 0 : index
    %c0_77 = arith.constant 0 : index
    %64 = vector.load %arg3[%c0_76, %c0_77] : memref<1152x128xbf16, #tpu.memory_space<vmem>>, vector<1152x128xbf16>
    %cst_78 = arith.constant dense<0.000000e+00> : vector<64x128xf32>
    %65 = tpu.matmul %63, %64, %cst_78 {dimension_numbers = #tpu.dot_dimension_numbers<[1], [0], [0], [1], [0, 0, 1, 1], [], []>} : vector<64x1152xbf16>, vector<1152x128xbf16>, vector<64x128xf32> -> vector<64x128xf32>
    %c0_79 = arith.constant 0 : index
    %c0_80 = arith.constant 0 : index
    %66 = vector.load %arg6[%c0_79, %c0_80] : memref<1x128xf32, #tpu.memory_space<vmem>>, vector<1x128xf32>
    %67 = vector.shape_cast %66 : vector<1x128xf32> to vector<128xf32>
    %68 = vector.shape_cast %67 : vector<128xf32> to vector<1x128xf32>
    %69 = vector.broadcast %68 : vector<1x128xf32> to vector<64x128xf32>
    %70 = arith.mulf %65, %69 : vector<64x128xf32>
    %c0_81 = arith.constant 0 : index
    %c0_82 = arith.constant 0 : index
    %71 = vector.load %arg9[%c0_81, %c0_82] : memref<1x128xf32, #tpu.memory_space<vmem>>, vector<1x128xf32>
    %72 = vector.shape_cast %71 : vector<1x128xf32> to vector<128xf32>
    %73 = vector.shape_cast %72 : vector<128xf32> to vector<1x128xf32>
    %74 = vector.broadcast %73 : vector<1x128xf32> to vector<64x128xf32>
    %75 = arith.addf %70, %74 : vector<64x128xf32>
    %cst_83 = arith.constant 0.000000e+00 : f32
    %76 = vector.broadcast %cst_83 : f32 to vector<64x128xf32>
    %77 = arith.maximumf %75, %76 : vector<64x128xf32>
    %78 = vector.shape_cast %77 : vector<64x128xf32> to vector<8x8x128xf32>
    %79 = vector.shape_cast %78 : vector<8x8x128xf32> to vector<64x128xf32>
    %80 = arith.truncf %79 : vector<64x128xf32> to vector<64x128xbf16>
    %c0_84 = arith.constant 0 : index
    %c0_85 = arith.constant 0 : index
    %81 = vector.load %arg4[%c0_84, %c0_85] : memref<128x128xbf16, #tpu.memory_space<vmem>>, vector<128x128xbf16>
    %cst_86 = arith.constant dense<0.000000e+00> : vector<64x128xf32>
    %82 = tpu.matmul %80, %81, %cst_86 {dimension_numbers = #tpu.dot_dimension_numbers<[1], [0], [0], [1], [0, 0, 1, 1], [], []>} : vector<64x128xbf16>, vector<128x128xbf16>, vector<64x128xf32> -> vector<64x128xf32>
    %c0_87 = arith.constant 0 : index
    %c0_88 = arith.constant 0 : index
    %83 = vector.load %arg7[%c0_87, %c0_88] : memref<1x128xf32, #tpu.memory_space<vmem>>, vector<1x128xf32>
    %84 = vector.shape_cast %83 : vector<1x128xf32> to vector<128xf32>
    %85 = vector.shape_cast %84 : vector<128xf32> to vector<1x128xf32>
    %86 = vector.broadcast %85 : vector<1x128xf32> to vector<64x128xf32>
    %87 = arith.mulf %82, %86 : vector<64x128xf32>
    %c0_89 = arith.constant 0 : index
    %c0_90 = arith.constant 0 : index
    %88 = vector.load %arg10[%c0_89, %c0_90] : memref<1x128xf32, #tpu.memory_space<vmem>>, vector<1x128xf32>
    %89 = vector.shape_cast %88 : vector<1x128xf32> to vector<128xf32>
    %90 = vector.shape_cast %89 : vector<128xf32> to vector<1x128xf32>
    %91 = vector.broadcast %90 : vector<1x128xf32> to vector<64x128xf32>
    %92 = arith.addf %87, %91 : vector<64x128xf32>
    %93 = vector.shape_cast %92 : vector<64x128xf32> to vector<8x8x128xf32>
    %c0_91 = arith.constant 0 : index
    %c0_92 = arith.constant 0 : index
    %c0_93 = arith.constant 0 : index
    %c0_94 = arith.constant 0 : index
    %94 = vector.load %arg11[%c0_91, %c0_92, %c0_93, %c0_94] : memref<1x8x8x128xf32, #tpu.memory_space<vmem>>, vector<1x8x8x128xf32>
    %95 = vector.shape_cast %94 : vector<1x8x8x128xf32> to vector<8x8x128xf32>
    %96 = vector.shape_cast %93 : vector<8x8x128xf32> to vector<1x8x8x128xf32>
    tpu.vector_store %arg11[%c0_91, %c0_92, %c0_93, %c0_94], %96 {strides = array<i32>} : memref<1x8x8x128xf32, #tpu.memory_space<vmem>>, vector<1x8x8x128xf32>,
    return
  }
  func.func @transform_0(%arg0: i32) -> (i32, i32, i32, i32) {
    %c0_i32 = arith.constant 0 : i32
    %c0_i32_0 = arith.constant 0 : i32
    %c0_i32_1 = arith.constant 0 : i32
    %c0_i32_2 = arith.constant 0 : i32
    return %arg0, %c0_i32, %c0_i32_0, %c0_i32_1 : i32, i32, i32, i32
  }
  func.func @transform_1(%arg0: i32) -> (i32, i32) {
    %c0_i32 = arith.constant 0 : i32
    %c0_i32_0 = arith.constant 0 : i32
    %c0_i32_1 = arith.constant 0 : i32
    return %c0_i32, %c0_i32_0 : i32, i32
  }
  func.func @transform_2(%arg0: i32) -> (i32, i32) {
    %c0_i32 = arith.constant 0 : i32
    %c0_i32_0 = arith.constant 0 : i32
    %c0_i32_1 = arith.constant 0 : i32
    return %c0_i32, %c0_i32_0 : i32, i32
  }
  func.func @transform_3(%arg0: i32) -> (i32, i32) {
    %c0_i32 = arith.constant 0 : i32
    %c0_i32_0 = arith.constant 0 : i32
    %c0_i32_1 = arith.constant 0 : i32
    return %c0_i32, %c0_i32_0 : i32, i32
  }
  func.func @transform_4(%arg0: i32) -> (i32, i32) {
    %c0_i32 = arith.constant 0 : i32
    %c0_i32_0 = arith.constant 0 : i32
    %c0_i32_1 = arith.constant 0 : i32
    return %c0_i32, %c0_i32_0 : i32, i32
  }
  func.func @transform_5(%arg0: i32) -> (i32, i32) {
    %c0_i32 = arith.constant 0 : i32
    %c0_i32_0 = arith.constant 0 : i32
    %c0_i32_1 = arith.constant 0 : i32
    return %c0_i32, %c0_i32_0 : i32, i32
  }
  func.func @transform_6(%arg0: i32) -> (i32, i32) {
    %c0_i32 = arith.constant 0 : i32
    %c0_i32_0 = arith.constant 0 : i32
    %c0_i32_1 = arith.constant 0 : i32
    return %c0_i32, %c0_i32_0 : i32, i32
  }
  func.func @transform_7(%arg0: i32) -> (i32, i32) {
    %c0_i32 = arith.constant 0 : i32
    %c0_i32_0 = arith.constant 0 : i32
    %c0_i32_1 = arith.constant 0 : i32
    return %c0_i32, %c0_i32_0 : i32, i32
  }
  func.func @transform_8(%arg0: i32) -> (i32, i32) {
    %c0_i32 = arith.constant 0 : i32
    %c0_i32_0 = arith.constant 0 : i32
    %c0_i32_1 = arith.constant 0 : i32
    return %c0_i32, %c0_i32_0 : i32, i32
  }
  func.func @transform_9(%arg0: i32) -> (i32, i32) {
    %c0_i32 = arith.constant 0 : i32
    %c0_i32_0 = arith.constant 0 : i32
    %c0_i32_1 = arith.constant 0 : i32
    return %c0_i32, %c0_i32_0 : i32, i32
  }
  func.func @transform_10(%arg0: i32) -> (i32, i32, i32, i32) {
    %c0_i32 = arith.constant 0 : i32
    %c0_i32_0 = arith.constant 0 : i32
    %c0_i32_1 = arith.constant 0 : i32
    %c0_i32_2 = arith.constant 0 : i32
    return %arg0, %c0_i32, %c0_i32_0, %c0_i32_1 : i32, i32, i32, i32
  }
}

</mosaic_0001>

<bundles_post_ra>
// kernel: _lambda_.12
= control target key start
LH: loop header
LB: loop body
LE: loop exit
PB: predicated region body
PF: predicated region fallthrough
CT: control target
= control target key end

     0   :  { %s1826_s15 = smov 0   ;;  %s2182_s0 = inlined_call_operand.vmem [shape: bf16[2,8,8,128], index: 0, kind: input, shape index: {}]   ;;  %s2183_s1 = inlined_call_operand.vmem [shape: bf16[1152,128], index: 1, kind: input, shape index: {}]   ;;  %s2184_s2 = inlined_call_operand.vmem [shape: f32[1,128], index: 2, kind: input, shape index: {}]   ;;  %s2185_s3 = inlined_call_operand.vmem [shape: f32[1,128], index: 3, kind: input, shape index: {}]   ;;  %s2186_s4 = inlined_call_operand.vmem [shape: bf16[2,8,8,128], index: 4, kind: output, shape index: {}]  }
   0x1 LB: > { %s1363_s16 = sadd.s32 4294967295, %s1798_s15   ;;  %p1367_p0 = scmp.ge.s32.totalorder %s1798_s15, 1  ;;  %s1798_s15 = sphi %s1826_s15, %s14_s15  }
   0x2   : > { %p162_p1 = scmp.lt.s32.totalorder %s1798_s15, 3 }
   0x4   : > { %p163_p2 = pnand %p1367_p0, %p162_p1 }
   0x5   : > { %v1713_v0 = vld [vmem:[%s2183_s1 + $0x40] sm:$0xff] (!%p163_p2)   ;;  %v1800_v3 = vmov (!%p163_p2), 0.0   ;;  %v1717_v5 = vld [vmem:[%s2183_s1 + $0x48] sm:$0xff] (!%p163_p2)   ;;  %v1721_v9 = vld [vmem:[%s2183_s1 + $0x50] sm:$0xff] (!%p163_p2)   ;;  %p188_p3 = scmp.lt.s32.totalorder (!%p163_p2), %s1363_s16, 1 }
   0x6   : > { %166 = sbr.rel (%p163_p2) target bundleno = 330 (0x14a), region = 36  ;;  %v1714_v1 = vld [vmem:[%s2183_s1 + $0xc0] sm:$0xff] (!%p163_p2)   ;;  %1492 = vmatprep.subr.bf16.mxu0 (!%p163_p2), %v1713_v0  ;;  %215 = vst [vmem:[#allocation2] sm:$0xff] (!%p163_p2), %v1800_v3  ;;  %216 = vst [vmem:[#allocation2 + $0x8] sm:$0x3] (!%p163_p2), %v1800_v3  ;;  %v1718_v6 = vld [vmem:[%s2183_s1 + $0xc8] sm:$0xff] (!%p163_p2)  }
   0x7   : > { %v1715_v2 = vld [vmem:[%s2183_s1] sm:$0xff] (!%p163_p2)   ;;  %217 = vst [vmem:[#allocation2 + $0x10] sm:$0xff] (!%p163_p2), %v1800_v3  ;;  %218 = vst [vmem:[#allocation2 + $0x18] sm:$0x3] (!%p163_p2), %v1800_v3  ;;  %1532 = vmatprep.subr.bf16.mxu1 (!%p163_p2), %v1714_v1  ;;  %v1719_v7 = vld [vmem:[%s2183_s1 + $0x8] sm:$0xff] (!%p163_p2)  }
   0x8   : > { %219 = vst [vmem:[#allocation2 + $0x20] sm:$0xff] (!%p163_p2), %v1800_v3  ;;  %220 = vst [vmem:[#allocation2 + $0x28] sm:$0x3] (!%p163_p2), %v1800_v3  ;;  %v1716_v4 = vld [vmem:[%s2183_s1 + $0x80] sm:$0xff] (!%p163_p2)   ;;  %1493 = vmatpush3.bf16.msra.mxu0 (!%p163_p2), %v1715_v2  ;;  %v1720_v8 = vld [vmem:[%s2183_s1 + $0x88] sm:$0xff] (!%p163_p2)  }
   0x9   : > { %221 = vst [vmem:[#allocation2 + $0x30] sm:$0xff] (!%p163_p2), %v1800_v3  ;;  %222 = vst [vmem:[#allocation2 + $0x38] sm:$0x3] (!%p163_p2), %v1800_v3  ;;  %1533 = vmatpush3.bf16.msra.mxu1 (!%p163_p2), %v1716_v4  ;;  %1494 = vmatprep.subr.bf16.mxu0 (!%p163_p2), %v1717_v5  ;;  %v1722_v10 = vld [vmem:[%s2183_s1 + $0xd0] sm:$0xff] (!%p163_p2)   ;;  %v1725_v13 = vld [vmem:[%s2183_s1 + $0x58] sm:$0xff] (!%p163_p2)  }
   0xa   : > { %223 = vst [vmem:[#allocation2 + $0x40] sm:$0xff] (!%p163_p2), %v1800_v3  ;;  %224 = vst [vmem:[#allocation2 + $0x48] sm:$0x3] (!%p163_p2), %v1800_v3  ;;  %1534 = vmatprep.subr.bf16.mxu1 (!%p163_p2), %v1718_v6  ;;  %v1723_v11 = vld [vmem:[%s2183_s1 + $0x10] sm:$0xff] (!%p163_p2)   ;;  %v1726_v14 = vld [vmem:[%s2183_s1 + $0xd8] sm:$0xff] (!%p163_p2)  }
   0xb   : > { %225 = vst [vmem:[#allocation2 + $0x50] sm:$0xff] (!%p163_p2), %v1800_v3  ;;  %226 = vst [vmem:[#allocation2 + $0x58] sm:$0x3] (!%p163_p2), %v1800_v3  ;;  %v1724_v12 = vld [vmem:[%s2183_s1 + $0x90] sm:$0xff] (!%p163_p2)   ;;  %v1727_v15 = vld [vmem:[%s2183_s1 + $0x18] sm:$0xff] (!%p163_p2)  }
   0xc   : > { %227 = vst [vmem:[#allocation2 + $0x60] sm:$0xff] (!%p163_p2), %v1800_v3  ;;  %228 = vst [vmem:[#allocation2 + $0x68] sm:$0x3] (!%p163_p2), %v1800_v3  ;;  %1495 = vmatpush3.bf16.msra.mxu0 (!%p163_p2), %v1719_v7  ;;  %v1728_v16 = vld [vmem:[%s2183_s1 + $0x98] sm:$0xff] (!%p163_p2)   ;;  %v1729_v17 = vld [vmem:[%s2183_s1 + $0x60] sm:$0xff] (!%p163_p2)  }
   0xd   : > { %229 = vst [vmem:[#allocation2 + $0x70] sm:$0xff] %v1800_v3  ;;  %230 = vst [vmem:[#allocation2 + $0x78] sm:$0x3] %v1800_v3  ;;  %1535 = vmatpush3.bf16.msra.mxu1 %v1720_v8  ;;  %1496 = vmatprep.subr.bf16.mxu0 %v1721_v9  ;;  %v1730_v18 = vld [vmem:[%s2183_s1 + $0xe0] sm:$0xff]   ;;  %v1733_v21 = vld [vmem:[%s2183_s1 + $0x68] sm:$0xff]   ;;  %s2188_s16 = smov (!%p188_p3, %s1363_s16), 1 }
   0xe   : > { %231 = vst [vmem:[#allocation2 + $0x80] sm:$0xff] %v1800_v3  ;;  %232 = vst [vmem:[#allocation2 + $0x88] sm:$0x3] %v1800_v3  ;;  %1536 = vmatprep.subr.bf16.mxu1 %v1722_v10  ;;  %v1731_v19 = vld [vmem:[%s2183_s1 + $0x20] sm:$0xff]   ;;  %v1734_v22 = vld [vmem:[%s2183_s1 + $0xe8] sm:$0xff]   ;;  %s1448_s23 = sshll.u32 %s2188_s16, 5 }
   0xf   : > { %233 = vst [vmem:[#allocation2 + $0x90] sm:$0xff] %v1800_v3  ;;  %234 = vst [vmem:[#allocation2 + $0x98] sm:$0x3] %v1800_v3  ;;  %v1732_v20 = vld [vmem:[%s2183_s1 + $0xa0] sm:$0xff]   ;;  %v1735_v23 = vld [vmem:[%s2183_s1 + $0x28] sm:$0xff]   ;;  %s1956_s6 = scalar_lea.vmem %s2182_s0, %s1448_s23  ;;  %s197_s8 = scalar_lea.vmem %s2186_s4, %s1448_s23 }
  0x10   : > { %1497 = vmatpush3.bf16.msra.mxu0 %v1723_v11  ;;  %v1736_v24 = vld [vmem:[%s2183_s1 + $0xa8] sm:$0xff]   ;;  %v1737_v25 = vld [vmem:[%s2183_s1 + $0x70] sm:$0xff]   ;;  %v1741_v29 = vld [vmem:[%s2183_s1 + $0x78] sm:$0xff]  }
  0x11   : > { %1537 = vmatpush3.bf16.msra.mxu1 %v1724_v12  ;;  %1498 = vmatprep.subr.bf16.mxu0 %v1725_v13  ;;  %v1738_v26 = vld [vmem:[%s2183_s1 + $0xf0] sm:$0xff]   ;;  %v1742_v30 = vld [vmem:[%s2183_s1 + $0xf8] sm:$0xff]   ;;  %v1451_v33 = vld [vmem:[%s1956_s6] sm:$0xff]  }
  0x12   : > { %1538 = vmatprep.subr.bf16.mxu1 %v1726_v14  ;;  %v1739_v27 = vld [vmem:[%s2183_s1 + $0x30] sm:$0xff]   ;;  %v1743_v31 = vld [vmem:[%s2183_s1 + $0x38] sm:$0xff]   ;;  %v252_v34 = vld [vmem:[#allocation2 + $0x1] sm:$0xff]  ;;  %v1452_v35 = vunpack.c.l.bf16 %v1451_v33  ;;  %v1453_v36 = vunpack.c.h.bf16 %v1451_v33 }
  0x13   : > { %v1740_v28 = vld [vmem:[%s2183_s1 + $0xb0] sm:$0xff]   ;;  %v1744_v32 = vld [vmem:[%s2183_s1 + $0xb8] sm:$0xff]   ;;  %v1745_v37 = vld [vmem:[%s2183_s1 + $0x140] sm:$0xff]  }
  0x14   : > { %1499 = vmatpush3.bf16.msra.mxu0 %v1727_v15  ;;  %v1746_v38 = vld [vmem:[%s2183_s1 + $0x1c0] sm:$0xff]   ;;  %236 = vst [vmem:[#allocation2 + $0x11] sm:$0xff] %v1452_v35  ;;  %v318_v39 = vpack.c.bf16 %v1452_v35, %v252_v34  ;;  %237 = vst [vmem:[#allocation2 + $0x21] sm:$0xff] %v1453_v36  ;;  %v1486_v43 = vld [vmem:[%s1956_s6 + $0x8] sm:$0xff]  }
  0x15   : > { %1539 = vmatpush3.bf16.msra.mxu1 %v1728_v16  ;;  %1500 = vmatprep.subr.bf16.mxu0 %v1729_v17  ;;  %v260_v40 = vld [vmem:[#allocation2 + $0x2] sm:$0xff]  ;;  %v1456_v47 = vunpack.c.l.bf16 %v1486_v43  ;;  %v1457_v48 = vunpack.c.h.bf16 %v1486_v43  ;;  %v1754_v58 = vld [vmem:[%s2183_s1 + $0x150] sm:$0xff]   ;;  %v1758_v5 = vld [vmem:[%s2183_s1 + $0x158] sm:$0xff]  }
  0x16   : > { %1540 = vmatprep.subr.bf16.mxu1 %v1730_v18  ;;  %961 = vmatprep.mubr.bf16.mxu0 %v318_v39  ;;  %v1747_v41 = vld [vmem:[%s2183_s1 + $0x100] sm:$0xff]   ;;  %v1749_v52 = vld [vmem:[%s2183_s1 + $0x148] sm:$0xff]   ;;  %v1755_v59 = vld [vmem:[%s2183_s1 + $0x1d0] sm:$0xff]  }
  0x17   : > { %v1748_v42 = vld [vmem:[%s2183_s1 + $0x180] sm:$0xff]   ;;  %v1750_v53 = vld [vmem:[%s2183_s1 + $0x1c8] sm:$0xff]   ;;  %238 = vst [vmem:[#allocation2 + $0x31] sm:$0xff] %v1456_v47  ;;  %239 = vst [vmem:[#allocation2 + $0x41] sm:$0xff] %v1457_v48 }
  0x18   : > { %1501 = vmatpush3.bf16.msra.mxu0 %v1731_v19  ;;  %v1989_v54 = vld [vmem:[%s1956_s6 + $0x4] ss:$4 sps:$4 sm:$0xff]   ;;  %v1756_v60 = vld [vmem:[%s2183_s1 + $0x110] sm:$0xff]   ;;  %v1759_v6 = vld [vmem:[%s2183_s1 + $0x1d8] sm:$0xff]  }
  0x19   : > { %1541 = vmatpush3.bf16.msra.mxu1 %v1732_v20  ;;  %1502 = vmatprep.subr.bf16.mxu0 %v1733_v21  ;;  %v1751_v55 = vld [vmem:[%s2183_s1 + $0x108] sm:$0xff]   ;;  %v1757_v61 = vld [vmem:[%s2183_s1 + $0x190] sm:$0xff]   ;;  %v1760_v8 = vld [vmem:[%s2183_s1 + $0x118] sm:$0xff]  }
  0x1a   : > { %1542 = vmatprep.subr.bf16.mxu1 %v1734_v22  ;;  %v1752_v56 = vld [vmem:[%s2183_s1 + $0x188] sm:$0xff]   ;;  %v1487_v7 = vld [vmem:[%s1956_s6 + $0x10] sm:$0xff]   ;;  %v1761_v12 = vld [vmem:[%s2183_s1 + $0x198] sm:$0xff]  }
  0x1b   : > { %v268_v44 = vld [vmem:[#allocation2 + $0x10] sm:$0xff]  ;;  %v269_v45 = vld [vmem:[#allocation2 + $0x20] sm:$0xff]  ;;  %v1460_v9 = vunpack.c.l.bf16 %v1487_v7  ;;  %v1461_v11 = vunpack.c.h.bf16 %v1487_v7  ;;  %v1767_v18 = vld [vmem:[%s2183_s1 + $0x168] sm:$0xff]  }
  0x1c   : > { %1503 = vmatpush3.bf16.msra.mxu0 %v1735_v23  ;;  %v1978_v46 = vld [vmem:[#allocation2 + $0x12] sm:$0xff]  ;;  %v320_v49 = vpack.c.bf16 %v269_v45, %v268_v44  ;;  %v317_v50 = vpack.c.bf16 %v268_v44, %v1800_v3  ;;  %v1997_v57 = vld [vmem:[#allocation2 + $0x22] sm:$0xff] }
  0x1d   : > { %1543 = vmatpush3.bf16.msra.mxu1 %v1736_v24  ;;  %1504 = vmatprep.subr.bf16.mxu0 %v1737_v25  ;;  %v319_v51 = vpack.c.bf16 %v1978_v46, %v260_v40  ;;  %v2031_v10 = vld [vmem:[%s1956_s6 + $0xc] ss:$4 sps:$4 sm:$0xff]   ;;  %240 = vst [vmem:[#allocation2 + $0x51] sm:$0xff] %v1460_v9  ;;  %241 = vst [vmem:[#allocation2 + $0x61] sm:$0xff] %v1461_v11  ;;  %v1763_v13 = vld [vmem:[%s2183_s1 + $0x160] sm:$0xff]   ;;  %v322_v43 = vpack.c.bf16 %v1997_v57, %v1978_v46 }
  0x1e   : > { %1544 = vmatprep.subr.bf16.mxu1 %v1738_v26  ;;  %1026 = vmatprep.mubr.bf16.mxu1 %v320_v49  ;;  %v270_v62 = vld [vmem:[#allocation2 + $0x30] sm:$0xff]  ;;  %v271_v63 = vld [vmem:[#allocation2 + $0x40] sm:$0xff]  ;;  %v1768_v19 = vld [vmem:[%s2183_s1 + $0x1e8] sm:$0xff]  }
  0x1f   : > { %v2012_v0 = vld [vmem:[#allocation2 + $0x32] sm:$0xff]  ;;  %v329_v1 = vpack.c.bf16 %v271_v63, %v270_v62  ;;  %v2014_v2 = vpack.c.bf16 %v270_v62, %v269_v45  ;;  %v1764_v14 = vld [vmem:[%s2183_s1 + $0x1e0] sm:$0xff]   ;;  %v1769_v20 = vld [vmem:[%s2183_s1 + $0x128] sm:$0xff]  }
  0x20   : > { %1505 = vmatpush3.bf16.msra.mxu0 %v1739_v27  ;;  %v2018_v4 = vpack.c.bf16 %v2012_v0, %v1997_v57  ;;  %v1765_v15 = vld [vmem:[%s2183_s1 + $0x120] sm:$0xff]   ;;  %v2063_v21 = vld [vmem:[%s1956_s6 + $0x18] sm:$0xff]   ;;  %v1773_v33 = vld [vmem:[%s2183_s1 + $0x1f0] sm:$0xff]  }
  0x21   : > { %1545 = vmatpush3.bf16.msra.mxu1 %v1740_v28  ;;  %1506 = vmatprep.subr.bf16.mxu0 %v1741_v29  ;;  %v2048_v16 = vld [vmem:[#allocation2 + $0x42] sm:$0xff]  ;;  %v1464_v25 = vunpack.c.l.bf16 %v2063_v21  ;;  %v1465_v26 = vunpack.c.h.bf16 %v2063_v21  ;;  %v1774_v34 = vld [vmem:[%s2183_s1 + $0x130] sm:$0xff]   ;;  %v1778_v39 = vld [vmem:[%s2183_s1 + $0x138] sm:$0xff]  }
  0x22   : > { %1546 = vmatprep.subr.bf16.mxu1 %v1742_v30  ;;  %v1766_v17 = vld [vmem:[%s2183_s1 + $0x1a0] sm:$0xff]   ;;  %v1770_v30 = vld [vmem:[%s2183_s1 + $0x1a8] sm:$0xff]   ;;  %v1775_v36 = vld [vmem:[%s2183_s1 + $0x1b0] sm:$0xff]  }
  0x23   : > { %242 = vst [vmem:[#allocation2 + $0x71] sm:$0xff] %v1464_v25  ;;  %243 = vst [vmem:[#allocation2 + $0x81] sm:$0xff] %v1465_v26  ;;  %v1779_v48 = vld [vmem:[%s2183_s1 + $0x1b8] sm:$0xff]   ;;  %v1781_v49 = vld [vmem:[%s2183_s1 + $0x200] sm:$0xff]  }
  0x24   : > { %1507 = vmatpush3.bf16.msra.mxu0 %v1743_v31  ;;  %v272_v22 = vld [vmem:[#allocation2 + $0x50] sm:$0xff]  ;;  %v273_v23 = vld [vmem:[#allocation2 + $0x60] sm:$0xff] }
  0x25   : > { %1547 = vmatpush3.bf16.msra.mxu1 %v1744_v32  ;;  %1572 = vmatprep.subr.bf16.mxu0 %v1745_v37  ;;  %v2065_v24 = vld [vmem:[#allocation2 + $0x52] sm:$0xff]  ;;  %v338_v27 = vpack.c.bf16 %v273_v23, %v272_v22  ;;  %v2069_v28 = vpack.c.bf16 %v272_v22, %v271_v63  ;;  %v266_v35 = vld [vmem:[#allocation2 + $0x62] sm:$0xff] }
  0x26   : > { %1612 = vmatprep.subr.bf16.mxu1 %v1746_v38  ;;  %v2073_v29 = vpack.c.bf16 %v2065_v24, %v2048_v16  ;;  %v2079_v31 = vld [vmem:[%s1956_s6 + $0x14] ss:$4 sps:$4 sm:$0xff]   ;;  %v1780_v46 = vld [vmem:[%s1956_s6] sm:$0xff] }
  0x27   : > { %962 = vmatmul.mubr.bf16.vlgmr.msra.gmra.mrb[0].mxu0 %v317_v50  ;;  %v1772_v32 = vld [vmem:[%s2183_s1 + $0x170] sm:$0xff]   ;;  %v1776_v37 = vld [vmem:[%s2183_s1 + $0x178] sm:$0xff]   ;;  %v1782_v50 = vld [vmem:[%s2183_s1 + $0x208] sm:$0xff]  }
  0x28   : > { %1027 = vmatmul.mubr.bf16.vlgmr.msra.gmra.mrb[0].mxu1 %v319_v51  ;;  %1573 = vmatpush3.bf16.msra.mxu0 %v1747_v41  ;;  %v1777_v38 = vld [vmem:[%s2183_s1 + $0x1f8] sm:$0xff]   ;;  %v331_v51 = vpack.c.bf16 %v2048_v16, %v2012_v0  ;;  %v1786_v57 = vld [vmem:[%s1956_s6 + $0x10] sm:$0xff] }
  0x29   : > { %1613 = vmatpush3.bf16.msra.mxu1 %v1748_v42  ;;  %1574 = vmatprep.subr.bf16.mxu0 %v1749_v52  ;;  %v1784_v52 = vld [vmem:[%s2183_s1 + $0x210] sm:$0xff]   ;;  %v1789_v0 = vld [vmem:[%s1956_s6 + $0x18] sm:$0xff] }
  0x2a   : > { %1614 = vmatprep.subr.bf16.mxu1 %v1750_v53  ;;  %969 = vmatprep.mubr.bf16.mxu0 %v1989_v54  ;;  %v274_v40 = vld [vmem:[#allocation2 + $0x70] sm:$0xff]  ;;  %v2107_v41 = vld [vmem:[#allocation2 + $0x80] sm:$0xff]  ;;  %v1783_v53 = vld [vmem:[%s1956_s6 + $0x8] sm:$0xff] }
  0x2b   : > { %1034 = vmatprep.mubr.bf16.mxu1 %v329_v1  ;;  %v2109_v42 = vld [vmem:[#allocation2 + $0x72] sm:$0xff]  ;;  %v347_v44 = vpack.c.bf16 %v2107_v41, %v274_v40  ;;  %v344_v45 = vpack.c.bf16 %v274_v40, %v273_v23  ;;  %v350_v1 = vpack.c.bf16 %v1800_v3, %v2107_v41 }
  0x2c   : > { %1575 = vmatpush3.bf16.msra.mxu0 %v1751_v55  ;;  %v2115_v47 = vpack.c.bf16 %v2109_v42, %v266_v35  ;;  %v340_v55 = vpack.c.bf16 %v266_v35, %v2065_v24  ;;  %v1790_v63 = vld [vmem:[%s2183_s1 + $0x230] sm:$0xff]  }
  0x2d   : > { %1615 = vmatpush3.bf16.msra.mxu1 %v1752_v56  ;;  %1576 = vmatprep.subr.bf16.mxu0 %v1754_v58  ;;  %v1787_v56 = vld [vmem:[%s2183_s1 + $0x220] sm:$0xff]  }
  0x2e   : > { %1616 = vmatprep.subr.bf16.mxu1 %v1755_v59  ;;  %v291_v58 = vld [vmem:[#allocation2 + $0x82] sm:$0xff]  ;;  %v308_v59 = vld [vmem:[#allocation2 + $0x91] sm:$0xff] }
  0x2f   : > { %970 = vmatmul.mubr.bf16.gmra.mrb[4].mxu0 %v2014_v2  ;;  %v351_v62 = vpack.c.bf16 %v308_v59, %v1465_v26 }
  0x30   : > { %1035 = vmatmul.mubr.bf16.gmra.mrb[4].mxu1 %v2018_v4  ;;  %1577 = vmatpush3.bf16.msra.mxu0 %v1756_v60  ;;  %v1788_v60 = vld [vmem:[%s2183_s1 + $0x228] sm:$0xff]  }
  0x31   : > { %1617 = vmatpush3.bf16.msra.mxu1 %v1757_v61  ;;  %1578 = vmatprep.subr.bf16.mxu0 %v1758_v5  ;;  %v349_v61 = vpack.c.bf16 %v291_v58, %v2109_v42  ;;  %v316_v5 = vld [vmem:[#allocation2 + $0x92] sm:$0xff] }
  0x32   : > { %1618 = vmatprep.subr.bf16.mxu1 %v1759_v6  ;;  %977 = vmatprep.mubr.bf16.mxu0 %v2031_v10  ;;  %v352_v3 = vpack.c.bf16 %v316_v5, %v291_v58 }
  0x33   : > { %1042 = vmatprep.mubr.bf16.mxu1 %v338_v27 }
  0x34   : > { %1579 = vmatpush3.bf16.msra.mxu0 %v1760_v8 }
  0x35   : > { %1619 = vmatpush3.bf16.msra.mxu1 %v1761_v12  ;;  %1580 = vmatprep.subr.bf16.mxu0 %v1763_v13 }
  0x36   : > { %1620 = vmatprep.subr.bf16.mxu1 %v1764_v14 }
  0x37   : > { %978 = vmatmul.mubr.bf16.gmra.mrb[8].mxu0 %v2069_v28 }
  0x38   : > { %1581 = vmatpush3.bf16.msra.mxu0 %v1765_v15  ;;  %1043 = vmatmul.mubr.bf16.gmra.mrb[8].mxu1 %v2073_v29 }
  0x39   : > { %1621 = vmatpush3.bf16.msra.mxu1 %v1766_v17  ;;  %1582 = vmatprep.subr.bf16.mxu0 %v1767_v18 }
  0x3a   : > { %1622 = vmatprep.subr.bf16.mxu1 %v1768_v19  ;;  %985 = vmatprep.mubr.bf16.mxu0 %v2079_v31 }
  0x3b   : > { %1050 = vmatprep.mubr.bf16.mxu1 %v347_v44 }
  0x3c   : > { %1583 = vmatpush3.bf16.msra.mxu0 %v1769_v20 }
  0x3d   : > { %1623 = vmatpush3.bf16.msra.mxu1 %v1770_v30  ;;  %1584 = vmatprep.subr.bf16.mxu0 %v1772_v32 }
  0x3e   : > { %1624 = vmatprep.subr.bf16.mxu1 %v1773_v33 }
  0x3f   : > { %986 = vmatmul.mubr.bf16.gmra.mrb[12].mxu0 %v344_v45 }
  0x40   : > { %1585 = vmatpush3.bf16.msra.mxu0 %v1774_v34  ;;  %1051 = vmatmul.mubr.bf16.gmra.mrb[12].mxu1 %v2115_v47 }
  0x41   : > { %1625 = vmatpush3.bf16.msra.mxu1 %v1775_v36  ;;  %1586 = vmatprep.subr.bf16.mxu0 %v1776_v37 }
  0x42   : > { %1626 = vmatprep.subr.bf16.mxu1 %v1777_v38  ;;  %1091 = vmatprep.mubr.bf16.mxu0 %v322_v43 }
  0x43   : > { %1156 = vmatprep.mubr.bf16.mxu1 %v1989_v54  ;;  %v1785_v54 = vld [vmem:[%s2183_s1 + $0x218] sm:$0xff]  }
  0x44   : > { %1587 = vmatpush3.bf16.msra.mxu0 %v1778_v39 }
  0x45   : > { %1627 = vmatpush3.bf16.msra.mxu1 %v1779_v48  ;;  %1664 = vmatprep.subr.bf16.mxu0 %v1781_v49 }
  0x46   : > { %1688 = vmatprep.subr.bf16.mxu1 %v1781_v49 }
  0x47   : > { %1092 = vmatmul.mubr.bf16.vlgmr.msra.gmra.mrb[16].mxu0 %v1780_v46 }
  0x48   : > { %1157 = vmatmul.mubr.bf16.vlgmr.msra.gmra.mrb[16].mxu1 %v2014_v2  ;;  %1665 = vmatpush3.bf16.msra.mxu0 %v1781_v49  ;;  %v1791_v2 = vld [vmem:[%s2183_s1 + $0x238] sm:$0xff]  }
  0x49   : > { %1696 = vmatpush3.bf16.msra.mxu1 %v1781_v49  ;;  %1666 = vmatprep.subr.bf16.mxu0 %v1782_v50 }
  0x4a   : > { %1689 = vmatprep.subr.bf16.mxu1 %v1782_v50  ;;  %1099 = vmatprep.mubr.bf16.mxu0 %v331_v51 }
  0x4b   : > { %1164 = vmatprep.mubr.bf16.mxu1 %v2031_v10 }
  0x4c   : > { %1667 = vmatpush3.bf16.msra.mxu0 %v1782_v50 }
  0x4d   : > { %1697 = vmatpush3.bf16.msra.mxu1 %v1782_v50  ;;  %1668 = vmatprep.subr.bf16.mxu0 %v1784_v52 }
  0x4e   : > { %1690 = vmatprep.subr.bf16.mxu1 %v1784_v52 }
  0x4f   : > { %1100 = vmatmul.mubr.bf16.gmra.mrb[20].mxu0 %v1783_v53 }
  0x50   : > { %1165 = vmatmul.mubr.bf16.gmra.mrb[20].mxu1 %v2069_v28  ;;  %1669 = vmatpush3.bf16.msra.mxu0 %v1784_v52 }
  0x51   : > { %1698 = vmatpush3.bf16.msra.mxu1 %v1784_v52  ;;  %1670 = vmatprep.subr.bf16.mxu0 %v1785_v54 }
  0x52   : > { %1691 = vmatprep.subr.bf16.mxu1 %v1785_v54  ;;  %1107 = vmatprep.mubr.bf16.mxu0 %v340_v55 }
  0x53   : > { %1172 = vmatprep.mubr.bf16.mxu1 %v2079_v31 }
  0x54   : > { %1671 = vmatpush3.bf16.msra.mxu0 %v1785_v54 }
  0x55   : > { %1699 = vmatpush3.bf16.msra.mxu1 %v1785_v54  ;;  %1672 = vmatprep.subr.bf16.mxu0 %v1787_v56 }
  0x56   : > { %1692 = vmatprep.subr.bf16.mxu1 %v1787_v56 }
  0x57   : > { %1108 = vmatmul.mubr.bf16.gmra.mrb[24].mxu0 %v1786_v57 }
  0x58   : > { %1173 = vmatmul.mubr.bf16.gmra.mrb[24].mxu1 %v344_v45  ;;  %1673 = vmatpush3.bf16.msra.mxu0 %v1787_v56 }
  0x59   : > { %1700 = vmatpush3.bf16.msra.mxu1 %v1787_v56  ;;  %1674 = vmatprep.subr.bf16.mxu0 %v1788_v60 }
  0x5a   : > { %1693 = vmatprep.subr.bf16.mxu1 %v1788_v60  ;;  %1115 = vmatprep.mubr.bf16.mxu0 %v349_v61 }
  0x5b   : > { %1180 = vmatprep.mubr.bf16.mxu1 %v351_v62 }
  0x5c   : > { %1675 = vmatpush3.bf16.msra.mxu0 %v1788_v60 }
  0x5d   : > { %1701 = vmatpush3.bf16.msra.mxu1 %v1788_v60  ;;  %1676 = vmatprep.subr.bf16.mxu0 %v1790_v63 }
  0x5e   : > { %1694 = vmatprep.subr.bf16.mxu1 %v1790_v63 }
  0x5f   : > { %1116 = vmatmul.mubr.bf16.gmra.mrb[28].mxu0 %v1789_v0 }
  0x60   : > { %1181 = vmatmul.mubr.bf16.gmra.mrb[28].mxu1 %v350_v1  ;;  %1677 = vmatpush3.bf16.msra.mxu0 %v1790_v63 }
  0x61   : > { %1702 = vmatpush3.bf16.msra.mxu1 %v1790_v63  ;;  %1678 = vmatprep.subr.bf16.mxu0 %v1791_v2 }
  0x62   : > { %1695 = vmatprep.subr.bf16.mxu1 %v1791_v2  ;;  %1680 = vmatprep.mubr.bf16.mxu0 %v2018_v4 }
  0x63   : > { %1684 = vmatprep.mubr.bf16.mxu1 %v2115_v47 }
  0x64   : > { %1679 = vmatpush3.bf16.msra.mxu0 %v1791_v2 }
  0x65   : > { %1703 = vmatpush3.bf16.msra.mxu1 %v1791_v2 }
  0x67   : > { %1681 = vmatmul.mubr.bf16.vlgmr.msra.gmra.mrb[32].mxu0 %v2073_v29 }
  0x68   : > { %1685 = vmatmul.mubr.bf16.vlgmr.msra.gmra.mrb[32].mxu1 %v352_v3 }
  0xfa   : > { %v1508_v6 = vpop.f32.mrb[0].mxu0 }
  0xfb   : > { %v1548_v7 = vpop.f32.mrb[0].mxu1  ;;  %v1509_v8 = vpop.f32.mrb[1].mxu0 }
  0xfc   : > { %v1510_v9 = vadd.f32 %v1509_v8, %v1508_v6  ;;  %v1549_v10 = vpop.f32.mrb[1].mxu1  ;;  %v1511_v11 = vpop.f32.mrb[2].mxu0 }
  0xfd   : > { %v1550_v12 = vadd.f32 %v1549_v10, %v1548_v7  ;;  %v1551_v13 = vpop.f32.mrb[2].mxu1  ;;  %v1512_v14 = vpop.f32.mrb[3].mxu0 }
  0xfe   : > { %v1513_v15 = vadd.f32 %v1512_v14, %v1511_v11  ;;  %v1552_v16 = vpop.f32.mrb[3].mxu1 }
  0xff   : > { %v1029_v4 = vadd.f32 %v1550_v12, %v1510_v9  ;;  %v1553_v17 = vadd.f32 %v1552_v16, %v1551_v13 }
 0x101   : > { %v1032_v18 = vadd.f32 %v1553_v17, %v1513_v15 }
 0x102   : > { %v1514_v19 = vpop.f32.mrb[4].mxu0 }
 0x103   : > { %v1554_v20 = vpop.f32.mrb[4].mxu1  ;;  %v1515_v21 = vpop.f32.mrb[5].mxu0 }
 0x104   : > { %v1516_v22 = vadd.f32 %v1515_v21, %v1514_v19  ;;  %v1555_v23 = vpop.f32.mrb[5].mxu1  ;;  %v1517_v24 = vpop.f32.mrb[6].mxu0 }
 0x105   : > { %v1556_v25 = vadd.f32 %v1555_v23, %v1554_v20  ;;  %v1557_v26 = vpop.f32.mrb[6].mxu1  ;;  %v1518_v27 = vpop.f32.mrb[7].mxu0 }
 0x106   : > { %v1519_v28 = vadd.f32 %v1518_v27, %v1517_v24  ;;  %v1558_v29 = vpop.f32.mrb[7].mxu1 }
 0x107   : > { %v1037_v30 = vadd.f32 %v1556_v25, %v1516_v22  ;;  %v1559_v31 = vadd.f32 %v1558_v29, %v1557_v26 }
 0x109   : > { %v1040_v32 = vadd.f32 %v1559_v31, %v1519_v28 }
 0x10a   : > { %v1520_v33 = vpop.f32.mrb[8].mxu0 }
 0x10b   : > { %v1560_v34 = vpop.f32.mrb[8].mxu1  ;;  %v1521_v35 = vpop.f32.mrb[9].mxu0 }
 0x10c   : > { %v1522_v36 = vadd.f32 %v1521_v35, %v1520_v33  ;;  %v1561_v37 = vpop.f32.mrb[9].mxu1  ;;  %v1523_v38 = vpop.f32.mrb[10].mxu0 }
 0x10d   : > { %v1562_v39 = vadd.f32 %v1561_v37, %v1560_v34  ;;  %v1563_v40 = vpop.f32.mrb[10].mxu1  ;;  %v1524_v41 = vpop.f32.mrb[11].mxu0 }
 0x10e   : > { %v1525_v42 = vadd.f32 %v1524_v41, %v1523_v38  ;;  %v1564_v43 = vpop.f32.mrb[11].mxu1 }
 0x10f   : > { %v1045_v44 = vadd.f32 %v1562_v39, %v1522_v36  ;;  %v1565_v45 = vadd.f32 %v1564_v43, %v1563_v40 }
 0x111   : > { %v1048_v47 = vadd.f32 %v1565_v45, %v1525_v42 }
 0x112   : > { %v1526_v48 = vpop.f32.mrb[12].mxu0 }
 0x113   : > { %v1566_v49 = vpop.f32.mrb[12].mxu1  ;;  %v1527_v46 = vpop.f32.mrb[13].mxu0 }
 0x114   : > { %v1528_v50 = vadd.f32 %v1527_v46, %v1526_v48  ;;  %v1567_v51 = vpop.f32.mrb[13].mxu1  ;;  %v1529_v52 = vpop.f32.mrb[14].mxu0 }
 0x115   : > { %v1568_v53 = vadd.f32 %v1567_v51, %v1566_v49  ;;  %v1569_v54 = vpop.f32.mrb[14].mxu1  ;;  %v1530_v55 = vpop.f32.mrb[15].mxu0 }
 0x116   : > { %v1531_v56 = vadd.f32 %v1530_v55, %v1529_v52  ;;  %v1570_v57 = vpop.f32.mrb[15].mxu1 }
 0x117   : > { %v1053_v58 = vadd.f32 %v1568_v53, %v1528_v50  ;;  %v1571_v59 = vadd.f32 %v1570_v57, %v1569_v54 }
 0x119   : > { %v1056_v60 = vadd.f32 %v1571_v59, %v1531_v56 }
 0x11a   : > { %v1588_v61 = vpop.f32.mrb[16].mxu0 }
 0x11b   : > { %v1628_v62 = vpop.f32.mrb[16].mxu1  ;;  %v1589_v63 = vpop.f32.mrb[17].mxu0 }
 0x11c   : > { %v1590_v0 = vadd.f32 %v1589_v63, %v1588_v61  ;;  %v1629_v1 = vpop.f32.mrb[17].mxu1  ;;  %v1591_v2 = vpop.f32.mrb[18].mxu0 }
 0x11d   : > { %v1630_v5 = vadd.f32 %v1629_v1, %v1628_v62  ;;  %v1631_v3 = vpop.f32.mrb[18].mxu1  ;;  %v1592_v6 = vpop.f32.mrb[19].mxu0 }
 0x11e   : > { %v1094_v7 = vadd.f32 %v1590_v0, %v1029_v4  ;;  %v1593_v8 = vadd.f32 %v1592_v6, %v1591_v2  ;;  %v1632_v9 = vpop.f32.mrb[19].mxu1 }
 0x11f   : > { %v1633_v10 = vadd.f32 %v1632_v9, %v1631_v3  ;;  %v1445_v3 = vld [vmem:[%s2185_s3] ss:$0 sm:$0xff] }
 0x120   : > { %v1097_v11 = vadd.f32 %v1593_v8, %v1032_v18  ;;  %v1159_v12 = vadd.f32 %v1630_v5, %v1094_v7 }
 0x122   : > { %v1594_v13 = vpop.f32.mrb[20].mxu0  ;;  %v2165_v14 = vadd.f32 %v1633_v10, %v1097_v11 }
 0x123   : > { %v1634_v15 = vpop.f32.mrb[20].mxu1  ;;  %v1595_v16 = vpop.f32.mrb[21].mxu0 }
 0x124   : > { %v1596_v17 = vadd.f32 %v1595_v16, %v1594_v13  ;;  %v1635_v19 = vpop.f32.mrb[21].mxu1  ;;  %v1597_v20 = vpop.f32.mrb[22].mxu0 }
 0x125   : > { %v1636_v21 = vadd.f32 %v1635_v19, %v1634_v15  ;;  %v1637_v22 = vpop.f32.mrb[22].mxu1  ;;  %v1598_v23 = vpop.f32.mrb[23].mxu0 }
 0x126   : > { %v1102_v24 = vadd.f32 %v1596_v17, %v1037_v30  ;;  %v1599_v25 = vadd.f32 %v1598_v23, %v1597_v20  ;;  %v1638_v26 = vpop.f32.mrb[23].mxu1 }
 0x127   : > { %v1639_v4 = vadd.f32 %v1638_v26, %v1637_v22 }
 0x128   : > { %v1105_v27 = vadd.f32 %v1599_v25, %v1040_v32  ;;  %v1167_v28 = vadd.f32 %v1636_v21, %v1102_v24 }
 0x12a   : > { %v1600_v29 = vpop.f32.mrb[24].mxu0  ;;  %v1170_v18 = vadd.f32 %v1639_v4, %v1105_v27 }
 0x12b   : > { %v1640_v31 = vpop.f32.mrb[24].mxu1  ;;  %v1601_v33 = vpop.f32.mrb[25].mxu0 }
 0x12c   : > { %v1602_v34 = vadd.f32 %v1601_v33, %v1600_v29  ;;  %v1641_v35 = vpop.f32.mrb[25].mxu1  ;;  %v1603_v36 = vpop.f32.mrb[26].mxu0 }
 0x12d   : > { %v1642_v37 = vadd.f32 %v1641_v35, %v1640_v31  ;;  %v1643_v38 = vpop.f32.mrb[26].mxu1  ;;  %v1604_v39 = vpop.f32.mrb[27].mxu0 }
 0x12e   : > { %v1110_v40 = vadd.f32 %v1602_v34, %v1045_v44  ;;  %v1605_v41 = vadd.f32 %v1604_v39, %v1603_v36  ;;  %v1644_v42 = vpop.f32.mrb[27].mxu1 }
 0x12f   : > { %v1645_v43 = vadd.f32 %v1644_v42, %v1643_v38 }
 0x130   : > { %v1113_v30 = vadd.f32 %v1605_v41, %v1048_v47  ;;  %v1175_v45 = vadd.f32 %v1642_v37, %v1110_v40  ;;  %v1444_v47 = vld [vmem:[%s2184_s2] ss:$0 sm:$0xff] }
 0x132   : > { %v1606_v48 = vpop.f32.mrb[28].mxu0  ;;  %v1178_v49 = vadd.f32 %v1645_v43, %v1113_v30 }
 0x133   : > { %v1646_v32 = vpop.f32.mrb[28].mxu1  ;;  %v1607_v46 = vpop.f32.mrb[29].mxu0 }
 0x134   : > { %v1608_v50 = vadd.f32 %v1607_v46, %v1606_v48  ;;  %v1647_v51 = vpop.f32.mrb[29].mxu1  ;;  %v1609_v52 = vpop.f32.mrb[30].mxu0 }
 0x135   : > { %v1648_v53 = vadd.f32 %v1647_v51, %v1646_v32  ;;  %v1649_v54 = vpop.f32.mrb[30].mxu1  ;;  %v1610_v55 = vpop.f32.mrb[31].mxu0 }
 0x136   : > { %v1118_v56 = vadd.f32 %v1608_v50, %v1053_v58  ;;  %v1611_v57 = vadd.f32 %v1610_v55, %v1609_v52  ;;  %v1650_v59 = vpop.f32.mrb[31].mxu1 }
 0x137   : > { %v1651_v61 = vadd.f32 %v1650_v59, %v1649_v54 }
 0x138   : > { %v1121_v44 = vadd.f32 %v1611_v57, %v1056_v60  ;;  %v1183_v62 = vadd.f32 %v1648_v53, %v1118_v56 }
 0x13a   : > { %v1682_v63 = vpop.f32.mrb[32].mxu0  ;;  %v1186_v0 = vadd.f32 %v1651_v61, %v1121_v44 }
 0x13b   : > { %v1232_v1 = vadd.f32 %v1682_v63, %v1167_v28  ;;  %v1686_v2 = vpop.f32.mrb[32].mxu1  ;;  %v1223_v5 = vpop.f32.mrb[33].mxu0 }
 0x13c   : > { %v1248_v6 = vadd.f32 %v1686_v2, %v1183_v62  ;;  %v1224_v58 = vadd.f32 %v1223_v5, %v1159_v12  ;;  %v1239_v7 = vpop.f32.mrb[33].mxu1  ;;  %v1683_v8 = vpop.f32.mrb[34].mxu0 }
 0x13d   : > { %v1263_v9 = vmul.f32 %v1444_v47, %v1232_v1  ;;  %v1240_v60 = vadd.f32 %v1239_v7, %v1175_v45  ;;  %v1235_v10 = vadd.f32 %v1683_v8, %v1170_v18  ;;  %v1687_v11 = vpop.f32.mrb[34].mxu1  ;;  %v1226_v13 = vpop.f32.mrb[35].mxu0 }
 0x13e   : > { %v1267_v15 = vmul.f32 %v1444_v47, %v1248_v6  ;;  %v1261_v16 = vmul.f32 %v1444_v47, %v1224_v58  ;;  %v1251_v17 = vadd.f32 %v1687_v11, %v1186_v0  ;;  %v1227_v19 = vadd.f32 %v1226_v13, %v2165_v14  ;;  %v1242_v20 = vpop.f32.mrb[35].mxu1 }
 0x13f   : > { %v1278_v21 = vadd.f32 %v1445_v3, %v1263_v9  ;;  %v1265_v22 = vmul.f32 %v1444_v47, %v1240_v60  ;;  %v1264_v23 = vmul.f32 %v1444_v47, %v1235_v10  ;;  %v1243_v24 = vadd.f32 %v1242_v20, %v1178_v49 }
 0x140   : > { %v1282_v25 = vadd.f32 %v1445_v3, %v1267_v15  ;;  %v1276_v12 = vadd.f32 %v1445_v3, %v1261_v16  ;;  %v1268_v26 = vmul.f32 %v1444_v47, %v1251_v17  ;;  %v1262_v4 = vmul.f32 %v1444_v47, %v1227_v19 }
 0x141   : > { %v1280_v27 = vadd.f32 %v1445_v3, %v1265_v22  ;;  %v1279_v28 = vadd.f32 %v1445_v3, %v1264_v23  ;;  %v1266_v29 = vmul.f32 %v1444_v47, %v1243_v24  ;;  %v1286_v33 = vmax.f32 %v1278_v21, 0.0 }
 0x142   : > { %v1283_v18 = vadd.f32 %v1445_v3, %v1268_v26  ;;  %v1277_v31 = vadd.f32 %v1445_v3, %v1262_v4  ;;  %v1290_v36 = vmax.f32 %v1282_v25, 0.0  ;;  %v1284_v14 = vmax.f32 %v1276_v12, 0.0 }
 0x143   : > { %v1287_v34 = vmax.f32 %v1279_v28, 0.0  ;;  %v1281_v35 = vadd.f32 %v1445_v3, %v1266_v29  ;;  %v1288_v39 = vmax.f32 %v1280_v27, 0.0 }
 0x144   : > { %v1291_v37 = vmax.f32 %v1283_v18, 0.0  ;;  %v1285_v38 = vmax.f32 %v1277_v31, 0.0 }
 0x145   : > { %v1474_v40 = vpack.c.bf16 %v1287_v34, %v1286_v33  ;;  %v1289_v41 = vmax.f32 %v1281_v35, 0.0 }
 0x146   : > { %v1484_v42 = vpack.c.bf16 %v1291_v37, %v1290_v36  ;;  %v1469_v43 = vpack.c.bf16 %v1285_v38, %v1284_v14 }
 0x147   : > { %1489 = vst [vmem:[%s197_s8 + $0x8] sm:$0xff] %v1474_v40   ;;  %v1479_v30 = vpack.c.bf16 %v1289_v41, %v1288_v39 }
 0x148   : > { %1491 = vst [vmem:[%s197_s8 + $0x18] sm:$0xff] %v1484_v42   ;;  %1470 = vst [vmem:[%s197_s8] sm:$0xff] %v1469_v43  }
 0x149   : > { %1490 = vst [vmem:[%s197_s8 + $0x10] sm:$0xff] %v1479_v30  }
 0x14a PF: > { %s14_s15 = sadd.s32 1, %s1798_s15  }
 0x14b   : > { %p11_p4 = scmp.ge.s32.totalorder %s14_s15, 4  }
 0x14d   :  { %13 = sbr.rel (!%p11_p4) target bundleno = 1 (0x1), region = 68 }

// kernel: _lambda_.11
= control target key start
LH: loop header
LB: loop body
LE: loop exit
PB: predicated region body
PF: predicated region fallthrough
CT: control target
= control target key end

     0   :  { %s3483_s15 = smov 0   ;;  %s4419_s0 = inlined_call_operand.vmem [shape: bf16[2,16,16,128], index: 0, kind: input, shape index: {}]   ;;  %s4420_s1 = inlined_call_operand.vmem [shape: bf16[1152,128], index: 1, kind: input, shape index: {}]   ;;  %s4421_s2 = inlined_call_operand.vmem [shape: f32[1,128], index: 2, kind: input, shape index: {}]   ;;  %s4422_s3 = inlined_call_operand.vmem [shape: f32[1,128], index: 3, kind: input, shape index: {}]   ;;  %s4423_s4 = inlined_call_operand.vmem [shape: bf16[2,16,16,128], index: 4, kind: output, shape index: {}]  }
   0x1 LB: > { %s2489_s16 = sadd.s32 4294967295, %s3454_s15   ;;  %p2493_p0 = scmp.ge.s32.totalorder %s3454_s15, 1  ;;  %s3454_s15 = sphi %s3483_s15, %s14_s15  }
   0x2   : > { %p162_p1 = scmp.lt.s32.totalorder %s3454_s15, 3 }
   0x4   : > { %p163_p2 = pnand %p2493_p0, %p162_p1 }
   0x5   : > { %v3359_v0 = vld [vmem:[%s4420_s1 + $0x40] sm:$0xff] (!%p163_p2)   ;;  %v3456_v2 = vmov (!%p163_p2), 0.0   ;;  %v3361_v3 = vld [vmem:[%s4420_s1 + $0x48] sm:$0xff] (!%p163_p2)   ;;  %p188_p3 = scmp.lt.s32.totalorder (!%p163_p2), %s2489_s16, 1  ;;  %v3363_v5 = vld [vmem:[%s4420_s1 + $0x50] sm:$0xff] (!%p163_p2)   ;;  %v3457_v49 = vmov (!%p163_p2), 0.0|0.0  }
   0x6   : > { %166 = sbr.rel (%p163_p2) target bundleno = 553 (0x229), region = 36  ;;  %v3360_v1 = vld [vmem:[%s4420_s1] sm:$0xff] (!%p163_p2)   ;;  %263 = vst [vmem:[#allocation2] sm:$0xff] (!%p163_p2), %v3456_v2  ;;  %264 = vst [vmem:[#allocation2 + $0x8] sm:$0xff] (!%p163_p2), %v3456_v2  ;;  %2814 = vmatprep.subr.bf16.mxu0 (!%p163_p2), %v3359_v0  ;;  %3334 = vmatprep.subr.bf16.mxu1 (!%p163_p2), %v3359_v0  ;;  %v3362_v4 = vld [vmem:[%s4420_s1 + $0x8] sm:$0xff] (!%p163_p2)  }
   0x7   : > { %265 = vst [vmem:[#allocation2 + $0x10] sm:$0x3] (!%p163_p2), %v3456_v2  ;;  %266 = vst [vmem:[#allocation2 + $0x18] sm:$0xff] (!%p163_p2), %v3456_v2  ;;  %2815 = vmatpush3.bf16.msra.mxu0 (!%p163_p2), %v3360_v1  ;;  %3342 = vmatpush3.bf16.msra.mxu1 (!%p163_p2), %v3360_v1  ;;  %v3364_v6 = vld [vmem:[%s4420_s1 + $0x10] sm:$0xff] (!%p163_p2)   ;;  %v3365_v7 = vld [vmem:[%s4420_s1 + $0x58] sm:$0xff] (!%p163_p2)  }
   0x8   : > { %267 = vst [vmem:[#allocation2 + $0x20] sm:$0xff] (!%p163_p2), %v3456_v2  ;;  %268 = vst [vmem:[#allocation2 + $0x28] sm:$0x3] (!%p163_p2), %v3456_v2  ;;  %2816 = vmatprep.subr.bf16.mxu0 (!%p163_p2), %v3361_v3  ;;  %3335 = vmatprep.subr.bf16.mxu1 (!%p163_p2), %v3361_v3  ;;  %v3366_v8 = vld [vmem:[%s4420_s1 + $0x18] sm:$0xff] (!%p163_p2)   ;;  %v3367_v9 = vld [vmem:[%s4420_s1 + $0x60] sm:$0xff] (!%p163_p2)  }
   0x9   : > { %269 = vst [vmem:[#allocation2 + $0x30] sm:$0xff] (!%p163_p2), %v3456_v2  ;;  %270 = vst [vmem:[#allocation2 + $0x38] sm:$0xff] (!%p163_p2), %v3456_v2  ;;  %v3368_v10 = vld [vmem:[%s4420_s1 + $0x20] sm:$0xff] (!%p163_p2)   ;;  %v3369_v11 = vld [vmem:[%s4420_s1 + $0x68] sm:$0xff] (!%p163_p2)  }
   0xa   : > { %271 = vst [vmem:[#allocation2 + $0x40] sm:$0x3] (!%p163_p2), %v3456_v2  ;;  %272 = vst [vmem:[#allocation2 + $0x48] sm:$0xff] (!%p163_p2), %v3456_v2  ;;  %v3370_v19 = vld [vmem:[%s4420_s1 + $0x28] sm:$0xff] (!%p163_p2)   ;;  %v3371_v20 = vld [vmem:[%s4420_s1 + $0x70] sm:$0xff] (!%p163_p2)  }
   0xb   : > { %273 = vst [vmem:[#allocation2 + $0x50] sm:$0xff] (!%p163_p2), %v3456_v2  ;;  %274 = vst [vmem:[#allocation2 + $0x58] sm:$0x3] (!%p163_p2), %v3456_v2  ;;  %2817 = vmatpush3.bf16.msra.mxu0 (!%p163_p2), %v3362_v4  ;;  %3343 = vmatpush3.bf16.msra.mxu1 (!%p163_p2), %v3362_v4  ;;  %v3372_v21 = vld [vmem:[%s4420_s1 + $0x30] sm:$0xff] (!%p163_p2)   ;;  %v3373_v23 = vld [vmem:[%s4420_s1 + $0x78] sm:$0xff] (!%p163_p2)  }
   0xc   : > { %275 = vst [vmem:[#allocation2 + $0x60] sm:$0xff] (!%p163_p2), %v3456_v2  ;;  %276 = vst [vmem:[#allocation2 + $0x68] sm:$0xff] (!%p163_p2), %v3456_v2  ;;  %2818 = vmatprep.subr.bf16.mxu0 (!%p163_p2), %v3363_v5  ;;  %3336 = vmatprep.subr.bf16.mxu1 (!%p163_p2), %v3363_v5  ;;  %v3374_v27 = vld [vmem:[%s4420_s1 + $0x38] sm:$0xff] (!%p163_p2)   ;;  %v3376_v31 = vld [vmem:[%s4420_s1 + $0xc0] sm:$0xff] (!%p163_p2)  }
   0xd   : > { %277 = vst [vmem:[#allocation2 + $0x70] sm:$0x3] %v3456_v2  ;;  %278 = vst [vmem:[#allocation2 + $0x78] sm:$0xff] %v3456_v2  ;;  %s4425_s16 = smov (!%p188_p3, %s2489_s16), 1  ;;  %v382_v12 = vld [vmem:[#allocation2 + $0x1] sm:$0xff]  ;;  %v3384_v54 = vld [vmem:[%s4420_s1 + $0xd0] sm:$0xff]  }
   0xe   : > { %279 = vst [vmem:[#allocation2 + $0x80] sm:$0xff] %v3456_v2  ;;  %280 = vst [vmem:[#allocation2 + $0x88] sm:$0x3] %v3456_v2  ;;  %s2606_s5 = sshll.u32 %s4425_s16, 7  ;;  %v383_v13 = vld [vmem:[#allocation2 + $0x9] sm:$0xff]  ;;  %v3379_v33 = vld [vmem:[%s4420_s1 + $0x140] sm:$0xff]  }
   0xf   : > { %281 = vst [vmem:[#allocation2 + $0x90] sm:$0xff] %v3456_v2  ;;  %282 = vst [vmem:[#allocation2 + $0x98] sm:$0xff] %v3456_v2  ;;  %2819 = vmatpush3.bf16.msra.mxu0 %v3364_v6  ;;  %3344 = vmatpush3.bf16.msra.mxu1 %v3364_v6  ;;  %s3530_s12 = scalar_lea.vmem %s4419_s0, %s2606_s5  ;;  %v640_v15 = vpack.c.bf16 %v383_v13, %v382_v12  ;;  %v3377_v34 = vld [vmem:[%s4420_s1 + $0x80] sm:$0xff]   ;;  %v3378_v37 = vld [vmem:[%s4420_s1 + $0xc8] sm:$0xff]   ;;  %s4303_s11 = scalar_lea.vmem %s4423_s4, %s2606_s5 }
  0x10   : > { %283 = vst [vmem:[#allocation2 + $0xa0] sm:$0x3] %v3456_v2  ;;  %284 = vst [vmem:[#allocation2 + $0xa8] sm:$0xff] %v3456_v2  ;;  %2820 = vmatprep.subr.bf16.mxu0 %v3365_v7  ;;  %3337 = vmatprep.subr.bf16.mxu1 %v3365_v7  ;;  %v2794_v14 = vld [vmem:[%s3530_s12 + $0x58] sm:$0xff]   ;;  %v2641_v22 = vld [vmem:[%s3530_s12] sm:$0xff]  }
  0x11   : > { %285 = vst [vmem:[#allocation2 + $0xb0] sm:$0xff] %v3456_v2  ;;  %286 = vst [vmem:[#allocation2 + $0xb8] sm:$0x3] %v3456_v2  ;;  %v2686_v16 = vunpack.c.l.bf16 %v2794_v14  ;;  %v2687_v17 = vunpack.c.h.bf16 %v2794_v14  ;;  %v3375_v18 = vld [vmem:[%s3530_s12 + $0x58] sm:$0xff]  ;;  %1391 = vmatprep.mubr.bf16.mxu0 %v640_v15  ;;  %v2642_v24 = vunpack.c.l.bf16 %v2641_v22  ;;  %v2643_v25 = vunpack.c.h.bf16 %v2641_v22  ;;  %v2795_v26 = vld [vmem:[%s3530_s12 + $0x60] sm:$0xff]  }
  0x12   : > { %287 = vst [vmem:[#allocation2 + $0xc0] sm:$0xff] %v3456_v2  ;;  %288 = vst [vmem:[#allocation2 + $0xc8] sm:$0xff] %v3456_v2  ;;  %1487 = vmatprep.mubr.bf16.mxu1 %v3375_v18  ;;  %v2690_v28 = vunpack.c.l.bf16 %v2795_v26  ;;  %v2691_v29 = vunpack.c.h.bf16 %v2795_v26  ;;  %v2784_v35 = vld [vmem:[%s3530_s12 + $0x8] sm:$0xff]   ;;  %v3381_v38 = vld [vmem:[%s4420_s1 + $0x100] sm:$0xff]  }
  0x13   : > { %289 = vst [vmem:[#allocation2 + $0xd0] sm:$0x3] %v3456_v2  ;;  %290 = vst [vmem:[#allocation2 + $0xd8] sm:$0xff] %v3456_v2  ;;  %2821 = vmatpush3.bf16.msra.mxu0 %v3366_v8  ;;  %3345 = vmatpush3.bf16.msra.mxu1 %v3366_v8  ;;  %v2646_v39 = vunpack.c.l.bf16 %v2784_v35  ;;  %v2647_v40 = vunpack.c.h.bf16 %v2784_v35  ;;  %v2796_v41 = vld [vmem:[%s3530_s12 + $0x68] sm:$0xff]   ;;  %v3577_v42 = vld [vmem:[%s3530_s12] sm:$0xff] }
  0x14   : > { %291 = vst [vmem:[#allocation2 + $0xe0] sm:$0xff] %v3456_v2  ;;  %292 = vst [vmem:[#allocation2 + $0xe8] sm:$0x3] %v3456_v2  ;;  %2822 = vmatprep.subr.bf16.mxu0 %v3367_v9  ;;  %3338 = vmatprep.subr.bf16.mxu1 %v3367_v9  ;;  %v2694_v43 = vunpack.c.l.bf16 %v2796_v41  ;;  %v2695_v44 = vunpack.c.h.bf16 %v2796_v41  ;;  %v3383_v45 = vld [vmem:[%s3530_s12 + $0x60] sm:$0xff]  ;;  %v3380_v46 = vld [vmem:[%s4420_s1 + $0x88] sm:$0xff]  }
  0x15   : > { %293 = vst [vmem:[#allocation2 + $0xf0] sm:$0xff] %v3456_v2  ;;  %294 = vst [vmem:[#allocation2 + $0xf8] sm:$0xff] %v3456_v2  ;;  %v3391_v48 = vld [vmem:[%s4420_s1 + $0x148] sm:$0xff]   ;;  %v2785_v57 = vld [vmem:[%s3530_s12 + $0x10] sm:$0xff]  }
  0x16   : > { %295 = vst [vmem:[#allocation2 + $0x100] sm:$0x3] %v3456_v2  ;;  %296 = vst [vmem:[#allocation2 + $0x108] sm:$0xff] %v3456_v2  ;;  %v3393_v53 = vld [vmem:[%s4420_s1 + $0x108] sm:$0xff]   ;;  %v2797_v58 = vld [vmem:[%s3530_s12 + $0x70] sm:$0xff]   ;;  %v2650_v61 = vunpack.c.l.bf16 %v2785_v57  ;;  %v2651_v62 = vunpack.c.h.bf16 %v2785_v57 }
  0x17   : > { %297 = vst [vmem:[#allocation2 + $0x110] sm:$0xff] %v3456_v2  ;;  %298 = vst [vmem:[#allocation2 + $0x118] sm:$0x3] %v3456_v2  ;;  %2823 = vmatpush3.bf16.msra.mxu0 %v3368_v10  ;;  %3346 = vmatpush3.bf16.msra.mxu1 %v3368_v10  ;;  %v3385_v59 = vld [vmem:[%s4420_s1 + $0x90] sm:$0xff]   ;;  %v3604_v60 = vld [vmem:[%s3530_s12 + $0x8] sm:$0xff]  ;;  %v2698_v63 = vunpack.c.l.bf16 %v2797_v58  ;;  %v2699_v0 = vunpack.c.h.bf16 %v2797_v58 }
  0x18   : > { %299 = vst [vmem:[#allocation2 + $0x120] sm:$0xff] %v3456_v2  ;;  %300 = vst [vmem:[#allocation2 + $0x128] sm:$0xff] %v3456_v2  ;;  %2824 = vmatprep.subr.bf16.mxu0 %v3369_v11  ;;  %3339 = vmatprep.subr.bf16.mxu1 %v3369_v11  ;;  %v3386_v1 = vld [vmem:[%s4420_s1 + $0xd8] sm:$0xff]   ;;  %v3390_v7 = vld [vmem:[%s4420_s1 + $0xe0] sm:$0xff]  }
  0x19   : > { %301 = vst [vmem:[#allocation2 + $0x130] sm:$0x3] %v3456_v2  ;;  %302 = vst [vmem:[#allocation2 + $0x138] sm:$0xff] %v3456_v2  ;;  %v3387_v3 = vld [vmem:[%s4420_s1 + $0x98] sm:$0xff]   ;;  %v3401_v9 = vld [vmem:[%s4420_s1 + $0x150] sm:$0xff]  }
  0x1a   : > { %303 = vst [vmem:[#allocation2 + $0x140] sm:$0xff] %v3456_v2  ;;  %304 = vst [vmem:[#allocation2 + $0x148] sm:$0x3] %v3456_v2  ;;  %v3403_v12 = vld [vmem:[%s4420_s1 + $0x110] sm:$0xff]   ;;  %v2786_v13 = vld [vmem:[%s3530_s12 + $0x18] sm:$0xff]  }
  0x1b   : > { %305 = vst [vmem:[#allocation2 + $0x150] sm:$0xff] %v3456_v2  ;;  %306 = vst [vmem:[#allocation2 + $0x158] sm:$0xff] %v3456_v2  ;;  %2825 = vmatpush3.bf16.msra.mxu0 %v3370_v19  ;;  %3347 = vmatpush3.bf16.msra.mxu1 %v3370_v19  ;;  %v3392_v14 = vld [vmem:[%s4420_s1 + $0xa0] sm:$0xff]   ;;  %v3634_v15 = vld [vmem:[%s3530_s12 + $0x10] sm:$0xff] }
  0x1c   : > { %307 = vst [vmem:[#allocation2 + $0x160] sm:$0x3] %v3456_v2  ;;  %308 = vst [vmem:[#allocation2 + $0x168] sm:$0xff] %v3456_v2  ;;  %2826 = vmatprep.subr.bf16.mxu0 %v3371_v20  ;;  %3340 = vmatprep.subr.bf16.mxu1 %v3371_v20  ;;  %v3394_v18 = vld [vmem:[%s4420_s1 + $0xe8] sm:$0xff]   ;;  %v3397_v19 = vld [vmem:[%s3530_s12 + $0x70] sm:$0xff] }
  0x1d   : > { %309 = vst [vmem:[#allocation2 + $0x170] sm:$0xff] %v3456_v2  ;;  %310 = vst [vmem:[#allocation2 + $0x178] sm:$0x3] %v3456_v2  ;;  %v3395_v20 = vld [vmem:[%s4420_s1 + $0xa8] sm:$0xff]   ;;  %v3398_v26 = vld [vmem:[%s4420_s1 + $0xf0] sm:$0xff]  }
  0x1e   : > { %311 = vst [vmem:[#allocation2 + $0x180] sm:$0xff] %v3456_v2  ;;  %312 = vst [vmem:[#allocation2 + $0x188] sm:$0xff] %v3456_v2  ;;  %v3665_v35 = vld [vmem:[%s3530_s12 + $0x18] sm:$0xff]  ;;  %v3406_v57 = vld [vmem:[%s4420_s1 + $0x180] sm:$0xff]  }
  0x1f   : > { %313 = vst [vmem:[#allocation2 + $0x190] sm:$0x3] %v3456_v2  ;;  %314 = vst [vmem:[#allocation2 + $0x198] sm:$0xff] %v3456_v2  ;;  %2827 = vmatpush3.bf16.msra.mxu0 %v3372_v21  ;;  %3348 = vmatpush3.bf16.msra.mxu1 %v3372_v21  ;;  %v3694_v58 = vld [vmem:[%s3530_s12 + $0x20] sm:$0xff] }
  0x20   : > { %315 = vst [vmem:[#allocation2 + $0x1a0] sm:$0xff] %v3456_v2  ;;  %316 = vst [vmem:[#allocation2 + $0x1a8] sm:$0x3] %v3456_v2  ;;  %2828 = vmatprep.subr.bf16.mxu0 %v3373_v23  ;;  %3341 = vmatprep.subr.bf16.mxu1 %v3373_v23  ;;  %v3389_v2 = vld [vmem:[%s3530_s12 + $0x68] sm:$0xff] }
  0x21   : > { %340 = vst [vmem:[#allocation2 + $0x121] sm:$0xff] %v2686_v16  ;;  %341 = vst [vmem:[#allocation2 + $0x129] sm:$0xff] %v2687_v17  ;;  %v2654_v16 = vunpack.c.l.bf16 %v2786_v13  ;;  %v2655_v17 = vunpack.c.h.bf16 %v2786_v13  ;;  %v3720_v13 = vld [vmem:[%s3530_s12 + $0x28] sm:$0xff] }
  0x22   : > { %318 = vst [vmem:[#allocation2 + $0x19] sm:$0xff] %v2642_v24  ;;  %319 = vst [vmem:[#allocation2 + $0x21] sm:$0xff] %v2643_v25  ;;  %v2787_v25 = vld [vmem:[%s3530_s12 + $0x20] sm:$0xff]  }
  0x23   : > { %342 = vst [vmem:[#allocation2 + $0x139] sm:$0xff] %v2690_v28  ;;  %343 = vst [vmem:[#allocation2 + $0x141] sm:$0xff] %v2691_v29  ;;  %2829 = vmatpush3.bf16.msra.mxu0 %v3374_v27  ;;  %3349 = vmatpush3.bf16.msra.mxu1 %v3374_v27  ;;  %v2658_v27 = vunpack.c.l.bf16 %v2787_v25  ;;  %v2659_v28 = vunpack.c.h.bf16 %v2787_v25  ;;  %v3408_v29 = vld [vmem:[%s4420_s1 + $0x158] sm:$0xff]  }
  0x24   : > { %2926 = vmatprep.subr.bf16.mxu1 %v3376_v31  ;;  %3038 = vmatprep.subr.bf16.mxu0 %v3379_v33  ;;  %320 = vst [vmem:[#allocation2 + $0x31] sm:$0xff] %v2646_v39  ;;  %321 = vst [vmem:[#allocation2 + $0x39] sm:$0xff] %v2647_v40  ;;  %v2788_v33 = vld [vmem:[%s3530_s12 + $0x28] sm:$0xff]   ;;  %v3400_v39 = vld [vmem:[%s4420_s1 + $0xf8] sm:$0xff]  }
  0x25   : > { %344 = vst [vmem:[#allocation2 + $0x151] sm:$0xff] %v2694_v43  ;;  %345 = vst [vmem:[#allocation2 + $0x159] sm:$0xff] %v2695_v44  ;;  %v3402_v40 = vld [vmem:[%s4420_s1 + $0xb8] sm:$0xff]   ;;  %v414_v43 = vld [vmem:[#allocation2 + $0x2] sm:$0xff] }
  0x26   : > { %1392 = vmatmul.mubr.bf16.vlgmr.msra.gmra.mrb[0].mxu0 %v3457_v49  ;;  %322 = vst [vmem:[#allocation2 + $0x49] sm:$0xff] %v2650_v61  ;;  %323 = vst [vmem:[#allocation2 + $0x51] sm:$0xff] %v2651_v62  ;;  %v415_v44 = vld [vmem:[#allocation2 + $0xa] sm:$0xff]  ;;  %v3426_v25 = vld [vmem:[%s4420_s1 + $0x198] sm:$0xff]  }
  0x27   : > { %3039 = vmatpush3.bf16.msra.mxu0 %v3381_v38  ;;  %1399 = vmatprep.mubr.bf16.mxu0 %v3577_v42  ;;  %346 = vst [vmem:[#allocation2 + $0x169] sm:$0xff] %v2698_v63  ;;  %347 = vst [vmem:[#allocation2 + $0x171] sm:$0xff] %v2699_v0  ;;  %v2663_v38 = vunpack.c.h.bf16 %v2788_v33  ;;  %v2789_v49 = vld [vmem:[%s3530_s12 + $0x30] sm:$0xff]   ;;  %v3411_v61 = vld [vmem:[%s4420_s1 + $0x1c8] sm:$0xff]  }
  0x28   : > { %v374_v30 = vld [vmem:[#allocation2 + $0x120] sm:$0xff]  ;;  %v375_v32 = vld [vmem:[#allocation2 + $0x128] sm:$0xff]  ;;  %3040 = vmatprep.subr.bf16.mxu0 %v3391_v48  ;;  %324 = vst [vmem:[#allocation2 + $0x61] sm:$0xff] %v2654_v16  ;;  %325 = vst [vmem:[#allocation2 + $0x69] sm:$0xff] %v2655_v17 }
  0x29   : > { %v3567_v36 = vpack.c.bf16 %v375_v32, %v374_v30  ;;  %v352_v47 = vld [vmem:[#allocation2 + $0x18] sm:$0xff]  ;;  %v353_v50 = vld [vmem:[#allocation2 + $0x20] sm:$0xff]  ;;  %326 = vst [vmem:[#allocation2 + $0x79] sm:$0xff] %v2658_v27  ;;  %327 = vst [vmem:[#allocation2 + $0x81] sm:$0xff] %v2659_v28 }
  0x2a   : > { %v376_v51 = vld [vmem:[#allocation2 + $0x138] sm:$0xff]  ;;  %v377_v52 = vld [vmem:[#allocation2 + $0x140] sm:$0xff]  ;;  %v3594_v55 = vpack.c.bf16 %v353_v50, %v352_v47  ;;  %329 = vst [vmem:[#allocation2 + $0x99] sm:$0xff] %v2663_v38  ;;  %v2666_v50 = vunpack.c.l.bf16 %v2789_v49 }
  0x2b   : > { %1488 = vmatmul.mubr.bf16.vlgmr.msra.gmra.mrb[0].mxu1 %v3567_v36  ;;  %v3596_v56 = vpack.c.bf16 %v377_v52, %v376_v51  ;;  %3041 = vmatpush3.bf16.msra.mxu0 %v3393_v53  ;;  %v354_v4 = vld [vmem:[#allocation2 + $0x30] sm:$0xff]  ;;  %v355_v5 = vld [vmem:[#allocation2 + $0x38] sm:$0xff]  ;;  %v3413_v47 = vld [vmem:[%s4420_s1 + $0x160] sm:$0xff]   ;;  %v2667_v51 = vunpack.c.h.bf16 %v2789_v49  ;;  %v641_v53 = vpack.c.bf16 %v415_v44, %v414_v43 }
  0x2c   : > { %2927 = vmatpush3.bf16.msra.mxu1 %v3377_v34  ;;  %1495 = vmatprep.mubr.bf16.mxu1 %v3383_v45  ;;  %v378_v6 = vld [vmem:[#allocation2 + $0x150] sm:$0xff]  ;;  %v379_v8 = vld [vmem:[#allocation2 + $0x158] sm:$0xff]  ;;  %v3622_v10 = vpack.c.bf16 %v355_v5, %v354_v4  ;;  %v3414_v48 = vld [vmem:[%s4420_s1 + $0x120] sm:$0xff]   ;;  %330 = vst [vmem:[#allocation2 + $0xa9] sm:$0xff] %v2666_v50 }
  0x2d   : > { %2928 = vmatprep.subr.bf16.mxu1 %v3378_v37  ;;  %v3624_v11 = vpack.c.bf16 %v379_v8, %v378_v6  ;;  %3042 = vmatprep.subr.bf16.mxu0 %v3401_v9  ;;  %v356_v21 = vld [vmem:[#allocation2 + $0x48] sm:$0xff]  ;;  %v357_v22 = vld [vmem:[#allocation2 + $0x50] sm:$0xff]  ;;  %v3409_v32 = vld [vmem:[%s4420_s1 + $0x118] sm:$0xff]   ;;  %v2662_v37 = vunpack.c.l.bf16 %v2788_v33  ;;  %331 = vst [vmem:[#allocation2 + $0xb1] sm:$0xff] %v2667_v51 }
  0x2e   : > { %1400 = vmatmul.mubr.bf16.gmra.mrb[4].mxu0 %v3594_v55  ;;  %v380_v23 = vld [vmem:[#allocation2 + $0x168] sm:$0xff]  ;;  %v381_v24 = vld [vmem:[#allocation2 + $0x170] sm:$0xff]  ;;  %v3653_v30 = vpack.c.bf16 %v357_v22, %v356_v21  ;;  %v416_v63 = vld [vmem:[#allocation2 + $0x1a] sm:$0xff] }
  0x2f   : > { %1407 = vmatprep.mubr.bf16.mxu0 %v3604_v60  ;;  %3043 = vmatpush3.bf16.msra.mxu0 %v3403_v12  ;;  %v3655_v31 = vpack.c.bf16 %v381_v24, %v380_v23  ;;  %v3399_v34 = vld [vmem:[%s4420_s1 + $0xb0] sm:$0xff]   ;;  %v358_v41 = vld [vmem:[#allocation2 + $0x60] sm:$0xff]  ;;  %328 = vst [vmem:[#allocation2 + $0x91] sm:$0xff] %v2662_v37  ;;  %v359_v45 = vld [vmem:[#allocation2 + $0x68] sm:$0xff] }
  0x30   : > { %2929 = vmatpush3.bf16.msra.mxu1 %v3380_v46  ;;  %3044 = vmatprep.subr.bf16.mxu0 %v3408_v29  ;;  %v3405_v46 = vld [vmem:[%s4420_s1 + $0x1c0] sm:$0xff]   ;;  %v3687_v52 = vpack.c.bf16 %v359_v45, %v358_v41  ;;  %v360_v62 = vld [vmem:[#allocation2 + $0x78] sm:$0xff]  ;;  %v3419_v4 = vld [vmem:[%s4420_s1 + $0x128] sm:$0xff]  }
  0x31   : > { %2930 = vmatprep.subr.bf16.mxu1 %v3384_v54  ;;  %v2790_v54 = vld [vmem:[%s3530_s12 + $0x38] sm:$0xff]   ;;  %v417_v0 = vld [vmem:[#allocation2 + $0x22] sm:$0xff]  ;;  %v3418_v5 = vld [vmem:[%s4420_s1 + $0x1d0] sm:$0xff]  }
  0x32   : > { %v2791_v6 = vld [vmem:[%s3530_s12 + $0x40] sm:$0xff]   ;;  %v3717_v12 = vpack.c.bf16 %v417_v0, %v416_v63  ;;  %v418_v16 = vld [vmem:[#allocation2 + $0x32] sm:$0xff]  ;;  %v420_v38 = vld [vmem:[#allocation2 + $0x4a] sm:$0xff] }
  0x33   : > { %1496 = vmatmul.mubr.bf16.gmra.mrb[4].mxu1 %v3596_v56  ;;  %3045 = vmatpush3.bf16.msra.mxu0 %v3409_v32  ;;  %v2675_v8 = vunpack.c.h.bf16 %v2791_v6  ;;  %v419_v17 = vld [vmem:[#allocation2 + $0x3a] sm:$0xff]  ;;  %v3748_v33 = vld [vmem:[%s3530_s12 + $0x30] sm:$0xff]  ;;  %v364_v41 = vld [vmem:[#allocation2 + $0xa8] sm:$0xff] }
  0x34   : > { %2931 = vmatpush3.bf16.msra.mxu1 %v3385_v59  ;;  %1503 = vmatprep.mubr.bf16.mxu1 %v3389_v2  ;;  %v2671_v59 = vunpack.c.h.bf16 %v2790_v54  ;;  %v3417_v2 = vld [vmem:[%s4420_s1 + $0x168] sm:$0xff]   ;;  %v3425_v24 = vld [vmem:[%s4420_s1 + $0x1d8] sm:$0xff]   ;;  %v3745_v32 = vpack.c.bf16 %v419_v17, %v418_v16  ;;  %v365_v43 = vld [vmem:[#allocation2 + $0xb0] sm:$0xff] }
  0x35   : > { %2932 = vmatprep.subr.bf16.mxu1 %v3386_v1  ;;  %3046 = vmatprep.subr.bf16.mxu0 %v3413_v47  ;;  %v3412_v1 = vld [vmem:[%s4420_s1 + $0x188] sm:$0xff]   ;;  %335 = vst [vmem:[#allocation2 + $0xe1] sm:$0xff] %v2675_v8  ;;  %v3429_v37 = vld [vmem:[%s4420_s1 + $0x138] sm:$0xff]   ;;  %v3431_v44 = vld [vmem:[%s4420_s1 + $0x1a0] sm:$0xff]  }
  0x36   : > { %1408 = vmatmul.mubr.bf16.gmra.mrb[8].mxu0 %v3622_v10  ;;  %333 = vst [vmem:[#allocation2 + $0xc9] sm:$0xff] %v2671_v59  ;;  %v363_v21 = vld [vmem:[#allocation2 + $0x98] sm:$0xff]  ;;  %v3769_v45 = vld [vmem:[%s4420_s1 + $0x200] sm:$0xff]   ;;  %v3433_v49 = vld [vmem:[%s4420_s1 + $0x1e8] sm:$0xff]  }
  0x37   : > { %1415 = vmatprep.mubr.bf16.mxu0 %v3634_v15  ;;  %3047 = vmatpush3.bf16.msra.mxu0 %v3414_v48  ;;  %v3776_v48 = vld [vmem:[%s3530_s12 + $0x38] sm:$0xff]  ;;  %v3434_v50 = vld [vmem:[%s4420_s1 + $0x1a8] sm:$0xff]   ;;  %v3437_v59 = vld [vmem:[%s4420_s1 + $0x1b0] sm:$0xff]  }
  0x38   : > { %2933 = vmatpush3.bf16.msra.mxu1 %v3387_v3  ;;  %v361_v3 = vld [vmem:[#allocation2 + $0x80] sm:$0xff]  ;;  %3048 = vmatprep.subr.bf16.mxu0 %v3417_v2  ;;  %v3439_v0 = vld [vmem:[%s4420_s1 + $0x1f8] sm:$0xff]   ;;  %v3818_v16 = vld [vmem:[%s3530_s12 + $0x48] sm:$0xff] }
  0x39   : > { %2934 = vmatprep.subr.bf16.mxu1 %v3390_v7  ;;  %v2674_v7 = vunpack.c.l.bf16 %v2791_v6  ;;  %v3715_v9 = vpack.c.bf16 %v361_v3, %v360_v62  ;;  %v3800_v63 = vld [vmem:[%s3530_s12 + $0x40] sm:$0xff]  ;;  %v2798_v3 = vld [vmem:[%s3530_s12 + $0x78] sm:$0xff]  }
  0x3a   : > { %v424_v2 = vld [vmem:[#allocation2 + $0x7a] sm:$0xff]  ;;  %v425_v6 = vld [vmem:[#allocation2 + $0x82] sm:$0xff]  ;;  %v2703_v8 = vunpack.c.h.bf16 %v2798_v3  ;;  %v426_v17 = vld [vmem:[#allocation2 + $0x92] sm:$0xff] }
  0x3b   : > { %1504 = vmatmul.mubr.bf16.gmra.mrb[8].mxu1 %v3624_v11  ;;  %3049 = vmatpush3.bf16.msra.mxu0 %v3419_v4  ;;  %334 = vst [vmem:[#allocation2 + $0xd9] sm:$0xff] %v2674_v7  ;;  %v2702_v7 = vunpack.c.l.bf16 %v2798_v3  ;;  %v442_v3 = vld [vmem:[#allocation2 + $0x152] sm:$0xff] }
  0x3c   : > { %2935 = vmatpush3.bf16.msra.mxu1 %v3392_v14  ;;  %1511 = vmatprep.mubr.bf16.mxu1 %v3397_v19  ;;  %v3420_v14 = vld [vmem:[%s4420_s1 + $0x190] sm:$0xff]   ;;  %v2792_v19 = vld [vmem:[%s3530_s12 + $0x48] sm:$0xff]   ;;  %349 = vst [vmem:[#allocation2 + $0x189] sm:$0xff] %v2703_v8 }
  0x3d   : > { %2936 = vmatprep.subr.bf16.mxu1 %v3394_v18  ;;  %v3423_v18 = vld [vmem:[%s4420_s1 + $0x130] sm:$0xff]   ;;  %v2678_v22 = vunpack.c.l.bf16 %v2792_v19  ;;  %v2679_v23 = vunpack.c.h.bf16 %v2792_v19  ;;  %348 = vst [vmem:[#allocation2 + $0x181] sm:$0xff] %v2702_v7 }
  0x3e   : > { %1416 = vmatmul.mubr.bf16.gmra.mrb[12].mxu0 %v3653_v30  ;;  %v444_v8 = vld [vmem:[#allocation2 + $0x16a] sm:$0xff] }
  0x3f   : > { %1423 = vmatprep.mubr.bf16.mxu0 %v3665_v35  ;;  %336 = vst [vmem:[#allocation2 + $0xf1] sm:$0xff] %v2678_v22  ;;  %337 = vst [vmem:[#allocation2 + $0xf9] sm:$0xff] %v2679_v23  ;;  %v3829_v23 = vld [vmem:[%s3530_s12 + $0x50] sm:$0xff] }
  0x40   : > { %2937 = vmatpush3.bf16.msra.mxu1 %v3395_v20  ;;  %v362_v20 = vld [vmem:[#allocation2 + $0x90] sm:$0xff] }
  0x41   : > { %2938 = vmatprep.subr.bf16.mxu1 %v3398_v26  ;;  %v2793_v26 = vld [vmem:[%s3530_s12 + $0x50] sm:$0xff]   ;;  %v3743_v29 = vpack.c.bf16 %v363_v21, %v362_v20  ;;  %v427_v20 = vld [vmem:[#allocation2 + $0x9a] sm:$0xff] }
  0x42   : > { %v2682_v27 = vunpack.c.l.bf16 %v2793_v26  ;;  %v2683_v28 = vunpack.c.h.bf16 %v2793_v26  ;;  %v368_v4 = vld [vmem:[#allocation2 + $0xd8] sm:$0xff]  ;;  %v3826_v22 = vpack.c.bf16 %v427_v20, %v426_v17 }
  0x43   : > { %1512 = vmatmul.mubr.bf16.gmra.mrb[12].mxu1 %v3655_v31  ;;  %v575_v17 = vld [vmem:[#allocation2 + $0x31] sm:$0xff] }
  0x44   : > { %2939 = vmatpush3.bf16.msra.mxu1 %v3399_v34  ;;  %1552 = vmatprep.mubr.bf16.mxu1 %v3594_v55  ;;  %v2670_v55 = vunpack.c.l.bf16 %v2790_v54  ;;  %338 = vst [vmem:[#allocation2 + $0x109] sm:$0xff] %v2682_v27  ;;  %339 = vst [vmem:[#allocation2 + $0x111] sm:$0xff] %v2683_v28  ;;  %v3428_v34 = vld [vmem:[%s4420_s1 + $0x178] sm:$0xff]   ;;  %v423_v54 = vld [vmem:[#allocation2 + $0x6a] sm:$0xff] }
  0x45   : > { %2940 = vmatprep.subr.bf16.mxu1 %v3400_v39  ;;  %v421_v39 = vld [vmem:[#allocation2 + $0x52] sm:$0xff] }
  0x46   : > { %332 = vst [vmem:[#allocation2 + $0xc1] sm:$0xff] %v2670_v55  ;;  %1424 = vmatmul.mubr.bf16.gmra.mrb[16].mxu0 %v3687_v52  ;;  %v3773_v47 = vpack.c.bf16 %v421_v39, %v420_v38  ;;  %v3436_v55 = vld [vmem:[%s4420_s1 + $0x1f0] sm:$0xff]   ;;  %v371_v19 = vld [vmem:[#allocation2 + $0xf8] sm:$0xff] }
  0x47   : > { %1431 = vmatprep.mubr.bf16.mxu0 %v3694_v58  ;;  %v429_v27 = vld [vmem:[#allocation2 + $0xb2] sm:$0xff]  ;;  %v431_v38 = vld [vmem:[#allocation2 + $0xca] sm:$0xff] }
  0x48   : > { %2941 = vmatpush3.bf16.msra.mxu1 %v3402_v40  ;;  %v3430_v40 = vld [vmem:[%s4420_s1 + $0x1e0] sm:$0xff]  }
  0x49   : > { %3150 = vmatprep.subr.bf16.mxu1 %v3405_v46  ;;  %v3771_v46 = vpack.c.bf16 %v365_v43, %v364_v41  ;;  %v432_v41 = vld [vmem:[#allocation2 + $0xda] sm:$0xff]  ;;  %v433_v43 = vld [vmem:[#allocation2 + $0xe2] sm:$0xff] }
  0x4b   : > { %1553 = vmatmul.mubr.bf16.vlgmr.msra.gmra.mrb[16].mxu1 %v641_v53  ;;  %v422_v53 = vld [vmem:[#allocation2 + $0x62] sm:$0xff]  ;;  %v373_v26 = vld [vmem:[#allocation2 + $0x110] sm:$0xff] }
  0x4c   : > { %3151 = vmatpush3.bf16.msra.mxu1 %v3406_v57  ;;  %1560 = vmatprep.mubr.bf16.mxu1 %v3622_v10  ;;  %v3422_v10 = vld [vmem:[%s4420_s1 + $0x170] sm:$0xff]   ;;  %v3797_v62 = vpack.c.bf16 %v423_v54, %v422_v53 }
  0x4d   : > { %3152 = vmatprep.subr.bf16.mxu1 %v3411_v61  ;;  %3050 = vmatprep.subr.bf16.mxu0 %v3422_v10  ;;  %v366_v51 = vld [vmem:[#allocation2 + $0xc0] sm:$0xff]  ;;  %v367_v57 = vld [vmem:[#allocation2 + $0xc8] sm:$0xff]  ;;  %v437_v53 = vld [vmem:[#allocation2 + $0x112] sm:$0xff] }
  0x4e   : > { %1432 = vmatmul.mubr.bf16.gmra.mrb[20].mxu0 %v3715_v9  ;;  %v3795_v61 = vpack.c.bf16 %v367_v57, %v366_v51  ;;  %v436_v51 = vld [vmem:[#allocation2 + $0x10a] sm:$0xff] }
  0x4f   : > { %1439 = vmatprep.mubr.bf16.mxu0 %v3720_v13  ;;  %3051 = vmatpush3.bf16.msra.mxu0 %v3423_v18  ;;  %v370_v18 = vld [vmem:[#allocation2 + $0xf0] sm:$0xff]  ;;  %v3880_v57 = vpack.c.bf16 %v437_v53, %v436_v51 }
  0x50   : > { %3153 = vmatpush3.bf16.msra.mxu1 %v3412_v1  ;;  %3052 = vmatprep.subr.bf16.mxu0 %v3428_v34  ;;  %v3440_v1 = vld [vmem:[%s4420_s1 + $0x1b8] sm:$0xff]   ;;  %v3824_v21 = vpack.c.bf16 %v371_v19, %v370_v18  ;;  %v3444_v54 = vld [vmem:[%s4420_s1 + $0x230] sm:$0xff]  }
  0x51   : > { %3154 = vmatprep.subr.bf16.mxu1 %v3418_v5  ;;  %v369_v5 = vld [vmem:[#allocation2 + $0xe0] sm:$0xff] }
  0x52   : > { %v3813_v10 = vpack.c.bf16 %v369_v5, %v368_v4  ;;  %v443_v4 = vld [vmem:[#allocation2 + $0x15a] sm:$0xff] }
  0x53   : > { %1561 = vmatmul.mubr.bf16.gmra.mrb[20].mxu1 %v3717_v12  ;;  %3053 = vmatpush3.bf16.msra.mxu0 %v3429_v37  ;;  %v430_v37 = vld [vmem:[#allocation2 + $0xc2] sm:$0xff]  ;;  %v3901_v7 = vpack.c.bf16 %v443_v4, %v442_v3  ;;  %v576_v18 = vld [vmem:[#allocation2 + $0x39] sm:$0xff] }
  0x54   : > { %1568 = vmatprep.mubr.bf16.mxu1 %v3653_v30  ;;  %3155 = vmatpush3.bf16.msra.mxu1 %v3420_v14  ;;  %v3815_v14 = vpack.c.bf16 %v425_v6, %v424_v2  ;;  %v3843_v39 = vpack.c.bf16 %v431_v38, %v430_v37  ;;  %v441_v2 = vld [vmem:[#allocation2 + $0x142] sm:$0xff]  ;;  %v646_v20 = vpack.c.bf16 %v576_v18, %v575_v17 }
  0x55   : > { %3156 = vmatprep.subr.bf16.mxu1 %v3425_v24  ;;  %3286 = vmatprep.subr.bf16.mxu0 %v3769_v45  ;;  %v428_v24 = vld [vmem:[#allocation2 + $0xaa] sm:$0xff]  ;;  %v476_v5 = vld [vmem:[#allocation2 + $0x180] sm:$0xff] }
  0x56   : > { %1440 = vmatmul.mubr.bf16.gmra.mrb[24].mxu0 %v3743_v29  ;;  %v3837_v34 = vpack.c.bf16 %v429_v27, %v428_v24  ;;  %v477_v6 = vld [vmem:[#allocation2 + $0x188] sm:$0xff]  ;;  %v543_v24 = vld [vmem:[#allocation2 + $0x30] sm:$0xff] }
  0x57   : > { %1447 = vmatprep.mubr.bf16.mxu0 %v3748_v33  ;;  %v500_v27 = vld [vmem:[#allocation2 + $0x121] sm:$0xff]  ;;  %v501_v37 = vld [vmem:[#allocation2 + $0x129] sm:$0xff] }
  0x58   : > { %3157 = vmatpush3.bf16.msra.mxu1 %v3426_v25  ;;  %v372_v25 = vld [vmem:[#allocation2 + $0x108] sm:$0xff]  ;;  %v3925_v38 = vpack.c.bf16 %v501_v37, %v500_v27 }
  0x59   : > { %3158 = vmatprep.subr.bf16.mxu1 %v3430_v40  ;;  %v3835_v28 = vpack.c.bf16 %v373_v26, %v372_v25  ;;  %v3435_v40 = vld [vmem:[%s4420_s1 + $0x208] sm:$0xff]   ;;  %v544_v25 = vld [vmem:[#allocation2 + $0x38] sm:$0xff] }
  0x5a   : > { %v645_v26 = vpack.c.bf16 %v544_v25, %v543_v24 }
  0x5b   : > { %1569 = vmatmul.mubr.bf16.gmra.mrb[24].mxu1 %v3745_v32 }
  0x5c   : > { %1576 = vmatprep.mubr.bf16.mxu1 %v3687_v52  ;;  %3159 = vmatpush3.bf16.msra.mxu1 %v3431_v44  ;;  %v3856_v44 = vpack.c.bf16 %v433_v43, %v432_v41  ;;  %v541_v41 = vld [vmem:[#allocation2 + $0x18a] sm:$0xff] }
  0x5d   : > { %3160 = vmatprep.subr.bf16.mxu1 %v3433_v49  ;;  %v3442_v49 = vld [vmem:[%s4420_s1 + $0x220] sm:$0xff]  }
  0x5e   : > { %1448 = vmatmul.mubr.bf16.gmra.mrb[28].mxu0 %v3771_v46 }
  0x5f   : > { %1455 = vmatprep.mubr.bf16.mxu0 %v3776_v48 }
  0x60   : > { %3161 = vmatpush3.bf16.msra.mxu1 %v3434_v50 }
  0x61   : > { %3162 = vmatprep.subr.bf16.mxu1 %v3436_v55  ;;  %v3445_v55 = vld [vmem:[%s4420_s1 + $0x238] sm:$0xff]  }
  0x63   : > { %1577 = vmatmul.mubr.bf16.gmra.mrb[28].mxu1 %v3773_v47 }
  0x64   : > { %1584 = vmatprep.mubr.bf16.mxu1 %v3715_v9  ;;  %3163 = vmatpush3.bf16.msra.mxu1 %v3437_v59  ;;  %v439_v59 = vld [vmem:[#allocation2 + $0x12a] sm:$0xff] }
  0x65   : > { %3164 = vmatprep.subr.bf16.mxu1 %v3439_v0 }
  0x66   : > { %1456 = vmatmul.mubr.bf16.gmra.mrb[32].mxu0 %v3795_v61 }
  0x67   : > { %1463 = vmatprep.mubr.bf16.mxu0 %v3800_v63 }
  0x68   : > { %3165 = vmatpush3.bf16.msra.mxu1 %v3440_v1  ;;  %v440_v1 = vld [vmem:[#allocation2 + $0x13a] sm:$0xff] }
  0x6b   : > { %1585 = vmatmul.mubr.bf16.gmra.mrb[32].mxu1 %v3797_v62 }
  0x6c   : > { %1592 = vmatprep.mubr.bf16.mxu1 %v3743_v29 }
  0x6e   : > { %1464 = vmatmul.mubr.bf16.gmra.mrb[36].mxu0 %v3813_v10 }
  0x6f   : > { %1471 = vmatprep.mubr.bf16.mxu0 %v3818_v16 }
  0x73   : > { %1593 = vmatmul.mubr.bf16.gmra.mrb[36].mxu1 %v3815_v14 }
  0x74   : > { %1600 = vmatprep.mubr.bf16.mxu1 %v3771_v46 }
  0x76   : > { %1472 = vmatmul.mubr.bf16.gmra.mrb[40].mxu0 %v3824_v21 }
  0x77   : > { %1479 = vmatprep.mubr.bf16.mxu0 %v3829_v23 }
  0x7b   : > { %1601 = vmatmul.mubr.bf16.gmra.mrb[40].mxu1 %v3826_v22 }
  0x7c   : > { %1608 = vmatprep.mubr.bf16.mxu1 %v3795_v61 }
  0x7e   : > { %1480 = vmatmul.mubr.bf16.gmra.mrb[44].mxu0 %v3835_v28 }
  0x7f   : > { %1713 = vmatprep.mubr.bf16.mxu0 %v3717_v12  ;;  %v3438_v12 = vld [vmem:[%s4420_s1 + $0x210] sm:$0xff]  }
  0x83   : > { %1609 = vmatmul.mubr.bf16.gmra.mrb[44].mxu1 %v3837_v34 }
  0x84   : > { %1616 = vmatprep.mubr.bf16.mxu1 %v3813_v10 }
  0x86   : > { %1714 = vmatmul.mubr.bf16.vlgmr.msra.gmra.mrb[48].mxu0 %v3577_v42  ;;  %v3441_v42 = vld [vmem:[%s4420_s1 + $0x218] sm:$0xff]  }
  0x87   : > { %3287 = vmatpush3.bf16.msra.mxu0 %v3769_v45  ;;  %1721 = vmatprep.mubr.bf16.mxu0 %v3745_v32  ;;  %v434_v32 = vld [vmem:[#allocation2 + $0xf2] sm:$0xff]  ;;  %v435_v45 = vld [vmem:[#allocation2 + $0xfa] sm:$0xff] }
  0x88   : > { %3288 = vmatprep.subr.bf16.mxu0 %v3435_v40  ;;  %v3868_v50 = vpack.c.bf16 %v435_v45, %v434_v32 }
  0x8b   : > { %1617 = vmatmul.mubr.bf16.gmra.mrb[48].mxu1 %v3843_v39  ;;  %3289 = vmatpush3.bf16.msra.mxu0 %v3435_v40 }
  0x8c   : > { %1624 = vmatprep.mubr.bf16.mxu1 %v3824_v21  ;;  %3290 = vmatprep.subr.bf16.mxu0 %v3438_v12 }
  0x8e   : > { %1722 = vmatmul.mubr.bf16.gmra.mrb[52].mxu0 %v3604_v60  ;;  %v3443_v60 = vld [vmem:[%s4420_s1 + $0x228] sm:$0xff]  }
  0x8f   : > { %1729 = vmatprep.mubr.bf16.mxu0 %v3773_v47  ;;  %3291 = vmatpush3.bf16.msra.mxu0 %v3438_v12  ;;  %v608_v12 = vld [vmem:[#allocation2 + $0x3a] sm:$0xff] }
  0x90   : > { %3292 = vmatprep.subr.bf16.mxu0 %v3441_v42 }
  0x93   : > { %1625 = vmatmul.mubr.bf16.gmra.mrb[52].mxu1 %v3856_v44  ;;  %3293 = vmatpush3.bf16.msra.mxu0 %v3441_v42 }
  0x94   : > { %1632 = vmatprep.mubr.bf16.mxu1 %v3835_v28  ;;  %3294 = vmatprep.subr.bf16.mxu0 %v3442_v49 }
  0x96   : > { %1730 = vmatmul.mubr.bf16.gmra.mrb[56].mxu0 %v3634_v15 }
  0x97   : > { %1737 = vmatprep.mubr.bf16.mxu0 %v3797_v62  ;;  %3295 = vmatpush3.bf16.msra.mxu0 %v3442_v49  ;;  %v3952_v49 = vld [vmem:[%s3530_s12 + $0x78] sm:$0xff] }
  0x98   : > { %3296 = vmatprep.subr.bf16.mxu0 %v3443_v60 }
  0x9b   : > { %1633 = vmatmul.mubr.bf16.gmra.mrb[56].mxu1 %v3868_v50  ;;  %3297 = vmatpush3.bf16.msra.mxu0 %v3443_v60 }
  0x9c   : > { %1640 = vmatprep.mubr.bf16.mxu1 %v3567_v36  ;;  %3298 = vmatprep.subr.bf16.mxu0 %v3444_v54  ;;  %v438_v36 = vld [vmem:[#allocation2 + $0x122] sm:$0xff] }
  0x9d   : > { %v3889_v0 = vpack.c.bf16 %v439_v59, %v438_v36 }
  0x9e   : > { %1738 = vmatmul.mubr.bf16.gmra.mrb[60].mxu0 %v3665_v35 }
  0x9f   : > { %1745 = vmatprep.mubr.bf16.mxu0 %v3815_v14  ;;  %3299 = vmatpush3.bf16.msra.mxu0 %v3444_v54 }
  0xa0   : > { %3300 = vmatprep.subr.bf16.mxu0 %v3445_v55 }
  0xa3   : > { %1641 = vmatmul.mubr.bf16.gmra.mrb[60].mxu1 %v3880_v57  ;;  %3301 = vmatpush3.bf16.msra.mxu0 %v3445_v55 }
  0xa4   : > { %1648 = vmatprep.mubr.bf16.mxu1 %v3596_v56  ;;  %v3895_v56 = vpack.c.bf16 %v441_v2, %v440_v1 }
  0xa6   : > { %1746 = vmatmul.mubr.bf16.gmra.mrb[64].mxu0 %v3694_v58 }
  0xa7   : > { %1753 = vmatprep.mubr.bf16.mxu0 %v3826_v22 }
  0xab   : > { %1649 = vmatmul.mubr.bf16.gmra.mrb[64].mxu1 %v3889_v0 }
  0xac   : > { %1656 = vmatprep.mubr.bf16.mxu1 %v3624_v11  ;;  %v3903_v11 = vpack.c.bf16 %v477_v6, %v476_v5 }
  0xae   : > { %1754 = vmatmul.mubr.bf16.gmra.mrb[68].mxu0 %v3720_v13 }
  0xaf   : > { %1761 = vmatprep.mubr.bf16.mxu0 %v3837_v34 }
  0xb3   : > { %1657 = vmatmul.mubr.bf16.gmra.mrb[68].mxu1 %v3895_v56 }
  0xb4   : > { %1664 = vmatprep.mubr.bf16.mxu1 %v3655_v31  ;;  %v445_v31 = vld [vmem:[#allocation2 + $0x172] sm:$0xff] }
  0xb5   : > { %v3909_v19 = vpack.c.bf16 %v445_v31, %v444_v8 }
  0xb6   : > { %1762 = vmatmul.mubr.bf16.gmra.mrb[72].mxu0 %v3748_v33 }
  0xb7   : > { %1769 = vmatprep.mubr.bf16.mxu0 %v3843_v39 }
  0xbb   : > { %1665 = vmatmul.mubr.bf16.gmra.mrb[72].mxu1 %v3901_v7 }
  0xbc   : > { %1672 = vmatprep.mubr.bf16.mxu1 %v3903_v11 }
  0xbe   : > { %1770 = vmatmul.mubr.bf16.gmra.mrb[76].mxu0 %v3776_v48 }
  0xbf   : > { %1777 = vmatprep.mubr.bf16.mxu0 %v3856_v44 }
  0xc3   : > { %1673 = vmatmul.mubr.bf16.gmra.mrb[76].mxu1 %v3909_v19 }
  0xc4   : > { %1874 = vmatprep.mubr.bf16.mxu1 %v646_v20 }
  0xc6   : > { %1778 = vmatmul.mubr.bf16.gmra.mrb[80].mxu0 %v3800_v63 }
  0xc7   : > { %1785 = vmatprep.mubr.bf16.mxu0 %v3868_v50 }
  0xcb   : > { %1875 = vmatmul.mubr.bf16.vlgmr.msra.gmra.mrb[80].mxu1 %v645_v26 }
  0xcc   : > { %1882 = vmatprep.mubr.bf16.mxu1 %v3634_v15  ;;  %v502_v15 = vld [vmem:[#allocation2 + $0x139] sm:$0xff] }
  0xce   : > { %1786 = vmatmul.mubr.bf16.gmra.mrb[84].mxu0 %v3818_v16 }
  0xcf   : > { %1793 = vmatprep.mubr.bf16.mxu0 %v3880_v57 }
  0xd3   : > { %1883 = vmatmul.mubr.bf16.gmra.mrb[84].mxu1 %v3653_v30  ;;  %v503_v30 = vld [vmem:[#allocation2 + $0x141] sm:$0xff] }
  0xd4   : > { %1890 = vmatprep.mubr.bf16.mxu1 %v3665_v35  ;;  %v3931_v35 = vpack.c.bf16 %v503_v30, %v502_v15 }
  0xd6   : > { %1794 = vmatmul.mubr.bf16.gmra.mrb[88].mxu0 %v3829_v23 }
  0xd7   : > { %1801 = vmatprep.mubr.bf16.mxu0 %v3889_v0 }
  0xdb   : > { %1891 = vmatmul.mubr.bf16.gmra.mrb[88].mxu1 %v3687_v52  ;;  %v504_v52 = vld [vmem:[#allocation2 + $0x151] sm:$0xff] }
  0xdc   : > { %1898 = vmatprep.mubr.bf16.mxu1 %v3694_v58  ;;  %v505_v58 = vld [vmem:[#allocation2 + $0x159] sm:$0xff] }
  0xdd   : > { %v3937_v40 = vpack.c.bf16 %v505_v58, %v504_v52 }
  0xde   : > { %1802 = vmatmul.mubr.bf16.gmra.mrb[92].mxu0 %v3925_v38 }
  0xdf   : > { %1809 = vmatprep.mubr.bf16.mxu0 %v3895_v56 }
  0xe3   : > { %1899 = vmatmul.mubr.bf16.gmra.mrb[92].mxu1 %v3715_v9  ;;  %v506_v9 = vld [vmem:[#allocation2 + $0x169] sm:$0xff] }
  0xe4   : > { %1906 = vmatprep.mubr.bf16.mxu1 %v3720_v13  ;;  %v507_v13 = vld [vmem:[#allocation2 + $0x171] sm:$0xff] }
  0xe5   : > { %v3943_v43 = vpack.c.bf16 %v507_v13, %v506_v9 }
  0xe6   : > { %1810 = vmatmul.mubr.bf16.gmra.mrb[96].mxu0 %v3931_v35 }
  0xe7   : > { %1817 = vmatprep.mubr.bf16.mxu0 %v3901_v7 }
  0xeb   : > { %1907 = vmatmul.mubr.bf16.gmra.mrb[96].mxu1 %v3743_v29  ;;  %v540_v29 = vld [vmem:[#allocation2 + $0x182] sm:$0xff] }
  0xec   : > { %1914 = vmatprep.mubr.bf16.mxu1 %v3748_v33  ;;  %v3945_v33 = vpack.c.bf16 %v541_v41, %v540_v29 }
  0xee   : > { %1818 = vmatmul.mubr.bf16.gmra.mrb[100].mxu0 %v3937_v40 }
  0xef   : > { %1825 = vmatprep.mubr.bf16.mxu0 %v3909_v19 }
  0xf3   : > { %1915 = vmatmul.mubr.bf16.gmra.mrb[100].mxu1 %v3771_v46  ;;  %v607_v46 = vld [vmem:[#allocation2 + $0x32] sm:$0xff] }
  0xf4   : > { %1922 = vmatprep.mubr.bf16.mxu1 %v3776_v48  ;;  %v647_v55 = vpack.c.bf16 %v608_v12, %v607_v46 }
  0xf6   : > { %1826 = vmatmul.mubr.bf16.gmra.mrb[104].mxu0 %v3943_v43 }
  0xf7   : > { %1833 = vmatprep.mubr.bf16.mxu0 %v3945_v33 }
  0xf9   : > { %v2830_v42 = vpop.f32.mrb[0].mxu0 }
  0xfa   : > { %v2831_v45 = vpop.f32.mrb[1].mxu0 }
  0xfb   : > { %1923 = vmatmul.mubr.bf16.gmra.mrb[104].mxu1 %v3795_v61  ;;  %v3956_v53 = vadd.f32 %v2831_v45, %v2830_v42  ;;  %v2833_v54 = vpop.f32.mrb[2].mxu0 }
  0xfc   : > { %1930 = vmatprep.mubr.bf16.mxu1 %v3800_v63  ;;  %v2834_v36 = vpop.f32.mrb[3].mxu0 }
  0xfd   : > { %v3960_v63 = vadd.f32 %v2834_v36, %v2833_v54 }
  0xfe   : > { %v2902_v48 = vpop.f32.mrb[0].mxu1  ;;  %1834 = vmatmul.mubr.bf16.gmra.mrb[108].mxu0 %v3952_v49 }
  0xff   : > { %v2903_v32 = vpop.f32.mrb[1].mxu1  ;;  %3302 = vmatprep.mubr.bf16.mxu0 %v647_v55 }
 0x100   : > { %v3954_v60 = vadd.f32 %v2903_v32, %v2902_v48  ;;  %v2905_v51 = vpop.f32.mrb[2].mxu1 }
 0x101   : > { %v2906_v61 = vpop.f32.mrb[3].mxu1  ;;  %v2836_v2 = vpop.f32.mrb[4].mxu0 }
 0x102   : > { %v3958_v59 = vadd.f32 %v2906_v61, %v2905_v51  ;;  %v2837_v4 = vpop.f32.mrb[5].mxu0  ;;  %v566_v51 = vld [vmem:[#allocation2 + $0x140] sm:$0xff] }
 0x103   : > { %1931 = vmatmul.mubr.bf16.gmra.mrb[108].mxu1 %v3813_v10  ;;  %v3967_v8 = vadd.f32 %v2837_v4, %v2836_v2  ;;  %v2839_v31 = vpop.f32.mrb[6].mxu0 }
 0x104   : > { %1938 = vmatprep.mubr.bf16.mxu1 %v3818_v16  ;;  %v2840_v18 = vpop.f32.mrb[7].mxu0 }
 0x105   : > { %v3971_v24 = vadd.f32 %v2840_v18, %v2839_v31 }
 0x106   : > { %v2908_v1 = vpop.f32.mrb[4].mxu1  ;;  %3303 = vmatmul.mubr.bf16.vlgmr.msra.gmra.mrb[112].mxu0 %v3773_v47  ;;  %v563_v47 = vld [vmem:[#allocation2 + $0x120] sm:$0xff] }
 0x107   : > { %v2909_v3 = vpop.f32.mrb[5].mxu1  ;;  %3306 = vmatprep.mubr.bf16.mxu0 %v3797_v62  ;;  %v564_v62 = vld [vmem:[#allocation2 + $0x128] sm:$0xff] }
 0x108   : > { %v3965_v5 = vadd.f32 %v2909_v3, %v2908_v1  ;;  %v2911_v6 = vpop.f32.mrb[6].mxu1  ;;  %v735_v46 = vpack.c.bf16 %v564_v62, %v563_v47 }
 0x109   : > { %v2912_v17 = vpop.f32.mrb[7].mxu1  ;;  %v2842_v16 = vpop.f32.mrb[8].mxu0 }
 0x10a   : > { %v3969_v20 = vadd.f32 %v2912_v17, %v2911_v6  ;;  %v2843_v26 = vpop.f32.mrb[9].mxu0 }
 0x10b   : > { %1939 = vmatmul.mubr.bf16.gmra.mrb[112].mxu1 %v3824_v21  ;;  %v3979_v15 = vadd.f32 %v2843_v26, %v2842_v16  ;;  %v2845_v30 = vpop.f32.mrb[10].mxu0  ;;  %v568_v16 = vld [vmem:[#allocation2 + $0x158] sm:$0xff] }
 0x10c   : > { %1946 = vmatprep.mubr.bf16.mxu1 %v3829_v23  ;;  %v2846_v58 = vpop.f32.mrb[11].mxu0 }
 0x10d   : > { %v3983_v21 = vadd.f32 %v2846_v58, %v2845_v30 }
 0x10e   : > { %v2914_v10 = vpop.f32.mrb[8].mxu1  ;;  %3307 = vmatmul.mubr.bf16.gmra.mrb[116].mxu0 %v3815_v14 }
 0x10f   : > { %v2915_v25 = vpop.f32.mrb[9].mxu1  ;;  %3310 = vmatprep.mubr.bf16.mxu0 %v3826_v22  ;;  %v565_v22 = vld [vmem:[#allocation2 + $0x138] sm:$0xff] }
 0x110   : > { %v3977_v27 = vadd.f32 %v2915_v25, %v2914_v10  ;;  %v2917_v37 = vpop.f32.mrb[10].mxu1  ;;  %v744_v1 = vpack.c.bf16 %v566_v51, %v565_v22  ;;  %v567_v10 = vld [vmem:[#allocation2 + $0x150] sm:$0xff] }
 0x111   : > { %v2918_v52 = vpop.f32.mrb[11].mxu1  ;;  %v2848_v13 = vpop.f32.mrb[12].mxu0  ;;  %v753_v30 = vpack.c.bf16 %v568_v16, %v567_v10 }
 0x112   : > { %v3981_v9 = vadd.f32 %v2918_v52, %v2917_v37  ;;  %v2849_v41 = vpop.f32.mrb[13].mxu0 }
 0x113   : > { %1947 = vmatmul.mubr.bf16.gmra.mrb[116].mxu1 %v3835_v28  ;;  %v3991_v42 = vadd.f32 %v2849_v41, %v2848_v13  ;;  %v2851_v32 = vpop.f32.mrb[14].mxu0  ;;  %v570_v41 = vld [vmem:[#allocation2 + $0x170] sm:$0xff] }
 0x114   : > { %1954 = vmatprep.mubr.bf16.mxu1 %v3925_v38  ;;  %v2852_v45 = vpop.f32.mrb[15].mxu0 }
 0x115   : > { %v3995_v38 = vadd.f32 %v2852_v45, %v2851_v32 }
 0x116   : > { %v2920_v23 = vpop.f32.mrb[12].mxu1  ;;  %3311 = vmatmul.mubr.bf16.gmra.mrb[120].mxu0 %v3837_v34 }
 0x117   : > { %v2921_v29 = vpop.f32.mrb[13].mxu1  ;;  %3314 = vmatprep.mubr.bf16.mxu0 %v3843_v39 }
 0x118   : > { %v3989_v12 = vadd.f32 %v2921_v29, %v2920_v23  ;;  %v2923_v48 = vpop.f32.mrb[14].mxu1  ;;  %v569_v29 = vld [vmem:[#allocation2 + $0x168] sm:$0xff] }
 0x119   : > { %v2924_v28 = vpop.f32.mrb[15].mxu1  ;;  %v2854_v55 = vpop.f32.mrb[16].mxu0 }
 0x11a   : > { %v3993_v14 = vadd.f32 %v2924_v28, %v2923_v48  ;;  %v2855_v36 = vpop.f32.mrb[17].mxu0  ;;  %v762_v28 = vpack.c.bf16 %v570_v41, %v569_v29 }
 0x11b   : > { %1955 = vmatmul.mubr.bf16.gmra.mrb[120].mxu1 %v735_v46  ;;  %v4000_v4 = vadd.f32 %v2855_v36, %v2854_v55  ;;  %v2857_v6 = vpop.f32.mrb[18].mxu0  ;;  %v605_v36 = vld [vmem:[#allocation2 + $0x199] sm:$0xff] }
 0x11c   : > { %1962 = vmatprep.mubr.bf16.mxu1 %v3931_v35  ;;  %v2858_v17 = vpop.f32.mrb[19].mxu0 }
 0x11d   : > { %v4005_v18 = vadd.f32 %v2858_v17, %v2857_v6 }
 0x11e   : > { %v2942_v54 = vpop.f32.mrb[16].mxu1  ;;  %3315 = vmatmul.mubr.bf16.gmra.mrb[124].mxu0 %v3856_v44 }
 0x11f   : > { %v2943_v61 = vpop.f32.mrb[17].mxu1  ;;  %3318 = vmatprep.mubr.bf16.mxu0 %v3868_v50 }
 0x120   : > { %v2944_v2 = vadd.f32 %v2943_v61, %v2942_v54  ;;  %v2945_v3 = vpop.f32.mrb[18].mxu1 }
 0x121   : > { %v2946_v31 = vpop.f32.mrb[19].mxu1  ;;  %v2860_v26 = vpop.f32.mrb[20].mxu0 }
 0x122   : > { %v4003_v34 = vadd.f32 %v2944_v2, %v3956_v53  ;;  %v2947_v35 = vadd.f32 %v2946_v31, %v2945_v3  ;;  %v2861_v53 = vpop.f32.mrb[21].mxu0 }
 0x123   : > { %1963 = vmatmul.mubr.bf16.gmra.mrb[124].mxu1 %v744_v1  ;;  %v4013_v47 = vadd.f32 %v2861_v53, %v2860_v26  ;;  %v2863_v62 = vpop.f32.mrb[22].mxu0  ;;  %v606_v1 = vld [vmem:[#allocation2 + $0x1a1] sm:$0xff] }
 0x124   : > { %v4009_v39 = vadd.f32 %v2947_v35, %v3960_v63  ;;  %1970 = vmatprep.mubr.bf16.mxu1 %v3937_v40  ;;  %v2864_v23 = vpop.f32.mrb[23].mxu0  ;;  %v781_v16 = vpack.c.bf16 %v606_v1, %v605_v36  ;;  %v638_v53 = vld [vmem:[#allocation2 + $0x1a2] sm:$0xff] }
 0x125   : > { %v4018_v13 = vadd.f32 %v2864_v23, %v2863_v62  ;;  %v3447_v62 = vld [vmem:[#allocation2] sm:$0xff] }
 0x126   : > { %v2948_v25 = vpop.f32.mrb[20].mxu1  ;;  %3319 = vmatmul.mubr.bf16.gmra.mrb[128].mxu0 %v3880_v57 }
 0x127   : > { %v2949_v37 = vpop.f32.mrb[21].mxu1  ;;  %3322 = vmatprep.mubr.bf16.mxu0 %v3889_v0 }
 0x128   : > { %v2950_v52 = vadd.f32 %v2949_v37, %v2948_v25  ;;  %v2951_v58 = vpop.f32.mrb[22].mxu1  ;;  %v637_v37 = vld [vmem:[#allocation2 + $0x19a] sm:$0xff] }
 0x129   : > { %v2952_v44 = vpop.f32.mrb[23].mxu1  ;;  %v2866_v48 = vpop.f32.mrb[24].mxu0  ;;  %v782_v23 = vpack.c.bf16 %v638_v53, %v637_v37 }
 0x12a   : > { %v4016_v63 = vadd.f32 %v2950_v52, %v3967_v8  ;;  %v2953_v40 = vadd.f32 %v2952_v44, %v2951_v58  ;;  %v2867_v8 = vpop.f32.mrb[25].mxu0  ;;  %v780_v44 = vpack.c.bf16 %v3447_v62, %v3447_v62 }
 0x12b   : > { %1971 = vmatmul.mubr.bf16.gmra.mrb[128].mxu1 %v753_v30  ;;  %v4026_v51 = vadd.f32 %v2867_v8, %v2866_v48  ;;  %v2869_v54 = vpop.f32.mrb[26].mxu0 }
 0x12c   : > { %v4022_v50 = vadd.f32 %v2953_v40, %v3971_v24  ;;  %1978 = vmatprep.mubr.bf16.mxu1 %v3943_v43  ;;  %v2870_v55 = vpop.f32.mrb[27].mxu0 }
 0x12d   : > { %v4031_v61 = vadd.f32 %v2870_v55, %v2869_v54 }
 0x12e   : > { %v2954_v46 = vpop.f32.mrb[24].mxu1  ;;  %3323 = vmatmul.mubr.bf16.gmra.mrb[132].mxu0 %v3895_v56 }
 0x12f   : > { %v2955_v32 = vpop.f32.mrb[25].mxu1  ;;  %3326 = vmatprep.mubr.bf16.mxu0 %v3901_v7 }
 0x130   : > { %v2956_v45 = vadd.f32 %v2955_v32, %v2954_v46  ;;  %v2957_v22 = vpop.f32.mrb[26].mxu1 }
 0x131   : > { %v2958_v57 = vpop.f32.mrb[27].mxu1  ;;  %v2872_v3 = vpop.f32.mrb[28].mxu0 }
 0x132   : > { %v4029_v24 = vadd.f32 %v2956_v45, %v3979_v15  ;;  %v2959_v43 = vadd.f32 %v2958_v57, %v2957_v22  ;;  %v2873_v15 = vpop.f32.mrb[29].mxu0 }
 0x133   : > { %1979 = vmatmul.mubr.bf16.gmra.mrb[132].mxu1 %v762_v28  ;;  %v4039_v35 = vadd.f32 %v2873_v15, %v2872_v3  ;;  %v2875_v10 = vpop.f32.mrb[30].mxu0 }
 0x134   : > { %v4035_v0 = vadd.f32 %v2959_v43, %v3983_v21  ;;  %1986 = vmatprep.mubr.bf16.mxu1 %v3952_v49  ;;  %v2876_v25 = vpop.f32.mrb[31].mxu0 }
 0x135   : > { %v4044_v26 = vadd.f32 %v2876_v25, %v2875_v10 }
 0x136   : > { %v2960_v2 = vpop.f32.mrb[28].mxu1  ;;  %3327 = vmatmul.mubr.bf16.gmra.mrb[136].mxu0 %v3909_v19 }
 0x137   : > { %v2961_v6 = vpop.f32.mrb[29].mxu1  ;;  %3330 = vmatprep.mubr.bf16.mxu0 %v3945_v33 }
 0x138   : > { %v2962_v31 = vadd.f32 %v2961_v6, %v2960_v2  ;;  %v2963_v17 = vpop.f32.mrb[30].mxu1 }
 0x139   : > { %v2964_v56 = vpop.f32.mrb[31].mxu1  ;;  %v2878_v52 = vpop.f32.mrb[32].mxu0 }
 0x13a   : > { %v4042_v21 = vadd.f32 %v2962_v31, %v3991_v42  ;;  %v2965_v49 = vadd.f32 %v2964_v56, %v2963_v17  ;;  %v2879_v42 = vpop.f32.mrb[33].mxu0 }
 0x13b   : > { %1987 = vmatmul.mubr.bf16.gmra.mrb[136].mxu1 %v3903_v11  ;;  %v2880_v11 = vadd.f32 %v2879_v42, %v2878_v52  ;;  %v2881_v41 = vpop.f32.mrb[34].mxu0 }
 0x13c   : > { %v4049_v7 = vadd.f32 %v2965_v49, %v3995_v38  ;;  %1994 = vmatprep.mubr.bf16.mxu1 %v781_v16  ;;  %v2882_v46 = vpop.f32.mrb[35].mxu0 }
 0x13d   : > { %v2883_v33 = vadd.f32 %v2882_v46, %v2881_v41 }
 0x13e   : > { %v2966_v30 = vpop.f32.mrb[32].mxu1  ;;  %3331 = vmatmul.mubr.bf16.gmra.mrb[140].mxu0 %v782_v23 }
 0x13f   : > { %v2967_v58 = vpop.f32.mrb[33].mxu1 }
 0x140   : > { %v2968_v40 = vadd.f32 %v2967_v58, %v2966_v30  ;;  %v2969_v29 = vpop.f32.mrb[34].mxu1 }
 0x141   : > { %v2970_v19 = vpop.f32.mrb[35].mxu1  ;;  %v2884_v28 = vpop.f32.mrb[36].mxu0 }
 0x142   : > { %v4053_v38 = vadd.f32 %v2968_v40, %v4000_v4  ;;  %v2971_v48 = vadd.f32 %v2970_v19, %v2969_v29  ;;  %v2885_v22 = vpop.f32.mrb[37].mxu0 }
 0x143   : > { %1995 = vmatmul.mubr.bf16.gmra.mrb[140].mxu1 %v780_v44  ;;  %v2886_v55 = vadd.f32 %v2885_v22, %v2884_v28  ;;  %v2887_v43 = vpop.f32.mrb[38].mxu0 }
 0x144   : > { %v4056_v32 = vadd.f32 %v2971_v48, %v4005_v18  ;;  %v2888_v1 = vpop.f32.mrb[39].mxu0 }
 0x145   : > { %v2889_v3 = vadd.f32 %v2888_v1, %v2887_v43 }
 0x146   : > { %v2972_v8 = vpop.f32.mrb[36].mxu1 }
 0x147   : > { %v2973_v45 = vpop.f32.mrb[37].mxu1 }
 0x148   : > { %v2974_v54 = vadd.f32 %v2973_v45, %v2972_v8  ;;  %v2975_v57 = vpop.f32.mrb[38].mxu1 }
 0x149   : > { %v2976_v36 = vpop.f32.mrb[39].mxu1  ;;  %v2890_v15 = vpop.f32.mrb[40].mxu0 }
 0x14a   : > { %v4059_v4 = vadd.f32 %v2974_v54, %v4013_v47  ;;  %v2977_v2 = vadd.f32 %v2976_v36, %v2975_v57  ;;  %v2891_v17 = vpop.f32.mrb[41].mxu0 }
 0x14b   : > { %v4064_v56 = vadd.f32 %v2891_v17, %v2890_v15  ;;  %v2893_v25 = vpop.f32.mrb[42].mxu0 }
 0x14c   : > { %v4062_v6 = vadd.f32 %v2977_v2, %v4018_v13  ;;  %v2894_v37 = vpop.f32.mrb[43].mxu0 }
 0x14d   : > { %v2895_v30 = vadd.f32 %v2894_v37, %v2893_v25 }
 0x14e   : > { %v2978_v18 = vpop.f32.mrb[40].mxu1 }
 0x14f   : > { %v2979_v31 = vpop.f32.mrb[41].mxu1 }
 0x150   : > { %v2980_v10 = vadd.f32 %v2979_v31, %v2978_v18  ;;  %v2981_v16 = vpop.f32.mrb[42].mxu1 }
 0x151   : > { %v2982_v49 = vpop.f32.mrb[43].mxu1  ;;  %v2896_v58 = vpop.f32.mrb[44].mxu0 }
 0x152   : > { %v4067_v53 = vadd.f32 %v2980_v10, %v4026_v51  ;;  %v2983_v47 = vadd.f32 %v2982_v49, %v2981_v16  ;;  %v2897_v62 = vpop.f32.mrb[45].mxu0 }
 0x153   : > { %v4072_v40 = vadd.f32 %v2897_v62, %v2896_v58  ;;  %v2899_v29 = vpop.f32.mrb[46].mxu0 }
 0x154   : > { %v4070_v52 = vadd.f32 %v2983_v47, %v4031_v61  ;;  %v2900_v19 = vpop.f32.mrb[47].mxu0 }
 0x155   : > { %v4077_v48 = vadd.f32 %v2900_v19, %v2899_v29 }
 0x156   : > { %v2984_v13 = vpop.f32.mrb[44].mxu1 }
 0x157   : > { %v2985_v42 = vpop.f32.mrb[45].mxu1 }
 0x158   : > { %v2986_v44 = vadd.f32 %v2985_v42, %v2984_v13  ;;  %v2987_v23 = vpop.f32.mrb[46].mxu1 }
 0x159   : > { %v2988_v41 = vpop.f32.mrb[47].mxu1  ;;  %v3054_v28 = vpop.f32.mrb[48].mxu0 }
 0x15a   : > { %v4075_v46 = vadd.f32 %v2986_v44, %v4039_v35  ;;  %v2989_v51 = vadd.f32 %v2988_v41, %v2987_v23  ;;  %v3055_v22 = vpop.f32.mrb[49].mxu0 }
 0x15b   : > { %v3056_v57 = vadd.f32 %v3055_v22, %v3054_v28  ;;  %v3057_v36 = vpop.f32.mrb[50].mxu0 }
 0x15c   : > { %v4080_v61 = vadd.f32 %v2989_v51, %v4044_v26  ;;  %v3058_v2 = vpop.f32.mrb[51].mxu0 }
 0x15d   : > { %v4085_v35 = vadd.f32 %v3056_v57, %v4003_v34  ;;  %v3059_v31 = vadd.f32 %v3058_v2, %v3057_v36 }
 0x15e   : > { %v2990_v8 = vpop.f32.mrb[48].mxu1 }
 0x15f   : > { %v2991_v45 = vpop.f32.mrb[49].mxu1  ;;  %v4090_v26 = vadd.f32 %v3059_v31, %v4009_v39 }
 0x160   : > { %v2992_v54 = vadd.f32 %v2991_v45, %v2990_v8  ;;  %v2993_v43 = vpop.f32.mrb[50].mxu1 }
 0x161   : > { %v2994_v1 = vpop.f32.mrb[51].mxu1  ;;  %v3060_v16 = vpop.f32.mrb[52].mxu0 }
 0x162   : > { %v4082_v18 = vadd.f32 %v2992_v54, %v2880_v11  ;;  %v2995_v15 = vadd.f32 %v2994_v1, %v2993_v43  ;;  %v3061_v49 = vpop.f32.mrb[53].mxu0 }
 0x163   : > { %v3062_v47 = vadd.f32 %v3061_v49, %v3060_v16  ;;  %v3063_v58 = vpop.f32.mrb[54].mxu0 }
 0x164   : > { %v4087_v17 = vadd.f32 %v2995_v15, %v2883_v33  ;;  %v3064_v42 = vpop.f32.mrb[55].mxu0 }
 0x165   : > { %v4095_v34 = vadd.f32 %v3062_v47, %v4016_v63  ;;  %v3065_v44 = vadd.f32 %v3064_v42, %v3063_v58 }
 0x166   : > { %v2996_v10 = vpop.f32.mrb[52].mxu1 }
 0x167   : > { %v2997_v25 = vpop.f32.mrb[53].mxu1  ;;  %v4100_v39 = vadd.f32 %v3065_v44, %v4022_v50 }
 0x168   : > { %v2998_v37 = vadd.f32 %v2997_v25, %v2996_v10  ;;  %v2999_v13 = vpop.f32.mrb[54].mxu1 }
 0x169   : > { %v3000_v11 = vpop.f32.mrb[55].mxu1  ;;  %v3066_v41 = vpop.f32.mrb[56].mxu0 }
 0x16a   : > { %v4092_v62 = vadd.f32 %v2998_v37, %v2886_v55  ;;  %v3001_v33 = vadd.f32 %v3000_v11, %v2999_v13  ;;  %v3067_v51 = vpop.f32.mrb[57].mxu0 }
 0x16b   : > { %v3068_v28 = vadd.f32 %v3067_v51, %v3066_v41  ;;  %v3069_v22 = vpop.f32.mrb[58].mxu0 }
 0x16c   : > { %v4097_v23 = vadd.f32 %v3001_v33, %v2889_v3  ;;  %v3070_v54 = vpop.f32.mrb[59].mxu0 }
 0x16d   : > { %v4106_v57 = vadd.f32 %v3068_v28, %v4029_v24  ;;  %v3071_v43 = vadd.f32 %v3070_v54, %v3069_v22 }
 0x16e   : > { %v3002_v29 = vpop.f32.mrb[56].mxu1 }
 0x16f   : > { %v3003_v19 = vpop.f32.mrb[57].mxu1  ;;  %v4111_v36 = vadd.f32 %v3071_v43, %v4035_v0 }
 0x170   : > { %v3004_v8 = vadd.f32 %v3003_v19, %v3002_v29  ;;  %v3005_v45 = vpop.f32.mrb[58].mxu1 }
 0x171   : > { %v3006_v55 = vpop.f32.mrb[59].mxu1  ;;  %v3072_v2 = vpop.f32.mrb[60].mxu0 }
 0x172   : > { %v4103_v63 = vadd.f32 %v3004_v8, %v4064_v56  ;;  %v3007_v3 = vadd.f32 %v3006_v55, %v3005_v45  ;;  %v3073_v31 = vpop.f32.mrb[61].mxu0 }
 0x173   : > { %v3074_v16 = vadd.f32 %v3073_v31, %v3072_v2  ;;  %v3075_v49 = vpop.f32.mrb[62].mxu0 }
 0x174   : > { %v4108_v50 = vadd.f32 %v3007_v3, %v2895_v30  ;;  %v3076_v37 = vpop.f32.mrb[63].mxu0 }
 0x175   : > { %v4117_v47 = vadd.f32 %v3074_v16, %v4042_v21  ;;  %v3077_v13 = vadd.f32 %v3076_v37, %v3075_v49 }
 0x176   : > { %v3008_v1 = vpop.f32.mrb[60].mxu1 }
 0x177   : > { %v3009_v15 = vpop.f32.mrb[61].mxu1  ;;  %v4123_v58 = vadd.f32 %v3077_v13, %v4049_v7 }
 0x178   : > { %v3010_v10 = vadd.f32 %v3009_v15, %v3008_v1  ;;  %v3011_v25 = vpop.f32.mrb[62].mxu1 }
 0x179   : > { %v3012_v56 = vpop.f32.mrb[63].mxu1  ;;  %v3078_v42 = vpop.f32.mrb[64].mxu0 }
 0x17a   : > { %v4114_v24 = vadd.f32 %v3010_v10, %v4072_v40  ;;  %v3013_v30 = vadd.f32 %v3012_v56, %v3011_v25  ;;  %v3079_v44 = vpop.f32.mrb[65].mxu0 }
 0x17b   : > { %v3080_v41 = vadd.f32 %v3079_v44, %v3078_v42  ;;  %v3081_v40 = vpop.f32.mrb[66].mxu0 }
 0x17c   : > { %v4120_v0 = vadd.f32 %v3013_v30, %v4077_v48  ;;  %v3082_v8 = vpop.f32.mrb[67].mxu0 }
 0x17d   : > { %v4129_v28 = vadd.f32 %v3080_v41, %v4053_v38  ;;  %v3083_v45 = vadd.f32 %v3082_v8, %v3081_v40 }
 0x17e   : > { %v3014_v11 = vpop.f32.mrb[64].mxu1 }
 0x17f   : > { %v3015_v33 = vpop.f32.mrb[65].mxu1  ;;  %v4135_v22 = vadd.f32 %v3083_v45, %v4056_v32 }
 0x180   : > { %v3016_v29 = vadd.f32 %v3015_v33, %v3014_v11  ;;  %v3017_v19 = vpop.f32.mrb[66].mxu1 }
 0x181   : > { %v3018_v51 = vpop.f32.mrb[67].mxu1  ;;  %v3084_v54 = vpop.f32.mrb[68].mxu0 }
 0x182   : > { %v4126_v21 = vadd.f32 %v3016_v29, %v3954_v60  ;;  %v3019_v48 = vadd.f32 %v3018_v51, %v3017_v19  ;;  %v3085_v43 = vpop.f32.mrb[69].mxu0 }
 0x183   : > { %v3086_v2 = vadd.f32 %v3085_v43, %v3084_v54  ;;  %v3087_v60 = vpop.f32.mrb[70].mxu0 }
 0x184   : > { %v4132_v7 = vadd.f32 %v3019_v48, %v3958_v59  ;;  %v3088_v10 = vpop.f32.mrb[71].mxu0 }
 0x185   : > { %v4141_v16 = vadd.f32 %v3086_v2, %v4059_v4  ;;  %v3089_v25 = vadd.f32 %v3088_v10, %v3087_v60 }
 0x186   : > { %v3020_v55 = vpop.f32.mrb[68].mxu1 }
 0x187   : > { %v3021_v3 = vpop.f32.mrb[69].mxu1  ;;  %v4147_v49 = vadd.f32 %v3089_v25, %v4062_v6 }
 0x188   : > { %v3022_v1 = vadd.f32 %v3021_v3, %v3020_v55  ;;  %v3023_v15 = vpop.f32.mrb[70].mxu1 }
 0x189   : > { %v3024_v31 = vpop.f32.mrb[71].mxu1  ;;  %v3090_v37 = vpop.f32.mrb[72].mxu0 }
 0x18a   : > { %v4138_v38 = vadd.f32 %v3022_v1, %v3965_v5  ;;  %v3025_v59 = vadd.f32 %v3024_v31, %v3023_v15  ;;  %v3091_v13 = vpop.f32.mrb[73].mxu0 }
 0x18b   : > { %v3092_v42 = vadd.f32 %v3091_v13, %v3090_v37  ;;  %v3093_v5 = vpop.f32.mrb[74].mxu0 }
 0x18c   : > { %v4144_v32 = vadd.f32 %v3025_v59, %v3969_v20  ;;  %v3094_v29 = vpop.f32.mrb[75].mxu0 }
 0x18d   : > { %v4153_v41 = vadd.f32 %v3092_v42, %v4067_v53  ;;  %v3095_v19 = vadd.f32 %v3094_v29, %v3093_v5 }
 0x18e   : > { %v3026_v56 = vpop.f32.mrb[72].mxu1 }
 0x18f   : > { %v3027_v30 = vpop.f32.mrb[73].mxu1  ;;  %v4159_v40 = vadd.f32 %v3095_v19, %v4070_v52 }
 0x190   : > { %v3028_v11 = vadd.f32 %v3027_v30, %v3026_v56  ;;  %v3029_v33 = vpop.f32.mrb[74].mxu1 }
 0x191   : > { %v3030_v44 = vpop.f32.mrb[75].mxu1  ;;  %v3096_v8 = vpop.f32.mrb[76].mxu0 }
 0x192   : > { %v4150_v4 = vadd.f32 %v3028_v11, %v3977_v27  ;;  %v3031_v20 = vadd.f32 %v3030_v44, %v3029_v33  ;;  %v3097_v45 = vpop.f32.mrb[77].mxu0 }
 0x193   : > { %v3098_v54 = vadd.f32 %v3097_v45, %v3096_v8  ;;  %v3099_v27 = vpop.f32.mrb[78].mxu0 }
 0x194   : > { %v4156_v6 = vadd.f32 %v3031_v20, %v3981_v9  ;;  %v3100_v1 = vpop.f32.mrb[79].mxu0 }
 0x195   : > { %v4165_v2 = vadd.f32 %v3098_v54, %v4075_v46  ;;  %v3101_v15 = vadd.f32 %v3100_v1, %v3099_v27 }
 0x196   : > { %v3032_v51 = vpop.f32.mrb[76].mxu1 }
 0x197   : > { %v3033_v48 = vpop.f32.mrb[77].mxu1  ;;  %v4171_v60 = vadd.f32 %v3101_v15, %v4080_v61 }
 0x198   : > { %v3034_v55 = vadd.f32 %v3033_v48, %v3032_v51  ;;  %v3035_v3 = vpop.f32.mrb[78].mxu1 }
 0x199   : > { %v3036_v43 = vpop.f32.mrb[79].mxu1  ;;  %v3102_v31 = vpop.f32.mrb[80].mxu0 }
 0x19a   : > { %v4162_v53 = vadd.f32 %v3034_v55, %v3989_v12  ;;  %v3037_v9 = vadd.f32 %v3036_v43, %v3035_v3  ;;  %v3103_v59 = vpop.f32.mrb[81].mxu0 }
 0x19b   : > { %v3104_v56 = vadd.f32 %v3103_v59, %v3102_v31  ;;  %v3105_v30 = vpop.f32.mrb[82].mxu0 }
 0x19c   : > { %v4168_v52 = vadd.f32 %v3037_v9, %v3993_v14  ;;  %v3106_v13 = vpop.f32.mrb[83].mxu0 }
 0x19d   : > { %v4174_v46 = vadd.f32 %v3104_v56, %v4082_v18  ;;  %v3107_v42 = vadd.f32 %v3106_v13, %v3105_v30 }
 0x19e   : > { %v3166_v10 = vpop.f32.mrb[80].mxu1 }
 0x19f   : > { %v3167_v25 = vpop.f32.mrb[81].mxu1  ;;  %v4180_v61 = vadd.f32 %v3107_v42, %v4087_v17 }
 0x1a0   : > { %v3168_v37 = vadd.f32 %v3167_v25, %v3166_v10  ;;  %v3169_v12 = vpop.f32.mrb[82].mxu1 }
 0x1a1   : > { %v3170_v11 = vpop.f32.mrb[83].mxu1  ;;  %v3108_v44 = vpop.f32.mrb[84].mxu0 }
 0x1a2   : > { %v3171_v33 = vadd.f32 %v3170_v11, %v3169_v12  ;;  %v4177_v14 = vadd.f32 %v3168_v37, %v4085_v35  ;;  %v3109_v20 = vpop.f32.mrb[85].mxu0 }
 0x1a3   : > { %v3110_v51 = vadd.f32 %v3109_v20, %v3108_v44  ;;  %v3111_v48 = vpop.f32.mrb[86].mxu0 }
 0x1a4   : > { %v4183_v5 = vadd.f32 %v3171_v33, %v4090_v26  ;;  %v3112_v45 = vpop.f32.mrb[87].mxu0 }
 0x1a5   : > { %v4186_v54 = vadd.f32 %v3110_v51, %v4092_v62  ;;  %v3113_v35 = vadd.f32 %v3112_v45, %v3111_v48 }
 0x1a6   : > { %v3172_v29 = vpop.f32.mrb[84].mxu1 }
 0x1a7   : > { %v3173_v19 = vpop.f32.mrb[85].mxu1  ;;  %v4192_v26 = vadd.f32 %v3113_v35, %v4097_v23 }
 0x1a8   : > { %v3174_v8 = vadd.f32 %v3173_v19, %v3172_v29  ;;  %v3175_v18 = vpop.f32.mrb[86].mxu1 }
 0x1a9   : > { %v3176_v55 = vpop.f32.mrb[87].mxu1  ;;  %v3114_v43 = vpop.f32.mrb[88].mxu0 }
 0x1aa   : > { %v3177_v3 = vadd.f32 %v3176_v55, %v3175_v18  ;;  %v4189_v17 = vadd.f32 %v3174_v8, %v4095_v34  ;;  %v3115_v9 = vpop.f32.mrb[89].mxu0 }
 0x1ab   : > { %v3116_v31 = vadd.f32 %v3115_v9, %v3114_v43  ;;  %v3117_v59 = vpop.f32.mrb[90].mxu0 }
 0x1ac   : > { %v4195_v27 = vadd.f32 %v3177_v3, %v4100_v39  ;;  %v3118_v25 = vpop.f32.mrb[91].mxu0 }
 0x1ad   : > { %v4198_v37 = vadd.f32 %v3116_v31, %v4103_v63  ;;  %v3119_v34 = vadd.f32 %v3118_v25, %v3117_v59 }
 0x1ae   : > { %v3178_v1 = vpop.f32.mrb[88].mxu1 }
 0x1af   : > { %v3179_v15 = vpop.f32.mrb[89].mxu1  ;;  %v4204_v39 = vadd.f32 %v3119_v34, %v4108_v50 }
 0x1b0   : > { %v3180_v10 = vadd.f32 %v3179_v15, %v3178_v1  ;;  %v3181_v62 = vpop.f32.mrb[90].mxu1 }
 0x1b1   : > { %v3182_v56 = vpop.f32.mrb[91].mxu1  ;;  %v3120_v13 = vpop.f32.mrb[92].mxu0 }
 0x1b2   : > { %v3183_v30 = vadd.f32 %v3182_v56, %v3181_v62  ;;  %v4201_v23 = vadd.f32 %v3180_v10, %v4106_v57  ;;  %v3121_v42 = vpop.f32.mrb[93].mxu0 }
 0x1b3   : > { %v3122_v44 = vadd.f32 %v3121_v42, %v3120_v13  ;;  %v3123_v20 = vpop.f32.mrb[94].mxu0 }
 0x1b4   : > { %v4207_v12 = vadd.f32 %v3183_v30, %v4111_v36  ;;  %v3124_v19 = vpop.f32.mrb[95].mxu0 }
 0x1b5   : > { %v4210_v8 = vadd.f32 %v3122_v44, %v4114_v24  ;;  %v3125_v57 = vadd.f32 %v3124_v19, %v3123_v20 }
 0x1b6   : > { %v3184_v11 = vpop.f32.mrb[92].mxu1 }
 0x1b7   : > { %v3185_v33 = vpop.f32.mrb[93].mxu1  ;;  %v4216_v36 = vadd.f32 %v3125_v57, %v4120_v0 }
 0x1b8   : > { %v3186_v29 = vadd.f32 %v3185_v33, %v3184_v11  ;;  %v3187_v63 = vpop.f32.mrb[94].mxu1 }
 0x1b9   : > { %v3188_v51 = vpop.f32.mrb[95].mxu1  ;;  %v3126_v45 = vpop.f32.mrb[96].mxu0 }
 0x1ba   : > { %v3189_v48 = vadd.f32 %v3188_v51, %v3187_v63  ;;  %v4213_v50 = vadd.f32 %v3186_v29, %v4117_v47  ;;  %v3127_v35 = vpop.f32.mrb[97].mxu0 }
 0x1bb   : > { %v3128_v43 = vadd.f32 %v3127_v35, %v3126_v45  ;;  %v3129_v9 = vpop.f32.mrb[98].mxu0 }
 0x1bc   : > { %v4219_v18 = vadd.f32 %v3189_v48, %v4123_v58  ;;  %v3130_v15 = vpop.f32.mrb[99].mxu0 }
 0x1bd   : > { %v4222_v10 = vadd.f32 %v3128_v43, %v4126_v21  ;;  %v3131_v47 = vadd.f32 %v3130_v15, %v3129_v9 }
 0x1be   : > { %v3190_v55 = vpop.f32.mrb[96].mxu1 }
 0x1bf   : > { %v3191_v3 = vpop.f32.mrb[97].mxu1  ;;  %v4228_v58 = vadd.f32 %v3131_v47, %v4132_v7 }
 0x1c0   : > { %v3192_v1 = vadd.f32 %v3191_v3, %v3190_v55  ;;  %v3193_v24 = vpop.f32.mrb[98].mxu1 }
 0x1c1   : > { %v3194_v31 = vpop.f32.mrb[99].mxu1  ;;  %v3132_v25 = vpop.f32.mrb[100].mxu0 }
 0x1c2   : > { %v3195_v59 = vadd.f32 %v3194_v31, %v3193_v24  ;;  %v4225_v0 = vadd.f32 %v3192_v1, %v4129_v28  ;;  %v3133_v34 = vpop.f32.mrb[101].mxu0 }
 0x1c3   : > { %v3134_v13 = vadd.f32 %v3133_v34, %v3132_v25  ;;  %v3135_v42 = vpop.f32.mrb[102].mxu0 }
 0x1c4   : > { %v4231_v62 = vadd.f32 %v3195_v59, %v4135_v22  ;;  %v3136_v33 = vpop.f32.mrb[103].mxu0 }
 0x1c5   : > { %v4234_v29 = vadd.f32 %v3134_v13, %v4138_v38  ;;  %v3137_v28 = vadd.f32 %v3136_v33, %v3135_v42 }
 0x1c6   : > { %v3196_v56 = vpop.f32.mrb[100].mxu1 }
 0x1c7   : > { %v3197_v30 = vpop.f32.mrb[101].mxu1  ;;  %v4240_v22 = vadd.f32 %v3137_v28, %v4144_v32  ;;  %v4272_v28 = vld [vmem:[%s4421_s2] ss:$0 sm:$0xff] }
 0x1c8   : > { %v3198_v11 = vadd.f32 %v3197_v30, %v3196_v56  ;;  %v3199_v21 = vpop.f32.mrb[102].mxu1 }
 0x1c9   : > { %v3200_v44 = vpop.f32.mrb[103].mxu1  ;;  %v3138_v19 = vpop.f32.mrb[104].mxu0 }
 0x1ca   : > { %v3201_v20 = vadd.f32 %v3200_v44, %v3199_v21  ;;  %v4237_v7 = vadd.f32 %v3198_v11, %v4141_v16  ;;  %v3139_v57 = vpop.f32.mrb[105].mxu0 }
 0x1cb   : > { %v3140_v45 = vadd.f32 %v3139_v57, %v3138_v19  ;;  %v3141_v35 = vpop.f32.mrb[106].mxu0 }
 0x1cc   : > { %v4243_v63 = vadd.f32 %v3201_v20, %v4147_v49  ;;  %v3142_v3 = vpop.f32.mrb[107].mxu0 }
 0x1cd   : > { %v4246_v1 = vadd.f32 %v3140_v45, %v4150_v4  ;;  %v3143_v16 = vadd.f32 %v3142_v3, %v3141_v35 }
 0x1ce   : > { %v3202_v51 = vpop.f32.mrb[104].mxu1 }
 0x1cf   : > { %v3203_v48 = vpop.f32.mrb[105].mxu1  ;;  %v4252_v49 = vadd.f32 %v3143_v16, %v4156_v6 }
 0x1d0   : > { %v3204_v55 = vadd.f32 %v3203_v48, %v3202_v51  ;;  %v3205_v38 = vpop.f32.mrb[106].mxu1 }
 0x1d1   : > { %v3206_v43 = vpop.f32.mrb[107].mxu1  ;;  %v3144_v15 = vpop.f32.mrb[108].mxu0 }
 0x1d2   : > { %v3207_v9 = vadd.f32 %v3206_v43, %v3205_v38  ;;  %v4249_v32 = vadd.f32 %v3204_v55, %v4153_v41  ;;  %v3145_v47 = vpop.f32.mrb[109].mxu0 }
 0x1d3   : > { %v3146_v25 = vadd.f32 %v3145_v47, %v3144_v15  ;;  %v3147_v34 = vpop.f32.mrb[110].mxu0 }
 0x1d4   : > { %v4255_v24 = vadd.f32 %v3207_v9, %v4159_v40  ;;  %v3148_v30 = vpop.f32.mrb[111].mxu0 }
 0x1d5   : > { %v4258_v11 = vadd.f32 %v3146_v25, %v4162_v53  ;;  %v3149_v41 = vadd.f32 %v3148_v30, %v3147_v34 }
 0x1d6   : > { %v3208_v31 = vpop.f32.mrb[108].mxu1 }
 0x1d7   : > { %v3209_v59 = vpop.f32.mrb[109].mxu1  ;;  %v4264_v40 = vadd.f32 %v3149_v41, %v4168_v52 }
 0x1d8   : > { %v3210_v56 = vadd.f32 %v3209_v59, %v3208_v31  ;;  %v3211_v4 = vpop.f32.mrb[110].mxu1 }
 0x1d9   : > { %v3212_v13 = vpop.f32.mrb[111].mxu1  ;;  %v3304_v44 = vpop.f32.mrb[112].mxu0 }
 0x1da   : > { %v3213_v42 = vadd.f32 %v3212_v13, %v3211_v4  ;;  %v4261_v6 = vadd.f32 %v3210_v56, %v4165_v2  ;;  %v2046_v53 = vadd.f32 %v3304_v44, %v4189_v17  ;;  %v2037_v19 = vpop.f32.mrb[113].mxu0  ;;  %v4278_v2 = vld [vmem:[%s4422_s3] ss:$0 sm:$0xff] }
 0x1db   : > { %v3305_v57 = vpop.f32.mrb[114].mxu0 }
 0x1dc   : > { %v4267_v21 = vadd.f32 %v3213_v42, %v4171_v60  ;;  %v2038_v60 = vadd.f32 %v2037_v19, %v4177_v14  ;;  %v2173_v48 = vmul.f32 %v4272_v28, %v2046_v53  ;;  %v2049_v45 = vadd.f32 %v3305_v57, %v4195_v27  ;;  %v2040_v35 = vpop.f32.mrb[115].mxu0 }
 0x1dd   : > { %v2041_v3 = vadd.f32 %v2040_v35, %v4183_v5 }
 0x1de   : > { %v3214_v33 = vpop.f32.mrb[112].mxu1  ;;  %v2171_v17 = vmul.f32 %v4272_v28, %v2038_v60  ;;  %v2212_v16 = vadd.f32 %v4278_v2, %v2173_v48  ;;  %v2174_v14 = vmul.f32 %v4272_v28, %v2049_v45 }
 0x1df   : > { %v3215_v20 = vpop.f32.mrb[113].mxu1  ;;  %v2172_v15 = vmul.f32 %v4272_v28, %v2041_v3 }
 0x1e0   : > { %v3216_v52 = vadd.f32 %v3215_v20, %v3214_v33  ;;  %v3217_v51 = vpop.f32.mrb[114].mxu1  ;;  %v2210_v9 = vadd.f32 %v4278_v2, %v2171_v17  ;;  %v2213_v31 = vadd.f32 %v4278_v2, %v2174_v14 }
 0x1e1   : > { %v3218_v55 = vpop.f32.mrb[115].mxu1  ;;  %v2211_v47 = vadd.f32 %v4278_v2, %v2172_v15  ;;  %v3308_v59 = vpop.f32.mrb[116].mxu0 }
 0x1e2   : > { %v3219_v38 = vadd.f32 %v3218_v55, %v3217_v51  ;;  %v4286_v43 = vadd.f32 %v3216_v52, %v4174_v46  ;;  %v2244_v46 = vmax.f32 %v2212_v16, 0.0  ;;  %v2245_v25 = vmax.f32 %v2213_v31, 0.0  ;;  %v2053_v4 = vpop.f32.mrb[117].mxu0 }
 0x1e3   : > { %v2062_v56 = vadd.f32 %v3308_v59, %v4213_v50  ;;  %v2242_v30 = vmax.f32 %v2210_v9, 0.0  ;;  %v2054_v41 = vadd.f32 %v2053_v4, %v4201_v23  ;;  %v3309_v33 = vpop.f32.mrb[118].mxu0 }
 0x1e4   : > { %v4293_v27 = vadd.f32 %v3219_v38, %v4180_v61  ;;  %v2243_v61 = vmax.f32 %v2211_v47, 0.0  ;;  %v2712_v44 = vpack.c.bf16 %v2245_v25, %v2244_v46  ;;  %v2065_v53 = vadd.f32 %v3309_v33, %v4219_v18  ;;  %v2056_v19 = vpop.f32.mrb[119].mxu0 }
 0x1e5   : > { %v2177_v50 = vmul.f32 %v4272_v28, %v2062_v56  ;;  %v2175_v60 = vmul.f32 %v4272_v28, %v2054_v41  ;;  %v2057_v57 = vadd.f32 %v2056_v19, %v4207_v12 }
 0x1e6   : > { %v3220_v5 = vpop.f32.mrb[116].mxu1  ;;  %v2707_v52 = vpack.c.bf16 %v2243_v61, %v2242_v30  ;;  %2799 = vst [vmem:[%s4303_s11 + $0x8] sm:$0xff] %v2712_v44   ;;  %v2178_v23 = vmul.f32 %v4272_v28, %v2065_v53 }
 0x1e7   : > { %v3221_v34 = vpop.f32.mrb[117].mxu1  ;;  %v2216_v48 = vadd.f32 %v4278_v2, %v2177_v50  ;;  %v2214_v55 = vadd.f32 %v4278_v2, %v2175_v60  ;;  %v2176_v18 = vmul.f32 %v4272_v28, %v2057_v57 }
 0x1e8   : > { %v3222_v13 = vadd.f32 %v3221_v34, %v3220_v5  ;;  %v3223_v42 = vpop.f32.mrb[118].mxu1  ;;  %2708 = vst [vmem:[%s4303_s11] sm:$0xff] %v2707_v52   ;;  %v2217_v17 = vadd.f32 %v4278_v2, %v2178_v23 }
 0x1e9   : > { %v3224_v20 = vpop.f32.mrb[119].mxu1  ;;  %v2215_v12 = vadd.f32 %v4278_v2, %v2176_v18  ;;  %v3312_v3 = vpop.f32.mrb[120].mxu0  ;;  %v2248_v16 = vmax.f32 %v2216_v48, 0.0  ;;  %v2246_v31 = vmax.f32 %v2214_v55, 0.0 }
 0x1ea   : > { %v3225_v51 = vadd.f32 %v3224_v20, %v3223_v42  ;;  %v4314_v45 = vadd.f32 %v3222_v13, %v4186_v54  ;;  %v2249_v14 = vmax.f32 %v2217_v17, 0.0  ;;  %v2078_v9 = vadd.f32 %v3312_v3, %v4237_v7  ;;  %v2069_v15 = vpop.f32.mrb[121].mxu0 }
 0x1eb   : > { %v2247_v47 = vmax.f32 %v2215_v12, 0.0  ;;  %v2070_v59 = vadd.f32 %v2069_v15, %v4225_v0  ;;  %v3313_v46 = vpop.f32.mrb[122].mxu0 }
 0x1ec   : > { %v4320_v35 = vadd.f32 %v3225_v51, %v4192_v26  ;;  %v2722_v25 = vpack.c.bf16 %v2249_v14, %v2248_v16  ;;  %v2181_v56 = vmul.f32 %v4272_v28, %v2078_v9  ;;  %v2081_v34 = vadd.f32 %v3313_v46, %v4243_v63  ;;  %v2072_v30 = vpop.f32.mrb[123].mxu0 }
 0x1ed   : > { %v2717_v61 = vpack.c.bf16 %v2247_v47, %v2246_v31  ;;  %v2179_v7 = vmul.f32 %v4272_v28, %v2070_v59  ;;  %v2073_v41 = vadd.f32 %v2072_v30, %v4231_v62 }
 0x1ee   : > { %v3226_v38 = vpop.f32.mrb[120].mxu1  ;;  %2801 = vst [vmem:[%s4303_s11 + $0x18] sm:$0xff] %v2722_v25   ;;  %v2220_v42 = vadd.f32 %v4278_v2, %v2181_v56  ;;  %v2182_v0 = vmul.f32 %v4272_v28, %v2081_v34 }
 0x1ef   : > { %v3227_v54 = vpop.f32.mrb[121].mxu1  ;;  %2800 = vst [vmem:[%s4303_s11 + $0x10] sm:$0xff] %v2717_v61   ;;  %v2218_v44 = vadd.f32 %v4278_v2, %v2179_v7  ;;  %v2180_v63 = vmul.f32 %v4272_v28, %v2073_v41 }
 0x1f0   : > { %v3228_v5 = vadd.f32 %v3227_v54, %v3226_v38  ;;  %v3229_v26 = vpop.f32.mrb[122].mxu1  ;;  %v2221_v53 = vadd.f32 %v4278_v2, %v2182_v0  ;;  %v2252_v52 = vmax.f32 %v2220_v42, 0.0 }
 0x1f1   : > { %v3230_v4 = vpop.f32.mrb[123].mxu1  ;;  %v2219_v62 = vadd.f32 %v4278_v2, %v2180_v63  ;;  %v3316_v19 = vpop.f32.mrb[124].mxu0  ;;  %v2250_v48 = vmax.f32 %v2218_v44, 0.0 }
 0x1f2   : > { %v3231_v13 = vadd.f32 %v3230_v4, %v3229_v26  ;;  %v4334_v33 = vadd.f32 %v3228_v5, %v4198_v37  ;;  %v2253_v60 = vmax.f32 %v2221_v53, 0.0  ;;  %v2094_v51 = vadd.f32 %v3316_v19, %v4261_v6  ;;  %v2085_v57 = vpop.f32.mrb[125].mxu0 }
 0x1f3   : > { %v2251_v23 = vmax.f32 %v2219_v62, 0.0  ;;  %v2086_v18 = vadd.f32 %v2085_v57, %v4249_v32  ;;  %v3317_v17 = vpop.f32.mrb[126].mxu0 }
 0x1f4   : > { %v4340_v50 = vadd.f32 %v3231_v13, %v4204_v39  ;;  %v2732_v12 = vpack.c.bf16 %v2253_v60, %v2252_v52  ;;  %v2185_v38 = vmul.f32 %v4272_v28, %v2094_v51  ;;  %v2097_v3 = vadd.f32 %v3317_v17, %v4267_v21  ;;  %v2088_v14 = vpop.f32.mrb[127].mxu0 }
 0x1f5   : > { %v2727_v9 = vpack.c.bf16 %v2251_v23, %v2250_v48  ;;  %v2183_v6 = vmul.f32 %v4272_v28, %v2086_v18  ;;  %v2089_v15 = vadd.f32 %v2088_v14, %v4255_v24 }
 0x1f6   : > { %v3232_v20 = vpop.f32.mrb[124].mxu1  ;;  %2803 = vst [vmem:[%s4303_s11 + $0x28] sm:$0xff] %v2732_v12   ;;  %v2224_v31 = vadd.f32 %v4278_v2, %v2185_v38  ;;  %v2186_v32 = vmul.f32 %v4272_v28, %v2097_v3 }
 0x1f7   : > { %v3233_v37 = vpop.f32.mrb[125].mxu1  ;;  %2802 = vst [vmem:[%s4303_s11 + $0x20] sm:$0xff] %v2727_v9   ;;  %v2222_v5 = vadd.f32 %v4278_v2, %v2183_v6  ;;  %v2184_v21 = vmul.f32 %v4272_v28, %v2089_v15 }
 0x1f8   : > { %v3234_v55 = vadd.f32 %v3233_v37, %v3232_v20  ;;  %v3235_v39 = vpop.f32.mrb[126].mxu1  ;;  %v2225_v26 = vadd.f32 %v4278_v2, %v2186_v32  ;;  %v2256_v56 = vmax.f32 %v2224_v31, 0.0 }
 0x1f9   : > { %v3236_v16 = vpop.f32.mrb[127].mxu1  ;;  %v2223_v46 = vadd.f32 %v4278_v2, %v2184_v21  ;;  %v3320_v24 = vpop.f32.mrb[128].mxu0 }
 0x1fa   : > { %v3237_v54 = vadd.f32 %v3236_v16, %v3235_v39  ;;  %v1965_v47 = vadd.f32 %v3234_v55, %v4210_v8  ;;  %v2257_v34 = vmax.f32 %v2225_v26, 0.0  ;;  %v2110_v4 = vadd.f32 %v3320_v24, %v4314_v45  ;;  %v2101_v61 = vpop.f32.mrb[129].mxu0 }
 0x1fb   : > { %v2254_v8 = vmax.f32 %v2222_v5, 0.0  ;;  %v2255_v7 = vmax.f32 %v2223_v46, 0.0  ;;  %v2102_v41 = vadd.f32 %v2101_v61, %v4286_v43  ;;  %v3321_v42 = vpop.f32.mrb[130].mxu0 }
 0x1fc   : > { %v1968_v59 = vadd.f32 %v3237_v54, %v4216_v36  ;;  %v2742_v0 = vpack.c.bf16 %v2257_v34, %v2256_v56  ;;  %v2189_v44 = vmul.f32 %v4272_v28, %v2110_v4  ;;  %v2113_v63 = vadd.f32 %v3321_v42, %v4320_v35  ;;  %v2104_v62 = vpop.f32.mrb[131].mxu0 }
 0x1fd   : > { %v2737_v20 = vpack.c.bf16 %v2255_v7, %v2254_v8  ;;  %v2187_v45 = vmul.f32 %v4272_v28, %v2102_v41  ;;  %v2105_v52 = vadd.f32 %v2104_v62, %v4293_v27 }
 0x1fe   : > { %v3238_v25 = vpop.f32.mrb[128].mxu1  ;;  %2805 = vst [vmem:[%s4303_s11 + $0x38] sm:$0xff] %v2742_v0   ;;  %v2228_v60 = vadd.f32 %v4278_v2, %v2189_v44  ;;  %v2190_v43 = vmul.f32 %v4272_v28, %v2113_v63 }
 0x1ff   : > { %v3239_v30 = vpop.f32.mrb[129].mxu1  ;;  %2804 = vst [vmem:[%s4303_s11 + $0x30] sm:$0xff] %v2737_v20   ;;  %v2226_v37 = vadd.f32 %v4278_v2, %v2187_v45  ;;  %v2188_v35 = vmul.f32 %v4272_v28, %v2105_v52 }
 0x200   : > { %v3240_v13 = vadd.f32 %v3239_v30, %v3238_v25  ;;  %v3241_v36 = vpop.f32.mrb[130].mxu1  ;;  %v2229_v48 = vadd.f32 %v4278_v2, %v2190_v43  ;;  %v2260_v18 = vmax.f32 %v2228_v60, 0.0 }
 0x201   : > { %v3242_v53 = vpop.f32.mrb[131].mxu1  ;;  %v2227_v23 = vadd.f32 %v4278_v2, %v2188_v35  ;;  %v3324_v27 = vpop.f32.mrb[132].mxu0 }
 0x202   : > { %v3243_v19 = vadd.f32 %v3242_v53, %v3241_v36  ;;  %v1973_v51 = vadd.f32 %v3240_v13, %v4222_v10  ;;  %v2261_v39 = vmax.f32 %v2229_v48, 0.0  ;;  %v2126_v17 = vadd.f32 %v3324_v27, %v1965_v47  ;;  %v2117_v38 = vpop.f32.mrb[133].mxu0 }
 0x203   : > { %v2258_v10 = vmax.f32 %v2226_v37, 0.0  ;;  %v2259_v3 = vmax.f32 %v2227_v23, 0.0  ;;  %v2118_v14 = vadd.f32 %v2117_v38, %v4334_v33 }
 0x204   : > { %v1976_v57 = vadd.f32 %v3243_v19, %v4228_v58  ;;  %v3325_v58 = vpop.f32.mrb[134].mxu0  ;;  %v2752_v6 = vpack.c.bf16 %v2261_v39, %v2260_v18  ;;  %v2193_v54 = vmul.f32 %v4272_v28, %v2126_v17 }
 0x205   : > { %v2129_v15 = vadd.f32 %v3325_v58, %v1968_v59  ;;  %v2120_v32 = vpop.f32.mrb[135].mxu0  ;;  %v2747_v5 = vpack.c.bf16 %v2259_v3, %v2258_v10  ;;  %v2191_v47 = vmul.f32 %v4272_v28, %v2118_v14 }
 0x206   : > { %v3244_v55 = vpop.f32.mrb[132].mxu1  ;;  %v2121_v26 = vadd.f32 %v2120_v32, %v4340_v50  ;;  %2807 = vst [vmem:[%s4303_s11 + $0x48] sm:$0xff] %v2752_v6   ;;  %v2232_v46 = vadd.f32 %v4278_v2, %v2193_v54 }
 0x207   : > { %v3245_v12 = vpop.f32.mrb[133].mxu1  ;;  %v2194_v33 = vmul.f32 %v4272_v28, %v2129_v15  ;;  %2806 = vst [vmem:[%s4303_s11 + $0x40] sm:$0xff] %v2747_v5   ;;  %v2230_v24 = vadd.f32 %v4278_v2, %v2191_v47 }
 0x208   : > { %v3246_v16 = vadd.f32 %v3245_v12, %v3244_v55  ;;  %v3247_v9 = vpop.f32.mrb[134].mxu1  ;;  %v2192_v59 = vmul.f32 %v4272_v28, %v2121_v26  ;;  %v2264_v61 = vmax.f32 %v2232_v46, 0.0 }
 0x209   : > { %v3248_v31 = vpop.f32.mrb[135].mxu1  ;;  %v2233_v34 = vadd.f32 %v4278_v2, %v2194_v33  ;;  %v3328_v50 = vpop.f32.mrb[136].mxu0 }
 0x20a   : > { %v3249_v21 = vadd.f32 %v3248_v31, %v3247_v9  ;;  %v1981_v25 = vadd.f32 %v3246_v16, %v4234_v29  ;;  %v2231_v4 = vadd.f32 %v4278_v2, %v2192_v59  ;;  %v2133_v41 = vpop.f32.mrb[137].mxu0  ;;  %v2262_v29 = vmax.f32 %v2230_v24, 0.0 }
 0x20b   : > { %v2265_v8 = vmax.f32 %v2233_v34, 0.0  ;;  %v2134_v0 = vadd.f32 %v2133_v41, %v1973_v51  ;;  %v3329_v63 = vpop.f32.mrb[138].mxu0 }
 0x20c   : > { %v1984_v56 = vadd.f32 %v3249_v21, %v4240_v22  ;;  %v2142_v7 = vadd.f32 %v3328_v50, %v1981_v25  ;;  %v2263_v36 = vmax.f32 %v2231_v4, 0.0  ;;  %v2136_v45 = vpop.f32.mrb[139].mxu0 }
 0x20d   : > { %v2762_v22 = vpack.c.bf16 %v2265_v8, %v2264_v61  ;;  %v2195_v52 = vmul.f32 %v4272_v28, %v2134_v0  ;;  %v2137_v43 = vadd.f32 %v2136_v45, %v1976_v57 }
 0x20e   : > { %v3250_v30 = vpop.f32.mrb[136].mxu1  ;;  %v2197_v53 = vmul.f32 %v4272_v28, %v2142_v7  ;;  %v2145_v62 = vadd.f32 %v3329_v63, %v1984_v56  ;;  %v2757_v19 = vpack.c.bf16 %v2263_v36, %v2262_v29 }
 0x20f   : > { %v3251_v13 = vpop.f32.mrb[137].mxu1  ;;  %2809 = vst [vmem:[%s4303_s11 + $0x58] sm:$0xff] %v2762_v22   ;;  %v2234_v48 = vadd.f32 %v4278_v2, %v2195_v52  ;;  %v2196_v23 = vmul.f32 %v4272_v28, %v2137_v43 }
 0x210   : > { %v3252_v42 = vadd.f32 %v3251_v13, %v3250_v30  ;;  %v3253_v44 = vpop.f32.mrb[138].mxu1  ;;  %v2236_v37 = vadd.f32 %v4278_v2, %v2197_v53  ;;  %v2198_v35 = vmul.f32 %v4272_v28, %v2145_v62  ;;  %2808 = vst [vmem:[%s4303_s11 + $0x50] sm:$0xff] %v2757_v19  }
 0x211   : > { %v3254_v20 = vpop.f32.mrb[139].mxu1  ;;  %v2235_v18 = vadd.f32 %v4278_v2, %v2196_v23  ;;  %v3332_v57 = vpop.f32.mrb[140].mxu0 }
 0x212   : > { %v3255_v60 = vadd.f32 %v3254_v20, %v3253_v44  ;;  %v1989_v51 = vadd.f32 %v3252_v42, %v4246_v1  ;;  %v2237_v27 = vadd.f32 %v4278_v2, %v2198_v35  ;;  %v2268_v17 = vmax.f32 %v2236_v37, 0.0  ;;  %v2149_v10 = vpop.f32.mrb[141].mxu0 }
 0x213   : > { %v2266_v1 = vmax.f32 %v2234_v48, 0.0  ;;  %v2267_v3 = vmax.f32 %v2235_v18, 0.0  ;;  %v3333_v58 = vpop.f32.mrb[142].mxu0 }
 0x214   : > { %v1992_v55 = vadd.f32 %v3255_v60, %v4252_v49  ;;  %v2269_v12 = vmax.f32 %v2237_v27, 0.0  ;;  %v2150_v14 = vadd.f32 %v2149_v10, %v1989_v51  ;;  %v2152_v54 = vpop.f32.mrb[143].mxu0 }
 0x215   : > { %v2767_v15 = vpack.c.bf16 %v2267_v3, %v2266_v1 }
 0x216   : > { %v3256_v39 = vpop.f32.mrb[140].mxu1  ;;  %v2772_v6 = vpack.c.bf16 %v2269_v12, %v2268_v17  ;;  %v2199_v32 = vmul.f32 %v4272_v28, %v2150_v14  ;;  %v2153_v47 = vadd.f32 %v2152_v54, %v1992_v55 }
 0x217   : > { %v3257_v38 = vpop.f32.mrb[141].mxu1  ;;  %2810 = vst [vmem:[%s4303_s11 + $0x60] sm:$0xff] %v2767_v15  }
 0x218   : > { %v3258_v16 = vadd.f32 %v3257_v38, %v3256_v39  ;;  %v3259_v9 = vpop.f32.mrb[142].mxu1  ;;  %2811 = vst [vmem:[%s4303_s11 + $0x68] sm:$0xff] %v2772_v6   ;;  %v2238_v46 = vadd.f32 %v4278_v2, %v2199_v32  ;;  %v2200_v33 = vmul.f32 %v4272_v28, %v2153_v47 }
 0x219   : > { %v3260_v49 = vpop.f32.mrb[143].mxu1 }
 0x21a   : > { %v1997_v31 = vadd.f32 %v3258_v16, %v4258_v11  ;;  %v3261_v5 = vadd.f32 %v3260_v49, %v3259_v9  ;;  %v2239_v11 = vadd.f32 %v4278_v2, %v2200_v33  ;;  %v2270_v34 = vmax.f32 %v2238_v46, 0.0 }
 0x21c   : > { %v2158_v21 = vadd.f32 %v3332_v57, %v1997_v31  ;;  %v2000_v26 = vadd.f32 %v3261_v5, %v4264_v40  ;;  %v2271_v4 = vmax.f32 %v2239_v11, 0.0 }
 0x21e   : > { %v2201_v25 = vmul.f32 %v4272_v28, %v2158_v21  ;;  %v2161_v24 = vadd.f32 %v3333_v58, %v2000_v26  ;;  %v2777_v50 = vpack.c.bf16 %v2271_v4, %v2270_v34 }
 0x220   : > { %v2240_v59 = vadd.f32 %v4278_v2, %v2201_v25  ;;  %v2202_v56 = vmul.f32 %v4272_v28, %v2161_v24  ;;  %2812 = vst [vmem:[%s4303_s11 + $0x70] sm:$0xff] %v2777_v50  }
 0x222   : > { %v2241_v30 = vadd.f32 %v4278_v2, %v2202_v56  ;;  %v2272_v40 = vmax.f32 %v2240_v59, 0.0 }
 0x224   : > { %v2273_v61 = vmax.f32 %v2241_v30, 0.0 }
 0x226   : > { %v2782_v8 = vpack.c.bf16 %v2273_v61, %v2272_v40 }
 0x228   : > { %2813 = vst [vmem:[%s4303_s11 + $0x78] sm:$0xff] %v2782_v8  }
 0x229 PF: > { %s14_s15 = sadd.s32 1, %s3454_s15  }
 0x22a   : > { %p11_p4 = scmp.ge.s32.totalorder %s14_s15, 4  }
 0x22c   :  { %13 = sbr.rel (!%p11_p4) target bundleno = 1 (0x1), region = 68 }

// kernel: _lambda_.14
= control target key start
LH: loop header
LB: loop body
LE: loop exit
PB: predicated region body
PF: predicated region fallthrough
CT: control target
= control target key end

     0   :  { %s1530_s15 = smov 0   ;;  %s1796_s0 = inlined_call_operand.vmem [shape: bf16[2,2,2,128], index: 0, kind: input, shape index: {}]   ;;  %s1797_s1 = inlined_call_operand.vmem [shape: bf16[1152,128], index: 1, kind: input, shape index: {}]   ;;  %s1798_s2 = inlined_call_operand.vmem [shape: f32[1,128], index: 2, kind: input, shape index: {}]   ;;  %s1799_s3 = inlined_call_operand.vmem [shape: f32[1,128], index: 3, kind: input, shape index: {}]   ;;  %s1800_s4 = inlined_call_operand.vmem [shape: bf16[2,2,2,128], index: 4, kind: output, shape index: {}]  }
   0x1 LB: > { %s1193_s16 = sadd.s32 4294967295, %s1500_s15   ;;  %p1197_p0 = scmp.ge.s32.totalorder %s1500_s15, 1  ;;  %s1500_s15 = sphi %s1530_s15, %s14_s15  }
   0x2   : > { %p161_p1 = scmp.lt.s32.totalorder %s1500_s15, 3 }
   0x4   : > { %p162_p2 = pnand %p1197_p0, %p161_p1 }
   0x5   : > { %v1404_v0 = vld [vmem:[%s1797_s1 + $0x40] sm:$0xff] (!%p162_p2)   ;;  %v1502_v3 = vmov (!%p162_p2), 0.0   ;;  %v1408_v5 = vld [vmem:[%s1797_s1 + $0x48] sm:$0xff] (!%p162_p2)   ;;  %v1412_v9 = vld [vmem:[%s1797_s1 + $0x50] sm:$0xff] (!%p162_p2)   ;;  %p185_p3 = scmp.lt.s32.totalorder (!%p162_p2), %s1193_s16, 1  ;;  %v230_v34 = vlaneseq (!%p162_p2)  ;;  %vm1504_vm0 = vmmov (!%p162_p2), 0  }
   0x6   : > { %165 = sbr.rel (%p162_p2) target bundleno = 330 (0x14a), region = 36  ;;  %v1405_v1 = vld [vmem:[%s1797_s1 + $0xc0] sm:$0xff] (!%p162_p2)   ;;  %1276 = vmatprep.subr.bf16.mxu0 (!%p162_p2), %v1404_v0  ;;  %198 = vst [vmem:[#allocation2] sm:$0xf] (!%p162_p2), %v1502_v3  ;;  %199 = vst [vmem:[#allocation2 + $0x4] sm:$0xf] (!%p162_p2), %v1502_v3 }
   0x7   : > { %v1406_v2 = vld [vmem:[%s1797_s1] sm:$0xff] (!%p162_p2)   ;;  %200 = vst [vmem:[#allocation2 + $0x8] sm:$0xf] (!%p162_p2), %v1502_v3  ;;  %201 = vst [vmem:[#allocation2 + $0xc] sm:$0xf] (!%p162_p2), %v1502_v3  ;;  %1298 = vmatprep.subr.bf16.mxu1 (!%p162_p2), %v1405_v1  ;;  %v1409_v6 = vld [vmem:[%s1797_s1 + $0xc8] sm:$0xff] (!%p162_p2)  }
   0x8   : > { %v1407_v4 = vld [vmem:[%s1797_s1 + $0x80] sm:$0xff] (!%p162_p2)   ;;  %1277 = vmatpush3.bf16.msra.mxu0 (!%p162_p2), %v1406_v2  ;;  %v1410_v7 = vld [vmem:[%s1797_s1 + $0x8] sm:$0xff] (!%p162_p2)   ;;  %v1413_v10 = vld [vmem:[%s1797_s1 + $0xd0] sm:$0xff] (!%p162_p2)   ;;  %v1503_v36 = vmov (!%p162_p2), 1983009808   ;;  %v231_v42 = vshrl.u32 (!%p162_p2), %v230_v34, 7 }
   0x9   : > { %1299 = vmatpush3.bf16.msra.mxu1 (!%p162_p2), %v1407_v4  ;;  %1278 = vmatprep.subr.bf16.mxu0 (!%p162_p2), %v1408_v5  ;;  %v1411_v8 = vld [vmem:[%s1797_s1 + $0x88] sm:$0xff] (!%p162_p2)   ;;  %v1414_v11 = vld [vmem:[%s1797_s1 + $0x10] sm:$0xff] (!%p162_p2)   ;;  %v1416_v13 = vld [vmem:[%s1797_s1 + $0x58] sm:$0xff] (!%p162_p2)   ;;  %v228_v37 = vunpack.c.l.s4 (!%p162_p2), %v1503_v36 }
   0xa   : > { %1300 = vmatprep.subr.bf16.mxu1 (!%p162_p2), %v1409_v6  ;;  %v1415_v12 = vld [vmem:[%s1797_s1 + $0x90] sm:$0xff] (!%p162_p2)   ;;  %v1417_v14 = vld [vmem:[%s1797_s1 + $0xd8] sm:$0xff] (!%p162_p2)   ;;  %v1420_v17 = vld [vmem:[%s1797_s1 + $0x60] sm:$0xff] (!%p162_p2)  }
   0xb   : > { %v1418_v15 = vld [vmem:[%s1797_s1 + $0x18] sm:$0xff] (!%p162_p2)   ;;  %v1421_v18 = vld [vmem:[%s1797_s1 + $0xe0] sm:$0xff] (!%p162_p2)   ;;  %v1424_v21 = vld [vmem:[%s1797_s1 + $0x68] sm:$0xff] (!%p162_p2)   ;;  %v229_v41 = vunpack.c.0.s8 (!%p162_p2), %v228_v37 }
   0xc   : > { %1279 = vmatpush3.bf16.msra.mxu0 (!%p162_p2), %v1410_v7  ;;  %v1419_v16 = vld [vmem:[%s1797_s1 + $0x98] sm:$0xff] (!%p162_p2)   ;;  %v1422_v19 = vld [vmem:[%s1797_s1 + $0x20] sm:$0xff] (!%p162_p2)   ;;  %v1425_v22 = vld [vmem:[%s1797_s1 + $0xe8] sm:$0xff] (!%p162_p2)  }
   0xd   : > { %1301 = vmatpush3.bf16.msra.mxu1 %v1411_v8  ;;  %1280 = vmatprep.subr.bf16.mxu0 %v1412_v9  ;;  %v1423_v20 = vld [vmem:[%s1797_s1 + $0xa0] sm:$0xff]   ;;  %v1426_v23 = vld [vmem:[%s1797_s1 + $0x28] sm:$0xff]   ;;  %s1802_s16 = smov (!%p185_p3, %s1193_s16), 1  ;;  %v1428_v25 = vld [vmem:[%s1797_s1 + $0x70] sm:$0xff]   ;;  %v1656_v44 = vsub.s32 %v229_v41, %v231_v42 }
   0xe   : > { %1302 = vmatprep.subr.bf16.mxu1 %v1413_v10  ;;  %v1427_v24 = vld [vmem:[%s1797_s1 + $0xa8] sm:$0xff]   ;;  %v1429_v26 = vld [vmem:[%s1797_s1 + $0xf0] sm:$0xff]   ;;  %s1198_s23 = sshll.u32 %s1802_s16, 1  ;;  %v1432_v29 = vld [vmem:[%s1797_s1 + $0x78] sm:$0xff]  }
   0xf   : > { %v1430_v27 = vld [vmem:[%s1797_s1 + $0x30] sm:$0xff]   ;;  %v1433_v30 = vld [vmem:[%s1797_s1 + $0xf8] sm:$0xff]   ;;  %s188_s6 = scalar_lea.vmem %s1796_s0, %s1198_s23  ;;  %v1440_v40 = vld [vmem:[%s1797_s1 + $0x140] sm:$0xff]   ;;  %s192_s5 = scalar_lea.vmem %s1800_s4, %s1198_s23 }
  0x10   : > { %1281 = vmatpush3.bf16.msra.mxu0 %v1414_v11  ;;  %v1431_v28 = vld [vmem:[%s1797_s1 + $0xb0] sm:$0xff]   ;;  %v1434_v31 = vld [vmem:[%s1797_s1 + $0x38] sm:$0xff]   ;;  %v194_v33 = vld [vmem:[%s188_s6] sm:$0x1] }
  0x11   : > { %1303 = vmatpush3.bf16.msra.mxu1 %v1415_v12  ;;  %1282 = vmatprep.subr.bf16.mxu0 %v1416_v13  ;;  %v1435_v32 = vld [vmem:[%s1797_s1 + $0xb8] sm:$0xff]   ;;  %v196_v35 = vunpack.c.l.bf16 %v194_v33  ;;  %v195_v38 = vld [vmem:[%s188_s6 + $0x1] sm:$0x1]  ;;  %v1444_v53 = vld [vmem:[%s1797_s1 + $0x148] sm:$0xff]  }
  0x12   : > { %1304 = vmatprep.subr.bf16.mxu1 %v1417_v14  ;;  %v197_v39 = vunpack.c.l.bf16 %v195_v38  ;;  %v1442_v43 = vld [vmem:[%s1797_s1 + $0x1c0] sm:$0xff]   ;;  %v1446_v56 = vld [vmem:[%s1797_s1 + $0x1c8] sm:$0xff]   ;;  %v1448_v59 = vld [vmem:[%s1797_s1 + $0x150] sm:$0xff]  }
  0x13   : > { %203 = vst [vmem:[#allocation2 + $0x5] sm:$0x3] %v196_v35  ;;  %v1441_v49 = vld [vmem:[%s1797_s1 + $0x100] sm:$0xff]   ;;  %v1445_v57 = vld [vmem:[%s1797_s1 + $0x108] sm:$0xff]   ;;  %v1450_v60 = vld [vmem:[%s1797_s1 + $0x1d0] sm:$0xff]  }
  0x14   : > { %1283 = vmatpush3.bf16.msra.mxu0 %v1418_v15  ;;  %204 = vst [vmem:[#allocation2 + $0x9] sm:$0x3] %v197_v39  ;;  %v1443_v51 = vld [vmem:[%s1797_s1 + $0x180] sm:$0xff]   ;;  %v1447_v58 = vld [vmem:[%s1797_s1 + $0x188] sm:$0xff]   ;;  %v1449_v61 = vld [vmem:[%s1797_s1 + $0x110] sm:$0xff]  }
  0x15   : > { %1305 = vmatpush3.bf16.msra.mxu1 %v1419_v16  ;;  %1284 = vmatprep.subr.bf16.mxu0 %v1420_v17  ;;  %v1451_v62 = vld [vmem:[%s1797_s1 + $0x190] sm:$0xff]   ;;  %v1452_v63 = vld [vmem:[%s1797_s1 + $0x158] sm:$0xff]   ;;  %v1456_v4 = vld [vmem:[%s1797_s1 + $0x160] sm:$0xff]  }
  0x16   : > { %1306 = vmatprep.subr.bf16.mxu1 %v1421_v18  ;;  %v1454_v0 = vld [vmem:[%s1797_s1 + $0x1d8] sm:$0xff]   ;;  %v1458_v5 = vld [vmem:[%s1797_s1 + $0x1e0] sm:$0xff]   ;;  %v1460_v8 = vld [vmem:[%s1797_s1 + $0x168] sm:$0xff]  }
  0x17   : > { %v1453_v1 = vld [vmem:[%s1797_s1 + $0x118] sm:$0xff]   ;;  %v1457_v6 = vld [vmem:[%s1797_s1 + $0x120] sm:$0xff]   ;;  %v1462_v9 = vld [vmem:[%s1797_s1 + $0x1e8] sm:$0xff]  }
  0x18   : > { %1285 = vmatpush3.bf16.msra.mxu0 %v1422_v19  ;;  %v1455_v2 = vld [vmem:[%s1797_s1 + $0x198] sm:$0xff]   ;;  %v1459_v7 = vld [vmem:[%s1797_s1 + $0x1a0] sm:$0xff]   ;;  %v1461_v10 = vld [vmem:[%s1797_s1 + $0x128] sm:$0xff]  }
  0x19   : > { %1307 = vmatpush3.bf16.msra.mxu1 %v1423_v20  ;;  %1286 = vmatprep.subr.bf16.mxu0 %v1424_v21  ;;  %v1463_v11 = vld [vmem:[%s1797_s1 + $0x1a8] sm:$0xff]   ;;  %v1464_v12 = vld [vmem:[%s1797_s1 + $0x170] sm:$0xff]   ;;  %v1468_v17 = vld [vmem:[%s1797_s1 + $0x178] sm:$0xff]  }
  0x1a   : > { %1308 = vmatprep.subr.bf16.mxu1 %v1425_v22  ;;  %v1485_v45 = vld.sshfl [vmem:[#allocation2 + $0x1] sm:$0xf pattern:$0x76325410]  ;;  %v1466_v13 = vld [vmem:[%s1797_s1 + $0x1f0] sm:$0xff]   ;;  %v1470_v20 = vld [vmem:[%s1797_s1 + $0x1f8] sm:$0xff]  }
  0x1b   : > { %v1486_v46 = vld.sshfl [vmem:[#allocation2 + $0x4] sm:$0xf pattern:$0x76325410]  ;;  %v324_v50 = vpack.c.bf16 %v1485_v45, %v1485_v45  ;;  %v1465_v15 = vld [vmem:[%s1797_s1 + $0x130] sm:$0xff]   ;;  %v1483_v36 = vld [vmem:[%s1797_s1 + $0x238] sm:$0xff]  }
  0x1c   : > { %1287 = vmatpush3.bf16.msra.mxu0 %v1426_v23  ;;  %v1487_v47 = vld.sshfl [vmem:[#allocation2] sm:$0xf pattern:$0x76325410]  ;;  %v326_v52 = vpack.c.bf16 %v1486_v46, %v1486_v46  ;;  %v1467_v16 = vld [vmem:[%s1797_s1 + $0x1b0] sm:$0xff]   ;;  %v1469_v23 = vld [vmem:[%s1797_s1 + $0x138] sm:$0xff]  }
  0x1d   : > { %1309 = vmatpush3.bf16.msra.mxu1 %v1427_v24  ;;  %1288 = vmatprep.subr.bf16.mxu0 %v1428_v25  ;;  %v1488_v48 = vld.sshfl [vmem:[#allocation2 + $0x2] sm:$0xf pattern:$0x76325410]  ;;  %v323_v54 = vpack.c.bf16 %v1487_v47, %v1487_v47  ;;  %v1472_v24 = vld [vmem:[%s1797_s1 + $0x1b8] sm:$0xff]   ;;  %v1481_v33 = vld [vmem:[%s1797_s1 + $0x228] sm:$0xff]  }
  0x1e   : > { %1310 = vmatprep.subr.bf16.mxu1 %v1429_v26  ;;  %940 = vmatprep.mubr.bf16.mxu0 %v324_v50  ;;  %v325_v55 = vpack.c.bf16 %v1488_v48, %v1488_v48  ;;  %v1489_v14 = vld.sshfl [vmem:[#allocation2 + $0x6] sm:$0xf pattern:$0x76325410]  ;;  %v1482_v35 = vld [vmem:[%s1797_s1 + $0x230] sm:$0xff]  }
  0x1f   : > { %980 = vmatprep.mubr.bf16.mxu1 %v326_v52  ;;  %v1491_v18 = vld.sshfl [vmem:[#allocation2 + $0x5] sm:$0xf pattern:$0x76325410]  ;;  %v328_v21 = vpack.c.bf16 %v1489_v14, %v1489_v14 }
  0x20   : > { %1289 = vmatpush3.bf16.msra.mxu0 %v1430_v27  ;;  %v1490_v19 = vld.sshfl [vmem:[#allocation2 + $0x9] sm:$0xf pattern:$0x76325410]  ;;  %v327_v26 = vpack.c.bf16 %v1491_v18, %v1491_v18 }
  0x21   : > { %1311 = vmatpush3.bf16.msra.mxu1 %v1431_v28  ;;  %1290 = vmatprep.subr.bf16.mxu0 %v1432_v29  ;;  %v1492_v22 = vld.sshfl [vmem:[#allocation2 + $0x8] sm:$0xf pattern:$0x76325410]  ;;  %v330_v25 = vpack.c.bf16 %v1490_v19, %v1490_v19  ;;  %v1475_v28 = vld [vmem:[%s1797_s1 + $0x200] sm:$0xff]  }
  0x22   : > { %1312 = vmatprep.subr.bf16.mxu1 %v1433_v30  ;;  %v329_v27 = vpack.c.bf16 %v1492_v22, %v1492_v22  ;;  %v1477_v29 = vld [vmem:[%s1797_s1 + $0x208] sm:$0xff]   ;;  %v1478_v30 = vld [vmem:[%s1797_s1 + $0x210] sm:$0xff]  }
  0x23   : > { %v1493_v34 = vld.sshfl [vmem:[#allocation2 + $0xa] sm:$0xf pattern:$0x76325410] }
  0x24   : > { %1291 = vmatpush3.bf16.msra.mxu0 %v1434_v31  ;;  %v1479_v31 = vld [vmem:[%s1797_s1 + $0x218] sm:$0xff]   ;;  %v331_v37 = vpack.c.bf16 %v1493_v34, %v1493_v34 }
  0x25   : > { %1313 = vmatpush3.bf16.msra.mxu1 %v1435_v32  ;;  %1320 = vmatprep.subr.bf16.mxu0 %v1440_v40  ;;  %v1480_v32 = vld [vmem:[%s1797_s1 + $0x220] sm:$0xff]  }
  0x26   : > { %1342 = vmatprep.subr.bf16.mxu1 %v1442_v43 }
  0x27   : > { %941 = vmatmul.mubr.bf16.vlgmr.msra.gmra.mrb[0].mxu0 %v323_v54 }
  0x28   : > { %981 = vmatmul.mubr.bf16.vlgmr.msra.gmra.mrb[0].mxu1 %v325_v55  ;;  %1321 = vmatpush3.bf16.msra.mxu0 %v1441_v49 }
  0x29   : > { %1343 = vmatpush3.bf16.msra.mxu1 %v1443_v51  ;;  %1322 = vmatprep.subr.bf16.mxu0 %v1444_v53 }
  0x2a   : > { %1344 = vmatprep.subr.bf16.mxu1 %v1446_v56  ;;  %1020 = vmatprep.mubr.bf16.mxu0 %v328_v21 }
  0x2b   : > { %1060 = vmatprep.mubr.bf16.mxu1 %v330_v25 }
  0x2c   : > { %1323 = vmatpush3.bf16.msra.mxu0 %v1445_v57 }
  0x2d   : > { %1345 = vmatpush3.bf16.msra.mxu1 %v1447_v58  ;;  %1324 = vmatprep.subr.bf16.mxu0 %v1448_v59 }
  0x2e   : > { %1346 = vmatprep.subr.bf16.mxu1 %v1450_v60 }
  0x30   : > { %1325 = vmatpush3.bf16.msra.mxu0 %v1449_v61 }
  0x31   : > { %1347 = vmatpush3.bf16.msra.mxu1 %v1451_v62  ;;  %1326 = vmatprep.subr.bf16.mxu0 %v1452_v63  ;;  %v1272_v62 = vld [vmem:[%s1798_s2] ss:$0 sm:$0xff] }
  0x32   : > { %1348 = vmatprep.subr.bf16.mxu1 %v1454_v0 }
  0x34   : > { %1327 = vmatpush3.bf16.msra.mxu0 %v1453_v1  ;;  %v1273_v1 = vld [vmem:[%s1799_s3] ss:$0 sm:$0xff] }
  0x35   : > { %1349 = vmatpush3.bf16.msra.mxu1 %v1455_v2  ;;  %1328 = vmatprep.subr.bf16.mxu0 %v1456_v4 }
  0x36   : > { %1350 = vmatprep.subr.bf16.mxu1 %v1458_v5 }
  0x38   : > { %1329 = vmatpush3.bf16.msra.mxu0 %v1457_v6 }
  0x39   : > { %1351 = vmatpush3.bf16.msra.mxu1 %v1459_v7  ;;  %1330 = vmatprep.subr.bf16.mxu0 %v1460_v8 }
  0x3a   : > { %1352 = vmatprep.subr.bf16.mxu1 %v1462_v9 }
  0x3c   : > { %1331 = vmatpush3.bf16.msra.mxu0 %v1461_v10 }
  0x3d   : > { %1353 = vmatpush3.bf16.msra.mxu1 %v1463_v11  ;;  %1332 = vmatprep.subr.bf16.mxu0 %v1464_v12 }
  0x3e   : > { %1354 = vmatprep.subr.bf16.mxu1 %v1466_v13 }
  0x40   : > { %1333 = vmatpush3.bf16.msra.mxu0 %v1465_v15 }
  0x41   : > { %1355 = vmatpush3.bf16.msra.mxu1 %v1467_v16  ;;  %1334 = vmatprep.subr.bf16.mxu0 %v1468_v17 }
  0x42   : > { %1356 = vmatprep.subr.bf16.mxu1 %v1470_v20 }
  0x44   : > { %1335 = vmatpush3.bf16.msra.mxu0 %v1469_v23 }
  0x45   : > { %1357 = vmatpush3.bf16.msra.mxu1 %v1472_v24  ;;  %1373 = vmatprep.subr.bf16.mxu0 %v1502_v3 }
  0x47   : > { %1021 = vmatmul.mubr.bf16.vlgmr.msra.gmra.mrb[4].mxu0 %v327_v26 }
  0x48   : > { %1061 = vmatmul.mubr.bf16.vlgmr.msra.gmra.mrb[4].mxu1 %v329_v27  ;;  %1374 = vmatpush3.bf16.msra.mxu0 %v1475_v28 }
  0x49   : > { %1389 = vmatprep.mubr.msk.bf16.mxu0 %vm1504_vm0, %v1502_v3  ;;  %1375 = vmatprep.subr.bf16.mxu0 %v1502_v3 }
  0x4c   : > { %1376 = vmatpush3.bf16.msra.mxu0 %v1477_v29 }
  0x4d   : > { %1377 = vmatprep.subr.bf16.mxu0 %v1502_v3 }
  0x50   : > { %1378 = vmatpush3.bf16.msra.mxu0 %v1478_v30 }
  0x51   : > { %1379 = vmatprep.subr.bf16.mxu0 %v1502_v3 }
  0x54   : > { %1380 = vmatpush3.bf16.msra.mxu0 %v1479_v31 }
  0x55   : > { %1381 = vmatprep.subr.bf16.mxu0 %v1502_v3 }
  0x58   : > { %1382 = vmatpush3.bf16.msra.mxu0 %v1480_v32 }
  0x59   : > { %1383 = vmatprep.subr.bf16.mxu0 %v1502_v3 }
  0x5c   : > { %1384 = vmatpush3.bf16.msra.mxu0 %v1481_v33 }
  0x5d   : > { %1385 = vmatprep.subr.bf16.mxu0 %v1502_v3 }
  0x60   : > { %1386 = vmatpush3.bf16.msra.mxu0 %v1482_v35 }
  0x61   : > { %1387 = vmatprep.subr.bf16.mxu0 %v1502_v3 }
  0x64   : > { %1388 = vmatpush3.bf16.msra.mxu0 %v1483_v36 }
  0x67   : > { %1390 = vmatmul.mubr.bf16.vlgmr.msra.gmra.mrb[8].mxu0 %v331_v37 }
  0xfa   : > { %v1292_v38 = vpop.f32.mrb[0].mxu0 }
  0xfb   : > { %v1314_v39 = vpop.f32.mrb[0].mxu1  ;;  %v1293_v40 = vpop.f32.mrb[1].mxu0 }
  0xfc   : > { %v1315_v41 = vpop.f32.mrb[1].mxu1  ;;  %v1294_v42 = vadd.f32 %v1293_v40, %v1292_v38  ;;  %v1295_v45 = vpop.f32.mrb[2].mxu0 }
  0xfd   : > { %v1316_v43 = vadd.f32 %v1315_v41, %v1314_v39  ;;  %v1317_v46 = vpop.f32.mrb[2].mxu1  ;;  %v1296_v47 = vpop.f32.mrb[3].mxu0 }
  0xfe   : > { %v1318_v48 = vpop.f32.mrb[3].mxu1 }
  0xff   : > { %v983_v49 = vadd.f32 %v1316_v43, %v1294_v42 }
 0x11a   : > { %v1336_v50 = vpop.f32.mrb[4].mxu0 }
 0x11b   : > { %v1358_v51 = vpop.f32.mrb[4].mxu1  ;;  %v1337_v52 = vpop.f32.mrb[5].mxu0 }
 0x11c   : > { %v1359_v53 = vpop.f32.mrb[5].mxu1  ;;  %v1338_v54 = vadd.f32 %v1337_v52, %v1336_v50  ;;  %v1339_v3 = vpop.f32.mrb[6].mxu0 }
 0x11d   : > { %v1360_v55 = vadd.f32 %v1359_v53, %v1358_v51  ;;  %v1361_v56 = vpop.f32.mrb[6].mxu1  ;;  %v1340_v57 = vpop.f32.mrb[7].mxu0 }
 0x11e   : > { %v1362_v58 = vpop.f32.mrb[7].mxu1  ;;  %v1023_v59 = vadd.f32 %v1338_v54, %v983_v49 }
 0x120   : > { %v1063_v60 = vadd.f32 %v1360_v55, %v1023_v59 }
 0x13a   : > { %v1102_v61 = vpop.f32.mrb[8].mxu0 }
 0x13b   : > { %v1103_v63 = vadd.f32 %v1102_v61, %v1063_v60  ;;  %v1391_v0 = vpop.f32.mrb[9].mxu0 }
 0x13c   : > { %v1105_v2 = vpop.f32.mrb[10].mxu0 }
 0x13d   : > { %v1115_v4 = vmul.f32 %v1272_v62, %v1103_v63  ;;  %v1392_v5 = vpop.f32.mrb[11].mxu0 }
 0x13f   : > { %v1123_v6 = vadd.f32 %v1273_v1, %v1115_v4 }
 0x141   : > { %v1124_v7 = vmax.f32 %v1123_v6, 0.0 }
 0x143   : > { %v1132_v8 = vrot.slane %v1124_v7, %v1656_v44 }
 0x145   : > { %v1133_v9 = vcombine.high %v1132_v8, %v1132_v8  ;;  %v1136_v10 = vpack.c.bf16 %v1132_v8, %v1132_v8 }
 0x147   : > { %v1137_v11 = vpack.c.bf16 %v1133_v9, %v1133_v9  ;;  %1138 = vst [vmem:[%s192_s5] sm:$0x1] %v1136_v10 }
 0x149   : > { %1139 = vst [vmem:[%s192_s5 + $0x1] sm:$0x1] %v1137_v11 }
 0x14a PF: > { %s14_s15 = sadd.s32 1, %s1500_s15  }
 0x14b   : > { %p11_p4 = scmp.ge.s32.totalorder %s14_s15, 4  }
 0x14d   :  { %13 = sbr.rel (!%p11_p4) target bundleno = 1 (0x1), region = 68 }

// kernel: _lambda_.13
= control target key start
LH: loop header
LB: loop body
LE: loop exit
PB: predicated region body
PF: predicated region fallthrough
CT: control target
= control target key end

     0   :  { %s1545_s15 = smov 0   ;;  %s1810_s0 = inlined_call_operand.vmem [shape: bf16[2,4,4,128], index: 0, kind: input, shape index: {}]   ;;  %s1811_s1 = inlined_call_operand.vmem [shape: bf16[1152,128], index: 1, kind: input, shape index: {}]   ;;  %s1812_s2 = inlined_call_operand.vmem [shape: f32[1,128], index: 2, kind: input, shape index: {}]   ;;  %s1813_s3 = inlined_call_operand.vmem [shape: f32[1,128], index: 3, kind: input, shape index: {}]   ;;  %s1814_s4 = inlined_call_operand.vmem [shape: bf16[2,4,4,128], index: 4, kind: output, shape index: {}]  }
   0x1 LB: > { %s1206_s16 = sadd.s32 4294967295, %s1516_s15   ;;  %p1210_p0 = scmp.ge.s32.totalorder %s1516_s15, 1  ;;  %s1516_s15 = sphi %s1545_s15, %s14_s15  }
   0x2   : > { %p162_p1 = scmp.lt.s32.totalorder %s1516_s15, 3 }
   0x4   : > { %p163_p2 = pnand %p1210_p0, %p162_p1 }
   0x5   : > { %v1420_v0 = vld [vmem:[%s1811_s1 + $0x40] sm:$0xff] (!%p163_p2)   ;;  %v1518_v3 = vmov (!%p163_p2), 0.0   ;;  %v1424_v5 = vld [vmem:[%s1811_s1 + $0x48] sm:$0xff] (!%p163_p2)   ;;  %v1428_v9 = vld [vmem:[%s1811_s1 + $0x50] sm:$0xff] (!%p163_p2)   ;;  %p188_p3 = scmp.lt.s32.totalorder (!%p163_p2), %s1206_s16, 1  ;;  %vm1519_vm0 = vmmov (!%p163_p2), 0  }
   0x6   : > { %166 = sbr.rel (%p163_p2) target bundleno = 330 (0x14a), region = 36  ;;  %v1421_v1 = vld [vmem:[%s1811_s1 + $0xc0] sm:$0xff] (!%p163_p2)   ;;  %1293 = vmatprep.subr.bf16.mxu0 (!%p163_p2), %v1420_v0  ;;  %207 = vst [vmem:[#allocation2] sm:$0x3f] (!%p163_p2), %v1518_v3  ;;  %208 = vst [vmem:[#allocation2 + $0x8] sm:$0x3f] (!%p163_p2), %v1518_v3 }
   0x7   : > { %v1422_v2 = vld [vmem:[%s1811_s1] sm:$0xff] (!%p163_p2)   ;;  %209 = vst [vmem:[#allocation2 + $0x10] sm:$0x3f] (!%p163_p2), %v1518_v3  ;;  %210 = vst [vmem:[#allocation2 + $0x18] sm:$0x3f] (!%p163_p2), %v1518_v3  ;;  %1315 = vmatprep.subr.bf16.mxu1 (!%p163_p2), %v1421_v1  ;;  %v1425_v6 = vld [vmem:[%s1811_s1 + $0xc8] sm:$0xff] (!%p163_p2)  }
   0x8   : > { %211 = vst [vmem:[#allocation2 + $0x20] sm:$0x3f] (!%p163_p2), %v1518_v3  ;;  %212 = vst [vmem:[#allocation2 + $0x28] sm:$0x3f] (!%p163_p2), %v1518_v3  ;;  %v1423_v4 = vld [vmem:[%s1811_s1 + $0x80] sm:$0xff] (!%p163_p2)   ;;  %1294 = vmatpush3.bf16.msra.mxu0 (!%p163_p2), %v1422_v2  ;;  %v1426_v7 = vld [vmem:[%s1811_s1 + $0x8] sm:$0xff] (!%p163_p2)  }
   0x9   : > { %1316 = vmatpush3.bf16.msra.mxu1 (!%p163_p2), %v1423_v4  ;;  %1295 = vmatprep.subr.bf16.mxu0 (!%p163_p2), %v1424_v5  ;;  %v1427_v8 = vld [vmem:[%s1811_s1 + $0x88] sm:$0xff] (!%p163_p2)   ;;  %v1429_v10 = vld [vmem:[%s1811_s1 + $0xd0] sm:$0xff] (!%p163_p2)   ;;  %v1432_v13 = vld [vmem:[%s1811_s1 + $0x58] sm:$0xff] (!%p163_p2)  }
   0xa   : > { %1317 = vmatprep.subr.bf16.mxu1 (!%p163_p2), %v1425_v6  ;;  %v1430_v11 = vld [vmem:[%s1811_s1 + $0x10] sm:$0xff] (!%p163_p2)   ;;  %v1433_v14 = vld [vmem:[%s1811_s1 + $0xd8] sm:$0xff] (!%p163_p2)   ;;  %v1436_v17 = vld [vmem:[%s1811_s1 + $0x60] sm:$0xff] (!%p163_p2)  }
   0xb   : > { %v1431_v12 = vld [vmem:[%s1811_s1 + $0x90] sm:$0xff] (!%p163_p2)   ;;  %v1434_v15 = vld [vmem:[%s1811_s1 + $0x18] sm:$0xff] (!%p163_p2)   ;;  %v1437_v18 = vld [vmem:[%s1811_s1 + $0xe0] sm:$0xff] (!%p163_p2)  }
   0xc   : > { %1296 = vmatpush3.bf16.msra.mxu0 (!%p163_p2), %v1426_v7  ;;  %v1435_v16 = vld [vmem:[%s1811_s1 + $0x98] sm:$0xff] (!%p163_p2)   ;;  %v1438_v19 = vld [vmem:[%s1811_s1 + $0x20] sm:$0xff] (!%p163_p2)   ;;  %v1440_v21 = vld [vmem:[%s1811_s1 + $0x68] sm:$0xff] (!%p163_p2)  }
   0xd   : > { %1318 = vmatpush3.bf16.msra.mxu1 %v1427_v8  ;;  %1297 = vmatprep.subr.bf16.mxu0 %v1428_v9  ;;  %v1439_v20 = vld [vmem:[%s1811_s1 + $0xa0] sm:$0xff]   ;;  %v1441_v22 = vld [vmem:[%s1811_s1 + $0xe8] sm:$0xff]   ;;  %s1816_s16 = smov (!%p188_p3, %s1206_s16), 1  ;;  %v1444_v25 = vld [vmem:[%s1811_s1 + $0x70] sm:$0xff]  }
   0xe   : > { %1319 = vmatprep.subr.bf16.mxu1 %v1429_v10  ;;  %v1442_v23 = vld [vmem:[%s1811_s1 + $0x28] sm:$0xff]   ;;  %v1445_v26 = vld [vmem:[%s1811_s1 + $0xf0] sm:$0xff]   ;;  %s1291_s23 = sshll.u32 %s1816_s16, 3  ;;  %v1448_v29 = vld [vmem:[%s1811_s1 + $0x78] sm:$0xff]  }
   0xf   : > { %v1443_v24 = vld [vmem:[%s1811_s1 + $0xa8] sm:$0xff]   ;;  %v1446_v27 = vld [vmem:[%s1811_s1 + $0x30] sm:$0xff]   ;;  %v1449_v30 = vld [vmem:[%s1811_s1 + $0xf8] sm:$0xff]   ;;  %s192_s6 = scalar_lea.vmem %s1810_s0, %s1291_s23  ;;  %s197_s5 = scalar_lea.vmem %s1814_s4, %s1291_s23 }
  0x10   : > { %1298 = vmatpush3.bf16.msra.mxu0 %v1430_v11  ;;  %v1447_v28 = vld [vmem:[%s1811_s1 + $0xb0] sm:$0xff]   ;;  %v1450_v31 = vld [vmem:[%s1811_s1 + $0x38] sm:$0xff]   ;;  %v199_v33 = vld [vmem:[%s192_s6] sm:$0xff]  }
  0x11   : > { %1320 = vmatpush3.bf16.msra.mxu1 %v1431_v12  ;;  %1299 = vmatprep.subr.bf16.mxu0 %v1432_v13  ;;  %v1451_v32 = vld [vmem:[%s1811_s1 + $0xb8] sm:$0xff]   ;;  %v203_v34 = vunpack.c.l.bf16 %v199_v33  ;;  %v205_v35 = vunpack.c.h.bf16 %v199_v33  ;;  %v1460_v36 = vld [vmem:[%s1811_s1 + $0x140] sm:$0xff]   ;;  %v1464_v51 = vld [vmem:[%s1811_s1 + $0x148] sm:$0xff]  }
  0x12   : > { %1321 = vmatprep.subr.bf16.mxu1 %v1433_v14  ;;  %v1462_v37 = vld [vmem:[%s1811_s1 + $0x1c0] sm:$0xff]   ;;  %v1466_v53 = vld [vmem:[%s1811_s1 + $0x1c8] sm:$0xff]   ;;  %v1468_v56 = vld [vmem:[%s1811_s1 + $0x150] sm:$0xff]  }
  0x13   : > { %214 = vst [vmem:[#allocation2 + $0x9] ss:$8 sps:$4 sm:$0xff] %v203_v34   ;;  %216 = vst [vmem:[#allocation2 + $0x19] sm:$0xf] %v205_v35  ;;  %v1461_v44 = vld [vmem:[%s1811_s1 + $0x100] sm:$0xff]   ;;  %v1465_v54 = vld [vmem:[%s1811_s1 + $0x108] sm:$0xff]  }
  0x14   : > { %1300 = vmatpush3.bf16.msra.mxu0 %v1434_v15  ;;  %217 = vst [vmem:[#allocation2 + $0x1d] sm:$0xf0] %v205_v35  ;;  %v1463_v47 = vld [vmem:[%s1811_s1 + $0x180] sm:$0xff]   ;;  %v1467_v55 = vld [vmem:[%s1811_s1 + $0x188] sm:$0xff]   ;;  %v1470_v57 = vld [vmem:[%s1811_s1 + $0x1d0] sm:$0xff]  }
  0x15   : > { %1322 = vmatpush3.bf16.msra.mxu1 %v1435_v16  ;;  %1301 = vmatprep.subr.bf16.mxu0 %v1436_v17  ;;  %v1469_v58 = vld [vmem:[%s1811_s1 + $0x110] sm:$0xff]   ;;  %v1472_v60 = vld [vmem:[%s1811_s1 + $0x158] sm:$0xff]   ;;  %v1476_v0 = vld [vmem:[%s1811_s1 + $0x160] sm:$0xff]  }
  0x16   : > { %1323 = vmatprep.subr.bf16.mxu1 %v1437_v18  ;;  %v1471_v59 = vld [vmem:[%s1811_s1 + $0x190] sm:$0xff]   ;;  %v1474_v61 = vld [vmem:[%s1811_s1 + $0x1d8] sm:$0xff]   ;;  %v1478_v1 = vld [vmem:[%s1811_s1 + $0x1e0] sm:$0xff]  }
  0x17   : > { %v1473_v62 = vld [vmem:[%s1811_s1 + $0x118] sm:$0xff]   ;;  %v1477_v2 = vld [vmem:[%s1811_s1 + $0x120] sm:$0xff]   ;;  %v1480_v5 = vld [vmem:[%s1811_s1 + $0x168] sm:$0xff]  }
  0x18   : > { %1302 = vmatpush3.bf16.msra.mxu0 %v1438_v19  ;;  %v1475_v63 = vld [vmem:[%s1811_s1 + $0x198] sm:$0xff]   ;;  %v1479_v4 = vld [vmem:[%s1811_s1 + $0x1a0] sm:$0xff]   ;;  %v1482_v6 = vld [vmem:[%s1811_s1 + $0x1e8] sm:$0xff]  }
  0x19   : > { %1324 = vmatpush3.bf16.msra.mxu1 %v1439_v20  ;;  %1303 = vmatprep.subr.bf16.mxu0 %v1440_v21  ;;  %v1481_v7 = vld [vmem:[%s1811_s1 + $0x128] sm:$0xff]   ;;  %v1484_v9 = vld [vmem:[%s1811_s1 + $0x170] sm:$0xff]   ;;  %v1488_v13 = vld [vmem:[%s1811_s1 + $0x178] sm:$0xff]  }
  0x1a   : > { %1325 = vmatprep.subr.bf16.mxu1 %v1441_v22  ;;  %v1452_v38 = vld [vmem:[#allocation2 + $0x1] ss:$8 sps:$4 sm:$0xff]   ;;  %v1453_v39 = vld [vmem:[#allocation2 + $0x11] ss:$8 sps:$4 sm:$0xff]  }
  0x1b   : > { %v328_v40 = vpack.c.bf16 %v1453_v39, %v1452_v38  ;;  %v1454_v41 = vld [vmem:[#allocation2 + $0x8] ss:$8 sps:$4 sm:$0xff]   ;;  %v1455_v42 = vld [vmem:[#allocation2 + $0x18] ss:$8 sps:$4 sm:$0xff]  }
  0x1c   : > { %1304 = vmatpush3.bf16.msra.mxu0 %v1442_v23  ;;  %v1456_v43 = vld [vmem:[#allocation2] ss:$8 sps:$4 sm:$0xff]   ;;  %v330_v45 = vpack.c.bf16 %v1455_v42, %v1454_v41  ;;  %v1457_v46 = vld [vmem:[#allocation2 + $0x10] ss:$8 sps:$4 sm:$0xff]  }
  0x1d   : > { %1326 = vmatpush3.bf16.msra.mxu1 %v1443_v24  ;;  %1305 = vmatprep.subr.bf16.mxu0 %v1444_v25  ;;  %v1458_v48 = vld [vmem:[#allocation2 + $0x2] ss:$8 sps:$4 sm:$0xff]   ;;  %v1459_v49 = vld [vmem:[#allocation2 + $0x12] ss:$8 sps:$4 sm:$0xff]   ;;  %v327_v50 = vpack.c.bf16 %v1457_v46, %v1456_v43 }
  0x1e   : > { %1327 = vmatprep.subr.bf16.mxu1 %v1445_v26  ;;  %944 = vmatprep.mubr.bf16.mxu0 %v328_v40  ;;  %v329_v52 = vpack.c.bf16 %v1459_v49, %v1458_v48  ;;  %v1483_v8 = vld [vmem:[%s1811_s1 + $0x1a8] sm:$0xff]   ;;  %v1485_v10 = vld [vmem:[%s1811_s1 + $0x130] sm:$0xff]   ;;  %v1492_v15 = vld [vmem:[#allocation2 + $0x1a] ss:$8 sps:$4 sm:$0xff]  }
  0x1f   : > { %985 = vmatprep.mubr.bf16.mxu1 %v330_v45  ;;  %v1486_v11 = vld [vmem:[%s1811_s1 + $0x1f0] sm:$0xff]   ;;  %v1489_v16 = vld [vmem:[%s1811_s1 + $0x138] sm:$0xff]   ;;  %v1497_v23 = vld [vmem:[#allocation2 + $0x21] ss:$8 sps:$4 sm:$0xff]  }
  0x20   : > { %1306 = vmatpush3.bf16.msra.mxu0 %v1446_v27  ;;  %v1487_v12 = vld [vmem:[%s1811_s1 + $0x1b0] sm:$0xff]   ;;  %v1490_v17 = vld [vmem:[%s1811_s1 + $0x1f8] sm:$0xff]   ;;  %v1498_v25 = vld [vmem:[%s1811_s1 + $0x200] sm:$0xff]  }
  0x21   : > { %1328 = vmatpush3.bf16.msra.mxu1 %v1447_v28  ;;  %1307 = vmatprep.subr.bf16.mxu0 %v1448_v29  ;;  %v1491_v14 = vld [vmem:[#allocation2 + $0xa] ss:$8 sps:$4 sm:$0xff]   ;;  %v1493_v19 = vld [vmem:[%s1811_s1 + $0x1b8] sm:$0xff]   ;;  %v1504_v33 = vld [vmem:[%s1811_s1 + $0x220] sm:$0xff]  }
  0x22   : > { %1329 = vmatprep.subr.bf16.mxu1 %v1449_v30  ;;  %v332_v18 = vpack.c.bf16 %v1492_v15, %v1491_v14  ;;  %v1494_v20 = vld [vmem:[#allocation2 + $0x9] ss:$8 sps:$4 sm:$0xff]   ;;  %v1495_v21 = vld [vmem:[#allocation2 + $0x19] ss:$8 sps:$4 sm:$0xff]  }
  0x23   : > { %v1496_v22 = vld [vmem:[#allocation2 + $0x11] ss:$8 sps:$4 sm:$0xff]   ;;  %v331_v24 = vpack.c.bf16 %v1495_v21, %v1494_v20  ;;  %v1500_v28 = vld [vmem:[#allocation2 + $0x20] ss:$8 sps:$4 sm:$0xff]  }
  0x24   : > { %1308 = vmatpush3.bf16.msra.mxu0 %v1450_v31  ;;  %v334_v26 = vpack.c.bf16 %v1497_v23, %v1496_v22  ;;  %v1499_v27 = vld [vmem:[#allocation2 + $0x10] ss:$8 sps:$4 sm:$0xff]   ;;  %v1501_v30 = vld [vmem:[%s1811_s1 + $0x208] sm:$0xff]  }
  0x25   : > { %1330 = vmatpush3.bf16.msra.mxu1 %v1451_v32  ;;  %1337 = vmatprep.subr.bf16.mxu0 %v1460_v36  ;;  %v333_v29 = vpack.c.bf16 %v1500_v28, %v1499_v27  ;;  %v1502_v31 = vld [vmem:[%s1811_s1 + $0x210] sm:$0xff]   ;;  %v1503_v32 = vld [vmem:[%s1811_s1 + $0x218] sm:$0xff]   ;;  %v1505_v34 = vld [vmem:[%s1811_s1 + $0x228] sm:$0xff]  }
  0x26   : > { %1359 = vmatprep.subr.bf16.mxu1 %v1462_v37  ;;  %v1506_v35 = vld [vmem:[%s1811_s1 + $0x230] sm:$0xff]   ;;  %v1509_v37 = vld [vmem:[#allocation2 + $0x22] ss:$8 sps:$4 sm:$0xff]   ;;  %v1507_v38 = vld [vmem:[%s1811_s1 + $0x238] sm:$0xff]  }
  0x27   : > { %945 = vmatmul.mubr.bf16.vlgmr.msra.gmra.mrb[0].mxu0 %v327_v50  ;;  %v1508_v36 = vld [vmem:[#allocation2 + $0x12] ss:$8 sps:$4 sm:$0xff]  }
  0x28   : > { %986 = vmatmul.mubr.bf16.vlgmr.msra.gmra.mrb[0].mxu1 %v329_v52  ;;  %1338 = vmatpush3.bf16.msra.mxu0 %v1461_v44  ;;  %v335_v39 = vpack.c.bf16 %v1509_v37, %v1508_v36 }
  0x29   : > { %1360 = vmatpush3.bf16.msra.mxu1 %v1463_v47  ;;  %1339 = vmatprep.subr.bf16.mxu0 %v1464_v51 }
  0x2a   : > { %1361 = vmatprep.subr.bf16.mxu1 %v1466_v53  ;;  %1026 = vmatprep.mubr.bf16.mxu0 %v332_v18 }
  0x2b   : > { %1067 = vmatprep.mubr.bf16.mxu1 %v334_v26 }
  0x2c   : > { %1340 = vmatpush3.bf16.msra.mxu0 %v1465_v54 }
  0x2d   : > { %1362 = vmatpush3.bf16.msra.mxu1 %v1467_v55  ;;  %1341 = vmatprep.subr.bf16.mxu0 %v1468_v56 }
  0x2e   : > { %1363 = vmatprep.subr.bf16.mxu1 %v1470_v57 }
  0x30   : > { %1342 = vmatpush3.bf16.msra.mxu0 %v1469_v58 }
  0x31   : > { %1364 = vmatpush3.bf16.msra.mxu1 %v1471_v59  ;;  %1343 = vmatprep.subr.bf16.mxu0 %v1472_v60 }
  0x32   : > { %1365 = vmatprep.subr.bf16.mxu1 %v1474_v61 }
  0x34   : > { %1344 = vmatpush3.bf16.msra.mxu0 %v1473_v62 }
  0x35   : > { %1366 = vmatpush3.bf16.msra.mxu1 %v1475_v63  ;;  %1345 = vmatprep.subr.bf16.mxu0 %v1476_v0 }
  0x36   : > { %1367 = vmatprep.subr.bf16.mxu1 %v1478_v1 }
  0x38   : > { %1346 = vmatpush3.bf16.msra.mxu0 %v1477_v2 }
  0x39   : > { %1368 = vmatpush3.bf16.msra.mxu1 %v1479_v4  ;;  %1347 = vmatprep.subr.bf16.mxu0 %v1480_v5 }
  0x3a   : > { %1369 = vmatprep.subr.bf16.mxu1 %v1482_v6 }
  0x3c   : > { %1348 = vmatpush3.bf16.msra.mxu0 %v1481_v7  ;;  %v1287_v7 = vld [vmem:[%s1812_s2] ss:$0 sm:$0xff] }
  0x3d   : > { %1370 = vmatpush3.bf16.msra.mxu1 %v1483_v8  ;;  %1349 = vmatprep.subr.bf16.mxu0 %v1484_v9 }
  0x3e   : > { %1371 = vmatprep.subr.bf16.mxu1 %v1486_v11 }
  0x40   : > { %1350 = vmatpush3.bf16.msra.mxu0 %v1485_v10  ;;  %v1288_v10 = vld [vmem:[%s1813_s3] ss:$0 sm:$0xff] }
  0x41   : > { %1372 = vmatpush3.bf16.msra.mxu1 %v1487_v12  ;;  %1351 = vmatprep.subr.bf16.mxu0 %v1488_v13 }
  0x42   : > { %1373 = vmatprep.subr.bf16.mxu1 %v1490_v17 }
  0x44   : > { %1352 = vmatpush3.bf16.msra.mxu0 %v1489_v16 }
  0x45   : > { %1374 = vmatpush3.bf16.msra.mxu1 %v1493_v19  ;;  %1390 = vmatprep.subr.bf16.mxu0 %v1518_v3 }
  0x47   : > { %1027 = vmatmul.mubr.bf16.vlgmr.msra.gmra.mrb[4].mxu0 %v331_v24 }
  0x48   : > { %1391 = vmatpush3.bf16.msra.mxu0 %v1498_v25  ;;  %1406 = vmatprep.mubr.msk.bf16.mxu0 %vm1519_vm0, %v1518_v3 }
  0x49   : > { %1068 = vmatmul.mubr.bf16.vlgmr.msra.gmra.mrb[4].mxu1 %v333_v29  ;;  %1392 = vmatprep.subr.bf16.mxu0 %v1518_v3 }
  0x4c   : > { %1393 = vmatpush3.bf16.msra.mxu0 %v1501_v30 }
  0x4d   : > { %1394 = vmatprep.subr.bf16.mxu0 %v1518_v3 }
  0x50   : > { %1395 = vmatpush3.bf16.msra.mxu0 %v1502_v31 }
  0x51   : > { %1396 = vmatprep.subr.bf16.mxu0 %v1518_v3 }
  0x54   : > { %1397 = vmatpush3.bf16.msra.mxu0 %v1503_v32 }
  0x55   : > { %1398 = vmatprep.subr.bf16.mxu0 %v1518_v3 }
  0x58   : > { %1399 = vmatpush3.bf16.msra.mxu0 %v1504_v33 }
  0x59   : > { %1400 = vmatprep.subr.bf16.mxu0 %v1518_v3 }
  0x5c   : > { %1401 = vmatpush3.bf16.msra.mxu0 %v1505_v34 }
  0x5d   : > { %1402 = vmatprep.subr.bf16.mxu0 %v1518_v3 }
  0x60   : > { %1403 = vmatpush3.bf16.msra.mxu0 %v1506_v35 }
  0x61   : > { %1404 = vmatprep.subr.bf16.mxu0 %v1518_v3 }
  0x64   : > { %1405 = vmatpush3.bf16.msra.mxu0 %v1507_v38 }
  0x67   : > { %1407 = vmatmul.mubr.bf16.vlgmr.msra.gmra.mrb[8].mxu0 %v335_v39 }
  0xfa   : > { %v1309_v40 = vpop.f32.mrb[0].mxu0 }
  0xfb   : > { %v1331_v41 = vpop.f32.mrb[0].mxu1  ;;  %v1310_v42 = vpop.f32.mrb[1].mxu0 }
  0xfc   : > { %v1311_v43 = vadd.f32 %v1310_v42, %v1309_v40  ;;  %v1332_v44 = vpop.f32.mrb[1].mxu1  ;;  %v1312_v45 = vpop.f32.mrb[2].mxu0 }
  0xfd   : > { %v1333_v46 = vadd.f32 %v1332_v44, %v1331_v41  ;;  %v1334_v47 = vpop.f32.mrb[2].mxu1  ;;  %v1313_v48 = vpop.f32.mrb[3].mxu0 }
  0xfe   : > { %v1314_v49 = vadd.f32 %v1313_v48, %v1312_v45  ;;  %v1335_v50 = vpop.f32.mrb[3].mxu1 }
  0xff   : > { %v988_v51 = vadd.f32 %v1333_v46, %v1311_v43  ;;  %v1336_v52 = vadd.f32 %v1335_v50, %v1334_v47 }
 0x101   : > { %v991_v53 = vadd.f32 %v1336_v52, %v1314_v49 }
 0x11a   : > { %v1353_v54 = vpop.f32.mrb[4].mxu0 }
 0x11b   : > { %v1354_v55 = vpop.f32.mrb[5].mxu0 }
 0x11c   : > { %v1355_v3 = vadd.f32 %v1354_v55, %v1353_v54  ;;  %v1356_v56 = vpop.f32.mrb[6].mxu0  ;;  %v1375_v57 = vpop.f32.mrb[4].mxu1 }
 0x11d   : > { %v1357_v58 = vpop.f32.mrb[7].mxu0  ;;  %v1376_v59 = vpop.f32.mrb[5].mxu1 }
 0x11e   : > { %v1029_v60 = vadd.f32 %v1355_v3, %v988_v51  ;;  %v1358_v61 = vadd.f32 %v1357_v58, %v1356_v56  ;;  %v1377_v62 = vadd.f32 %v1376_v59, %v1375_v57  ;;  %v1378_v63 = vpop.f32.mrb[6].mxu1 }
 0x11f   : > { %v1379_v0 = vpop.f32.mrb[7].mxu1 }
 0x120   : > { %v1032_v1 = vadd.f32 %v1358_v61, %v991_v53  ;;  %v1380_v2 = vadd.f32 %v1379_v0, %v1378_v63  ;;  %v1070_v4 = vadd.f32 %v1377_v62, %v1029_v60 }
 0x122   : > { %v1073_v5 = vadd.f32 %v1380_v2, %v1032_v1 }
 0x13a   : > { %v1110_v6 = vpop.f32.mrb[8].mxu0 }
 0x13b   : > { %v1111_v8 = vadd.f32 %v1110_v6, %v1070_v4  ;;  %v1408_v9 = vpop.f32.mrb[9].mxu0 }
 0x13c   : > { %v1113_v11 = vpop.f32.mrb[10].mxu0 }
 0x13d   : > { %v1124_v12 = vmul.f32 %v1287_v7, %v1111_v8  ;;  %v1114_v13 = vadd.f32 %v1113_v11, %v1073_v5  ;;  %v1409_v14 = vpop.f32.mrb[11].mxu0 }
 0x13f   : > { %v1133_v15 = vadd.f32 %v1288_v10, %v1124_v12  ;;  %v1125_v16 = vmul.f32 %v1287_v7, %v1114_v13 }
 0x141   : > { %v1135_v17 = vmax.f32 %v1133_v15, 0.0  ;;  %v1134_v18 = vadd.f32 %v1288_v10, %v1125_v16 }
 0x143   : > { %v1139_v19 = vcombine.high %v1135_v17, %v1135_v17  ;;  %v1143_v20 = vpack.c.bf16 %v1135_v17, %v1135_v17  ;;  %v1136_v21 = vmax.f32 %v1134_v18, 0.0 }
 0x145   : > { %v1144_v22 = vpack.c.bf16 %v1139_v19, %v1139_v19  ;;  %1147 = vst [vmem:[%s197_s5] sm:$0x3] %v1143_v20  ;;  %v1140_v23 = vcombine.high %v1136_v21, %v1136_v21  ;;  %v1145_v24 = vpack.c.bf16 %v1136_v21, %v1136_v21 }
 0x147   : > { %1148 = vst [vmem:[%s197_s5 + $0x2] sm:$0x3] %v1144_v22  ;;  %v1146_v25 = vpack.c.bf16 %v1140_v23, %v1140_v23  ;;  %1149 = vst [vmem:[%s197_s5 + $0x4] sm:$0x3] %v1145_v24 }
 0x149   : > { %1150 = vst [vmem:[%s197_s5 + $0x6] sm:$0x3] %v1146_v25 }
 0x14a PF: > { %s14_s15 = sadd.s32 1, %s1516_s15  }
 0x14b   : > { %p11_p4 = scmp.ge.s32.totalorder %s14_s15, 4  }
 0x14d   :  { %13 = sbr.rel (!%p11_p4) target bundleno = 1 (0x1), region = 68 }

// kernel: _lambda_.16
= control target key start
LH: loop header
LB: loop body
LE: loop exit
PB: predicated region body
PF: predicated region fallthrough
CT: control target
= control target key end

     0   :  { %s1182_s13 = smov 0   ;;  %s1368_s0 = inlined_call_operand.vmem [shape: bf16[2,2,2,128], index: 0, kind: input, shape index: {}]   ;;  %s1369_s1 = inlined_call_operand.vmem [shape: bf16[128,128], index: 1, kind: input, shape index: {}]   ;;  %s1370_s2 = inlined_call_operand.vmem [shape: f32[1,128], index: 2, kind: input, shape index: {}, may-alias: {2,5,8}]   ;;  %s1371_s3 = inlined_call_operand.vmem [shape: f32[1,128], index: 3, kind: input, shape index: {}, may-alias: {3,6,9}]   ;;  %s1372_s4 = inlined_call_operand.vmem [shape: bf16[128,128], index: 4, kind: input, shape index: {}]   ;;  %s1373_s5 = inlined_call_operand.vmem [shape: f32[1,128], index: 5, kind: input, shape index: {}, may-alias: {2,5,8}]   ;;  %s1374_s6 = inlined_call_operand.vmem [shape: f32[1,128], index: 6, kind: input, shape index: {}, may-alias: {3,6,9}]   ;;  %s1375_s7 = inlined_call_operand.vmem [shape: bf16[256,128], index: 7, kind: input, shape index: {}]   ;;  %s1376_s8 = inlined_call_operand.vmem [shape: f32[1,128], index: 8, kind: input, shape index: {}, may-alias: {2,5,8}]   ;;  %s1377_s9 = inlined_call_operand.vmem [shape: f32[1,128], index: 9, kind: input, shape index: {}, may-alias: {3,6,9}]   ;;  %s1378_s10 = inlined_call_operand.vmem [shape: bf16[2,2,2,128], index: 10, kind: output, shape index: {}]  }
   0x1 LB: > { %s912_s14 = sadd.s32 4294967295, %s1122_s13   ;;  %p916_p0 = scmp.ge.s32.totalorder %s1122_s13, 1  ;;  %s1122_s13 = sphi %s1182_s13, %s20_s13  }
   0x2   : > { %p311_p1 = scmp.lt.s32.totalorder %s1122_s13, 3 }
   0x4   : > { %p312_p2 = pnand %p916_p0, %p311_p1 }
   0x5   : > { %v1084_v0 = vld [vmem:[%s1369_s1] sm:$0xff] (!%p312_p2)   ;;  %v1124_v1 = vmov (!%p312_p2), 0.0   ;;  %v1086_v3 = vld [vmem:[%s1369_s1 + $0x8] sm:$0xff] (!%p312_p2)   ;;  %vm1125_vm0 = vmmov (!%p312_p2), 0   ;;  %p347_p3 = scmp.lt.s32.totalorder (!%p312_p2), %s912_s14, 1  ;;  %v1088_v5 = vld [vmem:[%s1369_s1 + $0x10] sm:$0xff] (!%p312_p2)   ;;  %v366_v9 = vlaneseq (!%p312_p2) }
   0x6   : > { %315 = sbr.rel (%p312_p2) target bundleno = 489 (0x1e9), region = 60  ;;  %993 = vmatprep.subr.bf16.mxu0 (!%p312_p2), %v1124_v1  ;;  %1013 = vmatprep.subr.bf16.mxu1 (!%p312_p2), %v1124_v1  ;;  %v1085_v2 = vld [vmem:[%s1372_s4] sm:$0xff] (!%p312_p2)   ;;  %v1087_v4 = vld [vmem:[%s1372_s4 + $0x8] sm:$0xff] (!%p312_p2)   ;;  %v1089_v6 = vld [vmem:[%s1372_s4 + $0x10] sm:$0xff] (!%p312_p2)   ;;  %v1126_v16 = vmov (!%p312_p2), 1983009808  }
   0x7   : > { %994 = vmatpush3.bf16.msra.mxu0 (!%p312_p2), %v1084_v0  ;;  %1009 = vmatprep.mubr.msk.bf16.mxu0 (!%p312_p2), %vm1125_vm0, %v1124_v1  ;;  %v1090_v7 = vld [vmem:[%s1369_s1 + $0x18] sm:$0xff] (!%p312_p2)   ;;  %v1092_v10 = vld [vmem:[%s1369_s1 + $0x20] sm:$0xff] (!%p312_p2)   ;;  %v364_v17 = vunpack.c.l.s4 (!%p312_p2), %v1126_v16  ;;  %v1242_v18 = vshrl.u32 (!%p312_p2), %v366_v9, 7  ;;  %v1094_v19 = vld [vmem:[%s1369_s1 + $0x28] sm:$0xff] (!%p312_p2)   ;;  %vm493_vm1 = vcmask (!%p312_p2), 1043456  }
   0x8   : > { %1014 = vmatpush3.bf16.msra.mxu1 (!%p312_p2), %v1085_v2  ;;  %995 = vmatprep.subr.bf16.mxu0 (!%p312_p2), %v1124_v1  ;;  %v1091_v8 = vld [vmem:[%s1372_s4 + $0x18] sm:$0xff] (!%p312_p2)   ;;  %v1093_v11 = vld [vmem:[%s1372_s4 + $0x20] sm:$0xff] (!%p312_p2)   ;;  %v1095_v20 = vld [vmem:[%s1372_s4 + $0x28] sm:$0xff] (!%p312_p2)  }
   0x9   : > { %1015 = vmatprep.subr.bf16.mxu1 (!%p312_p2), %v1124_v1  ;;  %1029 = vmatprep.mubr.msk.bf16.mxu1 (!%p312_p2), %vm1125_vm0, %v1124_v1  ;;  %v365_v22 = vunpack.c.0.s8 (!%p312_p2), %v364_v17  ;;  %v1096_v24 = vld [vmem:[%s1369_s1 + $0x30] sm:$0xff] (!%p312_p2)   ;;  %v1098_v28 = vld [vmem:[%s1369_s1 + $0x38] sm:$0xff] (!%p312_p2)   ;;  %v1100_v34 = vld [vmem:[%s1375_s7 + $0x40] sm:$0xff] (!%p312_p2)  }
   0xa   : > { %v1097_v25 = vld [vmem:[%s1372_s4 + $0x30] sm:$0xff] (!%p312_p2)   ;;  %v1099_v30 = vld [vmem:[%s1372_s4 + $0x38] sm:$0xff] (!%p312_p2)   ;;  %v1102_v37 = vld [vmem:[%s1375_s7 + $0x48] sm:$0xff] (!%p312_p2)  }
   0xb   : > { %996 = vmatpush3.bf16.msra.mxu0 (!%p312_p2), %v1086_v3  ;;  %v1253_v23 = vsub.s32 (!%p312_p2), %v365_v22, %v1242_v18  ;;  %v1104_v40 = vld [vmem:[%s1375_s7 + $0x50] sm:$0xff] (!%p312_p2)   ;;  %v1101_v41 = vld [vmem:[%s1375_s7] sm:$0xff] (!%p312_p2)   ;;  %v1106_v43 = vld [vmem:[%s1375_s7 + $0x58] sm:$0xff] (!%p312_p2)  }
   0xc   : > { %1016 = vmatpush3.bf16.msra.mxu1 (!%p312_p2), %v1087_v4  ;;  %997 = vmatprep.subr.bf16.mxu0 (!%p312_p2), %v1124_v1  ;;  %v1103_v44 = vld [vmem:[%s1375_s7 + $0x8] sm:$0xff] (!%p312_p2)   ;;  %v1108_v45 = vld [vmem:[%s1375_s7 + $0x60] sm:$0xff] (!%p312_p2)   ;;  %v1105_v46 = vld [vmem:[%s1375_s7 + $0x10] sm:$0xff] (!%p312_p2)  }
   0xd   : > { %s1380_s14 = smov (!%p347_p3, %s912_s14), 1  ;;  %1017 = vmatprep.subr.bf16.mxu1 %v1124_v1  ;;  %v1110_v47 = vld [vmem:[%s1375_s7 + $0x68] sm:$0xff]   ;;  %v1107_v48 = vld [vmem:[%s1375_s7 + $0x18] sm:$0xff]   ;;  %v1109_v49 = vld [vmem:[%s1375_s7 + $0x20] sm:$0xff]  }
   0xe   : > { %s917_s29 = sshll.u32 %s1380_s14, 1  ;;  %v1111_v50 = vld [vmem:[%s1375_s7 + $0x28] sm:$0xff]   ;;  %v1112_v51 = vld [vmem:[%s1375_s7 + $0x70] sm:$0xff]   ;;  %v1114_v53 = vld [vmem:[%s1375_s7 + $0x78] sm:$0xff]  }
   0xf   : > { %998 = vmatpush3.bf16.msra.mxu0 %v1088_v5  ;;  %s350_s16 = scalar_lea.vmem %s1368_s0, %s917_s29  ;;  %v1113_v52 = vld [vmem:[%s1375_s7 + $0x30] sm:$0xff]   ;;  %v1115_v54 = vld [vmem:[%s1375_s7 + $0x38] sm:$0xff]   ;;  %v927_v55 = vld [vmem:[%s1370_s2] ss:$0 sm:$0xff]  ;;  %s354_s28 = scalar_lea.vmem %s1378_s10, %s917_s29 }
  0x10   : > { %1018 = vmatpush3.bf16.msra.mxu1 %v1089_v6  ;;  %999 = vmatprep.subr.bf16.mxu0 %v1124_v1  ;;  %v356_v12 = vld [vmem:[%s350_s16] sm:$0x1]  ;;  %v357_v13 = vld [vmem:[%s350_s16 + $0x1] sm:$0x1] }
  0x11   : > { %1019 = vmatprep.subr.bf16.mxu1 %v1124_v1  ;;  %v358_v14 = vunpack.c.l.bf16 %v356_v12  ;;  %v359_v15 = vunpack.c.l.bf16 %v357_v13  ;;  %v928_v57 = vld [vmem:[%s1371_s3] ss:$0 sm:$0xff] }
  0x12   : > { %v610_v3 = vld [vmem:[%s1374_s6] sm:$0x1] }
  0x13   : > { %1000 = vmatpush3.bf16.msra.mxu0 %v1090_v7  ;;  %v362_v21 = vcombine.low %v358_v14, %v359_v15  ;;  %v737_v15 = vsub.s32 0, %v1242_v18 }
  0x14   : > { %1020 = vmatpush3.bf16.msra.mxu1 %v1091_v8  ;;  %1001 = vmatprep.subr.bf16.mxu0 %v1124_v1 }
  0x15   : > { %1021 = vmatprep.subr.bf16.mxu1 %v1124_v1  ;;  %v369_v26 = vrot.slane %v362_v21, %v1253_v23 }
  0x17   : > { %1002 = vmatpush3.bf16.msra.mxu0 %v1092_v10  ;;  %v494_v27 = vsel %vm493_vm1, %v369_v26, 0.0  ;;  %v371_v32 = vpack.c.bf16 %v369_v26, %v369_v26 }
  0x18   : > { %1022 = vmatpush3.bf16.msra.mxu1 %v1093_v11  ;;  %1003 = vmatprep.subr.bf16.mxu0 %v1124_v1  ;;  %v495_v29 = vrot.slane %v494_v27, 4 }
  0x19   : > { %1023 = vmatprep.subr.bf16.mxu1 %v1124_v1 }
  0x1a   : > { %v496_v31 = vadd.f32 %v495_v29, %v494_v27 }
  0x1b   : > { %1004 = vmatpush3.bf16.msra.mxu0 %v1094_v19 }
  0x1c   : > { %1024 = vmatpush3.bf16.msra.mxu1 %v1095_v20  ;;  %1005 = vmatprep.subr.bf16.mxu0 %v1124_v1  ;;  %v497_v33 = vrot.slane %v496_v31, 2  ;;  %v953_v20 = vld [vmem:[%s1376_s8] ss:$0 sm:$0xff] }
  0x1d   : > { %1025 = vmatprep.subr.bf16.mxu1 %v1124_v1 }
  0x1e   : > { %v498_v35 = vadd.f32 %v497_v33, %v496_v31 }
  0x1f   : > { %1006 = vmatpush3.bf16.msra.mxu0 %v1096_v24 }
  0x20   : > { %1026 = vmatpush3.bf16.msra.mxu1 %v1097_v25  ;;  %1007 = vmatprep.subr.bf16.mxu0 %v1124_v1  ;;  %v499_v36 = vrot.slane %v498_v35, 1  ;;  %v954_v25 = vld [vmem:[%s1377_s9] ss:$0 sm:$0xff] }
  0x21   : > { %1027 = vmatprep.subr.bf16.mxu1 %v1124_v1 }
  0x22   : > { %v500_v38 = vadd.f32 %v499_v36, %v498_v35 }
  0x23   : > { %1008 = vmatpush3.bf16.msra.mxu0 %v1098_v28 }
  0x24   : > { %1028 = vmatpush3.bf16.msra.mxu1 %v1099_v30  ;;  %1033 = vmatprep.subr.bf16.mxu0 %v1124_v1  ;;  %v502_v39 = vmul.f32 0.25, %v500_v38 }
  0x25   : > { %1053 = vmatprep.subr.bf16.mxu1 %v1124_v1 }
  0x26   : > { %1010 = vmatmul.mubr.bf16.vlgmr.msra.gmra.mrb[0].mxu0 %v371_v32  ;;  %v503_v42 = vpack.c.bf16 %v502_v39, %v502_v39 }
  0x27   : > { %1034 = vmatpush3.bf16.msra.mxu0 %v1100_v34  ;;  %1049 = vmatprep.mubr.msk.bf16.mxu0 %vm1125_vm0, %v1124_v1 }
  0x28   : > { %1035 = vmatprep.subr.bf16.mxu0 %v1124_v1  ;;  %1030 = vmatmul.mubr.bf16.vlgmr.msra.gmra.mrb[0].mxu1 %v503_v42 }
  0x29   : > { %1054 = vmatpush3.bf16.msra.mxu1 %v1101_v41  ;;  %1069 = vmatprep.mubr.msk.bf16.mxu1 %vm1125_vm0, %v1124_v1 }
  0x2a   : > { %1055 = vmatprep.subr.bf16.mxu1 %v1124_v1 }
  0x2b   : > { %1036 = vmatpush3.bf16.msra.mxu0 %v1102_v37 }
  0x2c   : > { %1037 = vmatprep.subr.bf16.mxu0 %v1124_v1 }
  0x2d   : > { %1056 = vmatpush3.bf16.msra.mxu1 %v1103_v44 }
  0x2e   : > { %1057 = vmatprep.subr.bf16.mxu1 %v1124_v1 }
  0x2f   : > { %1038 = vmatpush3.bf16.msra.mxu0 %v1104_v40 }
  0x30   : > { %1039 = vmatprep.subr.bf16.mxu0 %v1124_v1 }
  0x31   : > { %1058 = vmatpush3.bf16.msra.mxu1 %v1105_v46 }
  0x32   : > { %1059 = vmatprep.subr.bf16.mxu1 %v1124_v1 }
  0x33   : > { %1040 = vmatpush3.bf16.msra.mxu0 %v1106_v43 }
  0x34   : > { %1041 = vmatprep.subr.bf16.mxu0 %v1124_v1 }
  0x35   : > { %1060 = vmatpush3.bf16.msra.mxu1 %v1107_v48 }
  0x36   : > { %1061 = vmatprep.subr.bf16.mxu1 %v1124_v1 }
  0x37   : > { %1042 = vmatpush3.bf16.msra.mxu0 %v1108_v45 }
  0x38   : > { %1043 = vmatprep.subr.bf16.mxu0 %v1124_v1 }
  0x39   : > { %1062 = vmatpush3.bf16.msra.mxu1 %v1109_v49 }
  0x3a   : > { %1063 = vmatprep.subr.bf16.mxu1 %v1124_v1 }
  0x3b   : > { %1044 = vmatpush3.bf16.msra.mxu0 %v1110_v47 }
  0x3c   : > { %1045 = vmatprep.subr.bf16.mxu0 %v1124_v1 }
  0x3d   : > { %1064 = vmatpush3.bf16.msra.mxu1 %v1111_v50 }
  0x3e   : > { %1065 = vmatprep.subr.bf16.mxu1 %v1124_v1 }
  0x3f   : > { %1046 = vmatpush3.bf16.msra.mxu0 %v1112_v51 }
  0x40   : > { %1047 = vmatprep.subr.bf16.mxu0 %v1124_v1 }
  0x41   : > { %1066 = vmatpush3.bf16.msra.mxu1 %v1113_v52 }
  0x42   : > { %1067 = vmatprep.subr.bf16.mxu1 %v1124_v1  ;;  %v608_v1 = vld [vmem:[%s1373_s5] sm:$0x1] }
  0x43   : > { %1048 = vmatpush3.bf16.msra.mxu0 %v1114_v53 }
  0x45   : > { %1068 = vmatpush3.bf16.msra.mxu1 %v1115_v54 }
  0xf9   : > { %v470_v56 = vpop.f32.mrb[0].mxu0 }
  0xfa   : > { %v483_v58 = vmul.f32 %v927_v55, %v470_v56  ;;  %v1011_v59 = vpop.f32.mrb[1].mxu0 }
  0xfb   : > { %v473_v60 = vpop.f32.mrb[2].mxu0  ;;  %v602_v2 = vpop.f32.mrb[0].mxu1 }
  0xfc   : > { %v491_v61 = vadd.f32 %v928_v57, %v483_v58  ;;  %v1012_v62 = vpop.f32.mrb[3].mxu0  ;;  %v609_v4 = vmul.f32 %v608_v1, %v602_v2  ;;  %v1031_v5 = vpop.f32.mrb[1].mxu1 }
  0xfd   : > { %v605_v6 = vpop.f32.mrb[2].mxu1 }
  0xfe   : > { %v492_v63 = vmax.f32 %v491_v61, 0.0  ;;  %v611_v7 = vadd.f32 %v610_v3, %v609_v4  ;;  %v1032_v8 = vpop.f32.mrb[3].mxu1 }
 0x100   : > { %v645_v0 = vpack.c.bf16 %v492_v63, %v492_v63  ;;  %v612_v9 = vmax.f32 %v611_v7, 0.0 }
 0x102   : > { %1070 = vmatmul.mubr.bf16.vlgmr.msra.gmra.mrb[4].mxu1 %v645_v0  ;;  %v646_v10 = vpack.c.bf16 %v612_v9, %v612_v9 }
 0x104   : > { %1050 = vmatmul.mubr.bf16.vlgmr.msra.gmra.mrb[4].mxu0 %v646_v10 }
 0x1d5   : > { %v821_v11 = vpop.f32.mrb[4].mxu1 }
 0x1d6   : > { %v1071_v12 = vpop.f32.mrb[5].mxu1 }
 0x1d7   : > { %v824_v13 = vpop.f32.mrb[6].mxu1  ;;  %v729_v16 = vpop.f32.mrb[4].mxu0 }
 0x1d8   : > { %v1072_v14 = vpop.f32.mrb[7].mxu1  ;;  %v738_v17 = vrot.slane %v729_v16, %v737_v15  ;;  %v1051_v19 = vpop.f32.mrb[5].mxu0 }
 0x1d9   : > { %v732_v21 = vpop.f32.mrb[6].mxu0 }
 0x1da   : > { %v822_v22 = vadd.f32 %v821_v11, %v738_v17  ;;  %v1052_v24 = vpop.f32.mrb[7].mxu0 }
 0x1dc   : > { %v834_v26 = vmul.f32 %v953_v20, %v822_v22 }
 0x1de   : > { %v842_v27 = vadd.f32 %v954_v25, %v834_v26 }
 0x1e0   : > { %v843_v28 = vmax.f32 %v842_v27, 0.0 }
 0x1e2   : > { %v851_v29 = vrot.slane %v843_v28, %v1253_v23 }
 0x1e4   : > { %v852_v18 = vcombine.high %v851_v29, %v851_v29  ;;  %v855_v30 = vpack.c.bf16 %v851_v29, %v851_v29 }
 0x1e6   : > { %v856_v31 = vpack.c.bf16 %v852_v18, %v852_v18  ;;  %857 = vst [vmem:[%s354_s28] sm:$0x1] %v855_v30 }
 0x1e8   : > { %858 = vst [vmem:[%s354_s28 + $0x1] sm:$0x1] %v856_v31 }
 0x1e9 PF: > { %s20_s13 = sadd.s32 1, %s1122_s13  }
 0x1ea   : > { %p17_p4 = scmp.ge.s32.totalorder %s20_s13, 4  }
 0x1ec   :  { %19 = sbr.rel (!%p17_p4) target bundleno = 1 (0x1), region = 90 }

// kernel: _lambda_.20
= control target key start
LH: loop header
LB: loop body
LE: loop exit
PB: predicated region body
PF: predicated region fallthrough
CT: control target
= control target key end

     0   :  { %s1799_s24 = smov 0   ;;  %s2101_s0 = inlined_call_operand.vmem [shape: bf16[2,2,2,128], index: 0, kind: input, shape index: {}]   ;;  %s2102_s1 = inlined_call_operand.vmem [shape: bf16[1152,128], index: 1, kind: input, shape index: {}]   ;;  %s2103_s2 = inlined_call_operand.vmem [shape: bf16[128,128], index: 2, kind: input, shape index: {}]   ;;  %s2104_s3 = inlined_call_operand.vmem [shape: f32[1,128], index: 3, kind: input, shape index: {}]   ;;  %s2105_s4 = inlined_call_operand.vmem [shape: f32[1,128], index: 4, kind: input, shape index: {}]   ;;  %s2106_s5 = inlined_call_operand.vmem [shape: f32[1,128], index: 5, kind: input, shape index: {}]   ;;  %s2107_s6 = inlined_call_operand.vmem [shape: f32[1,128], index: 6, kind: input, shape index: {}]   ;;  %s2108_s7 = inlined_call_operand.vmem [shape: f32[2,2,2,128], index: 7, kind: output, shape index: {}]  }
   0x1 LB: > { %s1397_s25 = sadd.s32 4294967295, %s1754_s24   ;;  %p1401_p0 = scmp.ge.s32.totalorder %s1754_s24, 1  ;;  %s1754_s24 = sphi %s1799_s24, %s17_s24  }
   0x2   : > { %p236_p1 = scmp.lt.s32.totalorder %s1754_s24, 3 }
   0x4   : > { %p237_p2 = pnand %p1401_p0, %p236_p1 }
   0x5   : > { %v1650_v0 = vld [vmem:[%s2102_s1 + $0x40] sm:$0xff] (!%p237_p2)   ;;  %v1756_v3 = vmov (!%p237_p2), 0.0   ;;  %v1654_v5 = vld [vmem:[%s2102_s1 + $0x48] sm:$0xff] (!%p237_p2)   ;;  %v1658_v9 = vld [vmem:[%s2102_s1 + $0x50] sm:$0xff] (!%p237_p2)   ;;  %p267_p3 = scmp.lt.s32.totalorder (!%p237_p2), %s1397_s25, 1  ;;  %v313_v34 = vlaneseq (!%p237_p2)  ;;  %vm1758_vm0 = vmmov (!%p237_p2), 0  }
   0x6   : > { %240 = sbr.rel (%p237_p2) target bundleno = 546 (0x222), region = 48  ;;  %v1651_v1 = vld [vmem:[%s2102_s1 + $0xc0] sm:$0xff] (!%p237_p2)   ;;  %1493 = vmatprep.subr.bf16.mxu0 (!%p237_p2), %v1650_v0  ;;  %281 = vst [vmem:[#allocation2] sm:$0xf] (!%p237_p2), %v1756_v3  ;;  %282 = vst [vmem:[#allocation2 + $0x4] sm:$0xf] (!%p237_p2), %v1756_v3 }
   0x7   : > { %v1652_v2 = vld [vmem:[%s2102_s1] sm:$0xff] (!%p237_p2)   ;;  %283 = vst [vmem:[#allocation2 + $0x8] sm:$0xf] (!%p237_p2), %v1756_v3  ;;  %284 = vst [vmem:[#allocation2 + $0xc] sm:$0xf] (!%p237_p2), %v1756_v3  ;;  %1515 = vmatprep.subr.bf16.mxu1 (!%p237_p2), %v1651_v1  ;;  %v1655_v6 = vld [vmem:[%s2102_s1 + $0xc8] sm:$0xff] (!%p237_p2)  }
   0x8   : > { %v1653_v4 = vld [vmem:[%s2102_s1 + $0x80] sm:$0xff] (!%p237_p2)   ;;  %1494 = vmatpush3.bf16.msra.mxu0 (!%p237_p2), %v1652_v2  ;;  %v1656_v7 = vld [vmem:[%s2102_s1 + $0x8] sm:$0xff] (!%p237_p2)   ;;  %v1659_v10 = vld [vmem:[%s2102_s1 + $0xd0] sm:$0xff] (!%p237_p2)   ;;  %v1757_v36 = vmov (!%p237_p2), 1983009808   ;;  %v314_v42 = vshrl.u32 (!%p237_p2), %v313_v34, 7 }
   0x9   : > { %1516 = vmatpush3.bf16.msra.mxu1 (!%p237_p2), %v1653_v4  ;;  %1495 = vmatprep.subr.bf16.mxu0 (!%p237_p2), %v1654_v5  ;;  %v1657_v8 = vld [vmem:[%s2102_s1 + $0x88] sm:$0xff] (!%p237_p2)   ;;  %v1660_v11 = vld [vmem:[%s2102_s1 + $0x10] sm:$0xff] (!%p237_p2)   ;;  %v1662_v13 = vld [vmem:[%s2102_s1 + $0x58] sm:$0xff] (!%p237_p2)   ;;  %v311_v37 = vunpack.c.l.s4 (!%p237_p2), %v1757_v36 }
   0xa   : > { %1517 = vmatprep.subr.bf16.mxu1 (!%p237_p2), %v1655_v6  ;;  %v1661_v12 = vld [vmem:[%s2102_s1 + $0x90] sm:$0xff] (!%p237_p2)   ;;  %v1663_v14 = vld [vmem:[%s2102_s1 + $0xd8] sm:$0xff] (!%p237_p2)   ;;  %v1666_v17 = vld [vmem:[%s2102_s1 + $0x60] sm:$0xff] (!%p237_p2)  }
   0xb   : > { %v1664_v15 = vld [vmem:[%s2102_s1 + $0x18] sm:$0xff] (!%p237_p2)   ;;  %v1667_v18 = vld [vmem:[%s2102_s1 + $0xe0] sm:$0xff] (!%p237_p2)   ;;  %v1670_v21 = vld [vmem:[%s2102_s1 + $0x68] sm:$0xff] (!%p237_p2)   ;;  %v312_v41 = vunpack.c.0.s8 (!%p237_p2), %v311_v37 }
   0xc   : > { %1496 = vmatpush3.bf16.msra.mxu0 (!%p237_p2), %v1656_v7  ;;  %v1665_v16 = vld [vmem:[%s2102_s1 + $0x98] sm:$0xff] (!%p237_p2)   ;;  %v1668_v19 = vld [vmem:[%s2102_s1 + $0x20] sm:$0xff] (!%p237_p2)   ;;  %v1671_v22 = vld [vmem:[%s2102_s1 + $0xe8] sm:$0xff] (!%p237_p2)  }
   0xd   : > { %1518 = vmatpush3.bf16.msra.mxu1 %v1657_v8  ;;  %1497 = vmatprep.subr.bf16.mxu0 %v1658_v9  ;;  %v1669_v20 = vld [vmem:[%s2102_s1 + $0xa0] sm:$0xff]   ;;  %v1672_v23 = vld [vmem:[%s2102_s1 + $0x28] sm:$0xff]   ;;  %s2110_s25 = smov (!%p267_p3, %s1397_s25), 1  ;;  %v1674_v25 = vld [vmem:[%s2102_s1 + $0x70] sm:$0xff]   ;;  %v1923_v44 = vsub.s32 %v312_v41, %v314_v42 }
   0xe   : > { %1519 = vmatprep.subr.bf16.mxu1 %v1659_v10  ;;  %v1673_v24 = vld [vmem:[%s2102_s1 + $0xa8] sm:$0xff]   ;;  %v1675_v26 = vld [vmem:[%s2102_s1 + $0xf0] sm:$0xff]   ;;  %s1402_s15 = sshll.u32 %s2110_s25, 1  ;;  %v1678_v29 = vld [vmem:[%s2102_s1 + $0x78] sm:$0xff]   ;;  %s1492_s28 = sshll.u32 %s2110_s25, 2 }
   0xf   : > { %v1676_v27 = vld [vmem:[%s2102_s1 + $0x30] sm:$0xff]   ;;  %v1679_v30 = vld [vmem:[%s2102_s1 + $0xf8] sm:$0xff]   ;;  %s270_s26 = scalar_lea.vmem %s2101_s0, %s1402_s15  ;;  %v1686_v40 = vld [vmem:[%s2102_s1 + $0x140] sm:$0xff]   ;;  %s275_s10 = scalar_lea.vmem %s2108_s7, %s1492_s28 }
  0x10   : > { %1498 = vmatpush3.bf16.msra.mxu0 %v1660_v11  ;;  %v1677_v28 = vld [vmem:[%s2102_s1 + $0xb0] sm:$0xff]   ;;  %v1680_v31 = vld [vmem:[%s2102_s1 + $0x38] sm:$0xff]   ;;  %v277_v33 = vld [vmem:[%s270_s26] sm:$0x1] }
  0x11   : > { %1520 = vmatpush3.bf16.msra.mxu1 %v1661_v12  ;;  %1499 = vmatprep.subr.bf16.mxu0 %v1662_v13  ;;  %v1681_v32 = vld [vmem:[%s2102_s1 + $0xb8] sm:$0xff]   ;;  %v279_v35 = vunpack.c.l.bf16 %v277_v33  ;;  %v278_v38 = vld [vmem:[%s270_s26 + $0x1] sm:$0x1]  ;;  %v1690_v53 = vld [vmem:[%s2102_s1 + $0x148] sm:$0xff]  }
  0x12   : > { %1521 = vmatprep.subr.bf16.mxu1 %v1663_v14  ;;  %v280_v39 = vunpack.c.l.bf16 %v278_v38  ;;  %v1688_v43 = vld [vmem:[%s2102_s1 + $0x1c0] sm:$0xff]   ;;  %v1692_v56 = vld [vmem:[%s2102_s1 + $0x1c8] sm:$0xff]   ;;  %v1694_v59 = vld [vmem:[%s2102_s1 + $0x150] sm:$0xff]  }
  0x13   : > { %286 = vst [vmem:[#allocation2 + $0x5] sm:$0x3] %v279_v35  ;;  %v1687_v49 = vld [vmem:[%s2102_s1 + $0x100] sm:$0xff]   ;;  %v1691_v57 = vld [vmem:[%s2102_s1 + $0x108] sm:$0xff]   ;;  %v1696_v60 = vld [vmem:[%s2102_s1 + $0x1d0] sm:$0xff]  }
  0x14   : > { %1500 = vmatpush3.bf16.msra.mxu0 %v1664_v15  ;;  %287 = vst [vmem:[#allocation2 + $0x9] sm:$0x3] %v280_v39  ;;  %v1689_v51 = vld [vmem:[%s2102_s1 + $0x180] sm:$0xff]   ;;  %v1693_v58 = vld [vmem:[%s2102_s1 + $0x188] sm:$0xff]   ;;  %v1695_v61 = vld [vmem:[%s2102_s1 + $0x110] sm:$0xff]  }
  0x15   : > { %1522 = vmatpush3.bf16.msra.mxu1 %v1665_v16  ;;  %1501 = vmatprep.subr.bf16.mxu0 %v1666_v17  ;;  %v1697_v62 = vld [vmem:[%s2102_s1 + $0x190] sm:$0xff]   ;;  %v1698_v63 = vld [vmem:[%s2102_s1 + $0x158] sm:$0xff]   ;;  %v1702_v4 = vld [vmem:[%s2102_s1 + $0x160] sm:$0xff]  }
  0x16   : > { %1523 = vmatprep.subr.bf16.mxu1 %v1667_v18  ;;  %v1700_v0 = vld [vmem:[%s2102_s1 + $0x1d8] sm:$0xff]   ;;  %v1704_v5 = vld [vmem:[%s2102_s1 + $0x1e0] sm:$0xff]   ;;  %v1706_v8 = vld [vmem:[%s2102_s1 + $0x168] sm:$0xff]  }
  0x17   : > { %v1699_v1 = vld [vmem:[%s2102_s1 + $0x118] sm:$0xff]   ;;  %v1703_v6 = vld [vmem:[%s2102_s1 + $0x120] sm:$0xff]   ;;  %v1708_v9 = vld [vmem:[%s2102_s1 + $0x1e8] sm:$0xff]  }
  0x18   : > { %1502 = vmatpush3.bf16.msra.mxu0 %v1668_v19  ;;  %v1701_v2 = vld [vmem:[%s2102_s1 + $0x198] sm:$0xff]   ;;  %v1705_v7 = vld [vmem:[%s2102_s1 + $0x1a0] sm:$0xff]   ;;  %v1707_v10 = vld [vmem:[%s2102_s1 + $0x128] sm:$0xff]  }
  0x19   : > { %1524 = vmatpush3.bf16.msra.mxu1 %v1669_v20  ;;  %1503 = vmatprep.subr.bf16.mxu0 %v1670_v21  ;;  %v1709_v11 = vld [vmem:[%s2102_s1 + $0x1a8] sm:$0xff]   ;;  %v1710_v12 = vld [vmem:[%s2102_s1 + $0x170] sm:$0xff]   ;;  %v1714_v17 = vld [vmem:[%s2102_s1 + $0x178] sm:$0xff]  }
  0x1a   : > { %1525 = vmatprep.subr.bf16.mxu1 %v1671_v22  ;;  %v1739_v45 = vld.sshfl [vmem:[#allocation2 + $0x1] sm:$0xf pattern:$0x76325410]  ;;  %v1712_v13 = vld [vmem:[%s2102_s1 + $0x1f0] sm:$0xff]   ;;  %v1716_v20 = vld [vmem:[%s2102_s1 + $0x1f8] sm:$0xff]  }
  0x1b   : > { %v1740_v46 = vld.sshfl [vmem:[#allocation2 + $0x4] sm:$0xf pattern:$0x76325410]  ;;  %v407_v50 = vpack.c.bf16 %v1739_v45, %v1739_v45  ;;  %v1711_v15 = vld [vmem:[%s2102_s1 + $0x130] sm:$0xff]   ;;  %v1729_v36 = vld [vmem:[%s2102_s1 + $0x238] sm:$0xff]  }
  0x1c   : > { %1504 = vmatpush3.bf16.msra.mxu0 %v1672_v23  ;;  %v1741_v47 = vld.sshfl [vmem:[#allocation2] sm:$0xf pattern:$0x76325410]  ;;  %v409_v52 = vpack.c.bf16 %v1740_v46, %v1740_v46  ;;  %v1713_v16 = vld [vmem:[%s2102_s1 + $0x1b0] sm:$0xff]   ;;  %v1715_v23 = vld [vmem:[%s2102_s1 + $0x138] sm:$0xff]  }
  0x1d   : > { %1526 = vmatpush3.bf16.msra.mxu1 %v1673_v24  ;;  %1505 = vmatprep.subr.bf16.mxu0 %v1674_v25  ;;  %v1742_v48 = vld.sshfl [vmem:[#allocation2 + $0x2] sm:$0xf pattern:$0x76325410]  ;;  %v406_v54 = vpack.c.bf16 %v1741_v47, %v1741_v47  ;;  %v1718_v24 = vld [vmem:[%s2102_s1 + $0x1b8] sm:$0xff]   ;;  %v1727_v33 = vld [vmem:[%s2102_s1 + $0x228] sm:$0xff]  }
  0x1e   : > { %1527 = vmatprep.subr.bf16.mxu1 %v1675_v26  ;;  %1023 = vmatprep.mubr.bf16.mxu0 %v407_v50  ;;  %v408_v55 = vpack.c.bf16 %v1742_v48, %v1742_v48  ;;  %v1743_v14 = vld.sshfl [vmem:[#allocation2 + $0x6] sm:$0xf pattern:$0x76325410]  ;;  %v1728_v35 = vld [vmem:[%s2102_s1 + $0x230] sm:$0xff]   ;;  %v1734_v41 = vld [vmem:[%s2103_s2 + $0x18] sm:$0xff]  }
  0x1f   : > { %1063 = vmatprep.mubr.bf16.mxu1 %v409_v52  ;;  %v1745_v18 = vld.sshfl [vmem:[#allocation2 + $0x5] sm:$0xf pattern:$0x76325410]  ;;  %v411_v21 = vpack.c.bf16 %v1743_v14, %v1743_v14  ;;  %v1737_v45 = vld [vmem:[%s2103_s2 + $0x30] sm:$0xff]   ;;  %v1738_v46 = vld [vmem:[%s2103_s2 + $0x38] sm:$0xff]  }
  0x20   : > { %1506 = vmatpush3.bf16.msra.mxu0 %v1676_v27  ;;  %v1744_v19 = vld.sshfl [vmem:[#allocation2 + $0x9] sm:$0xf pattern:$0x76325410]  ;;  %v410_v26 = vpack.c.bf16 %v1745_v18, %v1745_v18  ;;  %v1731_v38 = vld [vmem:[%s2103_s2] sm:$0xff]  }
  0x21   : > { %1528 = vmatpush3.bf16.msra.mxu1 %v1677_v28  ;;  %1507 = vmatprep.subr.bf16.mxu0 %v1678_v29  ;;  %v1746_v22 = vld.sshfl [vmem:[#allocation2 + $0x8] sm:$0xf pattern:$0x76325410]  ;;  %v413_v25 = vpack.c.bf16 %v1744_v19, %v1744_v19  ;;  %v1721_v28 = vld [vmem:[%s2102_s1 + $0x200] sm:$0xff]  }
  0x22   : > { %1529 = vmatprep.subr.bf16.mxu1 %v1679_v30  ;;  %v412_v27 = vpack.c.bf16 %v1746_v22, %v1746_v22  ;;  %v1723_v29 = vld [vmem:[%s2102_s1 + $0x208] sm:$0xff]   ;;  %v1724_v30 = vld [vmem:[%s2102_s1 + $0x210] sm:$0xff]   ;;  %v1735_v42 = vld [vmem:[%s2103_s2 + $0x20] sm:$0xff]  }
  0x23   : > { %v1747_v34 = vld.sshfl [vmem:[#allocation2 + $0xa] sm:$0xf pattern:$0x76325410]  ;;  %v1488_v19 = vld [vmem:[%s2107_s6] ss:$0 sm:$0xff] }
  0x24   : > { %1508 = vmatpush3.bf16.msra.mxu0 %v1680_v31  ;;  %v1725_v31 = vld [vmem:[%s2102_s1 + $0x218] sm:$0xff]   ;;  %v414_v37 = vpack.c.bf16 %v1747_v34, %v1747_v34  ;;  %v1732_v39 = vld [vmem:[%s2103_s2 + $0x8] sm:$0xff]  }
  0x25   : > { %1530 = vmatpush3.bf16.msra.mxu1 %v1681_v32  ;;  %1537 = vmatprep.subr.bf16.mxu0 %v1686_v40  ;;  %v1726_v32 = vld [vmem:[%s2102_s1 + $0x220] sm:$0xff]   ;;  %v1733_v40 = vld [vmem:[%s2103_s2 + $0x10] sm:$0xff]  }
  0x26   : > { %1559 = vmatprep.subr.bf16.mxu1 %v1688_v43  ;;  %v1736_v43 = vld [vmem:[%s2103_s2 + $0x28] sm:$0xff]  }
  0x27   : > { %1024 = vmatmul.mubr.bf16.vlgmr.msra.gmra.mrb[0].mxu0 %v406_v54 }
  0x28   : > { %1064 = vmatmul.mubr.bf16.vlgmr.msra.gmra.mrb[0].mxu1 %v408_v55  ;;  %1538 = vmatpush3.bf16.msra.mxu0 %v1687_v49 }
  0x29   : > { %1560 = vmatpush3.bf16.msra.mxu1 %v1689_v51  ;;  %1539 = vmatprep.subr.bf16.mxu0 %v1690_v53 }
  0x2a   : > { %1561 = vmatprep.subr.bf16.mxu1 %v1692_v56  ;;  %1103 = vmatprep.mubr.bf16.mxu0 %v411_v21 }
  0x2b   : > { %1143 = vmatprep.mubr.bf16.mxu1 %v413_v25 }
  0x2c   : > { %1540 = vmatpush3.bf16.msra.mxu0 %v1691_v57 }
  0x2d   : > { %1562 = vmatpush3.bf16.msra.mxu1 %v1693_v58  ;;  %1541 = vmatprep.subr.bf16.mxu0 %v1694_v59 }
  0x2e   : > { %1563 = vmatprep.subr.bf16.mxu1 %v1696_v60 }
  0x30   : > { %1542 = vmatpush3.bf16.msra.mxu0 %v1695_v61 }
  0x31   : > { %1564 = vmatpush3.bf16.msra.mxu1 %v1697_v62  ;;  %1543 = vmatprep.subr.bf16.mxu0 %v1698_v63 }
  0x32   : > { %1565 = vmatprep.subr.bf16.mxu1 %v1700_v0 }
  0x34   : > { %1544 = vmatpush3.bf16.msra.mxu0 %v1699_v1 }
  0x35   : > { %1566 = vmatpush3.bf16.msra.mxu1 %v1701_v2  ;;  %1545 = vmatprep.subr.bf16.mxu0 %v1702_v4 }
  0x36   : > { %1567 = vmatprep.subr.bf16.mxu1 %v1704_v5 }
  0x38   : > { %1546 = vmatpush3.bf16.msra.mxu0 %v1703_v6 }
  0x39   : > { %1568 = vmatpush3.bf16.msra.mxu1 %v1705_v7  ;;  %1547 = vmatprep.subr.bf16.mxu0 %v1706_v8  ;;  %v1477_v7 = vld [vmem:[%s2104_s3] ss:$0 sm:$0xff] }
  0x3a   : > { %1569 = vmatprep.subr.bf16.mxu1 %v1708_v9 }
  0x3c   : > { %1548 = vmatpush3.bf16.msra.mxu0 %v1707_v10  ;;  %v1478_v10 = vld [vmem:[%s2106_s5] ss:$0 sm:$0xff] }
  0x3d   : > { %1570 = vmatpush3.bf16.msra.mxu1 %v1709_v11  ;;  %1549 = vmatprep.subr.bf16.mxu0 %v1710_v12 }
  0x3e   : > { %1571 = vmatprep.subr.bf16.mxu1 %v1712_v13 }
  0x40   : > { %1550 = vmatpush3.bf16.msra.mxu0 %v1711_v15 }
  0x41   : > { %1572 = vmatpush3.bf16.msra.mxu1 %v1713_v16  ;;  %1551 = vmatprep.subr.bf16.mxu0 %v1714_v17  ;;  %v1487_v17 = vld [vmem:[%s2105_s4] ss:$0 sm:$0xff] }
  0x42   : > { %1573 = vmatprep.subr.bf16.mxu1 %v1716_v20 }
  0x44   : > { %1552 = vmatpush3.bf16.msra.mxu0 %v1715_v23 }
  0x45   : > { %1574 = vmatpush3.bf16.msra.mxu1 %v1718_v24  ;;  %1599 = vmatprep.subr.bf16.mxu0 %v1756_v3 }
  0x46   : > { %1619 = vmatprep.subr.bf16.mxu1 %v1756_v3 }
  0x47   : > { %1104 = vmatmul.mubr.bf16.vlgmr.msra.gmra.mrb[4].mxu0 %v410_v26 }
  0x48   : > { %1144 = vmatmul.mubr.bf16.vlgmr.msra.gmra.mrb[4].mxu1 %v412_v27  ;;  %1600 = vmatpush3.bf16.msra.mxu0 %v1721_v28 }
  0x49   : > { %1615 = vmatprep.mubr.msk.bf16.mxu0 %vm1758_vm0, %v1756_v3  ;;  %1601 = vmatprep.subr.bf16.mxu0 %v1756_v3 }
  0x4a   : > { %1635 = vmatprep.mubr.msk.bf16.mxu1 %vm1758_vm0, %v1756_v3  ;;  %1620 = vmatpush3.bf16.msra.mxu1 %v1731_v38 }
  0x4b   : > { %1621 = vmatprep.subr.bf16.mxu1 %v1756_v3 }
  0x4c   : > { %1602 = vmatpush3.bf16.msra.mxu0 %v1723_v29 }
  0x4d   : > { %1603 = vmatprep.subr.bf16.mxu0 %v1756_v3 }
  0x4e   : > { %1622 = vmatpush3.bf16.msra.mxu1 %v1732_v39 }
  0x4f   : > { %1623 = vmatprep.subr.bf16.mxu1 %v1756_v3 }
  0x50   : > { %1604 = vmatpush3.bf16.msra.mxu0 %v1724_v30 }
  0x51   : > { %1605 = vmatprep.subr.bf16.mxu0 %v1756_v3 }
  0x52   : > { %1624 = vmatpush3.bf16.msra.mxu1 %v1733_v40 }
  0x53   : > { %1625 = vmatprep.subr.bf16.mxu1 %v1756_v3 }
  0x54   : > { %1606 = vmatpush3.bf16.msra.mxu0 %v1725_v31 }
  0x55   : > { %1607 = vmatprep.subr.bf16.mxu0 %v1756_v3 }
  0x56   : > { %1626 = vmatpush3.bf16.msra.mxu1 %v1734_v41 }
  0x57   : > { %1627 = vmatprep.subr.bf16.mxu1 %v1756_v3 }
  0x58   : > { %1608 = vmatpush3.bf16.msra.mxu0 %v1726_v32 }
  0x59   : > { %1609 = vmatprep.subr.bf16.mxu0 %v1756_v3 }
  0x5a   : > { %1628 = vmatpush3.bf16.msra.mxu1 %v1735_v42 }
  0x5b   : > { %1629 = vmatprep.subr.bf16.mxu1 %v1756_v3 }
  0x5c   : > { %1610 = vmatpush3.bf16.msra.mxu0 %v1727_v33 }
  0x5d   : > { %1611 = vmatprep.subr.bf16.mxu0 %v1756_v3 }
  0x5e   : > { %1630 = vmatpush3.bf16.msra.mxu1 %v1736_v43 }
  0x5f   : > { %1631 = vmatprep.subr.bf16.mxu1 %v1756_v3 }
  0x60   : > { %1612 = vmatpush3.bf16.msra.mxu0 %v1728_v35 }
  0x61   : > { %1613 = vmatprep.subr.bf16.mxu0 %v1756_v3 }
  0x62   : > { %1632 = vmatpush3.bf16.msra.mxu1 %v1737_v45 }
  0x63   : > { %1633 = vmatprep.subr.bf16.mxu1 %v1756_v3 }
  0x64   : > { %1614 = vmatpush3.bf16.msra.mxu0 %v1729_v36 }
  0x66   : > { %1634 = vmatpush3.bf16.msra.mxu1 %v1738_v46 }
  0x67   : > { %1616 = vmatmul.mubr.bf16.vlgmr.msra.gmra.mrb[8].mxu0 %v414_v37 }
  0xfa   : > { %v1509_v47 = vpop.f32.mrb[0].mxu0 }
  0xfb   : > { %v1531_v48 = vpop.f32.mrb[0].mxu1  ;;  %v1510_v49 = vpop.f32.mrb[1].mxu0 }
  0xfc   : > { %v1532_v50 = vpop.f32.mrb[1].mxu1  ;;  %v1511_v51 = vadd.f32 %v1510_v49, %v1509_v47  ;;  %v1512_v53 = vpop.f32.mrb[2].mxu0 }
  0xfd   : > { %v1533_v52 = vadd.f32 %v1532_v50, %v1531_v48  ;;  %v1534_v54 = vpop.f32.mrb[2].mxu1  ;;  %v1513_v55 = vpop.f32.mrb[3].mxu0 }
  0xfe   : > { %v1535_v56 = vpop.f32.mrb[3].mxu1 }
  0xff   : > { %v1066_v57 = vadd.f32 %v1533_v52, %v1511_v51 }
 0x11a   : > { %v1553_v58 = vpop.f32.mrb[4].mxu0 }
 0x11b   : > { %v1575_v59 = vpop.f32.mrb[4].mxu1  ;;  %v1554_v60 = vpop.f32.mrb[5].mxu0 }
 0x11c   : > { %v1576_v3 = vpop.f32.mrb[5].mxu1  ;;  %v1555_v61 = vadd.f32 %v1554_v60, %v1553_v58  ;;  %v1556_v62 = vpop.f32.mrb[6].mxu0 }
 0x11d   : > { %v1577_v63 = vadd.f32 %v1576_v3, %v1575_v59  ;;  %v1578_v0 = vpop.f32.mrb[6].mxu1  ;;  %v1557_v1 = vpop.f32.mrb[7].mxu0 }
 0x11e   : > { %v1579_v2 = vpop.f32.mrb[7].mxu1  ;;  %v1106_v4 = vadd.f32 %v1555_v61, %v1066_v57 }
 0x120   : > { %v1146_v5 = vadd.f32 %v1577_v63, %v1106_v4 }
 0x13a   : > { %v1185_v6 = vpop.f32.mrb[8].mxu0 }
 0x13b   : > { %v1186_v8 = vadd.f32 %v1185_v6, %v1146_v5  ;;  %v1617_v9 = vpop.f32.mrb[9].mxu0 }
 0x13c   : > { %v1188_v11 = vpop.f32.mrb[10].mxu0 }
 0x13d   : > { %v1198_v12 = vmul.f32 %v1477_v7, %v1186_v8  ;;  %v1618_v13 = vpop.f32.mrb[11].mxu0 }
 0x13f   : > { %v1206_v14 = vadd.f32 %v1478_v10, %v1198_v12 }
 0x141   : > { %v1207_v15 = vmax.f32 %v1206_v14, 0.0 }
 0x143   : > { %v1208_v16 = vpack.c.bf16 %v1207_v15, %v1207_v15 }
 0x145   : > { %1636 = vmatmul.mubr.bf16.vlgmr.msra.gmra.mrb[8].mxu1 %v1208_v16 }
 0x218   : > { %v1307_v18 = vpop.f32.mrb[8].mxu1 }
 0x219   : > { %v1320_v20 = vmul.f32 %v1487_v17, %v1307_v18  ;;  %v1637_v21 = vpop.f32.mrb[9].mxu1 }
 0x21a   : > { %v1310_v22 = vpop.f32.mrb[10].mxu1 }
 0x21b   : > { %v1328_v23 = vadd.f32 %v1488_v19, %v1320_v20  ;;  %v1638_v24 = vpop.f32.mrb[11].mxu1 }
 0x21d   : > { %v1336_v25 = vrot.slane %v1328_v23, %v1923_v44  ;;  %1489 = vst.sshfl [vmem:[%s275_s10] sm:$0x3 pattern:$0x76325410] %v1328_v23 }
 0x21f   : > { %v1337_v26 = vcombine.high %v1336_v25, %v1336_v25 }
 0x221   : > { %1341 = vst [vmem:[%s275_s10 + $0x2] sm:$0x3] %v1337_v26 }
 0x222 PF: > { %s17_s24 = sadd.s32 1, %s1754_s24  }
 0x223   : > { %p14_p4 = scmp.ge.s32.totalorder %s17_s24, 4  }
 0x225   :  { %16 = sbr.rel (!%p14_p4) target bundleno = 1 (0x1), region = 80 }

// kernel: _lambda_.19
= control target key start
LH: loop header
LB: loop body
LE: loop exit
PB: predicated region body
PF: predicated region fallthrough
CT: control target
= control target key end

     0   :  { %s1808_s24 = smov 0   ;;  %s2109_s0 = inlined_call_operand.vmem [shape: bf16[2,4,4,128], index: 0, kind: input, shape index: {}]   ;;  %s2110_s1 = inlined_call_operand.vmem [shape: bf16[1152,128], index: 1, kind: input, shape index: {}]   ;;  %s2111_s2 = inlined_call_operand.vmem [shape: bf16[128,128], index: 2, kind: input, shape index: {}]   ;;  %s2112_s3 = inlined_call_operand.vmem [shape: f32[1,128], index: 3, kind: input, shape index: {}]   ;;  %s2113_s4 = inlined_call_operand.vmem [shape: f32[1,128], index: 4, kind: input, shape index: {}]   ;;  %s2114_s5 = inlined_call_operand.vmem [shape: f32[1,128], index: 5, kind: input, shape index: {}]   ;;  %s2115_s6 = inlined_call_operand.vmem [shape: f32[1,128], index: 6, kind: input, shape index: {}]   ;;  %s2116_s7 = inlined_call_operand.vmem [shape: f32[2,4,4,128], index: 7, kind: output, shape index: {}]  }
   0x1 LB: > { %s1407_s25 = sadd.s32 4294967295, %s1764_s24   ;;  %p1411_p0 = scmp.ge.s32.totalorder %s1764_s24, 1  ;;  %s1764_s24 = sphi %s1808_s24, %s17_s24  }
   0x2   : > { %p237_p1 = scmp.lt.s32.totalorder %s1764_s24, 3 }
   0x4   : > { %p238_p2 = pnand %p1411_p0, %p237_p1 }
   0x5   : > { %v1660_v0 = vld [vmem:[%s2110_s1 + $0x40] sm:$0xff] (!%p238_p2)   ;;  %v1766_v3 = vmov (!%p238_p2), 0.0   ;;  %v1664_v5 = vld [vmem:[%s2110_s1 + $0x48] sm:$0xff] (!%p238_p2)   ;;  %v1668_v9 = vld [vmem:[%s2110_s1 + $0x50] sm:$0xff] (!%p238_p2)   ;;  %p269_p3 = scmp.lt.s32.totalorder (!%p238_p2), %s1407_s25, 1  ;;  %vm1767_vm0 = vmmov (!%p238_p2), 0  }
   0x6   : > { %241 = sbr.rel (%p238_p2) target bundleno = 548 (0x224), region = 48  ;;  %v1661_v1 = vld [vmem:[%s2110_s1 + $0xc0] sm:$0xff] (!%p238_p2)   ;;  %1504 = vmatprep.subr.bf16.mxu0 (!%p238_p2), %v1660_v0  ;;  %288 = vst [vmem:[#allocation2] sm:$0x3f] (!%p238_p2), %v1766_v3  ;;  %289 = vst [vmem:[#allocation2 + $0x8] sm:$0x3f] (!%p238_p2), %v1766_v3 }
   0x7   : > { %v1662_v2 = vld [vmem:[%s2110_s1] sm:$0xff] (!%p238_p2)   ;;  %290 = vst [vmem:[#allocation2 + $0x10] sm:$0x3f] (!%p238_p2), %v1766_v3  ;;  %291 = vst [vmem:[#allocation2 + $0x18] sm:$0x3f] (!%p238_p2), %v1766_v3  ;;  %1526 = vmatprep.subr.bf16.mxu1 (!%p238_p2), %v1661_v1  ;;  %v1665_v6 = vld [vmem:[%s2110_s1 + $0xc8] sm:$0xff] (!%p238_p2)  }
   0x8   : > { %292 = vst [vmem:[#allocation2 + $0x20] sm:$0x3f] (!%p238_p2), %v1766_v3  ;;  %293 = vst [vmem:[#allocation2 + $0x28] sm:$0x3f] (!%p238_p2), %v1766_v3  ;;  %v1663_v4 = vld [vmem:[%s2110_s1 + $0x80] sm:$0xff] (!%p238_p2)   ;;  %1505 = vmatpush3.bf16.msra.mxu0 (!%p238_p2), %v1662_v2  ;;  %v1666_v7 = vld [vmem:[%s2110_s1 + $0x8] sm:$0xff] (!%p238_p2)  }
   0x9   : > { %1527 = vmatpush3.bf16.msra.mxu1 (!%p238_p2), %v1663_v4  ;;  %1506 = vmatprep.subr.bf16.mxu0 (!%p238_p2), %v1664_v5  ;;  %v1667_v8 = vld [vmem:[%s2110_s1 + $0x88] sm:$0xff] (!%p238_p2)   ;;  %v1669_v10 = vld [vmem:[%s2110_s1 + $0xd0] sm:$0xff] (!%p238_p2)   ;;  %v1672_v13 = vld [vmem:[%s2110_s1 + $0x58] sm:$0xff] (!%p238_p2)  }
   0xa   : > { %1528 = vmatprep.subr.bf16.mxu1 (!%p238_p2), %v1665_v6  ;;  %v1670_v11 = vld [vmem:[%s2110_s1 + $0x10] sm:$0xff] (!%p238_p2)   ;;  %v1673_v14 = vld [vmem:[%s2110_s1 + $0xd8] sm:$0xff] (!%p238_p2)   ;;  %v1676_v17 = vld [vmem:[%s2110_s1 + $0x60] sm:$0xff] (!%p238_p2)  }
   0xb   : > { %v1671_v12 = vld [vmem:[%s2110_s1 + $0x90] sm:$0xff] (!%p238_p2)   ;;  %v1674_v15 = vld [vmem:[%s2110_s1 + $0x18] sm:$0xff] (!%p238_p2)   ;;  %v1677_v18 = vld [vmem:[%s2110_s1 + $0xe0] sm:$0xff] (!%p238_p2)  }
   0xc   : > { %1507 = vmatpush3.bf16.msra.mxu0 (!%p238_p2), %v1666_v7  ;;  %v1675_v16 = vld [vmem:[%s2110_s1 + $0x98] sm:$0xff] (!%p238_p2)   ;;  %v1678_v19 = vld [vmem:[%s2110_s1 + $0x20] sm:$0xff] (!%p238_p2)   ;;  %v1680_v21 = vld [vmem:[%s2110_s1 + $0x68] sm:$0xff] (!%p238_p2)  }
   0xd   : > { %1529 = vmatpush3.bf16.msra.mxu1 %v1667_v8  ;;  %1508 = vmatprep.subr.bf16.mxu0 %v1668_v9  ;;  %v1679_v20 = vld [vmem:[%s2110_s1 + $0xa0] sm:$0xff]   ;;  %v1681_v22 = vld [vmem:[%s2110_s1 + $0xe8] sm:$0xff]   ;;  %s2118_s25 = smov (!%p269_p3, %s1407_s25), 1  ;;  %v1684_v25 = vld [vmem:[%s2110_s1 + $0x70] sm:$0xff]  }
   0xe   : > { %1530 = vmatprep.subr.bf16.mxu1 %v1669_v10  ;;  %v1682_v23 = vld [vmem:[%s2110_s1 + $0x28] sm:$0xff]   ;;  %v1685_v26 = vld [vmem:[%s2110_s1 + $0xf0] sm:$0xff]   ;;  %s1502_s15 = sshll.u32 %s2118_s25, 3  ;;  %v1688_v29 = vld [vmem:[%s2110_s1 + $0x78] sm:$0xff]   ;;  %s1503_s28 = sshll.u32 %s2118_s25, 4 }
   0xf   : > { %v1683_v24 = vld [vmem:[%s2110_s1 + $0xa8] sm:$0xff]   ;;  %v1686_v27 = vld [vmem:[%s2110_s1 + $0x30] sm:$0xff]   ;;  %v1689_v30 = vld [vmem:[%s2110_s1 + $0xf8] sm:$0xff]   ;;  %s273_s26 = scalar_lea.vmem %s2109_s0, %s1502_s15  ;;  %s278_s10 = scalar_lea.vmem %s2116_s7, %s1503_s28 }
  0x10   : > { %1509 = vmatpush3.bf16.msra.mxu0 %v1670_v11  ;;  %v1687_v28 = vld [vmem:[%s2110_s1 + $0xb0] sm:$0xff]   ;;  %v1690_v31 = vld [vmem:[%s2110_s1 + $0x38] sm:$0xff]   ;;  %v280_v33 = vld [vmem:[%s273_s26] sm:$0xff]  }
  0x11   : > { %1531 = vmatpush3.bf16.msra.mxu1 %v1671_v12  ;;  %1510 = vmatprep.subr.bf16.mxu0 %v1672_v13  ;;  %v1691_v32 = vld [vmem:[%s2110_s1 + $0xb8] sm:$0xff]   ;;  %v284_v34 = vunpack.c.l.bf16 %v280_v33  ;;  %v286_v35 = vunpack.c.h.bf16 %v280_v33  ;;  %v1700_v36 = vld [vmem:[%s2110_s1 + $0x140] sm:$0xff]   ;;  %v1704_v51 = vld [vmem:[%s2110_s1 + $0x148] sm:$0xff]  }
  0x12   : > { %1532 = vmatprep.subr.bf16.mxu1 %v1673_v14  ;;  %v1702_v37 = vld [vmem:[%s2110_s1 + $0x1c0] sm:$0xff]   ;;  %v1706_v53 = vld [vmem:[%s2110_s1 + $0x1c8] sm:$0xff]   ;;  %v1708_v56 = vld [vmem:[%s2110_s1 + $0x150] sm:$0xff]  }
  0x13   : > { %295 = vst [vmem:[#allocation2 + $0x9] ss:$8 sps:$4 sm:$0xff] %v284_v34   ;;  %297 = vst [vmem:[#allocation2 + $0x19] sm:$0xf] %v286_v35  ;;  %v1701_v44 = vld [vmem:[%s2110_s1 + $0x100] sm:$0xff]   ;;  %v1705_v54 = vld [vmem:[%s2110_s1 + $0x108] sm:$0xff]  }
  0x14   : > { %1511 = vmatpush3.bf16.msra.mxu0 %v1674_v15  ;;  %298 = vst [vmem:[#allocation2 + $0x1d] sm:$0xf0] %v286_v35  ;;  %v1703_v47 = vld [vmem:[%s2110_s1 + $0x180] sm:$0xff]   ;;  %v1707_v55 = vld [vmem:[%s2110_s1 + $0x188] sm:$0xff]   ;;  %v1710_v57 = vld [vmem:[%s2110_s1 + $0x1d0] sm:$0xff]  }
  0x15   : > { %1533 = vmatpush3.bf16.msra.mxu1 %v1675_v16  ;;  %1512 = vmatprep.subr.bf16.mxu0 %v1676_v17  ;;  %v1709_v58 = vld [vmem:[%s2110_s1 + $0x110] sm:$0xff]   ;;  %v1712_v60 = vld [vmem:[%s2110_s1 + $0x158] sm:$0xff]   ;;  %v1716_v0 = vld [vmem:[%s2110_s1 + $0x160] sm:$0xff]  }
  0x16   : > { %1534 = vmatprep.subr.bf16.mxu1 %v1677_v18  ;;  %v1711_v59 = vld [vmem:[%s2110_s1 + $0x190] sm:$0xff]   ;;  %v1714_v61 = vld [vmem:[%s2110_s1 + $0x1d8] sm:$0xff]   ;;  %v1718_v1 = vld [vmem:[%s2110_s1 + $0x1e0] sm:$0xff]  }
  0x17   : > { %v1713_v62 = vld [vmem:[%s2110_s1 + $0x118] sm:$0xff]   ;;  %v1717_v2 = vld [vmem:[%s2110_s1 + $0x120] sm:$0xff]   ;;  %v1720_v5 = vld [vmem:[%s2110_s1 + $0x168] sm:$0xff]  }
  0x18   : > { %1513 = vmatpush3.bf16.msra.mxu0 %v1678_v19  ;;  %v1715_v63 = vld [vmem:[%s2110_s1 + $0x198] sm:$0xff]   ;;  %v1719_v4 = vld [vmem:[%s2110_s1 + $0x1a0] sm:$0xff]   ;;  %v1722_v6 = vld [vmem:[%s2110_s1 + $0x1e8] sm:$0xff]  }
  0x19   : > { %1535 = vmatpush3.bf16.msra.mxu1 %v1679_v20  ;;  %1514 = vmatprep.subr.bf16.mxu0 %v1680_v21  ;;  %v1721_v7 = vld [vmem:[%s2110_s1 + $0x128] sm:$0xff]   ;;  %v1724_v9 = vld [vmem:[%s2110_s1 + $0x170] sm:$0xff]   ;;  %v1728_v13 = vld [vmem:[%s2110_s1 + $0x178] sm:$0xff]  }
  0x1a   : > { %1536 = vmatprep.subr.bf16.mxu1 %v1681_v22  ;;  %v1692_v38 = vld [vmem:[#allocation2 + $0x1] ss:$8 sps:$4 sm:$0xff]   ;;  %v1693_v39 = vld [vmem:[#allocation2 + $0x11] ss:$8 sps:$4 sm:$0xff]  }
  0x1b   : > { %v409_v40 = vpack.c.bf16 %v1693_v39, %v1692_v38  ;;  %v1694_v41 = vld [vmem:[#allocation2 + $0x8] ss:$8 sps:$4 sm:$0xff]   ;;  %v1695_v42 = vld [vmem:[#allocation2 + $0x18] ss:$8 sps:$4 sm:$0xff]  }
  0x1c   : > { %1515 = vmatpush3.bf16.msra.mxu0 %v1682_v23  ;;  %v1696_v43 = vld [vmem:[#allocation2] ss:$8 sps:$4 sm:$0xff]   ;;  %v411_v45 = vpack.c.bf16 %v1695_v42, %v1694_v41  ;;  %v1697_v46 = vld [vmem:[#allocation2 + $0x10] ss:$8 sps:$4 sm:$0xff]  }
  0x1d   : > { %1537 = vmatpush3.bf16.msra.mxu1 %v1683_v24  ;;  %1516 = vmatprep.subr.bf16.mxu0 %v1684_v25  ;;  %v1698_v48 = vld [vmem:[#allocation2 + $0x2] ss:$8 sps:$4 sm:$0xff]   ;;  %v1699_v49 = vld [vmem:[#allocation2 + $0x12] ss:$8 sps:$4 sm:$0xff]   ;;  %v408_v50 = vpack.c.bf16 %v1697_v46, %v1696_v43 }
  0x1e   : > { %1538 = vmatprep.subr.bf16.mxu1 %v1685_v26  ;;  %1025 = vmatprep.mubr.bf16.mxu0 %v409_v40  ;;  %v410_v52 = vpack.c.bf16 %v1699_v49, %v1698_v48  ;;  %v1723_v8 = vld [vmem:[%s2110_s1 + $0x1a8] sm:$0xff]   ;;  %v1725_v10 = vld [vmem:[%s2110_s1 + $0x130] sm:$0xff]   ;;  %v1732_v15 = vld [vmem:[#allocation2 + $0x1a] ss:$8 sps:$4 sm:$0xff]  }
  0x1f   : > { %1066 = vmatprep.mubr.bf16.mxu1 %v411_v45  ;;  %v1726_v11 = vld [vmem:[%s2110_s1 + $0x1f0] sm:$0xff]   ;;  %v1729_v16 = vld [vmem:[%s2110_s1 + $0x138] sm:$0xff]   ;;  %v1737_v23 = vld [vmem:[#allocation2 + $0x21] ss:$8 sps:$4 sm:$0xff]  }
  0x20   : > { %1517 = vmatpush3.bf16.msra.mxu0 %v1686_v27  ;;  %v1727_v12 = vld [vmem:[%s2110_s1 + $0x1b0] sm:$0xff]   ;;  %v1730_v17 = vld [vmem:[%s2110_s1 + $0x1f8] sm:$0xff]   ;;  %v1738_v25 = vld [vmem:[%s2110_s1 + $0x200] sm:$0xff]  }
  0x21   : > { %1539 = vmatpush3.bf16.msra.mxu1 %v1687_v28  ;;  %1518 = vmatprep.subr.bf16.mxu0 %v1688_v29  ;;  %v1731_v14 = vld [vmem:[#allocation2 + $0xa] ss:$8 sps:$4 sm:$0xff]   ;;  %v1733_v19 = vld [vmem:[%s2110_s1 + $0x1b8] sm:$0xff]   ;;  %v1744_v33 = vld [vmem:[%s2110_s1 + $0x220] sm:$0xff]  }
  0x22   : > { %1540 = vmatprep.subr.bf16.mxu1 %v1689_v30  ;;  %v413_v18 = vpack.c.bf16 %v1732_v15, %v1731_v14  ;;  %v1734_v20 = vld [vmem:[#allocation2 + $0x9] ss:$8 sps:$4 sm:$0xff]   ;;  %v1735_v21 = vld [vmem:[#allocation2 + $0x19] ss:$8 sps:$4 sm:$0xff]   ;;  %v1488_v15 = vld [vmem:[%s2112_s3] ss:$0 sm:$0xff] }
  0x23   : > { %v1736_v22 = vld [vmem:[#allocation2 + $0x11] ss:$8 sps:$4 sm:$0xff]   ;;  %v412_v24 = vpack.c.bf16 %v1735_v21, %v1734_v20  ;;  %v1740_v28 = vld [vmem:[#allocation2 + $0x20] ss:$8 sps:$4 sm:$0xff]  }
  0x24   : > { %1519 = vmatpush3.bf16.msra.mxu0 %v1690_v31  ;;  %v415_v26 = vpack.c.bf16 %v1737_v23, %v1736_v22  ;;  %v1739_v27 = vld [vmem:[#allocation2 + $0x10] ss:$8 sps:$4 sm:$0xff]   ;;  %v1741_v30 = vld [vmem:[%s2110_s1 + $0x208] sm:$0xff]   ;;  %v1750_v40 = vld [vmem:[%s2111_s2] sm:$0xff]  }
  0x25   : > { %1541 = vmatpush3.bf16.msra.mxu1 %v1691_v32  ;;  %1548 = vmatprep.subr.bf16.mxu0 %v1700_v36  ;;  %v414_v29 = vpack.c.bf16 %v1740_v28, %v1739_v27  ;;  %v1742_v31 = vld [vmem:[%s2110_s1 + $0x210] sm:$0xff]   ;;  %v1743_v32 = vld [vmem:[%s2110_s1 + $0x218] sm:$0xff]   ;;  %v1745_v34 = vld [vmem:[%s2110_s1 + $0x228] sm:$0xff]  }
  0x26   : > { %1570 = vmatprep.subr.bf16.mxu1 %v1702_v37  ;;  %v1746_v35 = vld [vmem:[%s2110_s1 + $0x230] sm:$0xff]   ;;  %v1749_v37 = vld [vmem:[#allocation2 + $0x22] ss:$8 sps:$4 sm:$0xff]   ;;  %v1747_v38 = vld [vmem:[%s2110_s1 + $0x238] sm:$0xff]  }
  0x27   : > { %1026 = vmatmul.mubr.bf16.vlgmr.msra.gmra.mrb[0].mxu0 %v408_v50  ;;  %v1748_v36 = vld [vmem:[#allocation2 + $0x12] ss:$8 sps:$4 sm:$0xff]   ;;  %v1751_v41 = vld [vmem:[%s2111_s2 + $0x8] sm:$0xff]  }
  0x28   : > { %1067 = vmatmul.mubr.bf16.vlgmr.msra.gmra.mrb[0].mxu1 %v410_v52  ;;  %1549 = vmatpush3.bf16.msra.mxu0 %v1701_v44  ;;  %v416_v39 = vpack.c.bf16 %v1749_v37, %v1748_v36  ;;  %v1752_v42 = vld [vmem:[%s2111_s2 + $0x10] sm:$0xff]   ;;  %v1753_v43 = vld [vmem:[%s2111_s2 + $0x18] sm:$0xff]   ;;  %v1754_v44 = vld [vmem:[%s2111_s2 + $0x20] sm:$0xff]  }
  0x29   : > { %1571 = vmatpush3.bf16.msra.mxu1 %v1703_v47  ;;  %1550 = vmatprep.subr.bf16.mxu0 %v1704_v51  ;;  %v1755_v45 = vld [vmem:[%s2111_s2 + $0x28] sm:$0xff]   ;;  %v1756_v46 = vld [vmem:[%s2111_s2 + $0x30] sm:$0xff]   ;;  %v1757_v47 = vld [vmem:[%s2111_s2 + $0x38] sm:$0xff]  }
  0x2a   : > { %1572 = vmatprep.subr.bf16.mxu1 %v1706_v53  ;;  %1107 = vmatprep.mubr.bf16.mxu0 %v413_v18  ;;  %v1489_v18 = vld [vmem:[%s2114_s5] ss:$0 sm:$0xff] }
  0x2b   : > { %1148 = vmatprep.mubr.bf16.mxu1 %v415_v26 }
  0x2c   : > { %1551 = vmatpush3.bf16.msra.mxu0 %v1705_v54 }
  0x2d   : > { %1573 = vmatpush3.bf16.msra.mxu1 %v1707_v55  ;;  %1552 = vmatprep.subr.bf16.mxu0 %v1708_v56 }
  0x2e   : > { %1574 = vmatprep.subr.bf16.mxu1 %v1710_v57 }
  0x30   : > { %1553 = vmatpush3.bf16.msra.mxu0 %v1709_v58 }
  0x31   : > { %1575 = vmatpush3.bf16.msra.mxu1 %v1711_v59  ;;  %1554 = vmatprep.subr.bf16.mxu0 %v1712_v60 }
  0x32   : > { %1576 = vmatprep.subr.bf16.mxu1 %v1714_v61 }
  0x34   : > { %1555 = vmatpush3.bf16.msra.mxu0 %v1713_v62 }
  0x35   : > { %1577 = vmatpush3.bf16.msra.mxu1 %v1715_v63  ;;  %1556 = vmatprep.subr.bf16.mxu0 %v1716_v0 }
  0x36   : > { %1578 = vmatprep.subr.bf16.mxu1 %v1718_v1 }
  0x38   : > { %1557 = vmatpush3.bf16.msra.mxu0 %v1717_v2 }
  0x39   : > { %1579 = vmatpush3.bf16.msra.mxu1 %v1719_v4  ;;  %1558 = vmatprep.subr.bf16.mxu0 %v1720_v5 }
  0x3a   : > { %1580 = vmatprep.subr.bf16.mxu1 %v1722_v6 }
  0x3c   : > { %1559 = vmatpush3.bf16.msra.mxu0 %v1721_v7 }
  0x3d   : > { %1581 = vmatpush3.bf16.msra.mxu1 %v1723_v8  ;;  %1560 = vmatprep.subr.bf16.mxu0 %v1724_v9 }
  0x3e   : > { %1582 = vmatprep.subr.bf16.mxu1 %v1726_v11 }
  0x40   : > { %1561 = vmatpush3.bf16.msra.mxu0 %v1725_v10 }
  0x41   : > { %1583 = vmatpush3.bf16.msra.mxu1 %v1727_v12  ;;  %1562 = vmatprep.subr.bf16.mxu0 %v1728_v13 }
  0x42   : > { %1584 = vmatprep.subr.bf16.mxu1 %v1730_v17 }
  0x44   : > { %1563 = vmatpush3.bf16.msra.mxu0 %v1729_v16 }
  0x45   : > { %1585 = vmatpush3.bf16.msra.mxu1 %v1733_v19  ;;  %1610 = vmatprep.subr.bf16.mxu0 %v1766_v3 }
  0x46   : > { %1630 = vmatprep.subr.bf16.mxu1 %v1766_v3 }
  0x47   : > { %1108 = vmatmul.mubr.bf16.vlgmr.msra.gmra.mrb[4].mxu0 %v412_v24 }
  0x48   : > { %1611 = vmatpush3.bf16.msra.mxu0 %v1738_v25  ;;  %1626 = vmatprep.mubr.msk.bf16.mxu0 %vm1767_vm0, %v1766_v3 }
  0x49   : > { %1149 = vmatmul.mubr.bf16.vlgmr.msra.gmra.mrb[4].mxu1 %v414_v29  ;;  %1612 = vmatprep.subr.bf16.mxu0 %v1766_v3  ;;  %v1498_v29 = vld [vmem:[%s2113_s4] ss:$0 sm:$0xff] }
  0x4a   : > { %1646 = vmatprep.mubr.msk.bf16.mxu1 %vm1767_vm0, %v1766_v3  ;;  %1631 = vmatpush3.bf16.msra.mxu1 %v1750_v40 }
  0x4b   : > { %1632 = vmatprep.subr.bf16.mxu1 %v1766_v3 }
  0x4c   : > { %1613 = vmatpush3.bf16.msra.mxu0 %v1741_v30 }
  0x4d   : > { %1614 = vmatprep.subr.bf16.mxu0 %v1766_v3 }
  0x4e   : > { %1633 = vmatpush3.bf16.msra.mxu1 %v1751_v41 }
  0x4f   : > { %1634 = vmatprep.subr.bf16.mxu1 %v1766_v3 }
  0x50   : > { %1615 = vmatpush3.bf16.msra.mxu0 %v1742_v31  ;;  %v1499_v31 = vld [vmem:[%s2115_s6] ss:$0 sm:$0xff] }
  0x51   : > { %1616 = vmatprep.subr.bf16.mxu0 %v1766_v3 }
  0x52   : > { %1635 = vmatpush3.bf16.msra.mxu1 %v1752_v42 }
  0x53   : > { %1636 = vmatprep.subr.bf16.mxu1 %v1766_v3 }
  0x54   : > { %1617 = vmatpush3.bf16.msra.mxu0 %v1743_v32 }
  0x55   : > { %1618 = vmatprep.subr.bf16.mxu0 %v1766_v3 }
  0x56   : > { %1637 = vmatpush3.bf16.msra.mxu1 %v1753_v43 }
  0x57   : > { %1638 = vmatprep.subr.bf16.mxu1 %v1766_v3 }
  0x58   : > { %1619 = vmatpush3.bf16.msra.mxu0 %v1744_v33 }
  0x59   : > { %1620 = vmatprep.subr.bf16.mxu0 %v1766_v3 }
  0x5a   : > { %1639 = vmatpush3.bf16.msra.mxu1 %v1754_v44 }
  0x5b   : > { %1640 = vmatprep.subr.bf16.mxu1 %v1766_v3 }
  0x5c   : > { %1621 = vmatpush3.bf16.msra.mxu0 %v1745_v34 }
  0x5d   : > { %1622 = vmatprep.subr.bf16.mxu0 %v1766_v3 }
  0x5e   : > { %1641 = vmatpush3.bf16.msra.mxu1 %v1755_v45 }
  0x5f   : > { %1642 = vmatprep.subr.bf16.mxu1 %v1766_v3 }
  0x60   : > { %1623 = vmatpush3.bf16.msra.mxu0 %v1746_v35 }
  0x61   : > { %1624 = vmatprep.subr.bf16.mxu0 %v1766_v3 }
  0x62   : > { %1643 = vmatpush3.bf16.msra.mxu1 %v1756_v46 }
  0x63   : > { %1644 = vmatprep.subr.bf16.mxu1 %v1766_v3 }
  0x64   : > { %1625 = vmatpush3.bf16.msra.mxu0 %v1747_v38 }
  0x66   : > { %1645 = vmatpush3.bf16.msra.mxu1 %v1757_v47 }
  0x67   : > { %1627 = vmatmul.mubr.bf16.vlgmr.msra.gmra.mrb[8].mxu0 %v416_v39 }
  0xfa   : > { %v1520_v48 = vpop.f32.mrb[0].mxu0 }
  0xfb   : > { %v1542_v49 = vpop.f32.mrb[0].mxu1  ;;  %v1521_v50 = vpop.f32.mrb[1].mxu0 }
  0xfc   : > { %v1522_v51 = vadd.f32 %v1521_v50, %v1520_v48  ;;  %v1543_v52 = vpop.f32.mrb[1].mxu1  ;;  %v1523_v53 = vpop.f32.mrb[2].mxu0 }
  0xfd   : > { %v1544_v54 = vadd.f32 %v1543_v52, %v1542_v49  ;;  %v1545_v55 = vpop.f32.mrb[2].mxu1  ;;  %v1524_v56 = vpop.f32.mrb[3].mxu0 }
  0xfe   : > { %v1525_v57 = vadd.f32 %v1524_v56, %v1523_v53  ;;  %v1546_v58 = vpop.f32.mrb[3].mxu1 }
  0xff   : > { %v1069_v59 = vadd.f32 %v1544_v54, %v1522_v51  ;;  %v1547_v60 = vadd.f32 %v1546_v58, %v1545_v55 }
 0x101   : > { %v1072_v61 = vadd.f32 %v1547_v60, %v1525_v57 }
 0x11a   : > { %v1564_v3 = vpop.f32.mrb[4].mxu0 }
 0x11b   : > { %v1565_v62 = vpop.f32.mrb[5].mxu0 }
 0x11c   : > { %v1566_v63 = vadd.f32 %v1565_v62, %v1564_v3  ;;  %v1567_v0 = vpop.f32.mrb[6].mxu0  ;;  %v1586_v1 = vpop.f32.mrb[4].mxu1 }
 0x11d   : > { %v1568_v2 = vpop.f32.mrb[7].mxu0  ;;  %v1587_v4 = vpop.f32.mrb[5].mxu1 }
 0x11e   : > { %v1110_v5 = vadd.f32 %v1566_v63, %v1069_v59  ;;  %v1569_v6 = vadd.f32 %v1568_v2, %v1567_v0  ;;  %v1588_v7 = vadd.f32 %v1587_v4, %v1586_v1  ;;  %v1589_v8 = vpop.f32.mrb[6].mxu1 }
 0x11f   : > { %v1590_v9 = vpop.f32.mrb[7].mxu1 }
 0x120   : > { %v1113_v10 = vadd.f32 %v1569_v6, %v1072_v61  ;;  %v1591_v11 = vadd.f32 %v1590_v9, %v1589_v8  ;;  %v1151_v12 = vadd.f32 %v1588_v7, %v1110_v5 }
 0x122   : > { %v1154_v13 = vadd.f32 %v1591_v11, %v1113_v10 }
 0x13a   : > { %v1191_v14 = vpop.f32.mrb[8].mxu0 }
 0x13b   : > { %v1192_v16 = vadd.f32 %v1191_v14, %v1151_v12  ;;  %v1628_v17 = vpop.f32.mrb[9].mxu0 }
 0x13c   : > { %v1194_v19 = vpop.f32.mrb[10].mxu0 }
 0x13d   : > { %v1205_v20 = vmul.f32 %v1488_v15, %v1192_v16  ;;  %v1195_v21 = vadd.f32 %v1194_v19, %v1154_v13  ;;  %v1629_v22 = vpop.f32.mrb[11].mxu0 }
 0x13f   : > { %v1214_v23 = vadd.f32 %v1489_v18, %v1205_v20  ;;  %v1206_v24 = vmul.f32 %v1488_v15, %v1195_v21 }
 0x141   : > { %v1215_v25 = vadd.f32 %v1489_v18, %v1206_v24  ;;  %v1216_v26 = vmax.f32 %v1214_v23, 0.0 }
 0x143   : > { %v1217_v27 = vmax.f32 %v1215_v25, 0.0 }
 0x145   : > { %v1218_v28 = vpack.c.bf16 %v1217_v27, %v1216_v26 }
 0x147   : > { %1647 = vmatmul.mubr.bf16.vlgmr.msra.gmra.mrb[8].mxu1 %v1218_v28 }
 0x21a   : > { %v1317_v30 = vpop.f32.mrb[8].mxu1 }
 0x21b   : > { %v1331_v32 = vmul.f32 %v1498_v29, %v1317_v30  ;;  %v1648_v33 = vpop.f32.mrb[9].mxu1 }
 0x21c   : > { %v1320_v34 = vpop.f32.mrb[10].mxu1 }
 0x21d   : > { %v1340_v35 = vadd.f32 %v1499_v31, %v1331_v32  ;;  %v1332_v36 = vmul.f32 %v1498_v29, %v1320_v34  ;;  %v1649_v37 = vpop.f32.mrb[11].mxu1 }
 0x21f   : > { %v1344_v38 = vcombine.high %v1340_v35, %v1340_v35  ;;  %1348 = vst [vmem:[%s278_s10] sm:$0xf] %v1340_v35  ;;  %v1341_v39 = vadd.f32 %v1499_v31, %v1332_v36 }
 0x221   : > { %1349 = vst [vmem:[%s278_s10 + $0x4] sm:$0xf] %v1344_v38  ;;  %v1345_v40 = vcombine.high %v1341_v39, %v1341_v39  ;;  %1350 = vst [vmem:[%s278_s10 + $0x8] sm:$0xf] %v1341_v39 }
 0x223   : > { %1351 = vst [vmem:[%s278_s10 + $0xc] sm:$0xf] %v1345_v40 }
 0x224 PF: > { %s17_s24 = sadd.s32 1, %s1764_s24  }
 0x225   : > { %p14_p4 = scmp.ge.s32.totalorder %s17_s24, 4  }
 0x227   :  { %16 = sbr.rel (!%p14_p4) target bundleno = 1 (0x1), region = 80 }

// kernel: _lambda_.18
= control target key start
LH: loop header
LB: loop body
LE: loop exit
PB: predicated region body
PF: predicated region fallthrough
CT: control target
= control target key end

     0   :  { %s5625_s13 = smov 0   ;;  %s6750_s0 = inlined_call_operand.vmem [shape: bf16[2,8,8,256], index: 0, kind: input, shape index: {}]   ;;  %s6751_s1 = inlined_call_operand.vmem [shape: bf16[2304,128], index: 1, kind: input, shape index: {}]   ;;  %s6752_s2 = inlined_call_operand.vmem [shape: bf16[1152,128], index: 2, kind: input, shape index: {}]   ;;  %s6753_s3 = inlined_call_operand.vmem [shape: bf16[128,128], index: 3, kind: input, shape index: {}]   ;;  %s6754_s4 = inlined_call_operand.vmem [shape: f32[1,128], index: 4, kind: input, shape index: {}, may-alias: {4,5}]   ;;  %s6755_s5 = inlined_call_operand.vmem [shape: f32[1,128], index: 5, kind: input, shape index: {}, may-alias: {4,5}]   ;;  %s6756_s6 = inlined_call_operand.vmem [shape: f32[1,128], index: 6, kind: input, shape index: {}]   ;;  %s6757_s7 = inlined_call_operand.vmem [shape: f32[1,128], index: 7, kind: input, shape index: {}, may-alias: {7,8}]   ;;  %s6758_s8 = inlined_call_operand.vmem [shape: f32[1,128], index: 8, kind: input, shape index: {}, may-alias: {7,8}]   ;;  %s6759_s9 = inlined_call_operand.vmem [shape: f32[1,128], index: 9, kind: input, shape index: {}]   ;;  %s6760_s10 = inlined_call_operand.vmem [shape: f32[2,8,8,128], index: 10, kind: output, shape index: {}]  }
   0x1 LB: > { %s4475_s14 = sadd.s32 4294967295, %s5567_s13   ;;  %p4479_p0 = scmp.ge.s32.totalorder %s5567_s13, 1  ;;  %s5567_s13 = sphi %s5625_s13, %s20_s13  }
   0x2   : > { %p312_p1 = scmp.lt.s32.totalorder %s5567_s13, 3 }
   0x4   : > { %p313_p2 = pnand %p4479_p0, %p312_p1 }
   0x5   : > { %v5335_v0 = vld [vmem:[%s6751_s1 + $0x40] sm:$0xff] (!%p313_p2)   ;;  %v5569_v3 = vmov (!%p313_p2), 0.0   ;;  %v5339_v5 = vld [vmem:[%s6751_s1 + $0x48] sm:$0xff] (!%p313_p2)   ;;  %v5343_v9 = vld [vmem:[%s6751_s1 + $0x50] sm:$0xff] (!%p313_p2)   ;;  %p350_p3 = scmp.lt.s32.totalorder (!%p313_p2), %s4475_s14, 1  ;;  %vm586_vm0 = vcmask (!%p313_p2), 1046528  }
   0x6   : > { %316 = sbr.rel (%p313_p2) target bundleno = 931 (0x3a3), region = 60  ;;  %v5639_v1 = vld [vmem:[%s6751_s1 + $0xc0] sm:$0xff] (!%p313_p2)   ;;  %4718 = vmatprep.subr.bf16.mxu0 (!%p313_p2), %v5335_v0  ;;  %386 = vst [vmem:[#allocation2 + $0x8] sm:$0xff] (!%p313_p2), %v5569_v3  ;;  %390 = vst [vmem:[#allocation2 + $0x28] sm:$0xff] (!%p313_p2), %v5569_v3  ;;  %v5340_v6 = vld [vmem:[%s6751_s1 + $0xc8] sm:$0xff] (!%p313_p2)   ;;  %vm715_vm1 = vcmask (!%p313_p2), 1045504  }
   0x7   : > { %v5644_v2 = vld [vmem:[%s6751_s1] sm:$0xff] (!%p313_p2)   ;;  %391 = vst [vmem:[#allocation2 + $0x30] sm:$0x3] (!%p313_p2), %v5569_v3  ;;  %392 = vst [vmem:[#allocation2 + $0x38] sm:$0x3] (!%p313_p2), %v5569_v3  ;;  %4758 = vmatprep.subr.bf16.mxu1 (!%p313_p2), %v5639_v1  ;;  %v5341_v7 = vld [vmem:[%s6751_s1 + $0x8] sm:$0xff] (!%p313_p2)  }
   0x8   : > { %385 = vst [vmem:[#allocation2] sm:$0xff] (!%p313_p2), %v5569_v3  ;;  %387 = vst [vmem:[#allocation2 + $0x10] sm:$0x3] (!%p313_p2), %v5569_v3  ;;  %v5338_v4 = vld [vmem:[%s6751_s1 + $0x80] sm:$0xff] (!%p313_p2)   ;;  %4719 = vmatpush3.bf16.msra.mxu0 (!%p313_p2), %v5644_v2  ;;  %v5342_v8 = vld [vmem:[%s6751_s1 + $0x88] sm:$0xff] (!%p313_p2)  }
   0x9   : > { %388 = vst [vmem:[#allocation2 + $0x18] sm:$0x3] (!%p313_p2), %v5569_v3  ;;  %389 = vst [vmem:[#allocation2 + $0x20] sm:$0xff] (!%p313_p2), %v5569_v3  ;;  %4759 = vmatpush3.bf16.msra.mxu1 (!%p313_p2), %v5338_v4  ;;  %4720 = vmatprep.subr.bf16.mxu0 (!%p313_p2), %v5339_v5  ;;  %v5344_v10 = vld [vmem:[%s6751_s1 + $0xd0] sm:$0xff] (!%p313_p2)   ;;  %v5347_v13 = vld [vmem:[%s6751_s1 + $0x58] sm:$0xff] (!%p313_p2)  }
   0xa   : > { %393 = vst [vmem:[#allocation2 + $0x40] sm:$0xff] (!%p313_p2), %v5569_v3  ;;  %394 = vst [vmem:[#allocation2 + $0x48] sm:$0xff] (!%p313_p2), %v5569_v3  ;;  %4760 = vmatprep.subr.bf16.mxu1 (!%p313_p2), %v5340_v6  ;;  %v5345_v11 = vld [vmem:[%s6751_s1 + $0x10] sm:$0xff] (!%p313_p2)   ;;  %v5348_v14 = vld [vmem:[%s6751_s1 + $0xd8] sm:$0xff] (!%p313_p2)  }
   0xb   : > { %395 = vst [vmem:[#allocation2 + $0x50] sm:$0x3] (!%p313_p2), %v5569_v3  ;;  %396 = vst [vmem:[#allocation2 + $0x58] sm:$0x3] (!%p313_p2), %v5569_v3  ;;  %v5346_v12 = vld [vmem:[%s6751_s1 + $0x90] sm:$0xff] (!%p313_p2)   ;;  %v5349_v15 = vld [vmem:[%s6751_s1 + $0x18] sm:$0xff] (!%p313_p2)  }
   0xc   : > { %397 = vst [vmem:[#allocation2 + $0x60] sm:$0xff] (!%p313_p2), %v5569_v3  ;;  %398 = vst [vmem:[#allocation2 + $0x68] sm:$0xff] (!%p313_p2), %v5569_v3  ;;  %4721 = vmatpush3.bf16.msra.mxu0 (!%p313_p2), %v5341_v7  ;;  %v5350_v16 = vld [vmem:[%s6751_s1 + $0x98] sm:$0xff] (!%p313_p2)   ;;  %v5351_v17 = vld [vmem:[%s6751_s1 + $0x60] sm:$0xff] (!%p313_p2)  }
   0xd   : > { %399 = vst [vmem:[#allocation2 + $0x70] sm:$0x3] %v5569_v3  ;;  %400 = vst [vmem:[#allocation2 + $0x78] sm:$0x3] %v5569_v3  ;;  %4761 = vmatpush3.bf16.msra.mxu1 %v5342_v8  ;;  %4722 = vmatprep.subr.bf16.mxu0 %v5343_v9  ;;  %v5352_v18 = vld [vmem:[%s6751_s1 + $0xe0] sm:$0xff]   ;;  %v5355_v21 = vld [vmem:[%s6751_s1 + $0x68] sm:$0xff]  }
   0xe   : > { %401 = vst [vmem:[#allocation2 + $0x80] sm:$0xff] %v5569_v3  ;;  %402 = vst [vmem:[#allocation2 + $0x88] sm:$0xff] %v5569_v3  ;;  %4762 = vmatprep.subr.bf16.mxu1 %v5344_v10  ;;  %v5353_v19 = vld [vmem:[%s6751_s1 + $0x20] sm:$0xff]   ;;  %v5356_v22 = vld [vmem:[%s6751_s1 + $0xe8] sm:$0xff]   ;;  %s6762_s14 = smov (!%p350_p3, %s4475_s14), 1 }
   0xf   : > { %403 = vst [vmem:[#allocation2 + $0x90] sm:$0x3] %v5569_v3  ;;  %404 = vst [vmem:[#allocation2 + $0x98] sm:$0x3] %v5569_v3  ;;  %v5354_v20 = vld [vmem:[%s6751_s1 + $0xa0] sm:$0xff]   ;;  %v5357_v23 = vld [vmem:[%s6751_s1 + $0x28] sm:$0xff]  }
  0x10   : > { %405 = vst [vmem:[#allocation2 + $0xa0] sm:$0xff] %v5569_v3  ;;  %406 = vst [vmem:[#allocation2 + $0xa8] sm:$0xff] %v5569_v3  ;;  %4723 = vmatpush3.bf16.msra.mxu0 %v5345_v11  ;;  %v5358_v24 = vld [vmem:[%s6751_s1 + $0xa8] sm:$0xff]   ;;  %v5359_v25 = vld [vmem:[%s6751_s1 + $0x70] sm:$0xff]   ;;  %s4716_s15 = sshll.u32 %s6762_s14, 6 }
  0x11   : > { %407 = vst [vmem:[#allocation2 + $0xb0] sm:$0x3] %v5569_v3  ;;  %408 = vst [vmem:[#allocation2 + $0xb8] sm:$0x3] %v5569_v3  ;;  %4763 = vmatpush3.bf16.msra.mxu1 %v5346_v12  ;;  %4724 = vmatprep.subr.bf16.mxu0 %v5347_v13  ;;  %v5360_v26 = vld [vmem:[%s6751_s1 + $0xf0] sm:$0xff]   ;;  %v5363_v29 = vld [vmem:[%s6751_s1 + $0x78] sm:$0xff]   ;;  %s5801_s24 = scalar_lea.vmem %s6750_s0, %s4716_s15  ;;  %s359_s26 = scalar_lea.vmem %s6760_s10, %s4716_s15 }
  0x12   : > { %409 = vst [vmem:[#allocation2 + $0xc0] sm:$0xff] %v5569_v3  ;;  %410 = vst [vmem:[#allocation2 + $0xc8] sm:$0xff] %v5569_v3  ;;  %4764 = vmatprep.subr.bf16.mxu1 %v5348_v14  ;;  %v5361_v27 = vld [vmem:[%s6751_s1 + $0x30] sm:$0xff]   ;;  %v5364_v30 = vld [vmem:[%s6751_s1 + $0xf8] sm:$0xff]  }
  0x13   : > { %411 = vst [vmem:[#allocation2 + $0xd0] sm:$0x3] %v5569_v3  ;;  %412 = vst [vmem:[#allocation2 + $0xd8] sm:$0x3] %v5569_v3  ;;  %v5362_v28 = vld [vmem:[%s6751_s1 + $0xb0] sm:$0xff]   ;;  %v5365_v31 = vld [vmem:[%s6751_s1 + $0x38] sm:$0xff]  }
  0x14   : > { %413 = vst [vmem:[#allocation2 + $0xe0] sm:$0xff] %v5569_v3  ;;  %414 = vst [vmem:[#allocation2 + $0xe8] sm:$0xff] %v5569_v3  ;;  %4725 = vmatpush3.bf16.msra.mxu0 %v5349_v15  ;;  %v5366_v32 = vld [vmem:[%s6751_s1 + $0xb8] sm:$0xff]   ;;  %v361_v33 = vld [vmem:[%s5801_s24] sm:$0xff] }
  0x15   : > { %415 = vst [vmem:[#allocation2 + $0xf0] sm:$0x3] %v5569_v3  ;;  %416 = vst [vmem:[#allocation2 + $0xf8] sm:$0x3] %v5569_v3  ;;  %4765 = vmatpush3.bf16.msra.mxu1 %v5350_v16  ;;  %4726 = vmatprep.subr.bf16.mxu0 %v5351_v17  ;;  %v369_v34 = vunpack.c.l.bf16 %v361_v33  ;;  %v370_v35 = vunpack.c.h.bf16 %v361_v33  ;;  %v523_v36 = vld [vmem:[#allocation2 + $0x8] sm:$0xfe] }
  0x16   : > { %417 = vst [vmem:[#allocation2 + $0x100] sm:$0xff] %v5569_v3  ;;  %418 = vst [vmem:[#allocation2 + $0x108] sm:$0xff] %v5569_v3  ;;  %4766 = vmatprep.subr.bf16.mxu1 %v5352_v18  ;;  %v525_v37 = vld [vmem:[#allocation2 + $0x18] sm:$0x1]  ;;  %v5367_v40 = vld [vmem:[%s6751_s1 + $0x140] sm:$0xff]   ;;  %v590_v43 = vrot.slane %v523_v36, 1 }
  0x17   : > { %419 = vst [vmem:[#allocation2 + $0x110] sm:$0x3] %v5569_v3  ;;  %420 = vst [vmem:[#allocation2 + $0x118] sm:$0x3] %v5569_v3  ;;  %v441_v38 = vrot.slane %v369_v34, 7  ;;  %v442_v39 = vrot.slane %v370_v35, 7 }
  0x18   : > { %421 = vst [vmem:[#allocation2 + $0x120] sm:$0xff] %v5569_v3  ;;  %422 = vst [vmem:[#allocation2 + $0x128] sm:$0xff] %v5569_v3  ;;  %4727 = vmatpush3.bf16.msra.mxu0 %v5353_v19  ;;  %v5369_v41 = vld [vmem:[%s6751_s1 + $0x1c0] sm:$0xff]   ;;  %v591_v44 = vrot.slane %v525_v37, 1  ;;  %v524_v45 = vld [vmem:[#allocation2 + $0x10] sm:$0x1] }
  0x19   : > { %423 = vst [vmem:[#allocation2 + $0x130] sm:$0x3] %v5569_v3  ;;  %424 = vst [vmem:[#allocation2 + $0x138] sm:$0x3] %v5569_v3  ;;  %4767 = vmatpush3.bf16.msra.mxu1 %v5354_v20  ;;  %4728 = vmatprep.subr.bf16.mxu0 %v5355_v21  ;;  %v522_v42 = vld [vmem:[#allocation2] sm:$0xfe] }
  0x1a   : > { %3172 = vst [vmem:[#allocation3] sm:$0xff] %v5569_v3  ;;  %3173 = vst [vmem:[#allocation3 + $0x8] sm:$0x3] %v5569_v3  ;;  %4768 = vmatprep.subr.bf16.mxu1 %v5356_v22  ;;  %v587_v46 = vrot.slane %v522_v42, 1  ;;  %v362_v47 = vld [vmem:[%s5801_s24 + $0x8] sm:$0xff]  ;;  %v363_v48 = vld [vmem:[%s5801_s24 + $0x10] sm:$0xff]  ;;  %v592_v58 = vsel %vm586_vm0, %v590_v43, %v591_v44 }
  0x1b   : > { %3174 = vst [vmem:[#allocation3 + $0x10] sm:$0xff] %v5569_v3  ;;  %3175 = vst [vmem:[#allocation3 + $0x18] sm:$0x3] %v5569_v3  ;;  %v372_v49 = vunpack.c.h.bf16 %v362_v47  ;;  %v374_v50 = vunpack.c.h.bf16 %v363_v48  ;;  %v371_v51 = vunpack.c.l.bf16 %v362_v47  ;;  %v373_v52 = vunpack.c.l.bf16 %v363_v48  ;;  %v5368_v54 = vld [vmem:[%s6751_s1 + $0x100] sm:$0xff]   ;;  %v5371_v6 = vld [vmem:[%s6751_s1 + $0x148] sm:$0xff]  }
  0x1c   : > { %3176 = vst [vmem:[#allocation3 + $0x20] sm:$0xff] %v5569_v3  ;;  %3177 = vst [vmem:[#allocation3 + $0x28] sm:$0x3] %v5569_v3  ;;  %4729 = vmatpush3.bf16.msra.mxu0 %v5357_v23  ;;  %v588_v53 = vrot.slane %v524_v45, 1  ;;  %v5372_v12 = vld [vmem:[%s6751_s1 + $0x108] sm:$0xff]   ;;  %v5375_v17 = vld [vmem:[%s6751_s1 + $0x150] sm:$0xff]  }
  0x1d   : > { %3178 = vst [vmem:[#allocation3 + $0x30] sm:$0xff] %v5569_v3  ;;  %3179 = vst [vmem:[#allocation3 + $0x38] sm:$0x3] %v5569_v3  ;;  %4769 = vmatpush3.bf16.msra.mxu1 %v5358_v24  ;;  %4730 = vmatprep.subr.bf16.mxu0 %v5359_v25  ;;  %v444_v59 = vrot.slane %v372_v49, 7  ;;  %v446_v1 = vrot.slane %v374_v50, 7  ;;  %v443_v7 = vrot.slane %v371_v51, 7 }
  0x1e   : > { %3180 = vst [vmem:[#allocation3 + $0x40] sm:$0xff] %v5569_v3  ;;  %3181 = vst [vmem:[#allocation3 + $0x48] sm:$0x3] %v5569_v3  ;;  %4770 = vmatprep.subr.bf16.mxu1 %v5360_v26  ;;  %v445_v8 = vrot.slane %v373_v52, 7  ;;  %v589_v10 = vsel %vm586_vm0, %v587_v46, %v588_v53  ;;  %v5373_v15 = vld [vmem:[%s6751_s1 + $0x1c8] sm:$0xff]   ;;  %v5377_v19 = vld [vmem:[%s6751_s1 + $0x1d0] sm:$0xff]  }
  0x1f   : > { %3182 = vst [vmem:[#allocation3 + $0x50] sm:$0xff] %v5569_v3  ;;  %3183 = vst [vmem:[#allocation3 + $0x58] sm:$0x3] %v5569_v3  ;;  %v5374_v18 = vld [vmem:[%s6751_s1 + $0x188] sm:$0xff]   ;;  %v364_v20 = vld [vmem:[%s5801_s24 + $0x18] sm:$0xff] }
  0x20   : > { %3184 = vst [vmem:[#allocation3 + $0x60] sm:$0xff] %v5569_v3  ;;  %3185 = vst [vmem:[#allocation3 + $0x68] sm:$0x3] %v5569_v3  ;;  %4731 = vmatpush3.bf16.msra.mxu0 %v5361_v27  ;;  %v5376_v24 = vld [vmem:[%s6751_s1 + $0x110] sm:$0xff]   ;;  %v5380_v51 = vld [vmem:[%s6751_s1 + $0x118] sm:$0xff]  }
  0x21   : > { %3186 = vst [vmem:[#allocation3 + $0x70] sm:$0xff] %v5569_v3  ;;  %3187 = vst [vmem:[#allocation3 + $0x78] sm:$0x3] %v5569_v3  ;;  %4771 = vmatpush3.bf16.msra.mxu1 %v5362_v28  ;;  %4732 = vmatprep.subr.bf16.mxu0 %v5363_v29  ;;  %v5379_v29 = vld [vmem:[%s6751_s1 + $0x158] sm:$0xff]  }
  0x22   : > { %3188 = vst [vmem:[#allocation3 + $0x80] sm:$0xff] %v5569_v3  ;;  %3189 = vst [vmem:[#allocation3 + $0x88] sm:$0x3] %v5569_v3  ;;  %4772 = vmatprep.subr.bf16.mxu1 %v5364_v30  ;;  %v376_v30 = vunpack.c.h.bf16 %v364_v20 }
  0x23   : > { %3190 = vst [vmem:[#allocation3 + $0x90] sm:$0xff] %v5569_v3  ;;  %3191 = vst [vmem:[#allocation3 + $0x98] sm:$0x3] %v5569_v3 }
  0x24   : > { %4733 = vmatpush3.bf16.msra.mxu0 %v5365_v31  ;;  %475 = vst [vmem:[#allocation2 + $0x28] sm:$0xfe] %v442_v39  ;;  %476 = vst [vmem:[#allocation2 + $0x30] sm:$0x1] %v441_v38  ;;  %v375_v31 = vunpack.c.l.bf16 %v364_v20 }
  0x25   : > { %4773 = vmatpush3.bf16.msra.mxu1 %v5366_v32  ;;  %477 = vst [vmem:[#allocation2 + $0x38] sm:$0x1] %v442_v39  ;;  %474 = vst [vmem:[#allocation2 + $0x20] sm:$0xfe] %v441_v38  ;;  %4798 = vmatprep.subr.bf16.mxu0 %v5367_v40  ;;  %v5378_v38 = vld [vmem:[%s6751_s1 + $0x190] sm:$0xff]   ;;  %v365_v39 = vld [vmem:[%s5801_s24 + $0x20] sm:$0xff] }
  0x26   : > { %4838 = vmatprep.subr.bf16.mxu1 %v5369_v41  ;;  %479 = vst [vmem:[#allocation2 + $0x48] sm:$0xfe] %v444_v59  ;;  %481 = vst [vmem:[#allocation2 + $0x58] sm:$0x1] %v444_v59  ;;  %v378_v44 = vunpack.c.h.bf16 %v365_v39  ;;  %v377_v45 = vunpack.c.l.bf16 %v365_v39 }
  0x27   : > { %483 = vst [vmem:[#allocation2 + $0x68] sm:$0xfe] %v446_v1  ;;  %485 = vst [vmem:[#allocation2 + $0x78] sm:$0x1] %v446_v1 }
  0x28   : > { %478 = vst [vmem:[#allocation2 + $0x40] sm:$0xfe] %v443_v7  ;;  %480 = vst [vmem:[#allocation2 + $0x50] sm:$0x1] %v443_v7  ;;  %v450_v59 = vrot.slane %v378_v44, 7  ;;  %v5387_v7 = vld [vmem:[%s6751_s1 + $0x168] sm:$0xff]  }
  0x29   : > { %482 = vst [vmem:[#allocation2 + $0x60] sm:$0xfe] %v445_v8  ;;  %484 = vst [vmem:[#allocation2 + $0x70] sm:$0x1] %v445_v8  ;;  %v5388_v8 = vld [vmem:[%s6751_s1 + $0x128] sm:$0xff]  }
  0x2a   : > { %491 = vst [vmem:[#allocation2 + $0xa8] sm:$0xfe] %v450_v59  ;;  %493 = vst [vmem:[#allocation2 + $0xb8] sm:$0x1] %v450_v59  ;;  %v5397_v59 = vld [vmem:[%s6751_s1 + $0x1f8] sm:$0xff]  }
  0x2b   : > { %v5821_v55 = vld [vmem:[#allocation2 + $0x28] sm:$0xff]  ;;  %v528_v4 = vld [vmem:[#allocation2 + $0x30] sm:$0x1] }
  0x2c   : > { %v527_v56 = vld [vmem:[#allocation2 + $0x28] sm:$0xfe]  ;;  %v529_v57 = vld [vmem:[#allocation2 + $0x38] sm:$0x1]  ;;  %v1326_v60 = vpack.c.bf16 %v5821_v55, %v5569_v3  ;;  %v5826_v63 = vld [vmem:[#allocation2 + $0x20] sm:$0xff]  ;;  %v594_v11 = vrot.slane %v528_v4, 1 }
  0x2d   : > { %v596_v61 = vrot.slane %v527_v56, 1  ;;  %v597_v62 = vrot.slane %v529_v57, 1  ;;  %v526_v0 = vld [vmem:[#allocation2 + $0x20] sm:$0xfe]  ;;  %v1325_v2 = vpack.c.bf16 %v5826_v63, %v5569_v3  ;;  %v5855_v21 = vld [vmem:[#allocation2 + $0x48] sm:$0xff]  ;;  %v5381_v56 = vld [vmem:[%s6751_s1 + $0x1d8] sm:$0xff]  }
  0x2e   : > { %v593_v5 = vrot.slane %v526_v0, 1  ;;  %2581 = vmatprep.mubr.bf16.mxu0 %v1326_v60  ;;  %v5370_v3 = vld [vmem:[%s6751_s1 + $0x180] sm:$0xff]   ;;  %v531_v22 = vld [vmem:[#allocation2 + $0x48] sm:$0xfe]  ;;  %v533_v23 = vld [vmem:[#allocation2 + $0x58] sm:$0x1] }
  0x2f   : > { %v598_v9 = vsel %vm586_vm0, %v596_v61, %v597_v62  ;;  %2582 = vmatmul.mubr.bf16.vlgmr.msra.gmra.mrb[0].mxu0 %v1325_v2  ;;  %v5860_v25 = vld [vmem:[#allocation2 + $0x68] sm:$0xff]  ;;  %v537_v27 = vld [vmem:[#allocation2 + $0x78] sm:$0x1]  ;;  %v602_v28 = vrot.slane %v531_v22, 1  ;;  %v603_v33 = vrot.slane %v533_v23, 1  ;;  %v5867_v36 = vld [vmem:[#allocation2 + $0x40] sm:$0xff] }
  0x30   : > { %v1328_v13 = vpack.c.bf16 %v598_v9, %v592_v58  ;;  %v595_v14 = vsel %vm586_vm0, %v593_v5, %v594_v11  ;;  %4799 = vmatpush3.bf16.msra.mxu0 %v5368_v54  ;;  %v535_v26 = vld [vmem:[#allocation2 + $0x68] sm:$0xfe]  ;;  %v1344_v32 = vpack.c.bf16 %v5860_v25, %v5855_v21  ;;  %v609_v35 = vrot.slane %v537_v27, 1  ;;  %v5869_v37 = vld [vmem:[#allocation2 + $0x60] sm:$0xff]  ;;  %v532_v42 = vld [vmem:[#allocation2 + $0x50] sm:$0x1] }
  0x31   : > { %v1327_v16 = vpack.c.bf16 %v595_v14, %v589_v10  ;;  %4800 = vmatprep.subr.bf16.mxu0 %v5371_v6  ;;  %v608_v34 = vrot.slane %v535_v26, 1  ;;  %v1343_v40 = vpack.c.bf16 %v5869_v37, %v5867_v36  ;;  %v530_v41 = vld [vmem:[#allocation2 + $0x40] sm:$0xfe]  ;;  %v604_v46 = vsel %vm586_vm0, %v602_v28, %v603_v33  ;;  %v536_v48 = vld [vmem:[#allocation2 + $0x70] sm:$0x1]  ;;  %v5382_v60 = vld [vmem:[%s6751_s1 + $0x198] sm:$0xff]  }
  0x32   : > { %2646 = vmatprep.mubr.bf16.mxu1 %v1328_v13  ;;  %v534_v43 = vld [vmem:[#allocation2 + $0x60] sm:$0xfe]  ;;  %2589 = vmatprep.mubr.bf16.mxu0 %v1344_v32  ;;  %v599_v49 = vrot.slane %v530_v41, 1  ;;  %v600_v50 = vrot.slane %v532_v42, 1  ;;  %v606_v54 = vrot.slane %v536_v48, 1  ;;  %v448_v57 = vrot.slane %v376_v30, 7 }
  0x33   : > { %2647 = vmatmul.mubr.bf16.vlgmr.msra.gmra.mrb[0].mxu1 %v1327_v16  ;;  %v610_v47 = vsel %vm586_vm0, %v608_v34, %v609_v35  ;;  %v605_v53 = vrot.slane %v534_v43, 1  ;;  %v447_v61 = vrot.slane %v375_v31, 7  ;;  %v449_v62 = vrot.slane %v377_v45, 7  ;;  %v5383_v0 = vld [vmem:[%s6751_s1 + $0x160] sm:$0xff]   ;;  %v5389_v9 = vld [vmem:[%s6751_s1 + $0x1e8] sm:$0xff]   ;;  %v367_v11 = vld [vmem:[%s5801_s24 + $0x30] sm:$0xff] }
  0x34   : > { %4839 = vmatpush3.bf16.msra.mxu1 %v5370_v3  ;;  %4801 = vmatpush3.bf16.msra.mxu0 %v5372_v12  ;;  %v1346_v52 = vpack.c.bf16 %v610_v47, %v604_v46  ;;  %v601_v58 = vsel %vm586_vm0, %v599_v49, %v600_v50  ;;  %487 = vst [vmem:[#allocation2 + $0x88] sm:$0xfe] %v448_v57  ;;  %489 = vst [vmem:[#allocation2 + $0x98] sm:$0x1] %v448_v57  ;;  %v5384_v4 = vld [vmem:[%s6751_s1 + $0x120] sm:$0xff]   ;;  %v366_v10 = vld [vmem:[%s5801_s24 + $0x28] sm:$0xff]  ;;  %v381_v22 = vunpack.c.l.bf16 %v367_v11 }
  0x35   : > { %4840 = vmatprep.subr.bf16.mxu1 %v5373_v15  ;;  %4802 = vmatprep.subr.bf16.mxu0 %v5375_v17  ;;  %v607_v1 = vsel %vm586_vm0, %v605_v53, %v606_v54  ;;  %486 = vst [vmem:[#allocation2 + $0x80] sm:$0xfe] %v447_v61  ;;  %488 = vst [vmem:[#allocation2 + $0x90] sm:$0x1] %v447_v61  ;;  %v5385_v5 = vld [vmem:[%s6751_s1 + $0x1e0] sm:$0xff]   ;;  %v380_v14 = vunpack.c.h.bf16 %v366_v10  ;;  %v5915_v15 = vld [vmem:[#allocation2 + $0xa8] sm:$0xff]  ;;  %v379_v20 = vunpack.c.l.bf16 %v366_v10 }
  0x36   : > { %2654 = vmatprep.mubr.bf16.mxu1 %v1346_v52  ;;  %v1345_v2 = vpack.c.bf16 %v607_v1, %v601_v58  ;;  %490 = vst [vmem:[#allocation2 + $0xa0] sm:$0xfe] %v449_v62  ;;  %492 = vst [vmem:[#allocation2 + $0xb0] sm:$0x1] %v449_v62  ;;  %v5386_v6 = vld [vmem:[%s6751_s1 + $0x1a0] sm:$0xff]   ;;  %v5390_v30 = vld [vmem:[%s6751_s1 + $0x1a8] sm:$0xff]  }
  0x37   : > { %2590 = vmatmul.mubr.bf16.gmra.mrb[4].mxu0 %v1343_v40  ;;  %v543_v16 = vld [vmem:[#allocation2 + $0xa8] sm:$0xfe]  ;;  %v545_v17 = vld [vmem:[#allocation2 + $0xb8] sm:$0x1]  ;;  %v452_v45 = vrot.slane %v380_v14, 7  ;;  %v5391_v46 = vld [vmem:[%s6751_s1 + $0x170] sm:$0xff]  }
  0x38   : > { %4841 = vmatpush3.bf16.msra.mxu1 %v5374_v18  ;;  %4803 = vmatpush3.bf16.msra.mxu0 %v5376_v24  ;;  %v620_v26 = vrot.slane %v543_v16, 1  ;;  %v621_v27 = vrot.slane %v545_v17, 1  ;;  %v451_v49 = vrot.slane %v379_v20, 7  ;;  %v453_v50 = vrot.slane %v381_v22, 7  ;;  %v5393_v54 = vld [vmem:[%s6751_s1 + $0x1f0] sm:$0xff]   ;;  %v5395_v57 = vld [vmem:[%s6751_s1 + $0x178] sm:$0xff]  }
  0x39   : > { %4842 = vmatprep.subr.bf16.mxu1 %v5377_v19  ;;  %4804 = vmatprep.subr.bf16.mxu0 %v5379_v29  ;;  %v382_v19 = vunpack.c.h.bf16 %v367_v11  ;;  %495 = vst [vmem:[#allocation2 + $0xc8] sm:$0xfe] %v452_v45  ;;  %497 = vst [vmem:[#allocation2 + $0xd8] sm:$0x1] %v452_v45  ;;  %v5396_v58 = vld [vmem:[%s6751_s1 + $0x138] sm:$0xff]  }
  0x3a   : > { %494 = vst [vmem:[#allocation2 + $0xc0] sm:$0xfe] %v451_v49  ;;  %496 = vst [vmem:[#allocation2 + $0xd0] sm:$0x1] %v451_v49  ;;  %v654_v1 = vld [vmem:[#allocation2 + $0x18] sm:$0x3] }
  0x3b   : > { %2655 = vmatmul.mubr.bf16.gmra.mrb[4].mxu1 %v1345_v2  ;;  %v5913_v3 = vld [vmem:[#allocation2 + $0x88] sm:$0xff]  ;;  %v541_v13 = vld [vmem:[#allocation2 + $0x98] sm:$0x1]  ;;  %v454_v48 = vrot.slane %v382_v19, 7  ;;  %498 = vst [vmem:[#allocation2 + $0xe0] sm:$0xfe] %v453_v50 }
  0x3c   : > { %4843 = vmatpush3.bf16.msra.mxu1 %v5378_v38  ;;  %4805 = vmatpush3.bf16.msra.mxu0 %v5380_v51  ;;  %v539_v12 = vld [vmem:[#allocation2 + $0x88] sm:$0xfe]  ;;  %v1362_v23 = vpack.c.bf16 %v5915_v15, %v5913_v3  ;;  %v615_v24 = vrot.slane %v541_v13, 1  ;;  %v5919_v28 = vld [vmem:[#allocation2 + $0x80] sm:$0xff]  ;;  %v540_v33 = vld [vmem:[#allocation2 + $0x90] sm:$0x1]  ;;  %v622_v38 = vsel %vm586_vm0, %v620_v26, %v621_v27 }
  0x3d   : > { %4844 = vmatprep.subr.bf16.mxu1 %v5381_v56  ;;  %4806 = vmatprep.subr.bf16.mxu0 %v5383_v0  ;;  %v614_v18 = vrot.slane %v539_v12, 1  ;;  %v5921_v29 = vld [vmem:[#allocation2 + $0xa0] sm:$0xff]  ;;  %v544_v39 = vld [vmem:[#allocation2 + $0xb0] sm:$0x1]  ;;  %v612_v41 = vrot.slane %v540_v33, 1  ;;  %v5398_v16 = vld [vmem:[%s6751_s1 + $0x1b8] sm:$0xff]  }
  0x3e   : > { %v1361_v31 = vpack.c.bf16 %v5921_v29, %v5919_v28  ;;  %v538_v32 = vld [vmem:[#allocation2 + $0x80] sm:$0xfe]  ;;  %2597 = vmatprep.mubr.bf16.mxu0 %v1362_v23  ;;  %v618_v44 = vrot.slane %v544_v39, 1  ;;  %v5392_v51 = vld [vmem:[%s6751_s1 + $0x130] sm:$0xff]   ;;  %499 = vst [vmem:[#allocation2 + $0xe8] sm:$0xfe] %v454_v48 }
  0x3f   : > { %v542_v34 = vld [vmem:[#allocation2 + $0xa0] sm:$0xfe]  ;;  %v616_v35 = vsel %vm586_vm0, %v614_v18, %v615_v24  ;;  %v611_v40 = vrot.slane %v538_v32, 1  ;;  %501 = vst [vmem:[#allocation2 + $0xf8] sm:$0x1] %v454_v48  ;;  %v5394_v56 = vld [vmem:[%s6751_s1 + $0x1b0] sm:$0xff]  }
  0x40   : > { %4845 = vmatpush3.bf16.msra.mxu1 %v5382_v60  ;;  %4807 = vmatpush3.bf16.msra.mxu0 %v5384_v4  ;;  %v1364_v42 = vpack.c.bf16 %v622_v38, %v616_v35  ;;  %v617_v43 = vrot.slane %v542_v34, 1  ;;  %500 = vst [vmem:[#allocation2 + $0xf0] sm:$0x1] %v453_v50  ;;  %v652_v60 = vld [vmem:[#allocation2 + $0x8] sm:$0xfc]  ;;  %v720_v34 = vrot.slane %v654_v1, 2 }
  0x41   : > { %4846 = vmatprep.subr.bf16.mxu1 %v5385_v5  ;;  %4808 = vmatprep.subr.bf16.mxu0 %v5387_v7  ;;  %v613_v47 = vsel %vm586_vm0, %v611_v40, %v612_v41  ;;  %v5953_v61 = vld [vmem:[#allocation2 + $0xc8] sm:$0xff]  ;;  %v549_v0 = vld [vmem:[#allocation2 + $0xd8] sm:$0x1]  ;;  %v719_v2 = vrot.slane %v652_v60, 2  ;;  %v5959_v13 = vld [vmem:[#allocation2 + $0xc0] sm:$0xff] }
  0x42   : > { %2598 = vmatmul.mubr.bf16.gmra.mrb[8].mxu0 %v1361_v31  ;;  %2662 = vmatprep.mubr.bf16.mxu1 %v1364_v42  ;;  %v619_v52 = vsel %vm586_vm0, %v617_v43, %v618_v44  ;;  %v547_v62 = vld [vmem:[#allocation2 + $0xc8] sm:$0xfe]  ;;  %v627_v10 = vrot.slane %v549_v0, 1  ;;  %v5961_v14 = vld [vmem:[#allocation2 + $0xe0] sm:$0xff]  ;;  %v548_v19 = vld [vmem:[#allocation2 + $0xd0] sm:$0x1] }
  0x43   : > { %v1363_v53 = vpack.c.bf16 %v619_v52, %v613_v47  ;;  %v626_v7 = vrot.slane %v547_v62, 1  ;;  %v1379_v17 = vpack.c.bf16 %v5961_v14, %v5959_v13  ;;  %v546_v18 = vld [vmem:[#allocation2 + $0xc0] sm:$0xfe]  ;;  %v624_v27 = vrot.slane %v548_v19, 1  ;;  %v653_v44 = vld [vmem:[#allocation2 + $0x10] sm:$0x3] }
  0x44   : > { %4847 = vmatpush3.bf16.msra.mxu1 %v5386_v6  ;;  %4809 = vmatpush3.bf16.msra.mxu0 %v5388_v8  ;;  %v656_v8 = vld [vmem:[#allocation2 + $0x28] sm:$0xfc]  ;;  %v550_v20 = vld [vmem:[#allocation2 + $0xe0] sm:$0xfe]  ;;  %v623_v26 = vrot.slane %v546_v18, 1  ;;  %v721_v43 = vsel %vm715_vm1, %v719_v2, %v720_v34  ;;  %v1332_v47 = vpack.c.bf16 %v5855_v21, %v5821_v55  ;;  %v1331_v62 = vpack.c.bf16 %v5867_v36, %v5826_v63  ;;  %v5409_v34 = vld [vmem:[%s6751_s1 + $0x2d0] sm:$0xff]  }
  0x45   : > { %4848 = vmatprep.subr.bf16.mxu1 %v5389_v9  ;;  %4810 = vmatprep.subr.bf16.mxu0 %v5391_v46  ;;  %v5955_v4 = vld [vmem:[#allocation2 + $0xe8] sm:$0xff]  ;;  %v628_v22 = vsel %vm586_vm0, %v626_v7, %v627_v10  ;;  %v629_v32 = vrot.slane %v550_v20, 1  ;;  %v5399_v35 = vld [vmem:[%s6751_s1 + $0x240] sm:$0xff]   ;;  %v725_v39 = vrot.slane %v656_v8, 2  ;;  %v657_v46 = vld [vmem:[#allocation2 + $0x30] sm:$0x3]  ;;  %v1350_v10 = vpack.c.bf16 %v5913_v3, %v5860_v25 }
  0x46   : > { %2663 = vmatmul.mubr.bf16.gmra.mrb[8].mxu1 %v1363_v53  ;;  %v551_v5 = vld [vmem:[#allocation2 + $0xe8] sm:$0xfe]  ;;  %v553_v6 = vld [vmem:[#allocation2 + $0xf8] sm:$0x1]  ;;  %v1380_v9 = vpack.c.bf16 %v5955_v4, %v5953_v61  ;;  %v625_v38 = vsel %vm586_vm0, %v623_v26, %v624_v27  ;;  %v651_v41 = vld [vmem:[#allocation2] sm:$0xfc] }
  0x47   : > { %v632_v11 = vrot.slane %v551_v5, 1  ;;  %v633_v12 = vrot.slane %v553_v6, 1  ;;  %v552_v24 = vld [vmem:[#allocation2 + $0xf0] sm:$0x1]  ;;  %v655_v45 = vld [vmem:[#allocation2 + $0x20] sm:$0xfc] }
  0x48   : > { %4849 = vmatpush3.bf16.msra.mxu1 %v5390_v30  ;;  %4811 = vmatpush3.bf16.msra.mxu0 %v5392_v51  ;;  %v658_v30 = vld [vmem:[#allocation2 + $0x38] sm:$0x3]  ;;  %v630_v33 = vrot.slane %v552_v24, 1  ;;  %v716_v50 = vrot.slane %v651_v41, 2  ;;  %v717_v51 = vrot.slane %v653_v44, 2  ;;  %v722_v53 = vrot.slane %v655_v45, 2 }
  0x49   : > { %4850 = vmatprep.subr.bf16.mxu1 %v5393_v54  ;;  %4812 = vmatprep.subr.bf16.mxu0 %v5395_v57  ;;  %v634_v23 = vsel %vm586_vm0, %v632_v11, %v633_v12  ;;  %v726_v40 = vrot.slane %v658_v30, 2  ;;  %v723_v54 = vrot.slane %v657_v46, 2  ;;  %v5400_v57 = vld [vmem:[%s6751_s1 + $0x200] sm:$0xff]   ;;  %v5403_v60 = vld [vmem:[%s6751_s1 + $0x248] sm:$0xff]   ;;  %v662_v5 = vld [vmem:[#allocation2 + $0x58] sm:$0x3] }
  0x4a   : > { %2605 = vmatprep.mubr.bf16.mxu0 %v1380_v9  ;;  %v1382_v31 = vpack.c.bf16 %v634_v23, %v628_v22  ;;  %v631_v42 = vsel %vm586_vm0, %v629_v32, %v630_v33  ;;  %v5401_v55 = vld [vmem:[%s6751_s1 + $0x2c0] sm:$0xff]   ;;  %v5404_v0 = vld [vmem:[%s6751_s1 + $0x208] sm:$0xff]   ;;  %v666_v7 = vld [vmem:[#allocation2 + $0x78] sm:$0x3]  ;;  %v732_v9 = vrot.slane %v662_v5, 2  ;;  %v1349_v32 = vpack.c.bf16 %v5919_v28, %v5869_v37 }
  0x4b   : > { %2606 = vmatmul.mubr.bf16.gmra.mrb[12].mxu0 %v1379_v17  ;;  %v1381_v48 = vpack.c.bf16 %v631_v42, %v625_v38  ;;  %v727_v49 = vsel %vm715_vm1, %v725_v39, %v726_v40  ;;  %v5405_v1 = vld [vmem:[%s6751_s1 + $0x2c8] sm:$0xff]   ;;  %v738_v36 = vrot.slane %v666_v7, 2  ;;  %v661_v17 = vld [vmem:[#allocation2 + $0x50] sm:$0x3]  ;;  %v663_v19 = vld [vmem:[#allocation2 + $0x60] sm:$0xfc]  ;;  %v1368_v38 = vpack.c.bf16 %v5953_v61, %v5915_v15 }
  0x4c   : > { %4851 = vmatpush3.bf16.msra.mxu1 %v5394_v56  ;;  %4813 = vmatpush3.bf16.msra.mxu0 %v5396_v58  ;;  %v1330_v52 = vpack.c.bf16 %v727_v49, %v721_v43  ;;  %v718_v56 = vsel %vm715_vm1, %v716_v50, %v717_v51  ;;  %v724_v58 = vsel %vm715_vm1, %v722_v53, %v723_v54  ;;  %v660_v2 = vld [vmem:[#allocation2 + $0x48] sm:$0xfc]  ;;  %v665_v20 = vld [vmem:[#allocation2 + $0x70] sm:$0x3]  ;;  %v729_v23 = vrot.slane %v661_v17, 2  ;;  %v5411_v37 = vld [vmem:[%s6751_s1 + $0x258] sm:$0xff]  }
  0x4d   : > { %4852 = vmatprep.subr.bf16.mxu1 %v5397_v59  ;;  %2670 = vmatprep.mubr.bf16.mxu1 %v1382_v31  ;;  %v1329_v21 = vpack.c.bf16 %v724_v58, %v718_v56  ;;  %v5402_v59 = vld [vmem:[%s6751_s1 + $0x280] sm:$0xff]   ;;  %v664_v6 = vld [vmem:[#allocation2 + $0x68] sm:$0xfc]  ;;  %v731_v8 = vrot.slane %v660_v2, 2  ;;  %v734_v3 = vrot.slane %v663_v19, 2  ;;  %v735_v24 = vrot.slane %v665_v20, 2 }
  0x4e   : > { %4878 = vmatprep.subr.bf16.mxu0 %v5399_v35  ;;  %2671 = vmatmul.mubr.bf16.gmra.mrb[12].mxu1 %v1381_v48  ;;  %v737_v63 = vrot.slane %v664_v6, 2  ;;  %v5406_v12 = vld [vmem:[%s6751_s1 + $0x288] sm:$0xff]   ;;  %v5407_v27 = vld [vmem:[%s6751_s1 + $0x250] sm:$0xff]   ;;  %v5412_v28 = vld [vmem:[%s6751_s1 + $0x218] sm:$0xff]   ;;  %v1367_v50 = vpack.c.bf16 %v5959_v13, %v5921_v29 }
  0x4f   : > { %2711 = vmatprep.mubr.bf16.mxu0 %v1330_v52  ;;  %2776 = vmatprep.mubr.bf16.mxu1 %v1332_v47  ;;  %v733_v11 = vsel %vm715_vm1, %v731_v8, %v732_v9  ;;  %v736_v30 = vsel %vm715_vm1, %v734_v3, %v735_v24  ;;  %v5408_v31 = vld [vmem:[%s6751_s1 + $0x210] sm:$0xff]   ;;  %v5413_v39 = vld [vmem:[%s6751_s1 + $0x2d8] sm:$0xff]   ;;  %v668_v40 = vld [vmem:[#allocation2 + $0x88] sm:$0xfc] }
  0x50   : > { %4853 = vmatpush3.bf16.msra.mxu1 %v5398_v16  ;;  %v659_v16 = vld [vmem:[#allocation2 + $0x40] sm:$0xfc]  ;;  %v739_v18 = vsel %vm715_vm1, %v737_v63, %v738_v36  ;;  %v5410_v35 = vld [vmem:[%s6751_s1 + $0x290] sm:$0xff]   ;;  %v670_v41 = vld [vmem:[#allocation2 + $0x98] sm:$0x3]  ;;  %v743_v42 = vrot.slane %v668_v40, 2 }
  0x51   : > { %4918 = vmatprep.subr.bf16.mxu1 %v5401_v55  ;;  %v728_v22 = vrot.slane %v659_v16, 2  ;;  %v1348_v25 = vpack.c.bf16 %v739_v18, %v733_v11  ;;  %v672_v15 = vld [vmem:[#allocation2 + $0xa8] sm:$0xfc]  ;;  %v674_v61 = vld [vmem:[#allocation2 + $0xb8] sm:$0x3]  ;;  %v744_v43 = vrot.slane %v670_v41, 2 }
  0x52   : > { %v749_v44 = vrot.slane %v672_v15, 2  ;;  %v750_v45 = vrot.slane %v674_v61, 2  ;;  %v5414_v47 = vld [vmem:[%s6751_s1 + $0x298] sm:$0xff]   ;;  %v667_v48 = vld [vmem:[#allocation2 + $0x80] sm:$0xfc]  ;;  %v5420_v2 = vld [vmem:[%s6751_s1 + $0x228] sm:$0xff]  }
  0x53   : > { %2712 = vmatmul.mubr.bf16.vlgmr.msra.gmra.mrb[16].mxu0 %v1329_v21  ;;  %v730_v26 = vsel %vm715_vm1, %v728_v22, %v729_v23  ;;  %v745_v46 = vsel %vm715_vm1, %v743_v42, %v744_v43  ;;  %v669_v49 = vld [vmem:[#allocation2 + $0x90] sm:$0x3]  ;;  %v671_v52 = vld [vmem:[#allocation2 + $0xa0] sm:$0xfc]  ;;  %v740_v54 = vrot.slane %v667_v48, 2  ;;  %v5421_v5 = vld [vmem:[%s6751_s1 + $0x2e8] sm:$0xff]  }
  0x54   : > { %4879 = vmatpush3.bf16.msra.mxu0 %v5400_v57  ;;  %2719 = vmatprep.mubr.bf16.mxu0 %v1348_v25  ;;  %v1347_v33 = vpack.c.bf16 %v736_v30, %v730_v26  ;;  %v751_v51 = vsel %vm715_vm1, %v749_v44, %v750_v45  ;;  %v673_v53 = vld [vmem:[#allocation2 + $0xb0] sm:$0x3]  ;;  %v741_v56 = vrot.slane %v669_v49, 2  ;;  %v746_v58 = vrot.slane %v671_v52, 2  ;;  %v5416_v29 = vld [vmem:[%s6751_s1 + $0x220] sm:$0xff]   ;;  %v5422_v16 = vld [vmem:[%s6751_s1 + $0x2a8] sm:$0xff]  }
  0x55   : > { %4880 = vmatprep.subr.bf16.mxu0 %v5403_v60  ;;  %v1366_v57 = vpack.c.bf16 %v751_v51, %v745_v46  ;;  %v747_v55 = vrot.slane %v673_v53, 2  ;;  %v676_v6 = vld [vmem:[#allocation2 + $0xc8] sm:$0xfc]  ;;  %v678_v7 = vld [vmem:[#allocation2 + $0xd8] sm:$0x3]  ;;  %v5423_v30 = vld [vmem:[%s6751_s1 + $0x270] sm:$0xff]  }
  0x56   : > { %2777 = vmatmul.mubr.bf16.vlgmr.msra.gmra.mrb[16].mxu1 %v1331_v62  ;;  %v742_v21 = vsel %vm715_vm1, %v740_v54, %v741_v56  ;;  %v5417_v62 = vld [vmem:[%s6751_s1 + $0x2e0] sm:$0xff]   ;;  %v680_v8 = vld [vmem:[#allocation2 + $0xe8] sm:$0xfc]  ;;  %v682_v9 = vld [vmem:[#allocation2 + $0xf8] sm:$0x3]  ;;  %v756_v63 = vrot.slane %v678_v7, 2 }
  0x57   : > { %4919 = vmatpush3.bf16.msra.mxu1 %v5402_v59  ;;  %2784 = vmatprep.mubr.bf16.mxu1 %v1350_v10  ;;  %v5415_v59 = vld [vmem:[%s6751_s1 + $0x260] sm:$0xff]   ;;  %v748_v60 = vsel %vm715_vm1, %v746_v58, %v747_v55  ;;  %v755_v10 = vrot.slane %v676_v6, 2  ;;  %v761_v36 = vrot.slane %v680_v8, 2  ;;  %v762_v11 = vrot.slane %v682_v9, 2  ;;  %v677_v18 = vld [vmem:[#allocation2 + $0xd0] sm:$0x3] }
  0x58   : > { %4881 = vmatpush3.bf16.msra.mxu0 %v5404_v0  ;;  %4920 = vmatprep.subr.bf16.mxu1 %v5405_v1  ;;  %v1365_v13 = vpack.c.bf16 %v748_v60, %v742_v21  ;;  %v5418_v0 = vld [vmem:[%s6751_s1 + $0x2a0] sm:$0xff]   ;;  %v5419_v1 = vld [vmem:[%s6751_s1 + $0x268] sm:$0xff]   ;;  %v681_v22 = vld [vmem:[#allocation2 + $0xf0] sm:$0x3]  ;;  %v753_v25 = vrot.slane %v677_v18, 2 }
  0x59   : > { %4882 = vmatprep.subr.bf16.mxu0 %v5407_v27  ;;  %v675_v17 = vld [vmem:[#allocation2 + $0xc0] sm:$0xfc]  ;;  %v763_v19 = vsel %vm715_vm1, %v761_v36, %v762_v11  ;;  %v759_v26 = vrot.slane %v681_v22, 2  ;;  %v5426_v40 = vld [vmem:[%s6751_s1 + $0x2b0] sm:$0xff]   ;;  %v5427_v41 = vld [vmem:[%s6751_s1 + $0x278] sm:$0xff]  }
  0x5a   : > { %v679_v20 = vld [vmem:[#allocation2 + $0xe0] sm:$0xfc]  ;;  %v752_v23 = vrot.slane %v675_v17, 2  ;;  %v5428_v15 = vld [vmem:[%s6751_s1 + $0x238] sm:$0xff]   ;;  %v797_v42 = vld [vmem:[#allocation2 + $0x28] sm:$0xfe] }
  0x5b   : > { %4921 = vmatpush3.bf16.msra.mxu1 %v5406_v12  ;;  %2720 = vmatmul.mubr.bf16.gmra.mrb[20].mxu0 %v1347_v33  ;;  %v757_v12 = vsel %vm715_vm1, %v755_v10, %v756_v63  ;;  %v758_v24 = vrot.slane %v679_v20, 2  ;;  %v5429_v61 = vld [vmem:[%s6751_s1 + $0x2f8] sm:$0xff]   ;;  %v801_v44 = vld [vmem:[#allocation2 + $0x48] sm:$0xfe]  ;;  %v863_v46 = vrot.slane %v797_v42, 1  ;;  %v5431_v60 = vld [vmem:[%s6751_s1 + $0x340] sm:$0xff]  }
  0x5c   : > { %4883 = vmatpush3.bf16.msra.mxu0 %v5408_v31  ;;  %4922 = vmatprep.subr.bf16.mxu1 %v5409_v34  ;;  %v1384_v3 = vpack.c.bf16 %v763_v19, %v757_v12  ;;  %v754_v27 = vsel %vm715_vm1, %v752_v23, %v753_v25  ;;  %v368_v31 = vld [vmem:[%s5801_s24 + $0x38] sm:$0xff]  ;;  %v5424_v34 = vld [vmem:[%s6751_s1 + $0x230] sm:$0xff]   ;;  %v869_v48 = vrot.slane %v801_v44, 1  ;;  %v796_v51 = vld [vmem:[#allocation2 + $0x20] sm:$0xfe] }
  0x5d   : > { %4884 = vmatprep.subr.bf16.mxu0 %v5411_v37  ;;  %2727 = vmatprep.mubr.bf16.mxu0 %v1366_v57  ;;  %v384_v33 = vunpack.c.h.bf16 %v368_v31  ;;  %v5425_v37 = vld [vmem:[%s6751_s1 + $0x2f0] sm:$0xff]   ;;  %v799_v43 = vld [vmem:[#allocation2 + $0x38] sm:$0x1]  ;;  %v800_v56 = vld [vmem:[#allocation2 + $0x40] sm:$0xfe]  ;;  %v860_v55 = vrot.slane %v796_v51, 1 }
  0x5e   : > { %2785 = vmatmul.mubr.bf16.gmra.mrb[20].mxu1 %v1349_v32  ;;  %v760_v32 = vsel %vm715_vm1, %v758_v24, %v759_v26  ;;  %v803_v45 = vld [vmem:[#allocation2 + $0x58] sm:$0x1]  ;;  %v798_v54 = vld [vmem:[#allocation2 + $0x30] sm:$0x1]  ;;  %v929_v7 = vld [vmem:[#allocation2 + $0x48] sm:$0xfc] }
  0x5f   : > { %4923 = vmatpush3.bf16.msra.mxu1 %v5410_v35  ;;  %2792 = vmatprep.mubr.bf16.mxu1 %v1368_v38  ;;  %v383_v35 = vunpack.c.l.bf16 %v368_v31  ;;  %v1383_v38 = vpack.c.bf16 %v760_v32, %v754_v27  ;;  %v870_v49 = vrot.slane %v803_v45, 1  ;;  %v802_v57 = vld [vmem:[#allocation2 + $0x50] sm:$0x1]  ;;  %v861_v21 = vrot.slane %v798_v54, 1  ;;  %v927_v6 = vld [vmem:[#allocation2 + $0x38] sm:$0x3] }
  0x60   : > { %4885 = vmatpush3.bf16.msra.mxu0 %v5412_v28  ;;  %4924 = vmatprep.subr.bf16.mxu1 %v5413_v39  ;;  %v456_v28 = vrot.slane %v384_v33, 7  ;;  %v931_v9 = vld [vmem:[#allocation2 + $0x58] sm:$0x3]  ;;  %v992_v63 = vrot.slane %v927_v6, 2  ;;  %v997_v36 = vrot.slane %v929_v7, 2  ;;  %v5433_v12 = vld [vmem:[%s6751_s1 + $0x3c0] sm:$0xff]  }
  0x61   : > { %4886 = vmatprep.subr.bf16.mxu0 %v5415_v59  ;;  %v455_v39 = vrot.slane %v383_v35, 7  ;;  %v871_v53 = vsel %vm586_vm0, %v869_v48, %v870_v49  ;;  %v866_v59 = vrot.slane %v800_v56, 1  ;;  %v924_v17 = vld [vmem:[#allocation2 + $0x20] sm:$0xfc]  ;;  %v926_v18 = vld [vmem:[#allocation2 + $0x30] sm:$0x3] }
  0x62   : > { %503 = vst [vmem:[#allocation2 + $0x108] sm:$0xfe] %v456_v28  ;;  %505 = vst [vmem:[#allocation2 + $0x118] sm:$0x1] %v456_v28  ;;  %v928_v19 = vld [vmem:[#allocation2 + $0x40] sm:$0xfc] }
  0x63   : > { %4925 = vmatpush3.bf16.msra.mxu1 %v5414_v47  ;;  %2728 = vmatmul.mubr.bf16.gmra.mrb[24].mxu0 %v1365_v13  ;;  %502 = vst [vmem:[#allocation2 + $0x100] sm:$0xfe] %v455_v39  ;;  %504 = vst [vmem:[#allocation2 + $0x110] sm:$0x1] %v455_v39  ;;  %v864_v47 = vrot.slane %v799_v43, 1  ;;  %v988_v23 = vrot.slane %v924_v17, 2 }
  0x64   : > { %4887 = vmatpush3.bf16.msra.mxu0 %v5416_v29  ;;  %4926 = vmatprep.subr.bf16.mxu1 %v5417_v62  ;;  %v867_v62 = vrot.slane %v802_v57, 1  ;;  %v930_v22 = vld [vmem:[#allocation2 + $0x50] sm:$0x3]  ;;  %v989_v25 = vrot.slane %v926_v18, 2  ;;  %v5435_v27 = vld [vmem:[%s6751_s1 + $0x348] sm:$0xff]   ;;  %v5434_v31 = vld [vmem:[%s6751_s1 + $0x380] sm:$0xff]  }
  0x65   : > { %4888 = vmatprep.subr.bf16.mxu0 %v5419_v1  ;;  %2735 = vmatprep.mubr.bf16.mxu0 %v1384_v3  ;;  %v865_v52 = vsel %vm586_vm0, %v863_v46, %v864_v47  ;;  %v994_v3 = vrot.slane %v928_v19, 2  ;;  %v995_v26 = vrot.slane %v930_v22, 2  ;;  %v5437_v35 = vld [vmem:[%s6751_s1 + $0x3c8] sm:$0xff]   ;;  %v811_v39 = vld [vmem:[#allocation2 + $0x98] sm:$0x1]  ;;  %v5439_v56 = vld [vmem:[%s6751_s1 + $0x350] sm:$0xff]  }
  0x66   : > { %2793 = vmatmul.mubr.bf16.gmra.mrb[24].mxu1 %v1367_v50  ;;  %v5430_v50 = vld [vmem:[%s6751_s1 + $0x2b8] sm:$0xff]   ;;  %v1334_v58 = vpack.c.bf16 %v871_v53, %v865_v52  ;;  %v868_v8 = vsel %vm586_vm0, %v866_v59, %v867_v62  ;;  %v809_v28 = vld [vmem:[#allocation2 + $0x88] sm:$0xfe]  ;;  %v804_v44 = vld [vmem:[#allocation2 + $0x60] sm:$0xfe] }
  0x67   : > { %4927 = vmatpush3.bf16.msra.mxu1 %v5418_v0  ;;  %v996_v32 = vsel %vm715_vm1, %v994_v3, %v995_v26  ;;  %v5438_v43 = vld [vmem:[%s6751_s1 + $0x388] sm:$0xff]   ;;  %v806_v45 = vld [vmem:[#allocation2 + $0x70] sm:$0x1]  ;;  %v808_v47 = vld [vmem:[#allocation2 + $0x80] sm:$0xfe]  ;;  %v872_v49 = vrot.slane %v804_v44, 1 }
  0x68   : > { %4889 = vmatpush3.bf16.msra.mxu0 %v5420_v2  ;;  %4928 = vmatprep.subr.bf16.mxu1 %v5421_v5  ;;  %v862_v2 = vsel %vm586_vm0, %v860_v55, %v861_v21  ;;  %v925_v5 = vld [vmem:[#allocation2 + $0x28] sm:$0xfc]  ;;  %v810_v48 = vld [vmem:[#allocation2 + $0x90] sm:$0x1]  ;;  %v878_v52 = vrot.slane %v808_v47, 1  ;;  %v5443_v22 = vld [vmem:[%s6751_s1 + $0x358] sm:$0xff]  }
  0x69   : > { %4890 = vmatprep.subr.bf16.mxu0 %v5423_v30  ;;  %v6102_v29 = vld [vmem:[#allocation2 + $0x108] sm:$0xff]  ;;  %v991_v10 = vrot.slane %v925_v5, 2  ;;  %v1333_v11 = vpack.c.bf16 %v868_v8, %v862_v2  ;;  %v990_v30 = vsel %vm715_vm1, %v988_v23, %v989_v25  ;;  %v879_v53 = vrot.slane %v810_v48, 1  ;;  %v939_v59 = vld [vmem:[#allocation2 + $0x98] sm:$0x3]  ;;  %v5440_v6 = vld [vmem:[%s6751_s1 + $0x310] sm:$0xff]  }
  0x6a   : > { %v6104_v13 = vld [vmem:[#allocation2 + $0x100] sm:$0xff]  ;;  %v1386_v0 = vpack.c.bf16 %v6102_v29, %v5955_v4  ;;  %v1335_v33 = vpack.c.bf16 %v996_v32, %v990_v30  ;;  %v933_v57 = vld [vmem:[#allocation2 + $0x68] sm:$0xfc]  ;;  %v1010_v2 = vrot.slane %v939_v59, 2  ;;  %v934_v8 = vld [vmem:[#allocation2 + $0x70] sm:$0x3] }
  0x6b   : > { %4929 = vmatpush3.bf16.msra.mxu1 %v5422_v16  ;;  %2736 = vmatmul.mubr.bf16.gmra.mrb[28].mxu0 %v1383_v38  ;;  %v1385_v1 = vpack.c.bf16 %v6104_v13, %v5961_v14  ;;  %v5432_v4 = vld [vmem:[%s6751_s1 + $0x300] sm:$0xff]   ;;  %v998_v14 = vrot.slane %v931_v9, 2  ;;  %v993_v16 = vsel %vm715_vm1, %v991_v10, %v992_v63  ;;  %v805_v38 = vld [vmem:[#allocation2 + $0x68] sm:$0xfe]  ;;  %v880_v55 = vsel %vm586_vm0, %v878_v52, %v879_v53  ;;  %v938_v63 = vld [vmem:[#allocation2 + $0x90] sm:$0x3] }
  0x6c   : > { %4891 = vmatpush3.bf16.msra.mxu0 %v5424_v34  ;;  %4930 = vmatprep.subr.bf16.mxu1 %v5425_v37  ;;  %v5436_v34 = vld [vmem:[%s6751_s1 + $0x308] sm:$0xff]   ;;  %v807_v37 = vld [vmem:[#allocation2 + $0x78] sm:$0x1]  ;;  %v932_v7 = vld [vmem:[#allocation2 + $0x60] sm:$0xfc] }
  0x6d   : > { %4892 = vmatprep.subr.bf16.mxu0 %v5427_v41  ;;  %2841 = vmatprep.mubr.bf16.mxu0 %v1334_v58  ;;  %v999_v20 = vsel %vm715_vm1, %v997_v36, %v998_v14  ;;  %v876_v41 = vrot.slane %v807_v37, 1  ;;  %v935_v58 = vld [vmem:[#allocation2 + $0x78] sm:$0x3]  ;;  %v937_v21 = vld [vmem:[#allocation2 + $0x88] sm:$0xfc]  ;;  %v1000_v36 = vrot.slane %v932_v7, 2 }
  0x6e   : > { %2800 = vmatprep.mubr.bf16.mxu1 %v1386_v0  ;;  %v1336_v24 = vpack.c.bf16 %v999_v20, %v993_v16  ;;  %v1004_v62 = vrot.slane %v935_v58, 2  ;;  %v936_v10 = vld [vmem:[#allocation2 + $0x80] sm:$0xfc]  ;;  %v5441_v17 = vld [vmem:[%s6751_s1 + $0x3d0] sm:$0xff]   ;;  %v5444_v23 = vld [vmem:[%s6751_s1 + $0x318] sm:$0xff]  }
  0x6f   : > { %4931 = vmatpush3.bf16.msra.mxu1 %v5426_v40  ;;  %v875_v40 = vrot.slane %v805_v38, 1  ;;  %v1006_v14 = vrot.slane %v936_v10, 2  ;;  %v5442_v19 = vld [vmem:[%s6751_s1 + $0x390] sm:$0xff]   ;;  %v5445_v25 = vld [vmem:[%s6751_s1 + $0x3d8] sm:$0xff]   ;;  %v813_v3 = vld [vmem:[#allocation2 + $0xa8] sm:$0xfe] }
  0x70   : > { %4893 = vmatpush3.bf16.msra.mxu0 %v5428_v15  ;;  %4932 = vmatprep.subr.bf16.mxu1 %v5429_v61  ;;  %v881_v15 = vrot.slane %v809_v28, 1  ;;  %v882_v61 = vrot.slane %v811_v39, 1  ;;  %v817_v26 = vld [vmem:[#allocation2 + $0xc8] sm:$0xfe]  ;;  %v887_v30 = vrot.slane %v813_v3, 1  ;;  %v5448_v58 = vld [vmem:[%s6751_s1 + $0x320] sm:$0xff]  }
  0x71   : > { %4958 = vmatprep.subr.bf16.mxu0 %v5431_v60  ;;  %2801 = vmatmul.mubr.bf16.gmra.mrb[28].mxu1 %v1385_v1  ;;  %v877_v42 = vsel %vm586_vm0, %v875_v40, %v876_v41  ;;  %v1003_v60 = vrot.slane %v933_v57, 2  ;;  %v1009_v1 = vrot.slane %v937_v21, 2  ;;  %v893_v32 = vrot.slane %v817_v26, 1  ;;  %v812_v38 = vld [vmem:[#allocation2 + $0xa0] sm:$0xfe] }
  0x72   : > { %2906 = vmatprep.mubr.bf16.mxu1 %v1336_v24  ;;  %v883_v46 = vsel %vm586_vm0, %v881_v15, %v882_v61  ;;  %v815_v24 = vld [vmem:[#allocation2 + $0xb8] sm:$0x1]  ;;  %v814_v37 = vld [vmem:[#allocation2 + $0xb0] sm:$0x1]  ;;  %v816_v39 = vld [vmem:[#allocation2 + $0xc0] sm:$0xfe] }
  0x73   : > { %4933 = vmatpush3.bf16.msra.mxu1 %v5430_v50  ;;  %2842 = vmatmul.mubr.bf16.vlgmr.msra.gmra.mrb[32].mxu0 %v1333_v11  ;;  %v873_v50 = vrot.slane %v806_v45, 1  ;;  %v1352_v51 = vpack.c.bf16 %v883_v46, %v877_v42  ;;  %v1005_v5 = vsel %vm715_vm1, %v1003_v60, %v1004_v62  ;;  %v1011_v9 = vsel %vm715_vm1, %v1009_v1, %v1010_v2  ;;  %v818_v40 = vld [vmem:[#allocation2 + $0xd0] sm:$0x1]  ;;  %v5447_v45 = vld [vmem:[%s6751_s1 + $0x360] sm:$0xff]   ;;  %v941_v46 = vld [vmem:[#allocation2 + $0xa8] sm:$0xfc] }
  0x74   : > { %4998 = vmatprep.subr.bf16.mxu1 %v5433_v12  ;;  %4959 = vmatpush3.bf16.msra.mxu0 %v5432_v4  ;;  %v1001_v4 = vrot.slane %v934_v8, 2  ;;  %v1354_v11 = vpack.c.bf16 %v1011_v9, %v1005_v5  ;;  %v1007_v12 = vrot.slane %v938_v63, 2  ;;  %v884_v41 = vrot.slane %v812_v38, 1  ;;  %v943_v47 = vld [vmem:[#allocation2 + $0xb8] sm:$0x3]  ;;  %v5449_v8 = vld [vmem:[%s6751_s1 + $0x3e0] sm:$0xff]  }
  0x75   : > { %4960 = vmatprep.subr.bf16.mxu0 %v5435_v27  ;;  %v874_v54 = vsel %vm586_vm0, %v872_v49, %v873_v50  ;;  %2849 = vmatprep.mubr.bf16.mxu0 %v1352_v51  ;;  %v819_v27 = vld [vmem:[#allocation2 + $0xd8] sm:$0x1]  ;;  %v885_v15 = vrot.slane %v814_v37, 1  ;;  %v890_v42 = vrot.slane %v816_v39, 1  ;;  %v945_v49 = vld [vmem:[#allocation2 + $0xc8] sm:$0xfc] }
  0x76   : > { %v1351_v0 = vpack.c.bf16 %v880_v55, %v874_v54  ;;  %v1002_v16 = vsel %vm715_vm1, %v1000_v36, %v1001_v4  ;;  %v1008_v18 = vsel %vm715_vm1, %v1006_v14, %v1007_v12  ;;  %v947_v50 = vld [vmem:[#allocation2 + $0xd8] sm:$0x3]  ;;  %v1015_v51 = vrot.slane %v941_v46, 2  ;;  %v940_v55 = vld [vmem:[#allocation2 + $0xa0] sm:$0xfc]  ;;  %v5451_v36 = vld [vmem:[%s6751_s1 + $0x368] sm:$0xff]  }
  0x77   : > { %v1353_v20 = vpack.c.bf16 %v1008_v18, %v1002_v16  ;;  %v886_v44 = vsel %vm586_vm0, %v884_v41, %v885_v15  ;;  %v1016_v52 = vrot.slane %v943_v47, 2  ;;  %v1021_v54 = vrot.slane %v945_v49, 2  ;;  %v942_v21 = vld [vmem:[#allocation2 + $0xb0] sm:$0x3]  ;;  %v944_v60 = vld [vmem:[#allocation2 + $0xc0] sm:$0xfc] }
  0x78   : > { %4961 = vmatpush3.bf16.msra.mxu0 %v5436_v34  ;;  %v946_v62 = vld [vmem:[#allocation2 + $0xd0] sm:$0x3]  ;;  %v1013_v1 = vrot.slane %v942_v21, 2  ;;  %v1018_v5 = vrot.slane %v944_v60, 2  ;;  %v5450_v10 = vld [vmem:[%s6751_s1 + $0x3a0] sm:$0xff]   ;;  %v5452_v4 = vld [vmem:[%s6751_s1 + $0x328] sm:$0xff]  }
  0x79   : > { %2907 = vmatmul.mubr.bf16.vlgmr.msra.gmra.mrb[32].mxu1 %v1335_v33  ;;  %4962 = vmatprep.subr.bf16.mxu0 %v5439_v56  ;;  %v894_v33 = vrot.slane %v819_v27, 1  ;;  %v1022_v56 = vrot.slane %v947_v50, 2  ;;  %v1017_v57 = vsel %vm715_vm1, %v1015_v51, %v1016_v52  ;;  %v821_v14 = vld [vmem:[#allocation2 + $0xe8] sm:$0xfe]  ;;  %v823_v12 = vld [vmem:[#allocation2 + $0xf8] sm:$0x1] }
  0x7a   : > { %4999 = vmatpush3.bf16.msra.mxu1 %v5434_v31  ;;  %2914 = vmatprep.mubr.bf16.mxu1 %v1354_v11  ;;  %v888_v31 = vrot.slane %v815_v24, 1  ;;  %v5453_v11 = vld [vmem:[%s6751_s1 + $0x3e8] sm:$0xff]   ;;  %v899_v18 = vrot.slane %v821_v14, 1  ;;  %v820_v3 = vld [vmem:[#allocation2 + $0xe0] sm:$0xfe]  ;;  %v5455_v37 = vld [vmem:[%s6751_s1 + $0x370] sm:$0xff]  }
  0x7b   : > { %5000 = vmatprep.subr.bf16.mxu1 %v5437_v35  ;;  %2850 = vmatmul.mubr.bf16.gmra.mrb[36].mxu0 %v1351_v0  ;;  %v5446_v35 = vld [vmem:[%s6751_s1 + $0x398] sm:$0xff]   ;;  %v895_v28 = vsel %vm586_vm0, %v893_v32, %v894_v33  ;;  %v1023_v59 = vsel %vm715_vm1, %v1021_v54, %v1022_v56  ;;  %v1012_v0 = vrot.slane %v940_v55, 2  ;;  %v825_v16 = vld [vmem:[#allocation2 + $0x108] sm:$0xfe]  ;;  %v822_v24 = vld [vmem:[#allocation2 + $0xf0] sm:$0x1] }
  0x7c   : > { %4963 = vmatpush3.bf16.msra.mxu0 %v5440_v6  ;;  %v889_v34 = vsel %vm586_vm0, %v887_v30, %v888_v31  ;;  %v1372_v2 = vpack.c.bf16 %v1023_v59, %v1017_v57  ;;  %v1019_v6 = vrot.slane %v946_v62, 2  ;;  %v824_v27 = vld [vmem:[#allocation2 + $0x100] sm:$0xfe]  ;;  %v826_v30 = vld [vmem:[#allocation2 + $0x110] sm:$0x1]  ;;  %v896_v31 = vrot.slane %v820_v3, 1 }
  0x7d   : > { %4964 = vmatprep.subr.bf16.mxu0 %v5443_v22  ;;  %v1370_v61 = vpack.c.bf16 %v895_v28, %v889_v34  ;;  %v1014_v7 = vsel %vm715_vm1, %v1012_v0, %v1013_v1  ;;  %v897_v32 = vrot.slane %v822_v24, 1  ;;  %v902_v34 = vrot.slane %v824_v27, 1  ;;  %v949_v28 = vld [vmem:[#allocation2 + $0xe8] sm:$0xfc]  ;;  %v951_v39 = vld [vmem:[#allocation2 + $0xf8] sm:$0x3] }
  0x7e   : > { %5001 = vmatpush3.bf16.msra.mxu1 %v5438_v43  ;;  %v891_v43 = vrot.slane %v818_v40, 1  ;;  %v1020_v9 = vsel %vm715_vm1, %v1018_v5, %v1019_v6  ;;  %v953_v41 = vld [vmem:[#allocation2 + $0x108] sm:$0xfc]  ;;  %v955_v15 = vld [vmem:[#allocation2 + $0x118] sm:$0x3]  ;;  %v5456_v47 = vld [vmem:[%s6751_s1 + $0x330] sm:$0xff]  }
  0x7f   : > { %5002 = vmatprep.subr.bf16.mxu1 %v5441_v17  ;;  %2857 = vmatprep.mubr.bf16.mxu0 %v1370_v61  ;;  %v1371_v63 = vpack.c.bf16 %v1020_v9, %v1014_v7  ;;  %v827_v17 = vld [vmem:[#allocation2 + $0x118] sm:$0x1]  ;;  %v898_v38 = vsel %vm586_vm0, %v896_v31, %v897_v32  ;;  %v1027_v61 = vrot.slane %v949_v28, 2  ;;  %v950_v49 = vld [vmem:[#allocation2 + $0xf0] sm:$0x3]  ;;  %v1054_v5 = vld [vmem:[#allocation2 + $0x48] sm:$0xff] }
  0x80   : > { %4965 = vmatpush3.bf16.msra.mxu0 %v5444_v23  ;;  %v892_v48 = vsel %vm586_vm0, %v890_v42, %v891_v43  ;;  %v906_v22 = vrot.slane %v827_v17, 1  ;;  %v1028_v42 = vrot.slane %v951_v39, 2  ;;  %v952_v51 = vld [vmem:[#allocation2 + $0x100] sm:$0xfc]  ;;  %v954_v52 = vld [vmem:[#allocation2 + $0x110] sm:$0x3] }
  0x81   : > { %2915 = vmatmul.mubr.bf16.gmra.mrb[36].mxu1 %v1353_v20  ;;  %v1369_v53 = vpack.c.bf16 %v892_v48, %v886_v44  ;;  %4966 = vmatprep.subr.bf16.mxu0 %v5447_v45  ;;  %v905_v20 = vrot.slane %v825_v16, 1  ;;  %v1033_v44 = vrot.slane %v953_v41, 2  ;;  %v1034_v45 = vrot.slane %v955_v15, 2  ;;  %v948_v48 = vld [vmem:[#allocation2 + $0xe0] sm:$0xfc]  ;;  %v5457_v21 = vld [vmem:[%s6751_s1 + $0x3f0] sm:$0xff]  }
  0x82   : > { %5003 = vmatpush3.bf16.msra.mxu1 %v5442_v19  ;;  %2922 = vmatprep.mubr.bf16.mxu1 %v1372_v2  ;;  %v900_v19 = vrot.slane %v823_v12, 1  ;;  %v1029_v46 = vsel %vm715_vm1, %v1027_v61, %v1028_v42  ;;  %v1025_v54 = vrot.slane %v950_v49, 2  ;;  %v1030_v57 = vrot.slane %v952_v51, 2  ;;  %v5458_v60 = vld [vmem:[%s6751_s1 + $0x3b0] sm:$0xff]   ;;  %v5459_v0 = vld [vmem:[%s6751_s1 + $0x378] sm:$0xff]   ;;  %v1056_v6 = vld [vmem:[#allocation2 + $0x68] sm:$0xff] }
  0x83   : > { %5004 = vmatprep.subr.bf16.mxu1 %v5445_v25  ;;  %2858 = vmatmul.mubr.bf16.gmra.mrb[40].mxu0 %v1369_v53  ;;  %v5454_v25 = vld [vmem:[%s6751_s1 + $0x3a8] sm:$0xff]   ;;  %v907_v26 = vsel %vm586_vm0, %v905_v20, %v906_v22  ;;  %v1035_v50 = vsel %vm715_vm1, %v1033_v44, %v1034_v45  ;;  %v1024_v53 = vrot.slane %v948_v48, 2  ;;  %v5460_v1 = vld [vmem:[%s6751_s1 + $0x338] sm:$0xff]   ;;  %v1338_v7 = vpack.c.bf16 %v1056_v6, %v1054_v5  ;;  %v1053_v9 = vld [vmem:[#allocation2 + $0x40] sm:$0xff] }
  0x84   : > { %4967 = vmatpush3.bf16.msra.mxu0 %v5448_v58  ;;  %v901_v23 = vsel %vm586_vm0, %v899_v18, %v900_v19  ;;  %v1390_v56 = vpack.c.bf16 %v1035_v50, %v1029_v46  ;;  %v1031_v58 = vrot.slane %v954_v52, 2  ;;  %v5461_v2 = vld [vmem:[%s6751_s1 + $0x3f8] sm:$0xff]   ;;  %v1074_v14 = vld [vmem:[#allocation2 + $0x68] sm:$0xfe]  ;;  %v5464_v20 = vld [vmem:[%s6751_s1 + $0x400] sm:$0xff]  }
  0x85   : > { %4968 = vmatprep.subr.bf16.mxu0 %v5451_v36  ;;  %v1388_v33 = vpack.c.bf16 %v907_v26, %v901_v23  ;;  %v1026_v55 = vsel %vm715_vm1, %v1024_v53, %v1025_v54  ;;  %v5463_v36 = vld [vmem:[%s6751_s1 + $0x440] sm:$0xff]   ;;  %v1076_v12 = vld [vmem:[#allocation2 + $0x78] sm:$0x1]  ;;  %v1142_v18 = vrot.slane %v1074_v14, 1  ;;  %v1071_v3 = vld [vmem:[#allocation2 + $0x50] sm:$0x1] }
  0x86   : > { %5005 = vmatpush3.bf16.msra.mxu1 %v5446_v35  ;;  %v903_v35 = vrot.slane %v826_v30, 1  ;;  %v1032_v59 = vsel %vm715_vm1, %v1030_v57, %v1031_v58  ;;  %v1143_v19 = vrot.slane %v1076_v12, 1  ;;  %v1069_v22 = vld [vmem:[#allocation2 + $0x40] sm:$0xfe]  ;;  %v1075_v26 = vld [vmem:[#allocation2 + $0x70] sm:$0x1] }
  0x87   : > { %5006 = vmatprep.subr.bf16.mxu1 %v5449_v8  ;;  %2865 = vmatprep.mubr.bf16.mxu0 %v1388_v33  ;;  %v1389_v62 = vpack.c.bf16 %v1032_v59, %v1026_v55  ;;  %v5462_v8 = vld [vmem:[%s6751_s1 + $0x3b8] sm:$0xff]   ;;  %v1073_v24 = vld [vmem:[#allocation2 + $0x60] sm:$0xfe]  ;;  %v1133_v30 = vrot.slane %v1069_v22, 1  ;;  %v1134_v31 = vrot.slane %v1071_v3, 1  ;;  %v5465_v33 = vld [vmem:[%s6751_s1 + $0x448] sm:$0xff]  }
  0x88   : > { %4969 = vmatpush3.bf16.msra.mxu0 %v5452_v4  ;;  %v904_v40 = vsel %vm586_vm0, %v902_v34, %v903_v35  ;;  %v1070_v4 = vld [vmem:[#allocation2 + $0x48] sm:$0xfe]  ;;  %v1139_v32 = vrot.slane %v1073_v24, 1  ;;  %v1140_v34 = vrot.slane %v1075_v26, 1  ;;  %v1057_v41 = vld [vmem:[#allocation2 + $0x80] sm:$0xff]  ;;  %v5468_v52 = vld [vmem:[%s6751_s1 + $0x410] sm:$0xff]  }
  0x89   : > { %2923 = vmatmul.mubr.bf16.gmra.mrb[40].mxu1 %v1371_v63  ;;  %v1387_v43 = vpack.c.bf16 %v904_v40, %v898_v38  ;;  %4970 = vmatprep.subr.bf16.mxu0 %v5455_v37  ;;  %v1136_v16 = vrot.slane %v1070_v4, 1  ;;  %v5466_v35 = vld [vmem:[%s6751_s1 + $0x408] sm:$0xff]   ;;  %v1135_v38 = vsel %vm586_vm0, %v1133_v30, %v1134_v31  ;;  %v1059_v15 = vld [vmem:[#allocation2 + $0xa0] sm:$0xff]  ;;  %v1080_v45 = vld [vmem:[#allocation2 + $0x98] sm:$0x1] }
  0x8a   : > { %5007 = vmatpush3.bf16.msra.mxu1 %v5450_v10  ;;  %2930 = vmatprep.mubr.bf16.mxu1 %v1390_v56  ;;  %v1055_v10 = vld [vmem:[#allocation2 + $0x60] sm:$0xff]  ;;  %v1058_v37 = vld [vmem:[#allocation2 + $0x88] sm:$0xff]  ;;  %v1141_v39 = vsel %vm586_vm0, %v1139_v32, %v1140_v34  ;;  %v1355_v42 = vpack.c.bf16 %v1059_v15, %v1057_v41  ;;  %v1149_v49 = vrot.slane %v1080_v45, 1  ;;  %v1079_v57 = vld [vmem:[#allocation2 + $0x90] sm:$0x1] }
  0x8b   : > { %5008 = vmatprep.subr.bf16.mxu1 %v5453_v11  ;;  %2866 = vmatmul.mubr.bf16.gmra.mrb[44].mxu0 %v1387_v43  ;;  %v1337_v63 = vpack.c.bf16 %v1055_v10, %v1053_v9  ;;  %v1072_v11 = vld [vmem:[#allocation2 + $0x58] sm:$0x1]  ;;  %v1060_v28 = vld [vmem:[#allocation2 + $0xa8] sm:$0xff]  ;;  %v1339_v61 = vpack.c.bf16 %v1141_v39, %v1135_v38  ;;  %v5467_v43 = vld [vmem:[%s6751_s1 + $0x450] sm:$0xff]  }
  0x8c   : > { %4971 = vmatpush3.bf16.msra.mxu0 %v5456_v47  ;;  %2971 = vmatprep.mubr.bf16.mxu0 %v1338_v7  ;;  %v1137_v17 = vrot.slane %v1072_v11, 1  ;;  %v1356_v40 = vpack.c.bf16 %v1060_v28, %v1058_v37  ;;  %v1078_v44 = vld [vmem:[#allocation2 + $0x88] sm:$0xfe]  ;;  %v1084_v47 = vld [vmem:[#allocation2 + $0xb8] sm:$0x1]  ;;  %v1061_v10 = vld [vmem:[#allocation2 + $0xc0] sm:$0xff] }
  0x8d   : > { %4972 = vmatprep.subr.bf16.mxu0 %v5459_v0  ;;  %v1082_v46 = vld [vmem:[#allocation2 + $0xa8] sm:$0xfe]  ;;  %v1148_v48 = vrot.slane %v1078_v44, 1  ;;  %v1155_v51 = vrot.slane %v1084_v47, 1  ;;  %v1077_v53 = vld [vmem:[#allocation2 + $0x80] sm:$0xfe] }
  0x8e   : > { %5009 = vmatpush3.bf16.msra.mxu1 %v5454_v25  ;;  %v1138_v23 = vsel %vm586_vm0, %v1136_v16, %v1137_v17  ;;  %v1144_v25 = vsel %vm586_vm0, %v1142_v18, %v1143_v19  ;;  %v1154_v50 = vrot.slane %v1082_v46, 1  ;;  %v1081_v58 = vld [vmem:[#allocation2 + $0xa0] sm:$0xfe]  ;;  %v1083_v55 = vld [vmem:[#allocation2 + $0xb0] sm:$0x1]  ;;  %v1145_v59 = vrot.slane %v1077_v53, 1 }
  0x8f   : > { %5010 = vmatprep.subr.bf16.mxu1 %v5457_v21  ;;  %v1340_v27 = vpack.c.bf16 %v1144_v25, %v1138_v23  ;;  %v1150_v54 = vsel %vm586_vm0, %v1148_v48, %v1149_v49  ;;  %v5469_v0 = vld [vmem:[%s6751_s1 + $0x458] sm:$0xff]   ;;  %v1062_v6 = vld [vmem:[#allocation2 + $0xc8] sm:$0xff]  ;;  %v5471_v12 = vld [vmem:[%s6751_s1 + $0x460] sm:$0xff]  }
  0x90   : > { %4973 = vmatpush3.bf16.msra.mxu0 %v5460_v1  ;;  %v1156_v56 = vsel %vm586_vm0, %v1154_v50, %v1155_v51  ;;  %v1152_v1 = vrot.slane %v1083_v55, 1  ;;  %v1064_v7 = vld [vmem:[#allocation2 + $0xe8] sm:$0xff]  ;;  %v1088_v17 = vld [vmem:[#allocation2 + $0xd8] sm:$0x1]  ;;  %v1085_v3 = vld [vmem:[#allocation2 + $0xc0] sm:$0xfe] }
  0x91   : > { %2931 = vmatmul.mubr.bf16.gmra.mrb[44].mxu1 %v1389_v62  ;;  %5038 = vmatprep.subr.bf16.mxu0 %v5463_v36  ;;  %v1358_v21 = vpack.c.bf16 %v1156_v56, %v1150_v54  ;;  %v1151_v62 = vrot.slane %v1081_v58, 1  ;;  %v1374_v9 = vpack.c.bf16 %v1064_v7, %v1062_v6  ;;  %v5559_v36 = vld [vmem:[#allocation2 + $0x8] sm:$0xff]  ;;  %v1092_v19 = vld [vmem:[#allocation2 + $0xf8] sm:$0x1]  ;;  %v1161_v22 = vrot.slane %v1088_v17, 1  ;;  %v5475_v15 = vld [vmem:[%s6751_s1 + $0x470] sm:$0xff]  }
  0x92   : > { %5011 = vmatpush3.bf16.msra.mxu1 %v5458_v60  ;;  %3036 = vmatprep.mubr.bf16.mxu1 %v1340_v27  ;;  %v1146_v60 = vrot.slane %v1079_v57, 1  ;;  %v1392_v4 = vpack.c.bf16 %v5559_v36, %v6102_v29  ;;  %v1086_v16 = vld [vmem:[#allocation2 + $0xc8] sm:$0xfe]  ;;  %v1167_v25 = vrot.slane %v1092_v19, 1  ;;  %v5472_v29 = vld [vmem:[%s6751_s1 + $0x420] sm:$0xff]   ;;  %v1391_v39 = vpack.c.bf16 %v5559_v36, %v6104_v13  ;;  %v5476_v50 = vld [vmem:[%s6751_s1 + $0x430] sm:$0xff]  }
  0x93   : > { %5012 = vmatprep.subr.bf16.mxu1 %v5461_v2  ;;  %2972 = vmatmul.mubr.bf16.vlgmr.msra.gmra.mrb[48].mxu0 %v1337_v63  ;;  %v5470_v2 = vld [vmem:[%s6751_s1 + $0x418] sm:$0xff]   ;;  %v1063_v63 = vld [vmem:[#allocation2 + $0xe0] sm:$0xff]  ;;  %v1090_v18 = vld [vmem:[#allocation2 + $0xe8] sm:$0xfe] }
  0x94   : > { %5039 = vmatpush3.bf16.msra.mxu0 %v5464_v20  ;;  %2979 = vmatprep.mubr.bf16.mxu0 %v1356_v40  ;;  %v1147_v5 = vsel %vm586_vm0, %v1145_v59, %v1146_v60  ;;  %v1373_v14 = vpack.c.bf16 %v1063_v63, %v1061_v10  ;;  %v1160_v20 = vrot.slane %v1086_v16, 1  ;;  %v1166_v23 = vrot.slane %v1090_v18, 1  ;;  %v1087_v27 = vld [vmem:[#allocation2 + $0xd0] sm:$0x1]  ;;  %v1089_v30 = vld [vmem:[#allocation2 + $0xe0] sm:$0xfe] }
  0x95   : > { %5040 = vmatprep.subr.bf16.mxu0 %v5465_v33  ;;  %v1091_v31 = vld [vmem:[#allocation2 + $0xf0] sm:$0x1]  ;;  %v1157_v33 = vrot.slane %v1085_v3, 1  ;;  %v1158_v34 = vrot.slane %v1087_v27, 1  ;;  %v5473_v38 = vld [vmem:[%s6751_s1 + $0x468] sm:$0xff]  }
  0x96   : > { %5013 = vmatpush3.bf16.msra.mxu1 %v5462_v8  ;;  %v1153_v8 = vsel %vm586_vm0, %v1151_v62, %v1152_v1  ;;  %v1162_v24 = vsel %vm586_vm0, %v1160_v20, %v1161_v22  ;;  %v1168_v26 = vsel %vm586_vm0, %v1166_v23, %v1167_v25  ;;  %v1164_v37 = vrot.slane %v1091_v31, 1  ;;  %v5474_v28 = vld [vmem:[%s6751_s1 + $0x428] sm:$0xff]   ;;  %v1100_v45 = vld [vmem:[#allocation2 + $0x138] sm:$0x1]  ;;  %v1093_v51 = vld [vmem:[#allocation2 + $0x100] sm:$0xfe] }
  0x97   : > { %v1357_v11 = vpack.c.bf16 %v1153_v8, %v1147_v5  ;;  %v1376_v32 = vpack.c.bf16 %v1168_v26, %v1162_v24  ;;  %v1159_v40 = vsel %vm586_vm0, %v1157_v33, %v1158_v34  ;;  %v1098_v44 = vld [vmem:[#allocation2 + $0x128] sm:$0xfe]  ;;  %v1179_v48 = vrot.slane %v1100_v45, 1  ;;  %v1097_v54 = vld [vmem:[#allocation2 + $0x120] sm:$0xfe]  ;;  %v5477_v62 = vld [vmem:[%s6751_s1 + $0x478] sm:$0xff]  }
  0x98   : > { %5041 = vmatpush3.bf16.msra.mxu0 %v5466_v35  ;;  %v1163_v35 = vrot.slane %v1089_v30, 1  ;;  %v1178_v13 = vrot.slane %v1098_v44, 1  ;;  %v1099_v56 = vld [vmem:[#allocation2 + $0x130] sm:$0x1]  ;;  %v1169_v57 = vrot.slane %v1093_v51, 1  ;;  %v5478_v1 = vld [vmem:[%s6751_s1 + $0x438] sm:$0xff]  }
  0x99   : > { %3037 = vmatmul.mubr.bf16.vlgmr.msra.gmra.mrb[48].mxu1 %v1339_v61  ;;  %5042 = vmatprep.subr.bf16.mxu0 %v5467_v43  ;;  %v1094_v61 = vld [vmem:[#allocation2 + $0x108] sm:$0xfe]  ;;  %v1176_v59 = vrot.slane %v1099_v56, 1  ;;  %v1200_v5 = vld [vmem:[#allocation2 + $0x58] sm:$0x3] }
  0x9a   : > { %3044 = vmatprep.mubr.bf16.mxu1 %v1358_v21  ;;  %v1165_v41 = vsel %vm586_vm0, %v1163_v35, %v1164_v37  ;;  %v1172_v46 = vrot.slane %v1094_v61, 1  ;;  %v1180_v53 = vsel %vm586_vm0, %v1178_v13, %v1179_v48  ;;  %v1175_v21 = vrot.slane %v1097_v54, 1  ;;  %v1202_v7 = vld [vmem:[#allocation2 + $0x68] sm:$0xfc]  ;;  %v1204_v8 = vld [vmem:[#allocation2 + $0x78] sm:$0x3] }
  0x9b   : > { %2980 = vmatmul.mubr.bf16.gmra.mrb[52].mxu0 %v1355_v42  ;;  %v1096_v42 = vld [vmem:[#allocation2 + $0x118] sm:$0x1]  ;;  %v1375_v43 = vpack.c.bf16 %v1165_v41, %v1159_v40  ;;  %v1265_v10 = vrot.slane %v1200_v5, 2  ;;  %v1270_v63 = vrot.slane %v1202_v7, 2  ;;  %v1271_v36 = vrot.slane %v1204_v8, 2 }
  0x9c   : > { %5043 = vmatpush3.bf16.msra.mxu0 %v5468_v52  ;;  %2987 = vmatprep.mubr.bf16.mxu0 %v1374_v9  ;;  %v1173_v47 = vrot.slane %v1096_v42, 1  ;;  %v1095_v52 = vld [vmem:[#allocation2 + $0x110] sm:$0x1]  ;;  %v1206_v23 = vld [vmem:[#allocation2 + $0x88] sm:$0xfc] }
  0x9d   : > { %5044 = vmatprep.subr.bf16.mxu0 %v5469_v0  ;;  %v1170_v58 = vrot.slane %v1095_v52, 1  ;;  %v1177_v0 = vsel %vm586_vm0, %v1175_v21, %v1176_v59  ;;  %v1203_v16 = vld [vmem:[#allocation2 + $0x70] sm:$0x3]  ;;  %v1272_v19 = vsel %vm715_vm1, %v1270_v63, %v1271_v36  ;;  %v1208_v25 = vld [vmem:[#allocation2 + $0x98] sm:$0x3]  ;;  %v1276_v27 = vrot.slane %v1206_v23, 2 }
  0x9e   : > { %v1174_v49 = vsel %vm586_vm0, %v1172_v46, %v1173_v47  ;;  %v1268_v22 = vrot.slane %v1203_v16, 2  ;;  %v1210_v24 = vld [vmem:[#allocation2 + $0xa8] sm:$0xfc]  ;;  %v1212_v26 = vld [vmem:[#allocation2 + $0xb8] sm:$0x3]  ;;  %v1277_v30 = vrot.slane %v1208_v25, 2 }
  0x9f   : > { %v1394_v55 = vpack.c.bf16 %v1180_v53, %v1174_v49  ;;  %v1171_v60 = vsel %vm586_vm0, %v1169_v57, %v1170_v58  ;;  %v1283_v33 = vrot.slane %v1212_v26, 2  ;;  %v1205_v34 = vld [vmem:[#allocation2 + $0x80] sm:$0xfc]  ;;  %v1207_v35 = vld [vmem:[#allocation2 + $0x90] sm:$0x3] }
  0xa0   : > { %5045 = vmatpush3.bf16.msra.mxu0 %v5470_v2  ;;  %v1198_v2 = vld [vmem:[#allocation2 + $0x48] sm:$0xfc]  ;;  %v1393_v6 = vpack.c.bf16 %v1177_v0, %v1171_v60  ;;  %v1278_v37 = vsel %vm715_vm1, %v1276_v27, %v1277_v30  ;;  %v1273_v40 = vrot.slane %v1205_v34, 2  ;;  %v1274_v41 = vrot.slane %v1207_v35, 2  ;;  %v1216_v44 = vld [vmem:[#allocation2 + $0xd8] sm:$0x3] }
  0xa1   : > { %3045 = vmatmul.mubr.bf16.gmra.mrb[52].mxu1 %v1357_v11  ;;  %5046 = vmatprep.subr.bf16.mxu0 %v5471_v12  ;;  %v1264_v9 = vrot.slane %v1198_v2, 2  ;;  %v1199_v11 = vld [vmem:[#allocation2 + $0x50] sm:$0x3]  ;;  %v1201_v12 = vld [vmem:[#allocation2 + $0x60] sm:$0xfc]  ;;  %v1289_v48 = vrot.slane %v1216_v44, 2 }
  0xa2   : > { %3052 = vmatprep.mubr.bf16.mxu1 %v1376_v32  ;;  %v1262_v18 = vrot.slane %v1199_v11, 2  ;;  %v1267_v20 = vrot.slane %v1201_v12, 2  ;;  %v1282_v32 = vrot.slane %v1210_v24, 2  ;;  %v1218_v46 = vld [vmem:[#allocation2 + $0xe8] sm:$0xfc]  ;;  %v1275_v49 = vsel %vm715_vm1, %v1273_v40, %v1274_v41 }
  0xa3   : > { %2988 = vmatmul.mubr.bf16.gmra.mrb[56].mxu0 %v1373_v14  ;;  %v1266_v14 = vsel %vm715_vm1, %v1264_v9, %v1265_v10  ;;  %v1220_v47 = vld [vmem:[#allocation2 + $0xf8] sm:$0x3]  ;;  %v1294_v51 = vrot.slane %v1218_v46, 2  ;;  %v1213_v53 = vld [vmem:[#allocation2 + $0xc0] sm:$0xfc] }
  0xa4   : > { %2995 = vmatprep.mubr.bf16.mxu0 %v1392_v4  ;;  %5047 = vmatpush3.bf16.msra.mxu0 %v5472_v29  ;;  %v1197_v4 = vld [vmem:[#allocation2 + $0x40] sm:$0xfc]  ;;  %v1342_v29 = vpack.c.bf16 %v1272_v19, %v1266_v14  ;;  %v1269_v31 = vsel %vm715_vm1, %v1267_v20, %v1268_v22  ;;  %v1295_v52 = vrot.slane %v1220_v47, 2  ;;  %v1215_v54 = vld [vmem:[#allocation2 + $0xd0] sm:$0x3] }
  0xa5   : > { %5048 = vmatprep.subr.bf16.mxu0 %v5473_v38  ;;  %v1261_v17 = vrot.slane %v1197_v4, 2  ;;  %v1217_v57 = vld [vmem:[#allocation2 + $0xe0] sm:$0xfc]  ;;  %v1219_v58 = vld [vmem:[#allocation2 + $0xf0] sm:$0x3]  ;;  %v1286_v21 = vrot.slane %v1215_v54, 2 }
  0xa6   : > { %v1296_v59 = vsel %vm715_vm1, %v1294_v51, %v1295_v52  ;;  %v1291_v60 = vrot.slane %v1217_v57, 2  ;;  %v1222_v0 = vld [vmem:[#allocation2 + $0x108] sm:$0xfc]  ;;  %v1221_v36 = vld [vmem:[#allocation2 + $0x100] sm:$0xfc] }
  0xa7   : > { %v1263_v3 = vsel %vm715_vm1, %v1261_v17, %v1262_v18  ;;  %v1226_v5 = vld [vmem:[#allocation2 + $0x128] sm:$0xfc]  ;;  %v1300_v7 = vrot.slane %v1222_v0, 2  ;;  %v1223_v4 = vld [vmem:[#allocation2 + $0x110] sm:$0x3]  ;;  %v1297_v12 = vrot.slane %v1221_v36, 2 }
  0xa8   : > { %5049 = vmatpush3.bf16.msra.mxu0 %v5474_v28  ;;  %v1341_v38 = vpack.c.bf16 %v1269_v31, %v1263_v3  ;;  %v1209_v28 = vld [vmem:[#allocation2 + $0xa0] sm:$0xfc]  ;;  %v1306_v10 = vrot.slane %v1226_v5, 2  ;;  %v1227_v14 = vld [vmem:[#allocation2 + $0x130] sm:$0x3]  ;;  %v1298_v16 = vrot.slane %v1223_v4, 2 }
  0xa9   : > { %5050 = vmatprep.subr.bf16.mxu0 %v5475_v15  ;;  %3053 = vmatmul.mubr.bf16.gmra.mrb[56].mxu1 %v1375_v43  ;;  %v1284_v15 = vsel %vm715_vm1, %v1282_v32, %v1283_v33  ;;  %v1279_v61 = vrot.slane %v1209_v28, 2  ;;  %v1214_v43 = vld [vmem:[#allocation2 + $0xc8] sm:$0xfc]  ;;  %v1225_v11 = vld [vmem:[#allocation2 + $0x120] sm:$0xfc]  ;;  %v1304_v18 = vrot.slane %v1227_v14, 2 }
  0xaa   : > { %3060 = vmatprep.mubr.bf16.mxu1 %v1394_v55  ;;  %v1360_v45 = vpack.c.bf16 %v1284_v15, %v1278_v37  ;;  %v1288_v13 = vrot.slane %v1214_v43, 2  ;;  %v1285_v55 = vrot.slane %v1213_v53, 2  ;;  %v1303_v17 = vrot.slane %v1225_v11, 2 }
  0xab   : > { %2996 = vmatmul.mubr.bf16.gmra.mrb[60].mxu0 %v1391_v39  ;;  %v1211_v39 = vld [vmem:[#allocation2 + $0xb0] sm:$0x3]  ;;  %v1299_v3 = vsel %vm715_vm1, %v1297_v12, %v1298_v16 }
  0xac   : > { %5051 = vmatpush3.bf16.msra.mxu0 %v5476_v50  ;;  %3101 = vmatprep.mubr.bf16.mxu0 %v1342_v29  ;;  %v1280_v42 = vrot.slane %v1211_v39, 2  ;;  %v1290_v56 = vsel %vm715_vm1, %v1288_v13, %v1289_v48  ;;  %v1287_v19 = vsel %vm715_vm1, %v1285_v55, %v1286_v21  ;;  %v1305_v24 = vsel %vm715_vm1, %v1303_v17, %v1304_v18 }
  0xad   : > { %5052 = vmatprep.subr.bf16.mxu0 %v5477_v62  ;;  %v1292_v62 = vrot.slane %v1219_v58, 2  ;;  %v1378_v9 = vpack.c.bf16 %v1296_v59, %v1290_v56  ;;  %v1395_v30 = vpack.c.bf16 %v1305_v24, %v1299_v3 }
  0xae   : > { %v1281_v50 = vsel %vm715_vm1, %v1279_v61, %v1280_v42 }
  0xaf   : > { %v1359_v2 = vpack.c.bf16 %v1281_v50, %v1275_v49  ;;  %v1293_v20 = vsel %vm715_vm1, %v1291_v60, %v1292_v62 }
  0xb0   : > { %5053 = vmatpush3.bf16.msra.mxu0 %v5478_v1  ;;  %v1224_v1 = vld [vmem:[#allocation2 + $0x118] sm:$0x3]  ;;  %v1377_v25 = vpack.c.bf16 %v1293_v20, %v1287_v19 }
  0xb1   : > { %3061 = vmatmul.mubr.bf16.gmra.mrb[60].mxu1 %v1393_v6  ;;  %v1228_v6 = vld [vmem:[#allocation2 + $0x138] sm:$0x3]  ;;  %v1301_v8 = vrot.slane %v1224_v1, 2 }
  0xb2   : > { %v1307_v63 = vrot.slane %v1228_v6, 2 }
  0xb3   : > { %3102 = vmatmul.mubr.bf16.vlgmr.msra.gmra.mrb[64].mxu0 %v1341_v38  ;;  %v1302_v22 = vsel %vm715_vm1, %v1300_v7, %v1301_v8 }
  0xb4   : > { %3109 = vmatprep.mubr.bf16.mxu0 %v1360_v45  ;;  %v1308_v23 = vsel %vm715_vm1, %v1306_v10, %v1307_v63 }
  0xb5   : > { %v1396_v29 = vpack.c.bf16 %v1308_v23, %v1302_v22 }
  0xbb   : > { %3110 = vmatmul.mubr.bf16.gmra.mrb[68].mxu0 %v1359_v2 }
  0xbc   : > { %3117 = vmatprep.mubr.bf16.mxu0 %v1378_v9 }
  0xc3   : > { %3118 = vmatmul.mubr.bf16.gmra.mrb[72].mxu0 %v1377_v25 }
  0xc4   : > { %3125 = vmatprep.mubr.bf16.mxu0 %v1396_v29 }
  0xcb   : > { %3126 = vmatmul.mubr.bf16.gmra.mrb[76].mxu0 %v1395_v30 }
 0x102   : > { %v4734_v26 = vpop.f32.mrb[0].mxu0 }
 0x103   : > { %v4735_v27 = vpop.f32.mrb[1].mxu0 }
 0x104   : > { %v4736_v31 = vadd.f32 %v4735_v27, %v4734_v26  ;;  %v4737_v32 = vpop.f32.mrb[2].mxu0 }
 0x105   : > { %v4738_v33 = vpop.f32.mrb[3].mxu0 }
 0x106   : > { %v4774_v34 = vpop.f32.mrb[0].mxu1  ;;  %v4739_v35 = vadd.f32 %v4738_v33, %v4737_v32 }
 0x107   : > { %v4775_v38 = vpop.f32.mrb[1].mxu1 }
 0x108   : > { %v4776_v37 = vadd.f32 %v4775_v38, %v4774_v34  ;;  %v4777_v28 = vpop.f32.mrb[2].mxu1  ;;  %v5479_v34 = vld [vmem:[%s6752_s2 + $0x40] sm:$0xff]  }
 0x109   : > { %v4778_v39 = vpop.f32.mrb[3].mxu1  ;;  %5078 = vmatprep.subr.bf16.mxu1 %v5479_v34 }
 0x10a   : > { %v2649_v40 = vadd.f32 %v4776_v37, %v4736_v31  ;;  %v4779_v41 = vadd.f32 %v4778_v39, %v4777_v28  ;;  %v4740_v61 = vpop.f32.mrb[4].mxu0  ;;  %v5480_v37 = vld [vmem:[%s6752_s2] sm:$0xff]  }
 0x10b   : > { %v4741_v42 = vpop.f32.mrb[5].mxu0  ;;  %5079 = vmatpush3.bf16.msra.mxu1 %v5480_v37  ;;  %v5481_v39 = vld [vmem:[%s6752_s2 + $0xc0] sm:$0xff]   ;;  %v5507_v37 = vld [vmem:[%s6752_s2 + $0x78] sm:$0xff]  }
 0x10c   : > { %v2652_v15 = vadd.f32 %v4779_v41, %v4739_v35  ;;  %v4742_v43 = vadd.f32 %v4741_v42, %v4740_v61  ;;  %v4743_v44 = vpop.f32.mrb[6].mxu0  ;;  %v5482_v41 = vld [vmem:[%s6752_s2 + $0x80] sm:$0xff]   ;;  %5118 = vmatprep.subr.bf16.mxu0 %v5481_v39 }
 0x10d   : > { %v4744_v45 = vpop.f32.mrb[7].mxu0  ;;  %5119 = vmatpush3.bf16.msra.mxu0 %v5482_v41 }
 0x10e   : > { %v4745_v46 = vadd.f32 %v4744_v45, %v4743_v44  ;;  %v4780_v47 = vpop.f32.mrb[4].mxu1 }
 0x10f   : > { %v4781_v13 = vpop.f32.mrb[5].mxu1 }
 0x110   : > { %v4782_v48 = vadd.f32 %v4781_v13, %v4780_v47  ;;  %v4783_v49 = vpop.f32.mrb[6].mxu1 }
 0x111   : > { %v4784_v50 = vpop.f32.mrb[7].mxu1 }
 0x112   : > { %v6315_v51 = vadd.f32 %v4782_v48, %v4742_v43  ;;  %v4785_v52 = vadd.f32 %v4784_v50, %v4783_v49  ;;  %v5484_v43 = vld [vmem:[%s6752_s2 + $0x8] sm:$0xff]  }
 0x113   : > { %v5485_v49 = vld [vmem:[%s6752_s2 + $0xc8] sm:$0xff]  }
 0x114   : > { %v6317_v53 = vadd.f32 %v4785_v52, %v4745_v46  ;;  %5120 = vmatprep.subr.bf16.mxu0 %v5485_v49 }
 0x115   : > { %v4746_v54 = vpop.f32.mrb[8].mxu0 }
 0x116   : > { %v4747_v56 = vpop.f32.mrb[9].mxu0 }
 0x117   : > { %v4748_v57 = vadd.f32 %v4747_v56, %v4746_v54  ;;  %v4749_v58 = vpop.f32.mrb[10].mxu0  ;;  %v5486_v56 = vld [vmem:[%s6752_s2 + $0x88] sm:$0xff]  }
 0x118   : > { %v4750_v55 = vpop.f32.mrb[11].mxu0  ;;  %5121 = vmatpush3.bf16.msra.mxu0 %v5486_v56 }
 0x119   : > { %v4751_v21 = vadd.f32 %v4750_v55, %v4749_v58  ;;  %v4786_v59 = vpop.f32.mrb[8].mxu1  ;;  %v5488_v55 = vld [vmem:[%s6752_s2 + $0x10] sm:$0xff]  }
 0x11a   : > { %v4787_v60 = vpop.f32.mrb[9].mxu1 }
 0x11b   : > { %v4788_v62 = vadd.f32 %v4787_v60, %v4786_v59  ;;  %v4789_v0 = vpop.f32.mrb[10].mxu1 }
 0x11c   : > { %v4790_v1 = vpop.f32.mrb[11].mxu1 }
 0x11d   : > { %v6319_v2 = vadd.f32 %v4788_v62, %v4748_v57  ;;  %v4791_v5 = vadd.f32 %v4790_v1, %v4789_v0  ;;  %v5487_v57 = vld [vmem:[%s6752_s2 + $0x50] sm:$0xff]   ;;  %v5491_v0 = vld [vmem:[%s6752_s2 + $0x58] sm:$0xff]  }
 0x11e   : > { %v4752_v7 = vpop.f32.mrb[12].mxu0  ;;  %v5490_v62 = vld [vmem:[%s6752_s2 + $0x90] sm:$0xff]   ;;  %v5492_v1 = vld [vmem:[%s6752_s2 + $0x18] sm:$0xff]  }
 0x11f   : > { %v6321_v6 = vadd.f32 %v4791_v5, %v4751_v21  ;;  %v4753_v8 = vpop.f32.mrb[13].mxu0 }
 0x120   : > { %v4754_v9 = vadd.f32 %v4753_v8, %v4752_v7  ;;  %v4755_v10 = vpop.f32.mrb[14].mxu0 }
 0x121   : > { %v4756_v63 = vpop.f32.mrb[15].mxu0  ;;  %v4792_v4 = vpop.f32.mrb[12].mxu1 }
 0x122   : > { %v4757_v36 = vadd.f32 %v4756_v63, %v4755_v10  ;;  %v4793_v11 = vpop.f32.mrb[13].mxu1 }
 0x123   : > { %v4794_v14 = vadd.f32 %v4793_v11, %v4792_v4  ;;  %v4795_v12 = vpop.f32.mrb[14].mxu1  ;;  %v5495_v4 = vld [vmem:[%s6752_s2 + $0x60] sm:$0xff]  }
 0x124   : > { %v4796_v16 = vpop.f32.mrb[15].mxu1 }
 0x125   : > { %v6323_v17 = vadd.f32 %v4794_v14, %v4754_v9  ;;  %v4797_v18 = vadd.f32 %v4796_v16, %v4795_v12  ;;  %v5493_v9 = vld [vmem:[%s6752_s2 + $0xd8] sm:$0xff]   ;;  %v5496_v12 = vld [vmem:[%s6752_s2 + $0x20] sm:$0xff]  }
 0x126   : > { %v4814_v19 = vpop.f32.mrb[16].mxu0 }
 0x127   : > { %v4815_v20 = vpop.f32.mrb[17].mxu0  ;;  %v6325_v22 = vadd.f32 %v4797_v18, %v4757_v36  ;;  %v5494_v36 = vld [vmem:[%s6752_s2 + $0x98] sm:$0xff]  }
 0x128   : > { %v4816_v23 = vadd.f32 %v4815_v20, %v4814_v19  ;;  %v4817_v25 = vpop.f32.mrb[18].mxu0  ;;  %v5497_v20 = vld [vmem:[%s6752_s2 + $0xe0] sm:$0xff]  }
 0x129   : > { %v4818_v29 = vpop.f32.mrb[19].mxu0  ;;  %v4854_v24 = vpop.f32.mrb[16].mxu1 }
 0x12a   : > { %v2714_v3 = vadd.f32 %v4816_v23, %v2649_v40  ;;  %v4819_v26 = vadd.f32 %v4818_v29, %v4817_v25  ;;  %v4855_v27 = vpop.f32.mrb[17].mxu1  ;;  %v5498_v29 = vld [vmem:[%s6752_s2 + $0xa0] sm:$0xff]  }
 0x12b   : > { %v4856_v31 = vadd.f32 %v4855_v27, %v4854_v24  ;;  %v4857_v32 = vpop.f32.mrb[18].mxu1  ;;  %v5500_v24 = vld [vmem:[%s6752_s2 + $0x28] sm:$0xff]  }
 0x12c   : > { %v2717_v30 = vadd.f32 %v4819_v26, %v2652_v15  ;;  %v4858_v33 = vpop.f32.mrb[19].mxu1  ;;  %v5483_v15 = vld [vmem:[%s6752_s2 + $0x48] sm:$0xff]  }
 0x12d   : > { %v6330_v35 = vadd.f32 %v4856_v31, %v2714_v3  ;;  %v4859_v38 = vadd.f32 %v4858_v33, %v4857_v32  ;;  %5080 = vmatprep.subr.bf16.mxu1 %v5483_v15  ;;  %v5499_v3 = vld [vmem:[%s6752_s2 + $0x68] sm:$0xff]   ;;  %v5503_v32 = vld [vmem:[%s6752_s2 + $0x70] sm:$0xff]  }
 0x12e   : > { %v4820_v40 = vpop.f32.mrb[20].mxu0  ;;  %5081 = vmatpush3.bf16.msra.mxu1 %v5484_v43  ;;  %v5502_v31 = vld [vmem:[%s6752_s2 + $0xa8] sm:$0xff]   ;;  %v5505_v33 = vld [vmem:[%s6752_s2 + $0xf0] sm:$0xff]  }
 0x12f   : > { %v6335_v28 = vadd.f32 %v4859_v38, %v2717_v30  ;;  %v4821_v61 = vpop.f32.mrb[21].mxu0  ;;  %5082 = vmatprep.subr.bf16.mxu1 %v5487_v57  ;;  %v5506_v38 = vld [vmem:[%s6752_s2 + $0xb0] sm:$0xff]  }
 0x130   : > { %v4822_v44 = vadd.f32 %v4821_v61, %v4820_v40  ;;  %v4823_v45 = vpop.f32.mrb[22].mxu0  ;;  %v5508_v40 = vld [vmem:[%s6752_s2 + $0x38] sm:$0xff]  }
 0x131   : > { %v4860_v42 = vpop.f32.mrb[20].mxu1  ;;  %v4824_v47 = vpop.f32.mrb[23].mxu0 }
 0x132   : > { %v4861_v46 = vpop.f32.mrb[21].mxu1  ;;  %v2722_v50 = vadd.f32 %v4822_v44, %v6315_v51  ;;  %v4825_v52 = vadd.f32 %v4824_v47, %v4823_v45  ;;  %5083 = vmatpush3.bf16.msra.mxu1 %v5488_v55  ;;  %v5489_v51 = vld [vmem:[%s6752_s2 + $0xd0] sm:$0xff]   ;;  %v5510_v45 = vld [vmem:[%s6752_s2 + $0xb8] sm:$0xff]  }
 0x133   : > { %v4862_v13 = vadd.f32 %v4861_v46, %v4860_v42  ;;  %v4863_v48 = vpop.f32.mrb[22].mxu1  ;;  %5122 = vmatprep.subr.bf16.mxu0 %v5489_v51  ;;  %5084 = vmatprep.subr.bf16.mxu1 %v5491_v0  ;;  %v5509_v42 = vld [vmem:[%s6752_s2 + $0xf8] sm:$0xff]   ;;  %v5511_v46 = vld [vmem:[%s6752_s2 + $0x140] sm:$0xff]  }
 0x134   : > { %v4864_v54 = vpop.f32.mrb[23].mxu1  ;;  %v2725_v21 = vadd.f32 %v4825_v52, %v6317_v53  ;;  %5123 = vmatpush3.bf16.msra.mxu0 %v5490_v62 }
 0x135   : > { %v4865_v58 = vadd.f32 %v4864_v54, %v4863_v48  ;;  %v6363_v59 = vadd.f32 %v4862_v13, %v2722_v50  ;;  %5124 = vmatprep.subr.bf16.mxu0 %v5493_v9  ;;  %v5513_v13 = vld [vmem:[%s6752_s2 + $0x1c0] sm:$0xff]  }
 0x136   : > { %5085 = vmatpush3.bf16.msra.mxu1 %v5492_v1  ;;  %v4826_v10 = vpop.f32.mrb[24].mxu0 }
 0x137   : > { %v6368_v60 = vadd.f32 %v4865_v58, %v2725_v21  ;;  %v4827_v11 = vpop.f32.mrb[25].mxu0  ;;  %5086 = vmatprep.subr.bf16.mxu1 %v5495_v4 }
 0x138   : > { %v4828_v16 = vadd.f32 %v4827_v11, %v4826_v10  ;;  %v4829_v18 = vpop.f32.mrb[26].mxu0  ;;  %5125 = vmatpush3.bf16.msra.mxu0 %v5494_v36 }
 0x139   : > { %v4866_v53 = vpop.f32.mrb[24].mxu1  ;;  %v4830_v19 = vpop.f32.mrb[27].mxu0  ;;  %5126 = vmatprep.subr.bf16.mxu0 %v5497_v20 }
 0x13a   : > { %v4867_v5 = vpop.f32.mrb[25].mxu1  ;;  %5087 = vmatpush3.bf16.msra.mxu1 %v5496_v12  ;;  %v2730_v23 = vadd.f32 %v4828_v16, %v6319_v2  ;;  %v4831_v25 = vadd.f32 %v4830_v19, %v4829_v18  ;;  %v5501_v2 = vld [vmem:[%s6752_s2 + $0xe8] sm:$0xff]  }
 0x13b   : > { %v4868_v7 = vadd.f32 %v4867_v5, %v4866_v53  ;;  %v4869_v8 = vpop.f32.mrb[26].mxu1  ;;  %5088 = vmatprep.subr.bf16.mxu1 %v5499_v3 }
 0x13c   : > { %v4870_v63 = vpop.f32.mrb[27].mxu1  ;;  %v2733_v26 = vadd.f32 %v4831_v25, %v6321_v6  ;;  %5127 = vmatpush3.bf16.msra.mxu0 %v5498_v29  ;;  %v5504_v6 = vld [vmem:[%s6752_s2 + $0x30] sm:$0xff]  }
 0x13d   : > { %v4871_v14 = vadd.f32 %v4870_v63, %v4869_v8  ;;  %v6405_v27 = vadd.f32 %v4868_v7, %v2730_v23  ;;  %5128 = vmatprep.subr.bf16.mxu0 %v5501_v2 }
 0x13e   : > { %5089 = vmatpush3.bf16.msra.mxu1 %v5500_v24  ;;  %v4832_v34 = vpop.f32.mrb[28].mxu0 }
 0x13f   : > { %v6410_v30 = vadd.f32 %v4871_v14, %v2733_v26  ;;  %5090 = vmatprep.subr.bf16.mxu1 %v5503_v32  ;;  %v4833_v39 = vpop.f32.mrb[29].mxu0 }
 0x140   : > { %5129 = vmatpush3.bf16.msra.mxu0 %v5502_v31  ;;  %v4834_v41 = vadd.f32 %v4833_v39, %v4832_v34  ;;  %v4835_v15 = vpop.f32.mrb[30].mxu0 }
 0x141   : > { %5130 = vmatprep.subr.bf16.mxu0 %v5505_v33  ;;  %v4836_v61 = vpop.f32.mrb[31].mxu0 }
 0x142   : > { %5091 = vmatpush3.bf16.msra.mxu1 %v5504_v6  ;;  %v2738_v43 = vadd.f32 %v4834_v41, %v6323_v17  ;;  %v4837_v44 = vadd.f32 %v4836_v61, %v4835_v15 }
 0x143   : > { %5092 = vmatprep.subr.bf16.mxu1 %v5507_v37 }
 0x144   : > { %5131 = vmatpush3.bf16.msra.mxu0 %v5506_v38  ;;  %v2741_v47 = vadd.f32 %v4837_v44, %v6325_v22  ;;  %v4872_v17 = vpop.f32.mrb[28].mxu1 }
 0x145   : > { %5132 = vmatprep.subr.bf16.mxu0 %v5509_v42  ;;  %v4873_v48 = vpop.f32.mrb[29].mxu1 }
 0x146   : > { %5093 = vmatpush3.bf16.msra.mxu1 %v5508_v40  ;;  %v4894_v49 = vpop.f32.mrb[32].mxu0  ;;  %v4874_v50 = vadd.f32 %v4873_v48, %v4872_v17  ;;  %v4875_v52 = vpop.f32.mrb[30].mxu1 }
 0x147   : > { %5158 = vmatprep.subr.bf16.mxu1 %v5511_v46  ;;  %v4895_v54 = vpop.f32.mrb[33].mxu0  ;;  %v4876_v56 = vpop.f32.mrb[31].mxu1 }
 0x148   : > { %5133 = vmatpush3.bf16.msra.mxu0 %v5510_v45  ;;  %v4896_v57 = vadd.f32 %v4895_v54, %v4894_v49  ;;  %v4897_v58 = vpop.f32.mrb[34].mxu0  ;;  %v2803_v55 = vadd.f32 %v4874_v50, %v2738_v43  ;;  %v4877_v21 = vadd.f32 %v4876_v56, %v4875_v52 }
 0x149   : > { %5198 = vmatprep.subr.bf16.mxu0 %v5513_v13  ;;  %v4898_v51 = vpop.f32.mrb[35].mxu0 }
 0x14a   : > { %v2844_v22 = vadd.f32 %v4896_v57, %v6330_v35  ;;  %v4899_v62 = vadd.f32 %v4898_v51, %v4897_v58  ;;  %v2806_v0 = vadd.f32 %v4877_v21, %v2741_v47 }
 0x14c   : > { %v2847_v53 = vadd.f32 %v4899_v62, %v6335_v28  ;;  %v4934_v1 = vpop.f32.mrb[32].mxu1 }
 0x14d   : > { %v4935_v5 = vpop.f32.mrb[33].mxu1 }
 0x14e   : > { %v4936_v7 = vadd.f32 %v4935_v5, %v4934_v1  ;;  %v4937_v8 = vpop.f32.mrb[34].mxu1  ;;  %v4900_v4 = vpop.f32.mrb[36].mxu0 }
 0x14f   : > { %v4938_v9 = vpop.f32.mrb[35].mxu1  ;;  %v4901_v11 = vpop.f32.mrb[37].mxu0 }
 0x150   : > { %v2909_v10 = vadd.f32 %v4936_v7, %v2844_v22  ;;  %v4939_v63 = vadd.f32 %v4938_v9, %v4937_v8  ;;  %v4902_v14 = vadd.f32 %v4901_v11, %v4900_v4  ;;  %v4903_v12 = vpop.f32.mrb[38].mxu0 }
 0x151   : > { %v4904_v16 = vpop.f32.mrb[39].mxu0 }
 0x152   : > { %v2912_v36 = vadd.f32 %v4939_v63, %v2847_v53  ;;  %v2852_v18 = vadd.f32 %v4902_v14, %v6363_v59  ;;  %v4905_v35 = vadd.f32 %v4904_v16, %v4903_v12 }
 0x154   : > { %v4940_v19 = vpop.f32.mrb[36].mxu1  ;;  %v2855_v20 = vadd.f32 %v4905_v35, %v6368_v60 }
 0x155   : > { %v4941_v28 = vpop.f32.mrb[37].mxu1 }
 0x156   : > { %v4942_v23 = vadd.f32 %v4941_v28, %v4940_v19  ;;  %v4943_v25 = vpop.f32.mrb[38].mxu1  ;;  %v4906_v2 = vpop.f32.mrb[40].mxu0 }
 0x157   : > { %v4944_v29 = vpop.f32.mrb[39].mxu1  ;;  %v4907_v31 = vpop.f32.mrb[41].mxu0 }
 0x158   : > { %v2917_v3 = vadd.f32 %v4942_v23, %v2852_v18  ;;  %v4945_v24 = vadd.f32 %v4944_v29, %v4943_v25  ;;  %v4908_v32 = vadd.f32 %v4907_v31, %v4906_v2  ;;  %v4909_v6 = vpop.f32.mrb[42].mxu0 }
 0x159   : > { %v4910_v33 = vpop.f32.mrb[43].mxu0 }
 0x15a   : > { %v2920_v26 = vadd.f32 %v4945_v24, %v2855_v20  ;;  %v2860_v34 = vadd.f32 %v4908_v32, %v6405_v27  ;;  %v4911_v38 = vadd.f32 %v4910_v33, %v4909_v6 }
 0x15c   : > { %v4946_v59 = vpop.f32.mrb[40].mxu1  ;;  %v2863_v37 = vadd.f32 %v4911_v38, %v6410_v30 }
 0x15d   : > { %v4947_v39 = vpop.f32.mrb[41].mxu1 }
 0x15e   : > { %v4948_v60 = vadd.f32 %v4947_v39, %v4946_v59  ;;  %v4949_v40 = vpop.f32.mrb[42].mxu1  ;;  %v4912_v43 = vpop.f32.mrb[44].mxu0 }
 0x15f   : > { %v4950_v41 = vpop.f32.mrb[43].mxu1  ;;  %v4913_v44 = vpop.f32.mrb[45].mxu0 }
 0x160   : > { %v2925_v15 = vadd.f32 %v4948_v60, %v2860_v34  ;;  %v4951_v61 = vadd.f32 %v4950_v41, %v4949_v40  ;;  %v4914_v45 = vadd.f32 %v4913_v44, %v4912_v43  ;;  %v4915_v46 = vpop.f32.mrb[46].mxu0 }
 0x161   : > { %v4916_v47 = vpop.f32.mrb[47].mxu0 }
 0x162   : > { %v2928_v42 = vadd.f32 %v4951_v61, %v2863_v37  ;;  %v2868_v13 = vadd.f32 %v4914_v45, %v2803_v55  ;;  %v4917_v17 = vadd.f32 %v4916_v47, %v4915_v46 }
 0x164   : > { %v4952_v48 = vpop.f32.mrb[44].mxu1  ;;  %v2871_v27 = vadd.f32 %v4917_v17, %v2806_v0 }
 0x165   : > { %v4953_v49 = vpop.f32.mrb[45].mxu1 }
 0x166   : > { %v4954_v50 = vadd.f32 %v4953_v49, %v4952_v48  ;;  %v4955_v52 = vpop.f32.mrb[46].mxu1  ;;  %v4974_v57 = vpop.f32.mrb[48].mxu0 }
 0x167   : > { %v4956_v30 = vpop.f32.mrb[47].mxu1  ;;  %v4975_v21 = vpop.f32.mrb[49].mxu0 }
 0x168   : > { %v2933_v54 = vadd.f32 %v4954_v50, %v2868_v13  ;;  %v4957_v56 = vadd.f32 %v4956_v30, %v4955_v52  ;;  %v4976_v51 = vadd.f32 %v4975_v21, %v4974_v57  ;;  %v4977_v22 = vpop.f32.mrb[50].mxu0 }
 0x169   : > { %v4978_v62 = vpop.f32.mrb[51].mxu0 }
 0x16a   : > { %v2936_v58 = vadd.f32 %v4957_v56, %v2871_v27  ;;  %v2974_v53 = vadd.f32 %v4976_v51, %v2909_v10  ;;  %v4979_v1 = vadd.f32 %v4978_v62, %v4977_v22 }
 0x16c   : > { %v2977_v5 = vadd.f32 %v4979_v1, %v2912_v36  ;;  %v5014_v7 = vpop.f32.mrb[48].mxu1 }
 0x16d   : > { %v5015_v8 = vpop.f32.mrb[49].mxu1 }
 0x16e   : > { %v4980_v55 = vpop.f32.mrb[52].mxu0  ;;  %v5016_v0 = vadd.f32 %v5015_v8, %v5014_v7  ;;  %v5017_v63 = vpop.f32.mrb[50].mxu1  ;;  %v6467_v7 = vld [vmem:[%s6757_s7] ss:$0 sm:$0xff] }
 0x16f   : > { %v4981_v9 = vpop.f32.mrb[53].mxu0  ;;  %v5018_v14 = vpop.f32.mrb[51].mxu1 }
 0x170   : > { %v4982_v4 = vadd.f32 %v4981_v9, %v4980_v55  ;;  %v4983_v11 = vpop.f32.mrb[54].mxu0  ;;  %v3039_v16 = vadd.f32 %v5016_v0, %v2974_v53  ;;  %v5019_v18 = vadd.f32 %v5018_v14, %v5017_v63 }
 0x171   : > { %v4984_v12 = vpop.f32.mrb[55].mxu0 }
 0x172   : > { %v2982_v35 = vadd.f32 %v4982_v4, %v2917_v3  ;;  %v4985_v19 = vadd.f32 %v4984_v12, %v4983_v11  ;;  %v3042_v20 = vadd.f32 %v5019_v18, %v2977_v5  ;;  %v3209_v11 = vld [vmem:[#allocation3 + $0x1] sm:$0xff] }
 0x174   : > { %v2985_v28 = vadd.f32 %v4985_v19, %v2920_v26  ;;  %v5020_v23 = vpop.f32.mrb[52].mxu1 }
 0x175   : > { %v5021_v25 = vpop.f32.mrb[53].mxu1 }
 0x176   : > { %v4986_v10 = vpop.f32.mrb[56].mxu0  ;;  %v5022_v29 = vadd.f32 %v5021_v25, %v5020_v23  ;;  %v5023_v24 = vpop.f32.mrb[54].mxu1 }
 0x177   : > { %v4987_v36 = vpop.f32.mrb[57].mxu0  ;;  %v5024_v32 = vpop.f32.mrb[55].mxu1 }
 0x178   : > { %v4988_v2 = vadd.f32 %v4987_v36, %v4986_v10  ;;  %v4989_v31 = vpop.f32.mrb[58].mxu0  ;;  %v3047_v33 = vadd.f32 %v5022_v29, %v2982_v35  ;;  %v5025_v34 = vadd.f32 %v5024_v32, %v5023_v24 }
 0x179   : > { %v4990_v6 = vpop.f32.mrb[59].mxu0 }
 0x17a   : > { %v2990_v38 = vadd.f32 %v4988_v2, %v2925_v15  ;;  %v4991_v59 = vadd.f32 %v4990_v6, %v4989_v31  ;;  %v3050_v37 = vadd.f32 %v5025_v34, %v2985_v28 }
 0x17c   : > { %v2993_v39 = vadd.f32 %v4991_v59, %v2928_v42  ;;  %v5026_v60 = vpop.f32.mrb[56].mxu1 }
 0x17d   : > { %v5027_v26 = vpop.f32.mrb[57].mxu1 }
 0x17e   : > { %v4992_v3 = vpop.f32.mrb[60].mxu0  ;;  %v5028_v43 = vadd.f32 %v5027_v26, %v5026_v60  ;;  %v5029_v44 = vpop.f32.mrb[58].mxu1 }
 0x17f   : > { %v4993_v40 = vpop.f32.mrb[61].mxu0  ;;  %v5030_v46 = vpop.f32.mrb[59].mxu1 }
 0x180   : > { %v4994_v41 = vadd.f32 %v4993_v40, %v4992_v3  ;;  %v4995_v61 = vpop.f32.mrb[62].mxu0  ;;  %v3055_v17 = vadd.f32 %v5028_v43, %v2990_v38  ;;  %v5031_v48 = vadd.f32 %v5030_v46, %v5029_v44  ;;  %v6494_v40 = vld [vmem:[#allocation2 + $0x8] sm:$0xff] }
 0x181   : > { %v4996_v45 = vpop.f32.mrb[63].mxu0  ;;  %v5515_v43 = vld [vmem:[%s6752_s2 + $0x148] sm:$0xff]  }
 0x182   : > { %v2998_v47 = vadd.f32 %v4994_v41, %v2933_v54  ;;  %v4997_v13 = vadd.f32 %v4996_v45, %v4995_v61  ;;  %v6453_v49 = vadd.f32 %v5031_v48, %v2993_v39  ;;  %v3217_v41 = vld [vmem:[#allocation3 + $0x2] sm:$0xff] }
 0x184   : > { %v3001_v27 = vadd.f32 %v4997_v13, %v2936_v58  ;;  %v5032_v15 = vpop.f32.mrb[60].mxu1  ;;  %v6462_v58 = vld [vmem:[%s6754_s4] ss:$0 sm:$0xff] }
 0x185   : > { %v5033_v50 = vpop.f32.mrb[61].mxu1 }
 0x186   : > { %v5034_v42 = vadd.f32 %v5033_v50, %v5032_v15  ;;  %v5035_v52 = vpop.f32.mrb[62].mxu1  ;;  %v5054_v21 = vpop.f32.mrb[64].mxu0  ;;  %v5517_v15 = vld [vmem:[%s6752_s2 + $0x1c8] sm:$0xff]  }
 0x187   : > { %v5036_v30 = vpop.f32.mrb[63].mxu1  ;;  %v5055_v22 = vpop.f32.mrb[65].mxu0 }
 0x188   : > { %v6455_v56 = vadd.f32 %v5034_v42, %v2998_v47  ;;  %v5037_v57 = vadd.f32 %v5036_v30, %v5035_v52  ;;  %v5056_v62 = vadd.f32 %v5055_v22, %v5054_v21  ;;  %v5057_v54 = vpop.f32.mrb[66].mxu0  ;;  %v5519_v30 = vld [vmem:[%s6752_s2 + $0x150] sm:$0xff]  }
 0x189   : > { %v5058_v53 = vpop.f32.mrb[67].mxu0 }
 0x18a   : > { %v6457_v51 = vadd.f32 %v5037_v57, %v3001_v27  ;;  %v3104_v1 = vadd.f32 %v5056_v62, %v3039_v16  ;;  %v5059_v5 = vadd.f32 %v5058_v53, %v5057_v54  ;;  %v5516_v27 = vld [vmem:[%s6752_s2 + $0x108] sm:$0xff]  }
 0x18b   : > { %v5518_v53 = vld [vmem:[%s6752_s2 + $0x188] sm:$0xff]  }
 0x18c   : > { %v3141_v55 = vmul.f32 %v6462_v58, %v3104_v1  ;;  %v3107_v8 = vadd.f32 %v5059_v5, %v3042_v20 }
 0x18e   : > { %v3156_v9 = vadd.f32 %v6467_v7, %v3141_v55  ;;  %v3142_v0 = vmul.f32 %v6462_v58, %v3107_v8  ;;  %v5060_v63 = vpop.f32.mrb[68].mxu0  ;;  %v5520_v55 = vld [vmem:[%s6752_s2 + $0x110] sm:$0xff]  }
 0x18f   : > { %v5061_v4 = vpop.f32.mrb[69].mxu0  ;;  %v5521_v8 = vld [vmem:[%s6752_s2 + $0x1d0] sm:$0xff]  }
 0x190   : > { %v6472_v14 = vmax.f32 %v3156_v9, 0.0  ;;  %v3157_v12 = vadd.f32 %v6467_v7, %v3142_v0  ;;  %v5062_v16 = vadd.f32 %v5061_v4, %v5060_v63  ;;  %v5063_v18 = vpop.f32.mrb[70].mxu0 }
 0x191   : > { %v5064_v35 = vpop.f32.mrb[71].mxu0 }
 0x192   : > { %3193 = vst [vmem:[#allocation3 + $0x11] sm:$0xff] %v6472_v14  ;;  %v6476_v19 = vmax.f32 %v3157_v12, 0.0  ;;  %v3112_v28 = vadd.f32 %v5062_v16, %v3047_v33  ;;  %v5065_v20 = vadd.f32 %v5064_v35, %v5063_v18  ;;  %v3275_v23 = vpack.c.bf16 %v6472_v14, %v3209_v11  ;;  %v5523_v12 = vld [vmem:[%s6752_s2 + $0x158] sm:$0xff]  }
 0x194   : > { %3194 = vst [vmem:[#allocation3 + $0x21] sm:$0xff] %v6476_v19  ;;  %v3143_v10 = vmul.f32 %v6462_v58, %v3112_v28  ;;  %v3115_v25 = vadd.f32 %v5065_v20, %v3050_v37  ;;  %3918 = vmatprep.mubr.bf16.mxu1 %v3275_v23  ;;  %v3278_v36 = vpack.c.bf16 %v6476_v19, %v6472_v14  ;;  %v5512_v37 = vld [vmem:[%s6752_s2 + $0x100] sm:$0xff]   ;;  %v5522_v23 = vld [vmem:[%s6752_s2 + $0x190] sm:$0xff]  }
 0x196   : > { %v3158_v29 = vadd.f32 %v6467_v7, %v3143_v10  ;;  %v3144_v24 = vmul.f32 %v6462_v58, %v3115_v25  ;;  %v5066_v2 = vpop.f32.mrb[72].mxu0  ;;  %v5525_v25 = vld [vmem:[%s6752_s2 + $0x1d8] sm:$0xff]  }
 0x197   : > { %v5067_v31 = vpop.f32.mrb[73].mxu0 }
 0x198   : > { %v6485_v32 = vmax.f32 %v3158_v29, 0.0  ;;  %v3159_v6 = vadd.f32 %v6467_v7, %v3144_v24  ;;  %v5068_v33 = vadd.f32 %v5067_v31, %v5066_v2  ;;  %v5069_v34 = vpop.f32.mrb[74].mxu0  ;;  %v5527_v31 = vld [vmem:[%s6752_s2 + $0x160] sm:$0xff]  }
 0x199   : > { %v5070_v38 = vpop.f32.mrb[75].mxu0  ;;  %v3202_v59 = vld [vmem:[#allocation3 + $0x10] sm:$0xff] }
 0x19a   : > { %3195 = vst [vmem:[#allocation3 + $0x31] sm:$0xff] %v6485_v32  ;;  %v6492_v39 = vmax.f32 %v3159_v6, 0.0  ;;  %v3120_v3 = vadd.f32 %v5068_v33, %v3055_v17  ;;  %v5071_v60 = vadd.f32 %v5070_v38, %v5069_v34  ;;  %v3274_v26 = vpack.c.bf16 %v3202_v59, %v6494_v40  ;;  %v6497_v61 = vld [vmem:[#allocation3 + $0x12] sm:$0xff]  ;;  %v5514_v17 = vld [vmem:[%s6752_s2 + $0x180] sm:$0xff]  }
 0x19b   : > { %v3226_v44 = vld [vmem:[#allocation3 + $0x20] sm:$0xff]  ;;  %v6504_v45 = vpack.c.bf16 %v6485_v32, %v6476_v19  ;;  %v3276_v48 = vpack.c.bf16 %v6497_v61, %v3217_v41  ;;  %v5526_v34 = vld [vmem:[%s6752_s2 + $0x198] sm:$0xff]  }
 0x19c   : > { %3196 = vst [vmem:[#allocation3 + $0x41] sm:$0xff] %v6492_v39  ;;  %v3145_v46 = vmul.f32 %v6462_v58, %v3120_v3  ;;  %v3123_v47 = vadd.f32 %v5071_v60, %v6453_v49  ;;  %3919 = vmatmul.mubr.bf16.vlgmr.msra.gmra.mrb[64].mxu1 %v3274_v26  ;;  %v3277_v13 = vpack.c.bf16 %v3226_v44, %v3202_v59  ;;  %v6558_v20 = vld [vmem:[#allocation3 + $0x22] sm:$0xff] }
 0x19d   : > { %5159 = vmatpush3.bf16.msra.mxu1 %v5512_v37  ;;  %3926 = vmatprep.mubr.bf16.mxu1 %v6504_v45  ;;  %v3287_v49 = vpack.c.bf16 %v6492_v39, %v6485_v32  ;;  %v5528_v38 = vld [vmem:[%s6752_s2 + $0x120] sm:$0xff]   ;;  %v5531_v60 = vld [vmem:[%s6752_s2 + $0x168] sm:$0xff]  }
 0x19e   : > { %v3160_v50 = vadd.f32 %v6467_v7, %v3145_v46  ;;  %v3146_v42 = vmul.f32 %v6462_v58, %v3123_v47  ;;  %v5072_v52 = vpop.f32.mrb[76].mxu0  ;;  %3983 = vmatprep.mubr.bf16.mxu0 %v3277_v13  ;;  %5160 = vmatprep.subr.bf16.mxu1 %v5515_v43  ;;  %v5529_v59 = vld [vmem:[%s6752_s2 + $0x1e0] sm:$0xff]   ;;  %v5532_v13 = vld [vmem:[%s6752_s2 + $0x128] sm:$0xff]  }
 0x19f   : > { %v5073_v57 = vpop.f32.mrb[77].mxu0  ;;  %3984 = vmatmul.mubr.bf16.vlgmr.msra.gmra.mrb[80].mxu0 %v3276_v48  ;;  %v5530_v46 = vld [vmem:[%s6752_s2 + $0x1a0] sm:$0xff]  }
 0x1a0   : > { %v6527_v21 = vmax.f32 %v3160_v50, 0.0  ;;  %v3161_v22 = vadd.f32 %v6467_v7, %v3146_v42  ;;  %v5074_v62 = vadd.f32 %v5073_v57, %v5072_v52  ;;  %v5075_v54 = vpop.f32.mrb[78].mxu0  ;;  %5199 = vmatpush3.bf16.msra.mxu0 %v5514_v17  ;;  %v5533_v17 = vld [vmem:[%s6752_s2 + $0x1e8] sm:$0xff]   ;;  %v5536_v42 = vld [vmem:[%s6752_s2 + $0x130] sm:$0xff]   ;;  %v5547_v19 = vld [vmem:[%s6752_s2 + $0x220] sm:$0xff]  }
 0x1a1   : > { %v5076_v1 = vpop.f32.mrb[79].mxu0  ;;  %5161 = vmatpush3.bf16.msra.mxu1 %v5516_v27  ;;  %5200 = vmatprep.subr.bf16.mxu0 %v5517_v15  ;;  %v3204_v5 = vld [vmem:[#allocation3 + $0x30] sm:$0xff]  ;;  %v5534_v15 = vld [vmem:[%s6752_s2 + $0x1a8] sm:$0xff]  }
 0x1a2   : > { %3197 = vst [vmem:[#allocation3 + $0x51] sm:$0xff] %v6527_v21  ;;  %v6540_v9 = vmax.f32 %v3161_v22, 0.0  ;;  %v3128_v0 = vadd.f32 %v5074_v62, %v6455_v56  ;;  %v5077_v63 = vadd.f32 %v5076_v1, %v5075_v54  ;;  %v6543_v4 = vpack.c.bf16 %v3204_v5, %v3226_v44  ;;  %5162 = vmatprep.subr.bf16.mxu1 %v5519_v30  ;;  %v6545_v11 = vld [vmem:[#allocation3 + $0x32] sm:$0xff] }
 0x1a3   : > { %v3228_v16 = vld [vmem:[#allocation3 + $0x40] sm:$0xff]  ;;  %v6552_v18 = vpack.c.bf16 %v6527_v21, %v6492_v39  ;;  %v6565_v10 = vpack.c.bf16 %v6545_v11, %v6558_v20  ;;  %v5535_v27 = vld [vmem:[%s6752_s2 + $0x170] sm:$0xff]   ;;  %v3279_v62 = vpack.c.bf16 %v6558_v20, %v6497_v61  ;;  %v5539_v54 = vld [vmem:[%s6752_s2 + $0x178] sm:$0xff]  }
 0x1a4   : > { %3198 = vst [vmem:[#allocation3 + $0x61] sm:$0xff] %v6540_v9  ;;  %v3147_v35 = vmul.f32 %v6462_v58, %v3128_v0  ;;  %v3131_v56 = vadd.f32 %v5077_v63, %v6457_v51  ;;  %5201 = vmatpush3.bf16.msra.mxu0 %v5518_v53  ;;  %3927 = vmatmul.mubr.bf16.gmra.mrb[68].mxu1 %v6543_v4  ;;  %v5524_v51 = vld [vmem:[%s6752_s2 + $0x118] sm:$0xff]   ;;  %v3221_v44 = vld [vmem:[#allocation3 + $0x42] sm:$0xff]  ;;  %v5537_v57 = vld [vmem:[%s6752_s2 + $0x1f0] sm:$0xff]  }
 0x1a5   : > { %v3286_v28 = vpack.c.bf16 %v3228_v16, %v3204_v5  ;;  %5163 = vmatpush3.bf16.msra.mxu1 %v5520_v55  ;;  %5202 = vmatprep.subr.bf16.mxu0 %v5521_v8  ;;  %v3296_v29 = vpack.c.bf16 %v6540_v9, %v6527_v21  ;;  %v5538_v5 = vld [vmem:[%s6752_s2 + $0x1b0] sm:$0xff]   ;;  %v5540_v61 = vld [vmem:[%s6752_s2 + $0x138] sm:$0xff]   ;;  %v5543_v0 = vld [vmem:[%s6752_s2 + $0x200] sm:$0xff]  }
 0x1a6   : > { %v3162_v24 = vadd.f32 %v6467_v7, %v3147_v35  ;;  %v3148_v2 = vmul.f32 %v6462_v58, %v3131_v56  ;;  %5164 = vmatprep.subr.bf16.mxu1 %v5523_v12  ;;  %3934 = vmatprep.mubr.bf16.mxu1 %v6552_v18  ;;  %v5541_v8 = vld [vmem:[%s6752_s2 + $0x1f8] sm:$0xff]   ;;  %v5544_v12 = vld [vmem:[%s6752_s2 + $0x208] sm:$0xff]   ;;  %v5553_v20 = vld [vmem:[%s6753_s3 + $0x10] sm:$0xff]  }
 0x1a7   : > { %3991 = vmatprep.mubr.bf16.mxu0 %v3286_v28  ;;  %v5542_v63 = vld [vmem:[%s6752_s2 + $0x1b8] sm:$0xff]   ;;  %v5551_v28 = vld [vmem:[%s6753_s3] sm:$0xff]  }
 0x1a8   : > { %3992 = vmatmul.mubr.bf16.gmra.mrb[84].mxu0 %v6565_v10  ;;  %v6582_v6 = vmax.f32 %v3162_v24, 0.0  ;;  %v3163_v33 = vadd.f32 %v6467_v7, %v3148_v2  ;;  %v3265_v39 = vld [vmem:[#allocation3 + $0x91] sm:$0xff] }
 0x1a9   : > { %5203 = vmatpush3.bf16.msra.mxu0 %v5522_v23  ;;  %5165 = vmatpush3.bf16.msra.mxu1 %v5524_v51  ;;  %v3206_v58 = vld [vmem:[#allocation3 + $0x50] sm:$0xff]  ;;  %v5550_v35 = vld [vmem:[%s6752_s2 + $0x238] sm:$0xff]   ;;  %v5556_v51 = vld [vmem:[%s6753_s3 + $0x28] sm:$0xff]  }
 0x1aa   : > { %5204 = vmatprep.subr.bf16.mxu0 %v5525_v25  ;;  %3199 = vst [vmem:[#allocation3 + $0x71] sm:$0xff] %v6582_v6  ;;  %v6595_v37 = vmax.f32 %v3163_v33, 0.0  ;;  %v6597_v7 = vpack.c.bf16 %v3206_v58, %v3228_v16  ;;  %5166 = vmatprep.subr.bf16.mxu1 %v5527_v31  ;;  %v6599_v3 = vld [vmem:[#allocation3 + $0x52] sm:$0xff]  ;;  %v6606_v26 = vpack.c.bf16 %v6582_v6, %v6540_v9 }
 0x1ab   : > { %v3230_v41 = vld [vmem:[#allocation3 + $0x60] sm:$0xff]  ;;  %v6614_v47 = vpack.c.bf16 %v6599_v3, %v3221_v44  ;;  %v3288_v16 = vpack.c.bf16 %v3221_v44, %v6545_v11  ;;  %v5546_v11 = vld [vmem:[%s6752_s2 + $0x218] sm:$0xff]   ;;  %v5557_v25 = vld [vmem:[%s6753_s3 + $0x30] sm:$0xff]  }
 0x1ac   : > { %3200 = vst [vmem:[#allocation3 + $0x81] sm:$0xff] %v6595_v37  ;;  %3935 = vmatmul.mubr.bf16.gmra.mrb[72].mxu1 %v6597_v7  ;;  %v3295_v43 = vpack.c.bf16 %v3230_v41, %v3206_v58  ;;  %v3305_v48 = vpack.c.bf16 %v6595_v37, %v6582_v6  ;;  %v3223_v1 = vld [vmem:[#allocation3 + $0x62] sm:$0xff]  ;;  %v3273_v9 = vld [vmem:[#allocation3 + $0x92] sm:$0xff] }
 0x1ad   : > { %5205 = vmatpush3.bf16.msra.mxu0 %v5526_v34  ;;  %5167 = vmatpush3.bf16.msra.mxu1 %v5528_v38  ;;  %v3297_v14 = vpack.c.bf16 %v3223_v1, %v6599_v3  ;;  %v5554_v23 = vld [vmem:[%s6753_s3 + $0x18] sm:$0xff]  }
 0x1ae   : > { %5206 = vmatprep.subr.bf16.mxu0 %v5529_v59  ;;  %3999 = vmatprep.mubr.bf16.mxu0 %v3295_v43 }
 0x1af   : > { %5168 = vmatprep.subr.bf16.mxu1 %v5531_v60  ;;  %3942 = vmatprep.mubr.bf16.mxu1 %v6606_v26 }
 0x1b0   : > { %4000 = vmatmul.mubr.bf16.gmra.mrb[88].mxu0 %v6614_v47 }
 0x1b1   : > { %5207 = vmatpush3.bf16.msra.mxu0 %v5530_v46  ;;  %5169 = vmatpush3.bf16.msra.mxu1 %v5532_v13  ;;  %v3208_v50 = vld [vmem:[#allocation3 + $0x70] sm:$0xff] }
 0x1b2   : > { %5208 = vmatprep.subr.bf16.mxu0 %v5533_v17  ;;  %v3301_v52 = vpack.c.bf16 %v3208_v50, %v3230_v41  ;;  %5170 = vmatprep.subr.bf16.mxu1 %v5535_v27  ;;  %v3224_v30 = vld [vmem:[#allocation3 + $0x72] sm:$0xff] }
 0x1b3   : > { %v6638_v22 = vld [vmem:[#allocation3 + $0x80] sm:$0xff]  ;;  %v3303_v55 = vpack.c.bf16 %v3224_v30, %v3223_v1 }
 0x1b4   : > { %3943 = vmatmul.mubr.bf16.gmra.mrb[76].mxu1 %v3301_v52  ;;  %v3304_v53 = vpack.c.bf16 %v6638_v22, %v3208_v50  ;;  %v3307_v21 = vpack.c.bf16 %v6494_v40, %v6638_v22  ;;  %v5552_v40 = vld [vmem:[%s6753_s3 + $0x8] sm:$0xff]  }
 0x1b5   : > { %5209 = vmatpush3.bf16.msra.mxu0 %v5534_v15  ;;  %5171 = vmatpush3.bf16.msra.mxu1 %v5536_v42 }
 0x1b6   : > { %4048 = vmatprep.mubr.bf16.mxu1 %v3279_v62  ;;  %4007 = vmatprep.mubr.bf16.mxu0 %v3304_v53 }
 0x1b7   : > { %5210 = vmatprep.subr.bf16.mxu0 %v5537_v57  ;;  %5172 = vmatprep.subr.bf16.mxu1 %v5539_v54 }
 0x1b8   : > { %4008 = vmatmul.mubr.bf16.gmra.mrb[92].mxu0 %v3303_v55 }
 0x1b9   : > { %5211 = vmatpush3.bf16.msra.mxu0 %v5538_v5  ;;  %4113 = vmatprep.mubr.bf16.mxu0 %v6504_v45  ;;  %v5545_v45 = vld [vmem:[%s6752_s2 + $0x210] sm:$0xff]  }
 0x1ba   : > { %5173 = vmatpush3.bf16.msra.mxu1 %v5540_v61  ;;  %5212 = vmatprep.subr.bf16.mxu0 %v5541_v8 }
 0x1bb   : > { %5262 = vmatprep.subr.bf16.mxu1 %v5543_v0 }
 0x1bd   : > { %5213 = vmatpush3.bf16.msra.mxu0 %v5542_v63  ;;  %4049 = vmatmul.mubr.bf16.vlgmr.msra.gmra.mrb[80].mxu1 %v3278_v36  ;;  %v3248_v36 = vld [vmem:[#allocation3 + $0x82] sm:$0xff] }
 0x1be   : > { %4056 = vmatprep.mubr.bf16.mxu1 %v3288_v16  ;;  %5263 = vmatpush3.bf16.msra.mxu1 %v5543_v0  ;;  %v3306_v32 = vpack.c.bf16 %v3248_v36, %v3224_v30  ;;  %v3309_v56 = vpack.c.bf16 %v3273_v9, %v3248_v36 }
 0x1bf   : > { %5264 = vmatprep.subr.bf16.mxu1 %v5544_v12  ;;  %5286 = vmatprep.subr.bf16.mxu0 %v5551_v28 }
 0x1c0   : > { %4114 = vmatmul.mubr.bf16.vlgmr.msra.gmra.mrb[96].mxu0 %v6543_v4  ;;  %v5548_v4 = vld [vmem:[%s6752_s2 + $0x228] sm:$0xff]  }
 0x1c1   : > { %4121 = vmatprep.mubr.bf16.mxu0 %v6552_v18  ;;  %v5549_v18 = vld [vmem:[%s6752_s2 + $0x230] sm:$0xff]   ;;  %5287 = vmatpush3.bf16.msra.mxu0 %v5551_v28 }
 0x1c2   : > { %5265 = vmatpush3.bf16.msra.mxu1 %v5544_v12  ;;  %5288 = vmatprep.subr.bf16.mxu0 %v5552_v40 }
 0x1c3   : > { %5266 = vmatprep.subr.bf16.mxu1 %v5545_v45 }
 0x1c5   : > { %4057 = vmatmul.mubr.bf16.gmra.mrb[84].mxu1 %v3287_v49  ;;  %v3308_v49 = vpack.c.bf16 %v3265_v39, %v6595_v37  ;;  %5289 = vmatpush3.bf16.msra.mxu0 %v5552_v40 }
 0x1c6   : > { %4064 = vmatprep.mubr.bf16.mxu1 %v3297_v14  ;;  %5267 = vmatpush3.bf16.msra.mxu1 %v5545_v45 }
 0x1c7   : > { %5268 = vmatprep.subr.bf16.mxu1 %v5546_v11  ;;  %5290 = vmatprep.subr.bf16.mxu0 %v5553_v20 }
 0x1c8   : > { %4122 = vmatmul.mubr.bf16.gmra.mrb[100].mxu0 %v6597_v7 }
 0x1c9   : > { %4129 = vmatprep.mubr.bf16.mxu0 %v6606_v26  ;;  %5291 = vmatpush3.bf16.msra.mxu0 %v5553_v20 }
 0x1ca   : > { %5269 = vmatpush3.bf16.msra.mxu1 %v5546_v11  ;;  %5292 = vmatprep.subr.bf16.mxu0 %v5554_v23 }
 0x1cb   : > { %5270 = vmatprep.subr.bf16.mxu1 %v5547_v19 }
 0x1cd   : > { %4065 = vmatmul.mubr.bf16.gmra.mrb[88].mxu1 %v3296_v29  ;;  %5293 = vmatpush3.bf16.msra.mxu0 %v5554_v23  ;;  %v5558_v29 = vld [vmem:[%s6753_s3 + $0x38] sm:$0xff]  }
 0x1ce   : > { %4072 = vmatprep.mubr.bf16.mxu1 %v3306_v32  ;;  %5271 = vmatpush3.bf16.msra.mxu1 %v5547_v19 }
 0x1cf   : > { %5272 = vmatprep.subr.bf16.mxu1 %v5548_v4 }
 0x1d0   : > { %4130 = vmatmul.mubr.bf16.gmra.mrb[104].mxu0 %v3301_v52 }
 0x1d1   : > { %4137 = vmatprep.mubr.bf16.mxu0 %v3308_v49 }
 0x1d2   : > { %5273 = vmatpush3.bf16.msra.mxu1 %v5548_v4 }
 0x1d3   : > { %5274 = vmatprep.subr.bf16.mxu1 %v5549_v18 }
 0x1d5   : > { %4073 = vmatmul.mubr.bf16.gmra.mrb[92].mxu1 %v3305_v48 }
 0x1d6   : > { %5275 = vmatpush3.bf16.msra.mxu1 %v5549_v18  ;;  %5278 = vmatprep.mubr.bf16.mxu1 %v6565_v10  ;;  %v5555_v10 = vld [vmem:[%s6753_s3 + $0x20] sm:$0xff]  }
 0x1d7   : > { %5276 = vmatprep.subr.bf16.mxu1 %v5550_v35  ;;  %5294 = vmatprep.subr.bf16.mxu0 %v5555_v10 }
 0x1d8   : > { %4138 = vmatmul.mubr.bf16.gmra.mrb[108].mxu0 %v3307_v21 }
 0x1d9   : > { %5295 = vmatpush3.bf16.msra.mxu0 %v5555_v10 }
 0x1da   : > { %5277 = vmatpush3.bf16.msra.mxu1 %v5550_v35  ;;  %5296 = vmatprep.subr.bf16.mxu0 %v5556_v51 }
 0x1db   : > { %5310 = vmatprep.subr.bf16.mxu1 %v5551_v28 }
 0x1dd   : > { %5279 = vmatmul.mubr.bf16.vlgmr.msra.gmra.mrb[96].mxu1 %v6614_v47  ;;  %5297 = vmatpush3.bf16.msra.mxu0 %v5556_v51 }
 0x1de   : > { %5282 = vmatprep.mubr.bf16.mxu1 %v3303_v55  ;;  %5318 = vmatpush3.bf16.msra.mxu1 %v5551_v28 }
 0x1df   : > { %5311 = vmatprep.subr.bf16.mxu1 %v5552_v40  ;;  %5298 = vmatprep.subr.bf16.mxu0 %v5557_v25 }
 0x1e1   : > { %5299 = vmatpush3.bf16.msra.mxu0 %v5557_v25 }
 0x1e2   : > { %5319 = vmatpush3.bf16.msra.mxu1 %v5552_v40  ;;  %5300 = vmatprep.subr.bf16.mxu0 %v5558_v29 }
 0x1e3   : > { %5312 = vmatprep.subr.bf16.mxu1 %v5553_v20 }
 0x1e5   : > { %5283 = vmatmul.mubr.bf16.gmra.mrb[100].mxu1 %v3309_v56  ;;  %5301 = vmatpush3.bf16.msra.mxu0 %v5558_v29 }
 0x1e6   : > { %5320 = vmatpush3.bf16.msra.mxu1 %v5553_v20 }
 0x1e7   : > { %5313 = vmatprep.subr.bf16.mxu1 %v5554_v23 }
 0x1ea   : > { %5321 = vmatpush3.bf16.msra.mxu1 %v5554_v23 }
 0x1eb   : > { %5314 = vmatprep.subr.bf16.mxu1 %v5555_v10 }
 0x1ee   : > { %5322 = vmatpush3.bf16.msra.mxu1 %v5555_v10 }
 0x1ef   : > { %5315 = vmatprep.subr.bf16.mxu1 %v5556_v51 }
 0x1f2   : > { %5323 = vmatpush3.bf16.msra.mxu1 %v5556_v51 }
 0x1f3   : > { %5316 = vmatprep.subr.bf16.mxu1 %v5557_v25 }
 0x1f6   : > { %5324 = vmatpush3.bf16.msra.mxu1 %v5557_v25 }
 0x1f7   : > { %5317 = vmatprep.subr.bf16.mxu1 %v5558_v29 }
 0x1fa   : > { %5325 = vmatpush3.bf16.msra.mxu1 %v5558_v29 }
 0x26f   : > { %v5094_v24 = vpop.f32.mrb[64].mxu1 }
 0x270   : > { %v5095_v2 = vpop.f32.mrb[65].mxu1 }
 0x271   : > { %v5096_v31 = vadd.f32 %v5095_v2, %v5094_v24  ;;  %v5097_v6 = vpop.f32.mrb[66].mxu1 }
 0x272   : > { %v5134_v33 = vpop.f32.mrb[80].mxu0  ;;  %v5098_v34 = vpop.f32.mrb[67].mxu1 }
 0x273   : > { %v5099_v58 = vadd.f32 %v5098_v34, %v5097_v6  ;;  %v5135_v38 = vpop.f32.mrb[81].mxu0 }
 0x274   : > { %v5136_v59 = vadd.f32 %v5135_v38, %v5134_v33  ;;  %v5137_v37 = vpop.f32.mrb[82].mxu0 }
 0x275   : > { %v5138_v7 = vpop.f32.mrb[83].mxu0 }
 0x276   : > { %v3986_v3 = vadd.f32 %v5136_v59, %v5096_v31  ;;  %v5139_v60 = vadd.f32 %v5138_v7, %v5137_v37 }
 0x277   : > { %v5100_v26 = vpop.f32.mrb[68].mxu1 }
 0x278   : > { %v3989_v41 = vadd.f32 %v5139_v60, %v5099_v58  ;;  %v5101_v43 = vpop.f32.mrb[69].mxu1 }
 0x279   : > { %v5102_v44 = vadd.f32 %v5101_v43, %v5100_v26  ;;  %v5103_v46 = vpop.f32.mrb[70].mxu1 }
 0x27a   : > { %v5104_v13 = vpop.f32.mrb[71].mxu1 }
 0x27b   : > { %v5140_v47 = vpop.f32.mrb[84].mxu0  ;;  %v5105_v17 = vadd.f32 %v5104_v13, %v5103_v46 }
 0x27c   : > { %v5141_v48 = vpop.f32.mrb[85].mxu0 }
 0x27d   : > { %v5142_v27 = vadd.f32 %v5141_v48, %v5140_v47  ;;  %v5143_v15 = vpop.f32.mrb[86].mxu0 }
 0x27e   : > { %v5144_v50 = vpop.f32.mrb[87].mxu0 }
 0x27f   : > { %v3994_v42 = vadd.f32 %v5142_v27, %v5102_v44  ;;  %v5145_v52 = vadd.f32 %v5144_v50, %v5143_v15  ;;  %v5106_v30 = vpop.f32.mrb[72].mxu1 }
 0x280   : > { %v5107_v22 = vpop.f32.mrb[73].mxu1 }
 0x281   : > { %v3997_v57 = vadd.f32 %v5145_v52, %v5105_v17  ;;  %v5108_v62 = vadd.f32 %v5107_v22, %v5106_v30  ;;  %v5109_v54 = vpop.f32.mrb[74].mxu1 }
 0x282   : > { %v5110_v1 = vpop.f32.mrb[75].mxu1 }
 0x283   : > { %v5146_v53 = vpop.f32.mrb[88].mxu0  ;;  %v5111_v5 = vadd.f32 %v5110_v1, %v5109_v54 }
 0x284   : > { %v5147_v55 = vpop.f32.mrb[89].mxu0 }
 0x285   : > { %v5148_v61 = vadd.f32 %v5147_v55, %v5146_v53  ;;  %v5149_v8 = vpop.f32.mrb[90].mxu0 }
 0x286   : > { %v5150_v0 = vpop.f32.mrb[91].mxu0 }
 0x287   : > { %v4002_v63 = vadd.f32 %v5148_v61, %v5108_v62  ;;  %v5151_v12 = vadd.f32 %v5150_v0, %v5149_v8  ;;  %v5112_v16 = vpop.f32.mrb[76].mxu1 }
 0x288   : > { %v5113_v11 = vpop.f32.mrb[77].mxu1 }
 0x289   : > { %v4005_v45 = vadd.f32 %v5151_v12, %v5111_v5  ;;  %v5114_v14 = vadd.f32 %v5113_v11, %v5112_v16  ;;  %v5115_v19 = vpop.f32.mrb[78].mxu1 }
 0x28a   : > { %v5116_v4 = vpop.f32.mrb[79].mxu1 }
 0x28b   : > { %v5152_v36 = vpop.f32.mrb[92].mxu0  ;;  %v5117_v32 = vadd.f32 %v5116_v4, %v5115_v19 }
 0x28c   : > { %v5153_v39 = vpop.f32.mrb[93].mxu0 }
 0x28d   : > { %v5154_v49 = vadd.f32 %v5153_v39, %v5152_v36  ;;  %v5155_v18 = vpop.f32.mrb[94].mxu0 }
 0x28e   : > { %v5156_v35 = vpop.f32.mrb[95].mxu0 }
 0x28f   : > { %v4010_v21 = vadd.f32 %v5154_v49, %v5114_v14  ;;  %v5157_v9 = vadd.f32 %v5156_v35, %v5155_v18 }
 0x290   : > { %v5174_v56 = vpop.f32.mrb[80].mxu1 }
 0x291   : > { %v4013_v28 = vadd.f32 %v5157_v9, %v5117_v32  ;;  %v5175_v40 = vpop.f32.mrb[81].mxu1 }
 0x292   : > { %v5176_v20 = vadd.f32 %v5175_v40, %v5174_v56  ;;  %v5177_v23 = vpop.f32.mrb[82].mxu1 }
 0x293   : > { %v5214_v10 = vpop.f32.mrb[96].mxu0  ;;  %v5178_v51 = vpop.f32.mrb[83].mxu1 }
 0x294   : > { %v4051_v25 = vadd.f32 %v5176_v20, %v3986_v3  ;;  %v5179_v29 = vadd.f32 %v5178_v51, %v5177_v23  ;;  %v5215_v24 = vpop.f32.mrb[97].mxu0  ;;  %v4702_v20 = vld [vmem:[%s6755_s5] ss:$0 sm:$0xff] }
 0x295   : > { %v5216_v2 = vadd.f32 %v5215_v24, %v5214_v10  ;;  %v5217_v31 = vpop.f32.mrb[98].mxu0 }
 0x296   : > { %v4054_v6 = vadd.f32 %v5179_v29, %v3989_v41  ;;  %v5218_v33 = vpop.f32.mrb[99].mxu0 }
 0x297   : > { %v5219_v34 = vadd.f32 %v5218_v33, %v5217_v31  ;;  %v4116_v58 = vadd.f32 %v5216_v2, %v4051_v25 }
 0x298   : > { %v5180_v38 = vpop.f32.mrb[84].mxu1 }
 0x299   : > { %v5181_v59 = vpop.f32.mrb[85].mxu1  ;;  %v4119_v37 = vadd.f32 %v5219_v34, %v4054_v6 }
 0x29a   : > { %v5182_v7 = vadd.f32 %v5181_v59, %v5180_v38  ;;  %v5183_v60 = vpop.f32.mrb[86].mxu1 }
 0x29b   : > { %v5220_v26 = vpop.f32.mrb[100].mxu0  ;;  %v5184_v43 = vpop.f32.mrb[87].mxu1 }
 0x29c   : > { %v4059_v44 = vadd.f32 %v5182_v7, %v3994_v42  ;;  %v5185_v46 = vadd.f32 %v5184_v43, %v5183_v60  ;;  %v5221_v47 = vpop.f32.mrb[101].mxu0 }
 0x29d   : > { %v5222_v13 = vadd.f32 %v5221_v47, %v5220_v26  ;;  %v5223_v3 = vpop.f32.mrb[102].mxu0 }
 0x29e   : > { %v4062_v17 = vadd.f32 %v5185_v46, %v3997_v57  ;;  %v5224_v48 = vpop.f32.mrb[103].mxu0 }
 0x29f   : > { %v5225_v27 = vadd.f32 %v5224_v48, %v5223_v3  ;;  %v4124_v15 = vadd.f32 %v5222_v13, %v4059_v44 }
 0x2a0   : > { %v5186_v41 = vpop.f32.mrb[88].mxu1 }
 0x2a1   : > { %v5187_v50 = vpop.f32.mrb[89].mxu1  ;;  %v4127_v52 = vadd.f32 %v5225_v27, %v4062_v17 }
 0x2a2   : > { %v5188_v30 = vadd.f32 %v5187_v50, %v5186_v41  ;;  %v5189_v22 = vpop.f32.mrb[90].mxu1 }
 0x2a3   : > { %v5226_v62 = vpop.f32.mrb[104].mxu0  ;;  %v5190_v54 = vpop.f32.mrb[91].mxu1 }
 0x2a4   : > { %v4067_v53 = vadd.f32 %v5188_v30, %v4002_v63  ;;  %v5191_v1 = vadd.f32 %v5190_v54, %v5189_v22  ;;  %v5227_v5 = vpop.f32.mrb[105].mxu0 }
 0x2a5   : > { %v5228_v55 = vadd.f32 %v5227_v5, %v5226_v62  ;;  %v5229_v42 = vpop.f32.mrb[106].mxu0 }
 0x2a6   : > { %v4070_v61 = vadd.f32 %v5191_v1, %v4005_v45  ;;  %v5230_v8 = vpop.f32.mrb[107].mxu0 }
 0x2a7   : > { %v5231_v0 = vadd.f32 %v5230_v8, %v5229_v42  ;;  %v4132_v12 = vadd.f32 %v5228_v55, %v4067_v53 }
 0x2a8   : > { %v5192_v57 = vpop.f32.mrb[92].mxu1 }
 0x2a9   : > { %v5193_v16 = vpop.f32.mrb[93].mxu1  ;;  %v4135_v11 = vadd.f32 %v5231_v0, %v4070_v61 }
 0x2aa   : > { %v5194_v14 = vadd.f32 %v5193_v16, %v5192_v57  ;;  %v5195_v19 = vpop.f32.mrb[94].mxu1  ;;  %v4713_v16 = vld [vmem:[%s6759_s9] ss:$0 sm:$0xff] }
 0x2ab   : > { %v5232_v36 = vpop.f32.mrb[108].mxu0  ;;  %v5196_v4 = vpop.f32.mrb[95].mxu1 }
 0x2ac   : > { %v4075_v32 = vadd.f32 %v5194_v14, %v4010_v21  ;;  %v5197_v39 = vadd.f32 %v5196_v4, %v5195_v19  ;;  %v5233_v49 = vpop.f32.mrb[109].mxu0  ;;  %v4703_v21 = vld [vmem:[%s6758_s8] ss:$0 sm:$0xff] }
 0x2ad   : > { %v5234_v18 = vadd.f32 %v5233_v49, %v5232_v36  ;;  %v5235_v63 = vpop.f32.mrb[110].mxu0 }
 0x2ae   : > { %v4078_v35 = vadd.f32 %v5197_v39, %v4013_v28  ;;  %v5236_v9 = vpop.f32.mrb[111].mxu0 }
 0x2af   : > { %v5237_v56 = vadd.f32 %v5236_v9, %v5235_v63  ;;  %v4140_v40 = vadd.f32 %v5234_v18, %v4075_v32 }
 0x2b0   : > { %v5280_v45 = vpop.f32.mrb[96].mxu1 }
 0x2b1   : > { %v4189_v23 = vadd.f32 %v5280_v45, %v4124_v15  ;;  %v4180_v10 = vpop.f32.mrb[97].mxu1  ;;  %v4143_v51 = vadd.f32 %v5237_v56, %v4078_v35 }
 0x2b2   : > { %v4181_v25 = vadd.f32 %v4180_v10, %v4116_v58  ;;  %v5281_v29 = vpop.f32.mrb[98].mxu1 }
 0x2b3   : > { %v4220_v24 = vmul.f32 %v4702_v20, %v4189_v23  ;;  %v4192_v2 = vadd.f32 %v5281_v29, %v4127_v52  ;;  %v4183_v28 = vpop.f32.mrb[99].mxu1 }
 0x2b4   : > { %v4218_v31 = vmul.f32 %v4702_v20, %v4181_v25  ;;  %v4184_v6 = vadd.f32 %v4183_v28, %v4119_v37 }
 0x2b5   : > { %v4235_v33 = vadd.f32 %v4703_v21, %v4220_v24  ;;  %v4221_v34 = vmul.f32 %v4702_v20, %v4192_v2 }
 0x2b6   : > { %v4233_v38 = vadd.f32 %v4703_v21, %v4218_v31  ;;  %v4219_v59 = vmul.f32 %v4702_v20, %v4184_v6 }
 0x2b7   : > { %v4236_v7 = vadd.f32 %v4703_v21, %v4221_v34  ;;  %v4243_v43 = vmax.f32 %v4235_v33, 0.0 }
 0x2b8   : > { %v4234_v60 = vadd.f32 %v4703_v21, %v4219_v59  ;;  %v5284_v26 = vpop.f32.mrb[100].mxu1  ;;  %v4241_v13 = vmax.f32 %v4233_v38, 0.0 }
 0x2b9   : > { %v4244_v44 = vmax.f32 %v4236_v7, 0.0  ;;  %v4205_v46 = vadd.f32 %v5284_v26, %v4140_v40  ;;  %v4196_v47 = vpop.f32.mrb[101].mxu1 }
 0x2ba   : > { %v4242_v3 = vmax.f32 %v4234_v60, 0.0  ;;  %v4197_v58 = vadd.f32 %v4196_v47, %v4132_v12  ;;  %v5285_v17 = vpop.f32.mrb[102].mxu1  ;;  %v4712_v12 = vld [vmem:[%s6756_s6] ss:$0 sm:$0xff] }
 0x2bb   : > { %v4250_v48 = vpack.c.bf16 %v4244_v44, %v4243_v43  ;;  %v4224_v27 = vmul.f32 %v4702_v20, %v4205_v46  ;;  %v4208_v15 = vadd.f32 %v5285_v17, %v4143_v51  ;;  %v4199_v41 = vpop.f32.mrb[103].mxu1 }
 0x2bc   : > { %v4222_v37 = vmul.f32 %v4702_v20, %v4197_v58  ;;  %v4200_v50 = vadd.f32 %v4199_v41, %v4135_v11  ;;  %v4249_v52 = vpack.c.bf16 %v4242_v3, %v4241_v13 }
 0x2bd   : > { %v4239_v30 = vadd.f32 %v4703_v21, %v4224_v27  ;;  %v4225_v22 = vmul.f32 %v4702_v20, %v4208_v15 }
 0x2be   : > { %v4237_v62 = vadd.f32 %v4703_v21, %v4222_v37  ;;  %v4223_v54 = vmul.f32 %v4702_v20, %v4200_v50  ;;  %5302 = vmatprep.mubr.bf16.mxu0 %v4249_v52 }
 0x2bf   : > { %v4240_v53 = vadd.f32 %v4703_v21, %v4225_v22  ;;  %5303 = vmatmul.mubr.bf16.vlgmr.msra.gmra.mrb[112].mxu0 %v4250_v48  ;;  %v4247_v5 = vmax.f32 %v4239_v30, 0.0 }
 0x2c0   : > { %v4238_v1 = vadd.f32 %v4703_v21, %v4223_v54  ;;  %v4245_v42 = vmax.f32 %v4237_v62, 0.0 }
 0x2c1   : > { %v4248_v55 = vmax.f32 %v4240_v53, 0.0 }
 0x2c2   : > { %v4246_v61 = vmax.f32 %v4238_v1, 0.0 }
 0x2c3   : > { %v4252_v8 = vpack.c.bf16 %v4248_v55, %v4247_v5 }
 0x2c4   : > { %v4251_v0 = vpack.c.bf16 %v4246_v61, %v4245_v42 }
 0x2c6   : > { %5306 = vmatprep.mubr.bf16.mxu1 %v4251_v0 }
 0x2c7   : > { %5307 = vmatmul.mubr.bf16.vlgmr.msra.gmra.mrb[104].mxu1 %v4252_v8 }
 0x392   : > { %v5304_v57 = vpop.f32.mrb[112].mxu0 }
 0x393   : > { %v4391_v11 = vmul.f32 %v5304_v57, %v4712_v12  ;;  %v4351_v14 = vpop.f32.mrb[113].mxu0 }
 0x394   : > { %v4389_v19 = vmul.f32 %v4712_v12, %v4351_v14  ;;  %v5305_v36 = vpop.f32.mrb[114].mxu0 }
 0x395   : > { %v4406_v4 = vadd.f32 %v4713_v16, %v4391_v11  ;;  %v4392_v32 = vmul.f32 %v5305_v36, %v4712_v12  ;;  %v4354_v39 = vpop.f32.mrb[115].mxu0 }
 0x396   : > { %v4404_v49 = vadd.f32 %v4713_v16, %v4389_v19  ;;  %v4390_v18 = vmul.f32 %v4712_v12, %v4354_v39 }
 0x397   : > { %4414 = vst [vmem:[%s359_s26 + $0x10] sm:$0xff] %v4406_v4  ;;  %v4407_v63 = vadd.f32 %v4713_v16, %v4392_v32 }
 0x398   : > { %4412 = vst [vmem:[%s359_s26] sm:$0xff] %v4404_v49  ;;  %v4405_v35 = vadd.f32 %v4713_v16, %v4390_v18 }
 0x399   : > { %4415 = vst [vmem:[%s359_s26 + $0x18] sm:$0xff] %v4407_v63 }
 0x39a   : > { %4413 = vst [vmem:[%s359_s26 + $0x8] sm:$0xff] %v4405_v35  ;;  %v5308_v9 = vpop.f32.mrb[104].mxu1 }
 0x39b   : > { %v4395_v56 = vmul.f32 %v5308_v9, %v4712_v12  ;;  %v4367_v40 = vpop.f32.mrb[105].mxu1 }
 0x39c   : > { %v4393_v45 = vmul.f32 %v4712_v12, %v4367_v40  ;;  %v5309_v20 = vpop.f32.mrb[106].mxu1 }
 0x39d   : > { %v4410_v23 = vadd.f32 %v4713_v16, %v4395_v56  ;;  %v4396_v10 = vmul.f32 %v5309_v20, %v4712_v12  ;;  %v4370_v51 = vpop.f32.mrb[107].mxu1 }
 0x39e   : > { %v4408_v21 = vadd.f32 %v4713_v16, %v4393_v45  ;;  %v4394_v25 = vmul.f32 %v4712_v12, %v4370_v51 }
 0x39f   : > { %4418 = vst [vmem:[%s359_s26 + $0x30] sm:$0xff] %v4410_v23  ;;  %v4411_v29 = vadd.f32 %v4713_v16, %v4396_v10 }
 0x3a0   : > { %4416 = vst [vmem:[%s359_s26 + $0x20] sm:$0xff] %v4408_v21  ;;  %v4409_v24 = vadd.f32 %v4713_v16, %v4394_v25 }
 0x3a1   : > { %4419 = vst [vmem:[%s359_s26 + $0x38] sm:$0xff] %v4411_v29 }
 0x3a2   : > { %4417 = vst [vmem:[%s359_s26 + $0x28] sm:$0xff] %v4409_v24 }
 0x3a3 PF: > { %s20_s13 = sadd.s32 1, %s5567_s13  }
 0x3a4   : > { %p17_p4 = scmp.ge.s32.totalorder %s20_s13, 4  }
 0x3a6   :  { %19 = sbr.rel (!%p17_p4) target bundleno = 1 (0x1), region = 94 }

</bundles_post_ra>
